<compile_context>
chip_gen: v7x
topology: tpu7x:2x2x1
jax: 0.10.0
libtpu: 0.0.40
codegen_flags: <defaults>
</compile_context>

<pallas_src>
from functools import partial

import numpy as np
import jax
import jax.numpy as jnp
from jax.experimental import pallas as pl
from jax.experimental.pallas import tpu as pltpu

NEG_INF = float("-inf")


def _masked_logsumexp(x, axis):
    """logsumexp matching the @jit.script `logsumexp` in the reference (-inf safe)."""
    m = jnp.max(x, axis=axis, keepdims=True)
    is_ninf = m == NEG_INF
    m_safe = jnp.where(is_ninf, 0.0, m)
    s = jnp.sum(jnp.exp(x - m_safe), axis=axis, keepdims=True)
    s = jnp.where(is_ninf, 1.0, s)
    return jnp.log(s) + jnp.where(is_ninf, NEG_INF, m)


def _moca_fused_kernel(pygx_ref, init_ref, haz_ref, nll_ref, final_ref, prgx_scratch):
    tc = pl.program_id(1)
    n_tc = pl.num_programs(1)

    bt, r = prgx_scratch.shape
    tt = nll_ref.shape[1]

    # Initialize the belief carry once per batch block.
    @pl.when(tc == 0)
    def _():
        prgx_scratch[...] = jnp.broadcast_to(init_ref[...], (bt, r))

    # Loop-invariant tiles, computed once per grid step (amortized over Tt steps):
    haz_b = jnp.broadcast_to(haz_ref[...], (bt, r))                 # hazard row
    col = jax.lax.broadcasted_iota(jnp.int32, (bt, r), 1)
    is_first = col == 0
    is_last = col == r - 1

    log_prgx = prgx_scratch[...]                                    # (bt, R) belief

    # Fully unrolled (static) time loop over this grid step's Tt timesteps.
    for j in range(tt):
        # 128-lane-aligned static slice of the (bt, Tt*R) input slab -> (bt, R)
        log_pygx = pygx_ref[:, j * r:(j + 1) * r]

        # brgy = log p(y, r | x, data)
        brgy = log_pygx + log_prgx

        # Full-row logsumexp (-inf safe, matches the reference's masked version).
        m = jnp.max(brgy, axis=1, keepdims=True)
        is_ninf = m == NEG_INF
        m_safe = jnp.where(is_ninf, 0.0, m)
        s = jnp.sum(jnp.exp(brgy - m_safe), axis=1, keepdims=True)
        lse = jnp.log(jnp.where(is_ninf, 1.0, s)) + m               # (bt, 1)

        # nll[:, tc*Tt + j] = -lse  (single narrow column store per step)
        nll_ref[:, j:j + 1] = -lse

        # Tail logsumexp over the last two bins with a tail-LOCAL max
        # (numerically matches logsumexp(normalized[:, -2:]) in the reference).
        b_tail = brgy[:, r - 2:]                                    # (bt, 2)
        mt = jnp.max(b_tail, axis=1, keepdims=True)
        mt_ninf = mt == NEG_INF
        mt_safe = jnp.where(mt_ninf, 0.0, mt)
        st = jnp.sum(jnp.exp(b_tail - mt_safe), axis=1, keepdims=True)
        tail = jnp.log(jnp.where(mt_ninf, 1.0, st)) + mt - lse      # (bt, 1)

        # pushed = cat(0, normalized[:, :-2], tail); normalized = brgy - lse and
        # lse is per-row, so roll(normalized) == roll(brgy) - lse (no extra tile).
        shifted = pltpu.roll(brgy, shift=1, axis=1) - lse
        pushed = jnp.where(is_first, 0.0, shifted)
        pushed = jnp.where(is_last, tail, pushed)
        log_prgx = pushed + haz_b

    prgx_scratch[...] = log_prgx

    @pl.when(tc == n_tc - 1)
    def _():
        final_ref[...] = log_prgx


@partial(jax.jit, static_argnames=("batch_tile", "time_tile"))
def moca_filter(log_pygx_seq, init_log_prgx, log_hazard_term, *,
                batch_tile=128, time_tile=8):
    """Fused changepoint filtering over a full horizon.

    log_pygx_seq:    (B, T, MRL) per-run-length log predictive likelihoods
                     (stand-in for meta_learning_alg.log_predictive_prob output).
    init_log_prgx:   (1, MRL) initial run-length belief (log).
    log_hazard_term: (1, MRL) hazard log term.
    Returns (nll [B, T], final_log_prgx [B, MRL]).
    """
    b, t_len, r = log_pygx_seq.shape
    bt = min(batch_tile, b)          # keep >= 2 batch blocks for v7x's 2 TCs
    tt = min(time_tile, t_len)
    assert b % bt == 0 and bt % 8 == 0, "batch must tile into multiples of 8"
    assert r % 128 == 0, "max_run_length must be a multiple of 128 (lane-aligned)"
    assert t_len % tt == 0, "horizon must be divisible by time_tile"
    assert tt == t_len or tt % 128 == 0, \
        "time_tile must equal T or be a multiple of 128 (lane-aligned NLL block)"

    # Free row-major reshape (no HBM transpose pass): (B, T, R) -> (B, T*R).
    pygx2d = log_pygx_seq.astype(jnp.float32).reshape(b, t_len * r)
    init = init_log_prgx.astype(jnp.float32).reshape(1, r)
    haz = log_hazard_term.astype(jnp.float32).reshape(1, r)

    nll, final_prgx = pl.pallas_call(
        _moca_fused_kernel,
        out_shape=(
            jax.ShapeDtypeStruct((b, t_len), jnp.float32),
            jax.ShapeDtypeStruct((b, r), jnp.float32),
        ),
        grid_spec=pltpu.PrefetchScalarGridSpec(
            num_scalar_prefetch=0,
            grid=(b // bt, t_len // tt),
            in_specs=[
                pl.BlockSpec((bt, tt * r), lambda i, tc: (i, tc)),   # log_pygx slab
                pl.BlockSpec((1, r), lambda i, tc: (0, 0)),          # initial belief row
                pl.BlockSpec((1, r), lambda i, tc: (0, 0)),          # hazard row
            ],
            out_specs=(
                pl.BlockSpec((bt, tt), lambda i, tc: (i, tc)),       # nll (T-blocked)
                pl.BlockSpec((bt, r), lambda i, tc: (i, 0)),         # final belief
            ),
            scratch_shapes=[pltpu.VMEM((bt, r), jnp.float32)],       # belief carry
        ),
        compiler_params=pltpu.CompilerParams(
            dimension_semantics=("parallel", "arbitrary")),
    )(pygx2d, init, haz)
    return nll, final_prgx


# ---------------- pure-JAX reference (mirrors the PyTorch code) ----------------
def moca_step_ref(log_pygx, log_prgx, log_hazard_term):
    brgy = log_pygx + log_prgx
    nll = -jax.scipy.special.logsumexp(brgy, axis=1)
    normalized = jax.nn.log_softmax(brgy, axis=1)
    b = brgy.shape[0]
    zeros = jnp.zeros((b, 1), jnp.float32)
    second = normalized[:, :-2]
    third = _masked_logsumexp(normalized[:, -2:], axis=1)
    pushed = jnp.concatenate([zeros, second, third], axis=1) + log_hazard_term
    return nll, pushed


# ---------------- deterministic parameter construction (Moca.__init__) --------
def make_moca_params(hazard=0.05, mrl=128):
    hazard_logit = jnp.log(jnp.array([hazard / (1.0 - hazard)], jnp.float32))
    log_hazard = jnp.log(jax.nn.sigmoid(hazard_logit))            # log p(switch)
    log_1m_hazard = jnp.log(1.0 - jax.nn.sigmoid(hazard_logit))   # log(1 - p(switch))
    # init_log_prgx = log(cat(ones(1,1), zeros(1, mrl-1))) = [0, -inf, ..., -inf]
    init_log_prgx = jnp.log(
        jnp.concatenate([jnp.ones((1, 1)), jnp.zeros((1, mrl - 1))], axis=1)
    ).astype(jnp.float32)
    # log_hazard_term = cat(log_hazard, log_1m_hazard * (mrl-1))
    log_hazard_term = jnp.concatenate(
        [log_hazard.reshape(1, 1),
         jnp.tile(log_1m_hazard.reshape(1, 1), (1, mrl - 1))], axis=1
    ).astype(jnp.float32)
    return init_log_prgx, log_hazard_term


if __name__ == "__main__":
    B, T, MRL = 256, 8, 128   # batch, horizon, max_run_length (lane-aligned)
    key = jax.random.PRNGKey(0)

    # Synthetic per-run-length log-predictive likelihoods, shape (B, T, MRL).
    log_pygx_seq = jax.random.normal(key, (B, T, MRL), jnp.float32) - 1.0

    init_log_prgx, log_hazard_term = make_moca_params(hazard=0.05, mrl=MRL)

    # Fused kernel: single pallas_call over the whole horizon.
    nll, final_prgx = jax.block_until_ready(
        moca_filter(log_pygx_seq, init_log_prgx, log_hazard_term,
                    batch_tile=128, time_tile=8))

    # Pure-JAX recursive reference.
    log_prgx_ref = jnp.broadcast_to(init_log_prgx, (B, MRL)).astype(jnp.float32)
    nlls_ref = []
    for t in range(T):
        nll_t, log_prgx_ref = moca_step_ref(log_pygx_seq[:, t], log_prgx_ref,
                                            log_hazard_term)
        nlls_ref.append(nll_t)
    nll_ref = jnp.stack(nlls_ref, axis=1)

    assert np.allclose(np.asarray(nll), np.asarray(nll_ref), atol=1e-4, rtol=1e-4)
    assert np.allclose(np.asarray(final_prgx), np.asarray(log_prgx_ref),
                       atol=1e-4, rtol=1e-4)
    print("KERNEL_OK")
</pallas_src>

<mosaic_0001>
module attributes {stable_mosaic.version = 11 : i64} {
  func.func @_moca_fused_kernel(%arg0: i32, %arg1: i32, %arg2: memref<128x1024xf32, #tpu.memory_space<vmem>>, %arg3: memref<1x128xf32, #tpu.memory_space<vmem>>, %arg4: memref<1x128xf32, #tpu.memory_space<vmem>>, %arg5: memref<128x8xf32, #tpu.memory_space<vmem>>, %arg6: memref<128x128xf32, #tpu.memory_space<vmem>>, %arg7: memref<128x128xf32, #tpu.memory_space<vmem>>) attributes {dimension_semantics = [#tpu.dimension_semantics<parallel>, #tpu.dimension_semantics<arbitrary>], iteration_bounds = array<i64: 2, 1>, scalar_prefetch = 0 : i64, scratch_operands = 1 : i64, tpu.core_type = #tpu.core_type<tc>, window_params = [{transform_indices = @transform_0, window_bounds = array<i64: 128, 1024>}, {pipeline_mode = #tpu.pipeline_mode<synchronous>, transform_indices = @transform_1, window_bounds = array<i64: 1, 128>}, {pipeline_mode = #tpu.pipeline_mode<synchronous>, transform_indices = @transform_2, window_bounds = array<i64: 1, 128>}, {transform_indices = @transform_3, window_bounds = array<i64: 128, 8>}, {transform_indices = @transform_4, window_bounds = array<i64: 128, 128>}]} {
    %c0_i32 = arith.constant 0 : i32
    %0 = arith.cmpi eq, %arg1, %c0_i32 : i32
    %1 = arith.extui %0 : i1 to i32
    %c0_i32_0 = arith.constant 0 : i32
    %2 = arith.cmpi ne, %1, %c0_i32_0 : i32
    scf.if %2 {
      %c0_129 = arith.constant 0 : index
      %c0_130 = arith.constant 0 : index
      %384 = vector.load %arg3[%c0_129, %c0_130] : memref<1x128xf32, #tpu.memory_space<vmem>>, vector<1x128xf32>
      %385 = vector.shape_cast %384 : vector<1x128xf32> to vector<1x128xf32>
      %386 = vector.broadcast %385 : vector<1x128xf32> to vector<128x128xf32>
      %c0_131 = arith.constant 0 : index
      %c0_132 = arith.constant 0 : index
      %387 = vector.load %arg7[%c0_131, %c0_132] : memref<128x128xf32, #tpu.memory_space<vmem>>, vector<128x128xf32>
      tpu.vector_store %arg7[%c0_131, %c0_132], %386 {strides = array<i32>} : memref<128x128xf32, #tpu.memory_space<vmem>>, vector<128x128xf32>,
    } else {
    }
    %c0 = arith.constant 0 : index
    %c0_1 = arith.constant 0 : index
    %3 = vector.load %arg4[%c0, %c0_1] : memref<1x128xf32, #tpu.memory_space<vmem>>, vector<1x128xf32>
    %4 = vector.shape_cast %3 : vector<1x128xf32> to vector<1x128xf32>
    %5 = vector.broadcast %4 : vector<1x128xf32> to vector<128x128xf32>
    %6 = tpu.iota {dimensions = array<i32: 1>} : vector<128x128xi32>
    %c0_i32_2 = arith.constant 0 : i32
    %7 = vector.broadcast %c0_i32_2 : i32 to vector<128x128xi32>
    %8 = arith.cmpi eq, %6, %7 : vector<128x128xi32>
    %c127_i32 = arith.constant 127 : i32
    %9 = vector.broadcast %c127_i32 : i32 to vector<128x128xi32>
    %10 = arith.cmpi eq, %6, %9 : vector<128x128xi32>
    %c0_3 = arith.constant 0 : index
    %c0_4 = arith.constant 0 : index
    %11 = vector.load %arg7[%c0_3, %c0_4] : memref<128x128xf32, #tpu.memory_space<vmem>>, vector<128x128xf32>
    %c0_5 = arith.constant 0 : index
    %c0_6 = arith.constant 0 : index
    %12 = vector.load %arg2[%c0_5, %c0_6] : memref<128x1024xf32, #tpu.memory_space<vmem>>, vector<128x128xf32>
    %13 = arith.addf %12, %11 : vector<128x128xf32>
    %cst = arith.constant dense<0xFF800000> : vector<128xf32>
    %14 = vector.multi_reduction <maximumf>, %13, %cst [1] : vector<128x128xf32> to vector<128xf32>
    %15 = vector.shape_cast %14 : vector<128xf32> to vector<128x1xf32>
    %cst_7 = arith.constant 0xFF800000 : f32
    %16 = vector.broadcast %cst_7 : f32 to vector<128x1xf32>
    %17 = arith.cmpf oeq, %15, %16 : vector<128x1xf32>
    %cst_8 = arith.constant 0.000000e+00 : f32
    %18 = vector.broadcast %cst_8 : f32 to vector<128x1xf32>
    %19 = arith.select %17, %18, %15 : vector<128x1xi1>, vector<128x1xf32>
    %20 = vector.broadcast %19 : vector<128x1xf32> to vector<128x128xf32>
    %21 = arith.subf %13, %20 : vector<128x128xf32>
    %22 = math.exp %21 : vector<128x128xf32>
    %cst_9 = arith.constant dense<0.000000e+00> : vector<128xf32>
    %23 = vector.multi_reduction <add>, %22, %cst_9 [1] : vector<128x128xf32> to vector<128xf32>
    %24 = vector.shape_cast %23 : vector<128xf32> to vector<128x1xf32>
    %cst_10 = arith.constant 1.000000e+00 : f32
    %25 = vector.broadcast %cst_10 : f32 to vector<128x1xf32>
    %26 = arith.select %17, %25, %24 : vector<128x1xi1>, vector<128x1xf32>
    %27 = math.log %26 : vector<128x1xf32>
    %28 = arith.addf %27, %15 : vector<128x1xf32>
    %cst_11 = arith.constant 0.000000e+00 : f32
    %29 = vector.broadcast %cst_11 : f32 to vector<128x1xf32>
    %30 = arith.subf %29, %28 : vector<128x1xf32>
    %c0_12 = arith.constant 0 : index
    %c0_13 = arith.constant 0 : index
    %31 = vector.load %arg5[%c0_12, %c0_13] : memref<128x8xf32, #tpu.memory_space<vmem>>, vector<128x1xf32>
    tpu.vector_store %arg5[%c0_12, %c0_13], %30 {strides = array<i32>} : memref<128x8xf32, #tpu.memory_space<vmem>>, vector<128x1xf32>,
    %32 = vector.extract_strided_slice %13 {offsets = [0, 126], sizes = [128, 2], strides = [1, 1]} : vector<128x128xf32> to vector<128x2xf32>
    %cst_14 = arith.constant dense<0xFF800000> : vector<128xf32>
    %33 = vector.multi_reduction <maximumf>, %32, %cst_14 [1] : vector<128x2xf32> to vector<128xf32>
    %34 = vector.shape_cast %33 : vector<128xf32> to vector<128x1xf32>
    %cst_15 = arith.constant 0xFF800000 : f32
    %35 = vector.broadcast %cst_15 : f32 to vector<128x1xf32>
    %36 = arith.cmpf oeq, %34, %35 : vector<128x1xf32>
    %cst_16 = arith.constant 0.000000e+00 : f32
    %37 = vector.broadcast %cst_16 : f32 to vector<128x1xf32>
    %38 = arith.select %36, %37, %34 : vector<128x1xi1>, vector<128x1xf32>
    %39 = vector.broadcast %38 : vector<128x1xf32> to vector<128x2xf32>
    %40 = arith.subf %32, %39 : vector<128x2xf32>
    %41 = math.exp %40 : vector<128x2xf32>
    %cst_17 = arith.constant dense<0.000000e+00> : vector<128xf32>
    %42 = vector.multi_reduction <add>, %41, %cst_17 [1] : vector<128x2xf32> to vector<128xf32>
    %43 = vector.shape_cast %42 : vector<128xf32> to vector<128x1xf32>
    %cst_18 = arith.constant 1.000000e+00 : f32
    %44 = vector.broadcast %cst_18 : f32 to vector<128x1xf32>
    %45 = arith.select %36, %44, %43 : vector<128x1xi1>, vector<128x1xf32>
    %46 = math.log %45 : vector<128x1xf32>
    %47 = arith.addf %46, %34 : vector<128x1xf32>
    %48 = arith.subf %47, %28 : vector<128x1xf32>
    %c1_i32 = arith.constant 1 : i32
    %49 = tpu.dynamic_rotate %13 by %c1_i32 dim 1 : vector<128x128xf32>, i32 -> vector<128x128xf32>
    %50 = vector.broadcast %28 : vector<128x1xf32> to vector<128x128xf32>
    %51 = arith.subf %49, %50 : vector<128x128xf32>
    %cst_19 = arith.constant 0.000000e+00 : f32
    %52 = vector.broadcast %cst_19 : f32 to vector<128x128xf32>
    %53 = arith.select %8, %52, %51 : vector<128x128xi1>, vector<128x128xf32>
    %54 = vector.shape_cast %48 : vector<128x1xf32> to vector<128x1xf32>
    %55 = vector.broadcast %54 : vector<128x1xf32> to vector<128x128xf32>
    %56 = arith.select %10, %55, %53 : vector<128x128xi1>, vector<128x128xf32>
    %57 = arith.addf %56, %5 : vector<128x128xf32>
    %c0_20 = arith.constant 0 : index
    %c128 = arith.constant 128 : index
    %58 = vector.load %arg2[%c0_20, %c128] : memref<128x1024xf32, #tpu.memory_space<vmem>>, vector<128x128xf32>
    %59 = arith.addf %58, %57 : vector<128x128xf32>
    %cst_21 = arith.constant dense<0xFF800000> : vector<128xf32>
    %60 = vector.multi_reduction <maximumf>, %59, %cst_21 [1] : vector<128x128xf32> to vector<128xf32>
    %61 = vector.shape_cast %60 : vector<128xf32> to vector<128x1xf32>
    %cst_22 = arith.constant 0xFF800000 : f32
    %62 = vector.broadcast %cst_22 : f32 to vector<128x1xf32>
    %63 = arith.cmpf oeq, %61, %62 : vector<128x1xf32>
    %cst_23 = arith.constant 0.000000e+00 : f32
    %64 = vector.broadcast %cst_23 : f32 to vector<128x1xf32>
    %65 = arith.select %63, %64, %61 : vector<128x1xi1>, vector<128x1xf32>
    %66 = vector.broadcast %65 : vector<128x1xf32> to vector<128x128xf32>
    %67 = arith.subf %59, %66 : vector<128x128xf32>
    %68 = math.exp %67 : vector<128x128xf32>
    %cst_24 = arith.constant dense<0.000000e+00> : vector<128xf32>
    %69 = vector.multi_reduction <add>, %68, %cst_24 [1] : vector<128x128xf32> to vector<128xf32>
    %70 = vector.shape_cast %69 : vector<128xf32> to vector<128x1xf32>
    %cst_25 = arith.constant 1.000000e+00 : f32
    %71 = vector.broadcast %cst_25 : f32 to vector<128x1xf32>
    %72 = arith.select %63, %71, %70 : vector<128x1xi1>, vector<128x1xf32>
    %73 = math.log %72 : vector<128x1xf32>
    %74 = arith.addf %73, %61 : vector<128x1xf32>
    %cst_26 = arith.constant 0.000000e+00 : f32
    %75 = vector.broadcast %cst_26 : f32 to vector<128x1xf32>
    %76 = arith.subf %75, %74 : vector<128x1xf32>
    %c0_27 = arith.constant 0 : index
    %c1 = arith.constant 1 : index
    %77 = vector.load %arg5[%c0_27, %c1] : memref<128x8xf32, #tpu.memory_space<vmem>>, vector<128x1xf32>
    tpu.vector_store %arg5[%c0_27, %c1], %76 {strides = array<i32>} : memref<128x8xf32, #tpu.memory_space<vmem>>, vector<128x1xf32>,
    %78 = vector.extract_strided_slice %59 {offsets = [0, 126], sizes = [128, 2], strides = [1, 1]} : vector<128x128xf32> to vector<128x2xf32>
    %cst_28 = arith.constant dense<0xFF800000> : vector<128xf32>
    %79 = vector.multi_reduction <maximumf>, %78, %cst_28 [1] : vector<128x2xf32> to vector<128xf32>
    %80 = vector.shape_cast %79 : vector<128xf32> to vector<128x1xf32>
    %cst_29 = arith.constant 0xFF800000 : f32
    %81 = vector.broadcast %cst_29 : f32 to vector<128x1xf32>
    %82 = arith.cmpf oeq, %80, %81 : vector<128x1xf32>
    %cst_30 = arith.constant 0.000000e+00 : f32
    %83 = vector.broadcast %cst_30 : f32 to vector<128x1xf32>
    %84 = arith.select %82, %83, %80 : vector<128x1xi1>, vector<128x1xf32>
    %85 = vector.broadcast %84 : vector<128x1xf32> to vector<128x2xf32>
    %86 = arith.subf %78, %85 : vector<128x2xf32>
    %87 = math.exp %86 : vector<128x2xf32>
    %cst_31 = arith.constant dense<0.000000e+00> : vector<128xf32>
    %88 = vector.multi_reduction <add>, %87, %cst_31 [1] : vector<128x2xf32> to vector<128xf32>
    %89 = vector.shape_cast %88 : vector<128xf32> to vector<128x1xf32>
    %cst_32 = arith.constant 1.000000e+00 : f32
    %90 = vector.broadcast %cst_32 : f32 to vector<128x1xf32>
    %91 = arith.select %82, %90, %89 : vector<128x1xi1>, vector<128x1xf32>
    %92 = math.log %91 : vector<128x1xf32>
    %93 = arith.addf %92, %80 : vector<128x1xf32>
    %94 = arith.subf %93, %74 : vector<128x1xf32>
    %c1_i32_33 = arith.constant 1 : i32
    %95 = tpu.dynamic_rotate %59 by %c1_i32_33 dim 1 : vector<128x128xf32>, i32 -> vector<128x128xf32>
    %96 = vector.broadcast %74 : vector<128x1xf32> to vector<128x128xf32>
    %97 = arith.subf %95, %96 : vector<128x128xf32>
    %cst_34 = arith.constant 0.000000e+00 : f32
    %98 = vector.broadcast %cst_34 : f32 to vector<128x128xf32>
    %99 = arith.select %8, %98, %97 : vector<128x128xi1>, vector<128x128xf32>
    %100 = vector.shape_cast %94 : vector<128x1xf32> to vector<128x1xf32>
    %101 = vector.broadcast %100 : vector<128x1xf32> to vector<128x128xf32>
    %102 = arith.select %10, %101, %99 : vector<128x128xi1>, vector<128x128xf32>
    %103 = arith.addf %102, %5 : vector<128x128xf32>
    %c0_35 = arith.constant 0 : index
    %c256 = arith.constant 256 : index
    %104 = vector.load %arg2[%c0_35, %c256] : memref<128x1024xf32, #tpu.memory_space<vmem>>, vector<128x128xf32>
    %105 = arith.addf %104, %103 : vector<128x128xf32>
    %cst_36 = arith.constant dense<0xFF800000> : vector<128xf32>
    %106 = vector.multi_reduction <maximumf>, %105, %cst_36 [1] : vector<128x128xf32> to vector<128xf32>
    %107 = vector.shape_cast %106 : vector<128xf32> to vector<128x1xf32>
    %cst_37 = arith.constant 0xFF800000 : f32
    %108 = vector.broadcast %cst_37 : f32 to vector<128x1xf32>
    %109 = arith.cmpf oeq, %107, %108 : vector<128x1xf32>
    %cst_38 = arith.constant 0.000000e+00 : f32
    %110 = vector.broadcast %cst_38 : f32 to vector<128x1xf32>
    %111 = arith.select %109, %110, %107 : vector<128x1xi1>, vector<128x1xf32>
    %112 = vector.broadcast %111 : vector<128x1xf32> to vector<128x128xf32>
    %113 = arith.subf %105, %112 : vector<128x128xf32>
    %114 = math.exp %113 : vector<128x128xf32>
    %cst_39 = arith.constant dense<0.000000e+00> : vector<128xf32>
    %115 = vector.multi_reduction <add>, %114, %cst_39 [1] : vector<128x128xf32> to vector<128xf32>
    %116 = vector.shape_cast %115 : vector<128xf32> to vector<128x1xf32>
    %cst_40 = arith.constant 1.000000e+00 : f32
    %117 = vector.broadcast %cst_40 : f32 to vector<128x1xf32>
    %118 = arith.select %109, %117, %116 : vector<128x1xi1>, vector<128x1xf32>
    %119 = math.log %118 : vector<128x1xf32>
    %120 = arith.addf %119, %107 : vector<128x1xf32>
    %cst_41 = arith.constant 0.000000e+00 : f32
    %121 = vector.broadcast %cst_41 : f32 to vector<128x1xf32>
    %122 = arith.subf %121, %120 : vector<128x1xf32>
    %c0_42 = arith.constant 0 : index
    %c2 = arith.constant 2 : index
    %123 = vector.load %arg5[%c0_42, %c2] : memref<128x8xf32, #tpu.memory_space<vmem>>, vector<128x1xf32>
    tpu.vector_store %arg5[%c0_42, %c2], %122 {strides = array<i32>} : memref<128x8xf32, #tpu.memory_space<vmem>>, vector<128x1xf32>,
    %124 = vector.extract_strided_slice %105 {offsets = [0, 126], sizes = [128, 2], strides = [1, 1]} : vector<128x128xf32> to vector<128x2xf32>
    %cst_43 = arith.constant dense<0xFF800000> : vector<128xf32>
    %125 = vector.multi_reduction <maximumf>, %124, %cst_43 [1] : vector<128x2xf32> to vector<128xf32>
    %126 = vector.shape_cast %125 : vector<128xf32> to vector<128x1xf32>
    %cst_44 = arith.constant 0xFF800000 : f32
    %127 = vector.broadcast %cst_44 : f32 to vector<128x1xf32>
    %128 = arith.cmpf oeq, %126, %127 : vector<128x1xf32>
    %cst_45 = arith.constant 0.000000e+00 : f32
    %129 = vector.broadcast %cst_45 : f32 to vector<128x1xf32>
    %130 = arith.select %128, %129, %126 : vector<128x1xi1>, vector<128x1xf32>
    %131 = vector.broadcast %130 : vector<128x1xf32> to vector<128x2xf32>
    %132 = arith.subf %124, %131 : vector<128x2xf32>
    %133 = math.exp %132 : vector<128x2xf32>
    %cst_46 = arith.constant dense<0.000000e+00> : vector<128xf32>
    %134 = vector.multi_reduction <add>, %133, %cst_46 [1] : vector<128x2xf32> to vector<128xf32>
    %135 = vector.shape_cast %134 : vector<128xf32> to vector<128x1xf32>
    %cst_47 = arith.constant 1.000000e+00 : f32
    %136 = vector.broadcast %cst_47 : f32 to vector<128x1xf32>
    %137 = arith.select %128, %136, %135 : vector<128x1xi1>, vector<128x1xf32>
    %138 = math.log %137 : vector<128x1xf32>
    %139 = arith.addf %138, %126 : vector<128x1xf32>
    %140 = arith.subf %139, %120 : vector<128x1xf32>
    %c1_i32_48 = arith.constant 1 : i32
    %141 = tpu.dynamic_rotate %105 by %c1_i32_48 dim 1 : vector<128x128xf32>, i32 -> vector<128x128xf32>
    %142 = vector.broadcast %120 : vector<128x1xf32> to vector<128x128xf32>
    %143 = arith.subf %141, %142 : vector<128x128xf32>
    %cst_49 = arith.constant 0.000000e+00 : f32
    %144 = vector.broadcast %cst_49 : f32 to vector<128x128xf32>
    %145 = arith.select %8, %144, %143 : vector<128x128xi1>, vector<128x128xf32>
    %146 = vector.shape_cast %140 : vector<128x1xf32> to vector<128x1xf32>
    %147 = vector.broadcast %146 : vector<128x1xf32> to vector<128x128xf32>
    %148 = arith.select %10, %147, %145 : vector<128x128xi1>, vector<128x128xf32>
    %149 = arith.addf %148, %5 : vector<128x128xf32>
    %c0_50 = arith.constant 0 : index
    %c384 = arith.constant 384 : index
    %150 = vector.load %arg2[%c0_50, %c384] : memref<128x1024xf32, #tpu.memory_space<vmem>>, vector<128x128xf32>
    %151 = arith.addf %150, %149 : vector<128x128xf32>
    %cst_51 = arith.constant dense<0xFF800000> : vector<128xf32>
    %152 = vector.multi_reduction <maximumf>, %151, %cst_51 [1] : vector<128x128xf32> to vector<128xf32>
    %153 = vector.shape_cast %152 : vector<128xf32> to vector<128x1xf32>
    %cst_52 = arith.constant 0xFF800000 : f32
    %154 = vector.broadcast %cst_52 : f32 to vector<128x1xf32>
    %155 = arith.cmpf oeq, %153, %154 : vector<128x1xf32>
    %cst_53 = arith.constant 0.000000e+00 : f32
    %156 = vector.broadcast %cst_53 : f32 to vector<128x1xf32>
    %157 = arith.select %155, %156, %153 : vector<128x1xi1>, vector<128x1xf32>
    %158 = vector.broadcast %157 : vector<128x1xf32> to vector<128x128xf32>
    %159 = arith.subf %151, %158 : vector<128x128xf32>
    %160 = math.exp %159 : vector<128x128xf32>
    %cst_54 = arith.constant dense<0.000000e+00> : vector<128xf32>
    %161 = vector.multi_reduction <add>, %160, %cst_54 [1] : vector<128x128xf32> to vector<128xf32>
    %162 = vector.shape_cast %161 : vector<128xf32> to vector<128x1xf32>
    %cst_55 = arith.constant 1.000000e+00 : f32
    %163 = vector.broadcast %cst_55 : f32 to vector<128x1xf32>
    %164 = arith.select %155, %163, %162 : vector<128x1xi1>, vector<128x1xf32>
    %165 = math.log %164 : vector<128x1xf32>
    %166 = arith.addf %165, %153 : vector<128x1xf32>
    %cst_56 = arith.constant 0.000000e+00 : f32
    %167 = vector.broadcast %cst_56 : f32 to vector<128x1xf32>
    %168 = arith.subf %167, %166 : vector<128x1xf32>
    %c0_57 = arith.constant 0 : index
    %c3 = arith.constant 3 : index
    %169 = vector.load %arg5[%c0_57, %c3] : memref<128x8xf32, #tpu.memory_space<vmem>>, vector<128x1xf32>
    tpu.vector_store %arg5[%c0_57, %c3], %168 {strides = array<i32>} : memref<128x8xf32, #tpu.memory_space<vmem>>, vector<128x1xf32>,
    %170 = vector.extract_strided_slice %151 {offsets = [0, 126], sizes = [128, 2], strides = [1, 1]} : vector<128x128xf32> to vector<128x2xf32>
    %cst_58 = arith.constant dense<0xFF800000> : vector<128xf32>
    %171 = vector.multi_reduction <maximumf>, %170, %cst_58 [1] : vector<128x2xf32> to vector<128xf32>
    %172 = vector.shape_cast %171 : vector<128xf32> to vector<128x1xf32>
    %cst_59 = arith.constant 0xFF800000 : f32
    %173 = vector.broadcast %cst_59 : f32 to vector<128x1xf32>
    %174 = arith.cmpf oeq, %172, %173 : vector<128x1xf32>
    %cst_60 = arith.constant 0.000000e+00 : f32
    %175 = vector.broadcast %cst_60 : f32 to vector<128x1xf32>
    %176 = arith.select %174, %175, %172 : vector<128x1xi1>, vector<128x1xf32>
    %177 = vector.broadcast %176 : vector<128x1xf32> to vector<128x2xf32>
    %178 = arith.subf %170, %177 : vector<128x2xf32>
    %179 = math.exp %178 : vector<128x2xf32>
    %cst_61 = arith.constant dense<0.000000e+00> : vector<128xf32>
    %180 = vector.multi_reduction <add>, %179, %cst_61 [1] : vector<128x2xf32> to vector<128xf32>
    %181 = vector.shape_cast %180 : vector<128xf32> to vector<128x1xf32>
    %cst_62 = arith.constant 1.000000e+00 : f32
    %182 = vector.broadcast %cst_62 : f32 to vector<128x1xf32>
    %183 = arith.select %174, %182, %181 : vector<128x1xi1>, vector<128x1xf32>
    %184 = math.log %183 : vector<128x1xf32>
    %185 = arith.addf %184, %172 : vector<128x1xf32>
    %186 = arith.subf %185, %166 : vector<128x1xf32>
    %c1_i32_63 = arith.constant 1 : i32
    %187 = tpu.dynamic_rotate %151 by %c1_i32_63 dim 1 : vector<128x128xf32>, i32 -> vector<128x128xf32>
    %188 = vector.broadcast %166 : vector<128x1xf32> to vector<128x128xf32>
    %189 = arith.subf %187, %188 : vector<128x128xf32>
    %cst_64 = arith.constant 0.000000e+00 : f32
    %190 = vector.broadcast %cst_64 : f32 to vector<128x128xf32>
    %191 = arith.select %8, %190, %189 : vector<128x128xi1>, vector<128x128xf32>
    %192 = vector.shape_cast %186 : vector<128x1xf32> to vector<128x1xf32>
    %193 = vector.broadcast %192 : vector<128x1xf32> to vector<128x128xf32>
    %194 = arith.select %10, %193, %191 : vector<128x128xi1>, vector<128x128xf32>
    %195 = arith.addf %194, %5 : vector<128x128xf32>
    %c0_65 = arith.constant 0 : index
    %c512 = arith.constant 512 : index
    %196 = vector.load %arg2[%c0_65, %c512] : memref<128x1024xf32, #tpu.memory_space<vmem>>, vector<128x128xf32>
    %197 = arith.addf %196, %195 : vector<128x128xf32>
    %cst_66 = arith.constant dense<0xFF800000> : vector<128xf32>
    %198 = vector.multi_reduction <maximumf>, %197, %cst_66 [1] : vector<128x128xf32> to vector<128xf32>
    %199 = vector.shape_cast %198 : vector<128xf32> to vector<128x1xf32>
    %cst_67 = arith.constant 0xFF800000 : f32
    %200 = vector.broadcast %cst_67 : f32 to vector<128x1xf32>
    %201 = arith.cmpf oeq, %199, %200 : vector<128x1xf32>
    %cst_68 = arith.constant 0.000000e+00 : f32
    %202 = vector.broadcast %cst_68 : f32 to vector<128x1xf32>
    %203 = arith.select %201, %202, %199 : vector<128x1xi1>, vector<128x1xf32>
    %204 = vector.broadcast %203 : vector<128x1xf32> to vector<128x128xf32>
    %205 = arith.subf %197, %204 : vector<128x128xf32>
    %206 = math.exp %205 : vector<128x128xf32>
    %cst_69 = arith.constant dense<0.000000e+00> : vector<128xf32>
    %207 = vector.multi_reduction <add>, %206, %cst_69 [1] : vector<128x128xf32> to vector<128xf32>
    %208 = vector.shape_cast %207 : vector<128xf32> to vector<128x1xf32>
    %cst_70 = arith.constant 1.000000e+00 : f32
    %209 = vector.broadcast %cst_70 : f32 to vector<128x1xf32>
    %210 = arith.select %201, %209, %208 : vector<128x1xi1>, vector<128x1xf32>
    %211 = math.log %210 : vector<128x1xf32>
    %212 = arith.addf %211, %199 : vector<128x1xf32>
    %cst_71 = arith.constant 0.000000e+00 : f32
    %213 = vector.broadcast %cst_71 : f32 to vector<128x1xf32>
    %214 = arith.subf %213, %212 : vector<128x1xf32>
    %c0_72 = arith.constant 0 : index
    %c4 = arith.constant 4 : index
    %215 = vector.load %arg5[%c0_72, %c4] : memref<128x8xf32, #tpu.memory_space<vmem>>, vector<128x1xf32>
    tpu.vector_store %arg5[%c0_72, %c4], %214 {strides = array<i32>} : memref<128x8xf32, #tpu.memory_space<vmem>>, vector<128x1xf32>,
    %216 = vector.extract_strided_slice %197 {offsets = [0, 126], sizes = [128, 2], strides = [1, 1]} : vector<128x128xf32> to vector<128x2xf32>
    %cst_73 = arith.constant dense<0xFF800000> : vector<128xf32>
    %217 = vector.multi_reduction <maximumf>, %216, %cst_73 [1] : vector<128x2xf32> to vector<128xf32>
    %218 = vector.shape_cast %217 : vector<128xf32> to vector<128x1xf32>
    %cst_74 = arith.constant 0xFF800000 : f32
    %219 = vector.broadcast %cst_74 : f32 to vector<128x1xf32>
    %220 = arith.cmpf oeq, %218, %219 : vector<128x1xf32>
    %cst_75 = arith.constant 0.000000e+00 : f32
    %221 = vector.broadcast %cst_75 : f32 to vector<128x1xf32>
    %222 = arith.select %220, %221, %218 : vector<128x1xi1>, vector<128x1xf32>
    %223 = vector.broadcast %222 : vector<128x1xf32> to vector<128x2xf32>
    %224 = arith.subf %216, %223 : vector<128x2xf32>
    %225 = math.exp %224 : vector<128x2xf32>
    %cst_76 = arith.constant dense<0.000000e+00> : vector<128xf32>
    %226 = vector.multi_reduction <add>, %225, %cst_76 [1] : vector<128x2xf32> to vector<128xf32>
    %227 = vector.shape_cast %226 : vector<128xf32> to vector<128x1xf32>
    %cst_77 = arith.constant 1.000000e+00 : f32
    %228 = vector.broadcast %cst_77 : f32 to vector<128x1xf32>
    %229 = arith.select %220, %228, %227 : vector<128x1xi1>, vector<128x1xf32>
    %230 = math.log %229 : vector<128x1xf32>
    %231 = arith.addf %230, %218 : vector<128x1xf32>
    %232 = arith.subf %231, %212 : vector<128x1xf32>
    %c1_i32_78 = arith.constant 1 : i32
    %233 = tpu.dynamic_rotate %197 by %c1_i32_78 dim 1 : vector<128x128xf32>, i32 -> vector<128x128xf32>
    %234 = vector.broadcast %212 : vector<128x1xf32> to vector<128x128xf32>
    %235 = arith.subf %233, %234 : vector<128x128xf32>
    %cst_79 = arith.constant 0.000000e+00 : f32
    %236 = vector.broadcast %cst_79 : f32 to vector<128x128xf32>
    %237 = arith.select %8, %236, %235 : vector<128x128xi1>, vector<128x128xf32>
    %238 = vector.shape_cast %232 : vector<128x1xf32> to vector<128x1xf32>
    %239 = vector.broadcast %238 : vector<128x1xf32> to vector<128x128xf32>
    %240 = arith.select %10, %239, %237 : vector<128x128xi1>, vector<128x128xf32>
    %241 = arith.addf %240, %5 : vector<128x128xf32>
    %c0_80 = arith.constant 0 : index
    %c640 = arith.constant 640 : index
    %242 = vector.load %arg2[%c0_80, %c640] : memref<128x1024xf32, #tpu.memory_space<vmem>>, vector<128x128xf32>
    %243 = arith.addf %242, %241 : vector<128x128xf32>
    %cst_81 = arith.constant dense<0xFF800000> : vector<128xf32>
    %244 = vector.multi_reduction <maximumf>, %243, %cst_81 [1] : vector<128x128xf32> to vector<128xf32>
    %245 = vector.shape_cast %244 : vector<128xf32> to vector<128x1xf32>
    %cst_82 = arith.constant 0xFF800000 : f32
    %246 = vector.broadcast %cst_82 : f32 to vector<128x1xf32>
    %247 = arith.cmpf oeq, %245, %246 : vector<128x1xf32>
    %cst_83 = arith.constant 0.000000e+00 : f32
    %248 = vector.broadcast %cst_83 : f32 to vector<128x1xf32>
    %249 = arith.select %247, %248, %245 : vector<128x1xi1>, vector<128x1xf32>
    %250 = vector.broadcast %249 : vector<128x1xf32> to vector<128x128xf32>
    %251 = arith.subf %243, %250 : vector<128x128xf32>
    %252 = math.exp %251 : vector<128x128xf32>
    %cst_84 = arith.constant dense<0.000000e+00> : vector<128xf32>
    %253 = vector.multi_reduction <add>, %252, %cst_84 [1] : vector<128x128xf32> to vector<128xf32>
    %254 = vector.shape_cast %253 : vector<128xf32> to vector<128x1xf32>
    %cst_85 = arith.constant 1.000000e+00 : f32
    %255 = vector.broadcast %cst_85 : f32 to vector<128x1xf32>
    %256 = arith.select %247, %255, %254 : vector<128x1xi1>, vector<128x1xf32>
    %257 = math.log %256 : vector<128x1xf32>
    %258 = arith.addf %257, %245 : vector<128x1xf32>
    %cst_86 = arith.constant 0.000000e+00 : f32
    %259 = vector.broadcast %cst_86 : f32 to vector<128x1xf32>
    %260 = arith.subf %259, %258 : vector<128x1xf32>
    %c0_87 = arith.constant 0 : index
    %c5 = arith.constant 5 : index
    %261 = vector.load %arg5[%c0_87, %c5] : memref<128x8xf32, #tpu.memory_space<vmem>>, vector<128x1xf32>
    tpu.vector_store %arg5[%c0_87, %c5], %260 {strides = array<i32>} : memref<128x8xf32, #tpu.memory_space<vmem>>, vector<128x1xf32>,
    %262 = vector.extract_strided_slice %243 {offsets = [0, 126], sizes = [128, 2], strides = [1, 1]} : vector<128x128xf32> to vector<128x2xf32>
    %cst_88 = arith.constant dense<0xFF800000> : vector<128xf32>
    %263 = vector.multi_reduction <maximumf>, %262, %cst_88 [1] : vector<128x2xf32> to vector<128xf32>
    %264 = vector.shape_cast %263 : vector<128xf32> to vector<128x1xf32>
    %cst_89 = arith.constant 0xFF800000 : f32
    %265 = vector.broadcast %cst_89 : f32 to vector<128x1xf32>
    %266 = arith.cmpf oeq, %264, %265 : vector<128x1xf32>
    %cst_90 = arith.constant 0.000000e+00 : f32
    %267 = vector.broadcast %cst_90 : f32 to vector<128x1xf32>
    %268 = arith.select %266, %267, %264 : vector<128x1xi1>, vector<128x1xf32>
    %269 = vector.broadcast %268 : vector<128x1xf32> to vector<128x2xf32>
    %270 = arith.subf %262, %269 : vector<128x2xf32>
    %271 = math.exp %270 : vector<128x2xf32>
    %cst_91 = arith.constant dense<0.000000e+00> : vector<128xf32>
    %272 = vector.multi_reduction <add>, %271, %cst_91 [1] : vector<128x2xf32> to vector<128xf32>
    %273 = vector.shape_cast %272 : vector<128xf32> to vector<128x1xf32>
    %cst_92 = arith.constant 1.000000e+00 : f32
    %274 = vector.broadcast %cst_92 : f32 to vector<128x1xf32>
    %275 = arith.select %266, %274, %273 : vector<128x1xi1>, vector<128x1xf32>
    %276 = math.log %275 : vector<128x1xf32>
    %277 = arith.addf %276, %264 : vector<128x1xf32>
    %278 = arith.subf %277, %258 : vector<128x1xf32>
    %c1_i32_93 = arith.constant 1 : i32
    %279 = tpu.dynamic_rotate %243 by %c1_i32_93 dim 1 : vector<128x128xf32>, i32 -> vector<128x128xf32>
    %280 = vector.broadcast %258 : vector<128x1xf32> to vector<128x128xf32>
    %281 = arith.subf %279, %280 : vector<128x128xf32>
    %cst_94 = arith.constant 0.000000e+00 : f32
    %282 = vector.broadcast %cst_94 : f32 to vector<128x128xf32>
    %283 = arith.select %8, %282, %281 : vector<128x128xi1>, vector<128x128xf32>
    %284 = vector.shape_cast %278 : vector<128x1xf32> to vector<128x1xf32>
    %285 = vector.broadcast %284 : vector<128x1xf32> to vector<128x128xf32>
    %286 = arith.select %10, %285, %283 : vector<128x128xi1>, vector<128x128xf32>
    %287 = arith.addf %286, %5 : vector<128x128xf32>
    %c0_95 = arith.constant 0 : index
    %c768 = arith.constant 768 : index
    %288 = vector.load %arg2[%c0_95, %c768] : memref<128x1024xf32, #tpu.memory_space<vmem>>, vector<128x128xf32>
    %289 = arith.addf %288, %287 : vector<128x128xf32>
    %cst_96 = arith.constant dense<0xFF800000> : vector<128xf32>
    %290 = vector.multi_reduction <maximumf>, %289, %cst_96 [1] : vector<128x128xf32> to vector<128xf32>
    %291 = vector.shape_cast %290 : vector<128xf32> to vector<128x1xf32>
    %cst_97 = arith.constant 0xFF800000 : f32
    %292 = vector.broadcast %cst_97 : f32 to vector<128x1xf32>
    %293 = arith.cmpf oeq, %291, %292 : vector<128x1xf32>
    %cst_98 = arith.constant 0.000000e+00 : f32
    %294 = vector.broadcast %cst_98 : f32 to vector<128x1xf32>
    %295 = arith.select %293, %294, %291 : vector<128x1xi1>, vector<128x1xf32>
    %296 = vector.broadcast %295 : vector<128x1xf32> to vector<128x128xf32>
    %297 = arith.subf %289, %296 : vector<128x128xf32>
    %298 = math.exp %297 : vector<128x128xf32>
    %cst_99 = arith.constant dense<0.000000e+00> : vector<128xf32>
    %299 = vector.multi_reduction <add>, %298, %cst_99 [1] : vector<128x128xf32> to vector<128xf32>
    %300 = vector.shape_cast %299 : vector<128xf32> to vector<128x1xf32>
    %cst_100 = arith.constant 1.000000e+00 : f32
    %301 = vector.broadcast %cst_100 : f32 to vector<128x1xf32>
    %302 = arith.select %293, %301, %300 : vector<128x1xi1>, vector<128x1xf32>
    %303 = math.log %302 : vector<128x1xf32>
    %304 = arith.addf %303, %291 : vector<128x1xf32>
    %cst_101 = arith.constant 0.000000e+00 : f32
    %305 = vector.broadcast %cst_101 : f32 to vector<128x1xf32>
    %306 = arith.subf %305, %304 : vector<128x1xf32>
    %c0_102 = arith.constant 0 : index
    %c6 = arith.constant 6 : index
    %307 = vector.load %arg5[%c0_102, %c6] : memref<128x8xf32, #tpu.memory_space<vmem>>, vector<128x1xf32>
    tpu.vector_store %arg5[%c0_102, %c6], %306 {strides = array<i32>} : memref<128x8xf32, #tpu.memory_space<vmem>>, vector<128x1xf32>,
    %308 = vector.extract_strided_slice %289 {offsets = [0, 126], sizes = [128, 2], strides = [1, 1]} : vector<128x128xf32> to vector<128x2xf32>
    %cst_103 = arith.constant dense<0xFF800000> : vector<128xf32>
    %309 = vector.multi_reduction <maximumf>, %308, %cst_103 [1] : vector<128x2xf32> to vector<128xf32>
    %310 = vector.shape_cast %309 : vector<128xf32> to vector<128x1xf32>
    %cst_104 = arith.constant 0xFF800000 : f32
    %311 = vector.broadcast %cst_104 : f32 to vector<128x1xf32>
    %312 = arith.cmpf oeq, %310, %311 : vector<128x1xf32>
    %cst_105 = arith.constant 0.000000e+00 : f32
    %313 = vector.broadcast %cst_105 : f32 to vector<128x1xf32>
    %314 = arith.select %312, %313, %310 : vector<128x1xi1>, vector<128x1xf32>
    %315 = vector.broadcast %314 : vector<128x1xf32> to vector<128x2xf32>
    %316 = arith.subf %308, %315 : vector<128x2xf32>
    %317 = math.exp %316 : vector<128x2xf32>
    %cst_106 = arith.constant dense<0.000000e+00> : vector<128xf32>
    %318 = vector.multi_reduction <add>, %317, %cst_106 [1] : vector<128x2xf32> to vector<128xf32>
    %319 = vector.shape_cast %318 : vector<128xf32> to vector<128x1xf32>
    %cst_107 = arith.constant 1.000000e+00 : f32
    %320 = vector.broadcast %cst_107 : f32 to vector<128x1xf32>
    %321 = arith.select %312, %320, %319 : vector<128x1xi1>, vector<128x1xf32>
    %322 = math.log %321 : vector<128x1xf32>
    %323 = arith.addf %322, %310 : vector<128x1xf32>
    %324 = arith.subf %323, %304 : vector<128x1xf32>
    %c1_i32_108 = arith.constant 1 : i32
    %325 = tpu.dynamic_rotate %289 by %c1_i32_108 dim 1 : vector<128x128xf32>, i32 -> vector<128x128xf32>
    %326 = vector.broadcast %304 : vector<128x1xf32> to vector<128x128xf32>
    %327 = arith.subf %325, %326 : vector<128x128xf32>
    %cst_109 = arith.constant 0.000000e+00 : f32
    %328 = vector.broadcast %cst_109 : f32 to vector<128x128xf32>
    %329 = arith.select %8, %328, %327 : vector<128x128xi1>, vector<128x128xf32>
    %330 = vector.shape_cast %324 : vector<128x1xf32> to vector<128x1xf32>
    %331 = vector.broadcast %330 : vector<128x1xf32> to vector<128x128xf32>
    %332 = arith.select %10, %331, %329 : vector<128x128xi1>, vector<128x128xf32>
    %333 = arith.addf %332, %5 : vector<128x128xf32>
    %c0_110 = arith.constant 0 : index
    %c896 = arith.constant 896 : index
    %334 = vector.load %arg2[%c0_110, %c896] : memref<128x1024xf32, #tpu.memory_space<vmem>>, vector<128x128xf32>
    %335 = arith.addf %334, %333 : vector<128x128xf32>
    %cst_111 = arith.constant dense<0xFF800000> : vector<128xf32>
    %336 = vector.multi_reduction <maximumf>, %335, %cst_111 [1] : vector<128x128xf32> to vector<128xf32>
    %337 = vector.shape_cast %336 : vector<128xf32> to vector<128x1xf32>
    %cst_112 = arith.constant 0xFF800000 : f32
    %338 = vector.broadcast %cst_112 : f32 to vector<128x1xf32>
    %339 = arith.cmpf oeq, %337, %338 : vector<128x1xf32>
    %cst_113 = arith.constant 0.000000e+00 : f32
    %340 = vector.broadcast %cst_113 : f32 to vector<128x1xf32>
    %341 = arith.select %339, %340, %337 : vector<128x1xi1>, vector<128x1xf32>
    %342 = vector.broadcast %341 : vector<128x1xf32> to vector<128x128xf32>
    %343 = arith.subf %335, %342 : vector<128x128xf32>
    %344 = math.exp %343 : vector<128x128xf32>
    %cst_114 = arith.constant dense<0.000000e+00> : vector<128xf32>
    %345 = vector.multi_reduction <add>, %344, %cst_114 [1] : vector<128x128xf32> to vector<128xf32>
    %346 = vector.shape_cast %345 : vector<128xf32> to vector<128x1xf32>
    %cst_115 = arith.constant 1.000000e+00 : f32
    %347 = vector.broadcast %cst_115 : f32 to vector<128x1xf32>
    %348 = arith.select %339, %347, %346 : vector<128x1xi1>, vector<128x1xf32>
    %349 = math.log %348 : vector<128x1xf32>
    %350 = arith.addf %349, %337 : vector<128x1xf32>
    %cst_116 = arith.constant 0.000000e+00 : f32
    %351 = vector.broadcast %cst_116 : f32 to vector<128x1xf32>
    %352 = arith.subf %351, %350 : vector<128x1xf32>
    %c0_117 = arith.constant 0 : index
    %c7 = arith.constant 7 : index
    %353 = vector.load %arg5[%c0_117, %c7] : memref<128x8xf32, #tpu.memory_space<vmem>>, vector<128x1xf32>
    tpu.vector_store %arg5[%c0_117, %c7], %352 {strides = array<i32>} : memref<128x8xf32, #tpu.memory_space<vmem>>, vector<128x1xf32>,
    %354 = vector.extract_strided_slice %335 {offsets = [0, 126], sizes = [128, 2], strides = [1, 1]} : vector<128x128xf32> to vector<128x2xf32>
    %cst_118 = arith.constant dense<0xFF800000> : vector<128xf32>
    %355 = vector.multi_reduction <maximumf>, %354, %cst_118 [1] : vector<128x2xf32> to vector<128xf32>
    %356 = vector.shape_cast %355 : vector<128xf32> to vector<128x1xf32>
    %cst_119 = arith.constant 0xFF800000 : f32
    %357 = vector.broadcast %cst_119 : f32 to vector<128x1xf32>
    %358 = arith.cmpf oeq, %356, %357 : vector<128x1xf32>
    %cst_120 = arith.constant 0.000000e+00 : f32
    %359 = vector.broadcast %cst_120 : f32 to vector<128x1xf32>
    %360 = arith.select %358, %359, %356 : vector<128x1xi1>, vector<128x1xf32>
    %361 = vector.broadcast %360 : vector<128x1xf32> to vector<128x2xf32>
    %362 = arith.subf %354, %361 : vector<128x2xf32>
    %363 = math.exp %362 : vector<128x2xf32>
    %cst_121 = arith.constant dense<0.000000e+00> : vector<128xf32>
    %364 = vector.multi_reduction <add>, %363, %cst_121 [1] : vector<128x2xf32> to vector<128xf32>
    %365 = vector.shape_cast %364 : vector<128xf32> to vector<128x1xf32>
    %cst_122 = arith.constant 1.000000e+00 : f32
    %366 = vector.broadcast %cst_122 : f32 to vector<128x1xf32>
    %367 = arith.select %358, %366, %365 : vector<128x1xi1>, vector<128x1xf32>
    %368 = math.log %367 : vector<128x1xf32>
    %369 = arith.addf %368, %356 : vector<128x1xf32>
    %370 = arith.subf %369, %350 : vector<128x1xf32>
    %c1_i32_123 = arith.constant 1 : i32
    %371 = tpu.dynamic_rotate %335 by %c1_i32_123 dim 1 : vector<128x128xf32>, i32 -> vector<128x128xf32>
    %372 = vector.broadcast %350 : vector<128x1xf32> to vector<128x128xf32>
    %373 = arith.subf %371, %372 : vector<128x128xf32>
    %cst_124 = arith.constant 0.000000e+00 : f32
    %374 = vector.broadcast %cst_124 : f32 to vector<128x128xf32>
    %375 = arith.select %8, %374, %373 : vector<128x128xi1>, vector<128x128xf32>
    %376 = vector.shape_cast %370 : vector<128x1xf32> to vector<128x1xf32>
    %377 = vector.broadcast %376 : vector<128x1xf32> to vector<128x128xf32>
    %378 = arith.select %10, %377, %375 : vector<128x128xi1>, vector<128x128xf32>
    %379 = arith.addf %378, %5 : vector<128x128xf32>
    %c0_125 = arith.constant 0 : index
    %c0_126 = arith.constant 0 : index
    %380 = vector.load %arg7[%c0_125, %c0_126] : memref<128x128xf32, #tpu.memory_space<vmem>>, vector<128x128xf32>
    tpu.vector_store %arg7[%c0_125, %c0_126], %379 {strides = array<i32>} : memref<128x128xf32, #tpu.memory_space<vmem>>, vector<128x128xf32>,
    %c0_i32_127 = arith.constant 0 : i32
    %381 = arith.cmpi eq, %arg1, %c0_i32_127 : i32
    %382 = arith.extui %381 : i1 to i32
    %c0_i32_128 = arith.constant 0 : i32
    %383 = arith.cmpi ne, %382, %c0_i32_128 : i32
    scf.if %383 {
      %c0_129 = arith.constant 0 : index
      %c0_130 = arith.constant 0 : index
      %384 = vector.load %arg6[%c0_129, %c0_130] : memref<128x128xf32, #tpu.memory_space<vmem>>, vector<128x128xf32>
      tpu.vector_store %arg6[%c0_129, %c0_130], %379 {strides = array<i32>} : memref<128x128xf32, #tpu.memory_space<vmem>>, vector<128x128xf32>,
    } else {
    }
    return
  }
  func.func @transform_0(%arg0: i32, %arg1: i32) -> (i32, i32) {
    %c0_i32 = arith.constant 0 : i32
    return %arg0, %arg1 : i32, i32
  }
  func.func @transform_1(%arg0: i32, %arg1: i32) -> (i32, i32) {
    %c0_i32 = arith.constant 0 : i32
    %c0_i32_0 = arith.constant 0 : i32
    %c0_i32_1 = arith.constant 0 : i32
    return %c0_i32, %c0_i32_0 : i32, i32
  }
  func.func @transform_2(%arg0: i32, %arg1: i32) -> (i32, i32) {
    %c0_i32 = arith.constant 0 : i32
    %c0_i32_0 = arith.constant 0 : i32
    %c0_i32_1 = arith.constant 0 : i32
    return %c0_i32, %c0_i32_0 : i32, i32
  }
  func.func @transform_3(%arg0: i32, %arg1: i32) -> (i32, i32) {
    %c0_i32 = arith.constant 0 : i32
    return %arg0, %arg1 : i32, i32
  }
  func.func @transform_4(%arg0: i32, %arg1: i32) -> (i32, i32) {
    %c0_i32 = arith.constant 0 : i32
    %c0_i32_0 = arith.constant 0 : i32
    return %arg0, %c0_i32 : i32, i32
  }
}

</mosaic_0001>

<bundles_post_ra>
// kernel: moca_filter.1
= control target key start
LH: loop header
LB: loop body
LE: loop exit
PB: predicated region body
PF: predicated region fallthrough
CT: control target
= control target key end

     0   :  { %10 = vsyncpa [#allocation4], 0  ;;  %s13200_s0 = inlined_call_operand.vmem [shape: f32[256,1024], index: 0, kind: input, shape index: {}]   ;;  %s13201_s1 = inlined_call_operand.vmem [shape: f32[1,128], index: 1, kind: input, shape index: {}]   ;;  %s13202_s2 = inlined_call_operand.vmem [shape: f32[1,128], index: 2, kind: input, shape index: {}]   ;;  %s13203_s3 = inlined_call_operand.vmem [shape: f32[256,8], index: 3, kind: output, shape index: {0}]   ;;  %s13204_s4 = inlined_call_operand.hbm [shape: f32[256,128], index: 4, kind: output, shape index: {1}]  }
   0x1   :  { %12 = vsyncpa [#allocation4 + $0x1], 0  ;;  %s7209_s15 = smov 0   ;;  %s7211_s16 = smov 0  }
   0x2   :  { %s7213_s17 = smov 0   ;;  %s7215_s18 = smov 0  }
   0x3   :  { %s7217_s19 = smov 0   ;;  %s7219_s20 = smov 0  }
   0x4 LB: > { %s5989_s21 = sadd.s32 4294967295, %s7177_s20   ;;  %s5990_s22 = sadd.s32 4294967294, %s7177_s20   ;;  %s7177_s20 = sphi %s7219_s20, %s18_s20   ;;  %s7173_s19 = sphi %s7217_s19, %s13929_s19   ;;  %s7169_s18 = sphi %s7215_s18, %s13928_s18   ;;  %s7165_s17 = sphi %s7213_s17, %s13927_s17   ;;  %s7161_s16 = sphi %s7211_s16, %s13926_s16   ;;  %s7157_s15 = sphi %s7209_s15, %s13925_s15  }
   0x5   : > { %s30_s23 = sadd.s32 1, %s7173_s19  ;;  %s135_s24 = sadd.s32 1, %s7165_s17 }
   0x6   : > { %p32_p0 = scmp.ge.s32.totalorder %s30_s23, 2  ;;  %p145_p1 = scmp.ne.s32.totalorder %s7165_s17, %s7161_s16 }
   0x7   : > { %p146_p2 = scmp.eq.s32.totalorder %s5989_s21, 1  ;;  %p151_p3 = scmp.ne.s32.totalorder %s7161_s16, %s7157_s15 }
   0x8   : > { %s13931_s23 = smov (%p32_p0, %s30_s23), 0  ;;  %p152_p5 = scmp.eq.s32.totalorder %s5990_s22, 1 }
   0x9   : > { %p7249_p4 = por %p146_p2, %p145_p1  ;;  %s132_s26 = ssub.s32 %s7173_s19, %s13931_s23 }
   0xa   : > { %p5993_p6 = scmp.ge.s32.totalorder %s7177_s20, 1  ;;  %p133_p7 = scmp.eq.s32.totalorder %s132_s26, 0 }
   0xb   : > { %p7256_p8 = por %p152_p5, %p151_p3  ;;  %p191_p9 = scmp.lt.s32.totalorder %s7177_s20, 3 }
   0xc   : > { %s7262_s28 = scalar_select %p133_p7, %s7165_s17, %s135_s24  }
   0xd   : > { %p192_p10 = pnand %p5993_p6, %p191_p9 }
   0xf   : > { %195 = sbr.rel (%p192_p10) target bundleno = 4498 (0x1192), region = 32 }
  0x16   : > { %s5995_s29 = sshll.u32 %s7169_s18, 4  ;;  %v6000_v0 = vld [vmem:[%s13201_s1] ss:$0 sm:$0xff]  ;;  %vm13205_vm0 = vcmask 1048560   ;;  %s7179_s10 = smov 2  }
  0x17   : > { %p232_p11 = scmp.lt.s32.totalorder %s5995_s29, 31  ;;  %s7180_s11 = smov 1  }
  0x19   : > { %s13933_s29 = smov (!%p232_p11, %s5995_s29), 31 }
  0x1a   : > { %s6007_s30 = sshll.u32 %s13933_s29, 6  ;;  %s5999_s12 = sshll.u32 %s13933_s29, 3 }
  0x1b   : > { %s7274_s9 = scalar_lea.vmem %s13200_s0, %s6007_s30  ;;  %s7665_s21 = scalar_lea.vmem %s13203_s3, %s5999_s12 }
  0x1c   : > { %v308_v1 = vld [vmem:[%s7274_s9 + $0x80] sm:$0xff]  ;;  %s6008_s29 = sshll.u32 %s7169_s18, 11  ;;  %s7181_s12 = smov [#allocation3]  }
  0x1d   : > { %v306_v2 = vld [vmem:[%s7274_s9] sm:$0xff]  ;;  %v7279_v4 = vadd.f32 %v6000_v0, %v308_v1  ;;  %s13146_s7 = scalar_lea.hbm %s13204_s4, %s6008_s29  ;;  %s7103_s13 = sshll.u32 %s7181_s12, 4  ;;  %s7104_s13 = int_to_ptr.vmem [resolvable:$false] %s7103_s13 }
  0x1e   : > { %v309_v3 = vld [vmem:[%s7274_s9 + $0xc0] sm:$0xff]  ;;  %v7281_v5 = vadd.f32 %v6000_v0, %v306_v2  ;;  %s7105_s14 = scalar_lea.vmem %s7104_s13, 4096 }
  0x1f   : > { %v7283_v6 = vadd.f32 %v6000_v0, %v309_v3  ;;  %v307_v7 = vld [vmem:[%s7274_s9 + $0x40] sm:$0xff]  ;;  %v586_v11 = vsel %vm13205_vm0, %v7279_v4, -inf }
  0x20   : > { %v7286_v8 = vadd.f32 %v6000_v0, %v307_v7  ;;  %v311_v9 = vld [vmem:[%s7274_s9 + $0x140] sm:$0xff]  ;;  %v580_v12 = vsel %vm13205_vm0, %v7281_v5, -inf  ;;  %587 = vmax.xlane.f32.xlu1 %v586_v11 }
  0x21   : > { %v310_v10 = vld [vmem:[%s7274_s9 + $0x100] sm:$0xff]  ;;  %581 = vmax.xlane.f32.xlu0 %v580_v12  ;;  %v589_v13 = vsel %vm13205_vm0, %v7283_v6, -inf  ;;  %v7298_v15 = vadd.f32 %v6000_v0, %v311_v9 }
  0x22   : > { %v583_v14 = vsel %vm13205_vm0, %v7286_v8, -inf  ;;  %v7300_v16 = vadd.f32 %v6000_v0, %v310_v10  ;;  %v313_v17 = vld [vmem:[%s7274_s9 + $0x1c0] sm:$0xff] }
  0x23   : > { %v312_v18 = vld [vmem:[%s7274_s9 + $0x180] sm:$0xff]  ;;  %v595_v19 = vsel %vm13205_vm0, %v7298_v15, -inf  ;;  %v7308_v21 = vadd.f32 %v6000_v0, %v313_v17 }
  0x24   : > { %590 = vmax.xlane.f32.xlu1 %v589_v13  ;;  %v592_v20 = vsel %vm13205_vm0, %v7300_v16, -inf  ;;  %v7310_v22 = vadd.f32 %v6000_v0, %v312_v18  ;;  %v315_v23 = vld [vmem:[%s7274_s9 + $0x240] sm:$0xff] }
  0x25   : > { %584 = vmax.xlane.f32.xlu0 %v583_v14  ;;  %v314_v24 = vld [vmem:[%s7274_s9 + $0x200] sm:$0xff]  ;;  %v601_v25 = vsel %vm13205_vm0, %v7308_v21, -inf  ;;  %v7318_v27 = vadd.f32 %v6000_v0, %v315_v23 }
  0x26   : > { %v598_v26 = vsel %vm13205_vm0, %v7310_v22, -inf  ;;  %v7320_v28 = vadd.f32 %v6000_v0, %v314_v24  ;;  %v317_v29 = vld [vmem:[%s7274_s9 + $0x2c0] sm:$0xff] }
  0x27   : > { %v316_v30 = vld [vmem:[%s7274_s9 + $0x280] sm:$0xff]  ;;  %v607_v31 = vsel %vm13205_vm0, %v7318_v27, -inf  ;;  %v7328_v33 = vadd.f32 %v6000_v0, %v317_v29 }
  0x28   : > { %596 = vmax.xlane.f32.xlu1 %v595_v19  ;;  %v604_v32 = vsel %vm13205_vm0, %v7320_v28, -inf  ;;  %v7330_v34 = vadd.f32 %v6000_v0, %v316_v30  ;;  %v319_v35 = vld [vmem:[%s7274_s9 + $0x340] sm:$0xff] }
  0x29   : > { %593 = vmax.xlane.f32.xlu0 %v592_v20  ;;  %v318_v36 = vld [vmem:[%s7274_s9 + $0x300] sm:$0xff]  ;;  %v613_v37 = vsel %vm13205_vm0, %v7328_v33, -inf  ;;  %v7338_v39 = vadd.f32 %v6000_v0, %v319_v35 }
  0x2a   : > { %v610_v38 = vsel %vm13205_vm0, %v7330_v34, -inf  ;;  %v7340_v40 = vadd.f32 %v6000_v0, %v318_v36  ;;  %v321_v41 = vld [vmem:[%s7274_s9 + $0x3c0] sm:$0xff] }
  0x2b   : > { %v320_v42 = vld [vmem:[%s7274_s9 + $0x380] sm:$0xff]  ;;  %v619_v43 = vsel %vm13205_vm0, %v7338_v39, -inf  ;;  %v7348_v45 = vadd.f32 %v6000_v0, %v321_v41 }
  0x2c   : > { %602 = vmax.xlane.f32.xlu1 %v601_v25  ;;  %v616_v44 = vsel %vm13205_vm0, %v7340_v40, -inf  ;;  %v7350_v46 = vadd.f32 %v6000_v0, %v320_v42 }
  0x2d   : > { %599 = vmax.xlane.f32.xlu0 %v598_v26  ;;  %v625_v47 = vsel %vm13205_vm0, %v7348_v45, -inf }
  0x2e   : > { %v622_v48 = vsel %vm13205_vm0, %v7350_v46, -inf }
  0x30   : > { %608 = vmax.xlane.f32.xlu1 %v607_v31 }
  0x31   : > { %605 = vmax.xlane.f32.xlu0 %v604_v32 }
  0x34   : > { %614 = vmax.xlane.f32.xlu1 %v613_v37 }
  0x35   : > { %611 = vmax.xlane.f32.xlu0 %v610_v38 }
  0x38   : > { %620 = vmax.xlane.f32.xlu1 %v619_v43 }
  0x39   : > { %617 = vmax.xlane.f32.xlu0 %v616_v44 }
  0x3c   : > { %626 = vmax.xlane.f32.xlu1 %v625_v47 }
  0x3d   : > { %623 = vmax.xlane.f32.xlu0 %v622_v48 }
  0x40   : > { %340 = vmax.xlane.f32.xlu1 %v7286_v8 }
  0x41   : > { %338 = vmax.xlane.f32.xlu0 %v7281_v5 }
  0x44   : > { %344 = vmax.xlane.f32.xlu1 %v7283_v6 }
  0x45   : > { %342 = vmax.xlane.f32.xlu0 %v7279_v4 }
  0x48   : > { %348 = vmax.xlane.f32.xlu1 %v7298_v15 }
  0x49   : > { %346 = vmax.xlane.f32.xlu0 %v7300_v16 }
  0x4c   : > { %352 = vmax.xlane.f32.xlu1 %v7308_v21 }
  0x4d   : > { %350 = vmax.xlane.f32.xlu0 %v7310_v22 }
  0x50   : > { %356 = vmax.xlane.f32.xlu1 %v7318_v27 }
  0x51   : > { %354 = vmax.xlane.f32.xlu0 %v7320_v28 }
  0x54   : > { %360 = vmax.xlane.f32.xlu1 %v7328_v33 }
  0x55   : > { %358 = vmax.xlane.f32.xlu0 %v7330_v34 }
  0x58   : > { %364 = vmax.xlane.f32.xlu1 %v7338_v39 }
  0x59   : > { %362 = vmax.xlane.f32.xlu0 %v7340_v40 }
  0x5c   : > { %368 = vmax.xlane.f32.xlu1 %v7348_v45 }
  0x5d   : > { %366 = vmax.xlane.f32.xlu0 %v7350_v46 }
  0xad   : > { %v7372_v49 = vpop.xlane.xlu1 %587 }
  0xae   : > { %v7374_v50 = vpop.xlane.xlu0 %581 }
  0xb1   : > { %v7376_v51 = vpop.xlane.xlu1 %590 }
  0xb2   : > { %v7378_v52 = vpop.xlane.xlu0 %584 }
  0xb5   : > { %v7380_v53 = vpop.xlane.xlu1 %596 }
  0xb6   : > { %v7382_v54 = vpop.xlane.xlu0 %593 }
  0xb9   : > { %v7384_v55 = vpop.xlane.xlu1 %602 }
  0xba   : > { %v7386_v56 = vpop.xlane.xlu0 %599 }
  0xbd   : > { %v7388_v57 = vpop.xlane.xlu1 %608 }
  0xbe   : > { %v7390_v58 = vpop.xlane.xlu0 %605 }
  0xc1   : > { %v7392_v59 = vpop.xlane.xlu1 %614 }
  0xc2   : > { %v7394_v60 = vpop.xlane.xlu0 %611 }
  0xc5   : > { %v7396_v61 = vpop.xlane.xlu1 %620 }
  0xc6   : > { %v7398_v62 = vpop.xlane.xlu0 %617 }
  0xc9   : > { %v7400_v63 = vpop.xlane.xlu1 %626 }
  0xca   : > { %v7402_v0 = vpop.xlane.xlu0 %623 }
  0xcd   : > { %v7404_v1 = vpop.xlane.xlu1 %340 }
  0xce   : > { %v7406_v2 = vpop.xlane.xlu0 %338  ;;  %vm371_vm1 = vcmp.eq.f32.partialorder %v7404_v1, -inf }
  0xcf   : > { %vm370_vm2 = vcmp.eq.f32.partialorder %v7406_v2, -inf  ;;  %v387_v3 = vsel %vm371_vm1, 0.0, %v7404_v1 }
  0xd0   : > { %v386_v7 = vsel %vm370_vm2, 0.0, %v7406_v2  ;;  %v403_v9 = vsub.f32 %v7286_v8, %v387_v3 }
  0xd1   : > { %v402_v10 = vsub.f32 %v7281_v5, %v386_v7  ;;  %v7418_v11 = vpop.xlane.xlu1 %344 }
  0xd2   : > { %v7420_v12 = vpop.xlane.xlu0 %342  ;;  %v420_v13 = vmul.f32 1.442695, %v403_v9  ;;  %vm373_vm3 = vcmp.eq.f32.partialorder %v7418_v11, -inf }
  0xd3   : > { %v418_v14 = vmul.f32 1.442695, %v402_v10  ;;  %vm372_vm4 = vcmp.eq.f32.partialorder %v7420_v12, -inf  ;;  %v389_v17 = vsel %vm373_vm3, 0.0, %v7418_v11 }
  0xd4   : > { %v388_v18 = vsel %vm372_vm4, 0.0, %v7420_v12  ;;  %6068 = vpow2.f32 %v420_v13  ;;  %v405_v20 = vsub.f32 %v7283_v6, %v389_v17 }
  0xd5   : > { %v404_v19 = vsub.f32 %v7279_v4, %v388_v18  ;;  %6070 = vpow2.f32 %v418_v14  ;;  %v7432_v23 = vpop.xlane.xlu1 %348 }
  0xd6   : > { %v7434_v24 = vpop.xlane.xlu0 %346  ;;  %vm375_vm5 = vcmp.eq.f32.partialorder %v7432_v23, -inf  ;;  %v424_v32 = vmul.f32 1.442695, %v405_v20 }
  0xd7   : > { %v422_v25 = vmul.f32 1.442695, %v404_v19  ;;  %vm374_vm6 = vcmp.eq.f32.partialorder %v7434_v24, -inf  ;;  %v391_v26 = vsel %vm375_vm5, 0.0, %v7432_v23 }
  0xd8   : > { %v390_v29 = vsel %vm374_vm6, 0.0, %v7434_v24  ;;  %v407_v30 = vsub.f32 %v7298_v15, %v391_v26 }
  0xd9   : > { %v406_v31 = vsub.f32 %v7300_v16, %v390_v29  ;;  %6072 = vpow2.f32 %v422_v25  ;;  %v7446_v35 = vpop.xlane.xlu1 %352 }
  0xda   : > { %v7448_v36 = vpop.xlane.xlu0 %350  ;;  %v428_v37 = vmul.f32 1.442695, %v407_v30  ;;  %vm377_vm7 = vcmp.eq.f32.partialorder %v7446_v35, -inf }
  0xdb   : > { %vm376_vm8 = vcmp.eq.f32.partialorder %v7448_v36, -inf  ;;  %v393_v38 = vsel %vm377_vm7, 0.0, %v7446_v35  ;;  %v426_v41 = vmul.f32 1.442695, %v406_v31 }
  0xdc   : > { %v392_v42 = vsel %vm376_vm8, 0.0, %v7448_v36  ;;  %6074 = vpow2.f32 %v428_v37  ;;  %v409_v43 = vsub.f32 %v7308_v21, %v393_v38 }
  0xdd   : > { %v408_v44 = vsub.f32 %v7310_v22, %v392_v42  ;;  %6076 = vpow2.f32 %v424_v32  ;;  %v7460_v47 = vpop.xlane.xlu1 %356 }
  0xde   : > { %v7462_v48 = vpop.xlane.xlu0 %354  ;;  %v6069_v3 = vpop.eup %6068  ;;  %v432_v7 = vmul.f32 1.442695, %v409_v43  ;;  %vm379_vm9 = vcmp.eq.f32.partialorder %v7460_v47, -inf  ;;  %6078 = vpow2.f32 %v426_v41 }
  0xdf   : > { %vm378_vm10 = vcmp.eq.f32.partialorder %v7462_v48, -inf  ;;  %v6071_v9 = vpop.eup %6070  ;;  %v395_v10 = vsel %vm379_vm9, 0.0, %v7460_v47  ;;  %v430_v13 = vmul.f32 1.442695, %v408_v44  ;;  %452 = vadd.xlane.f32.xlu1 %v6069_v3 }
  0xe0   : > { %v394_v14 = vsel %vm378_vm10, 0.0, %v7462_v48  ;;  %6080 = vpow2.f32 %v432_v7  ;;  %v411_v17 = vsub.f32 %v7318_v27, %v395_v10  ;;  %450 = vadd.xlane.f32.xlu0 %v6071_v9 }
  0xe1   : > { %v410_v18 = vsub.f32 %v7320_v28, %v394_v14  ;;  %v7474_v19 = vpop.xlane.xlu1 %360  ;;  %6082 = vpow2.f32 %v430_v13 }
  0xe2   : > { %v7476_v20 = vpop.xlane.xlu0 %358  ;;  %v436_v25 = vmul.f32 1.442695, %v411_v17  ;;  %vm381_vm11 = vcmp.eq.f32.partialorder %v7474_v19, -inf }
  0xe3   : > { %vm13210_vm12 = vcmp.eq.f32.partialorder %v7476_v20, -inf  ;;  %v6073_v26 = vpop.eup %6072  ;;  %v397_v29 = vsel %vm381_vm11, 0.0, %v7474_v19  ;;  %v434_v30 = vmul.f32 1.442695, %v410_v18 }
  0xe4   : > { %v396_v31 = vsel %vm13210_vm12, 0.0, %v7476_v20  ;;  %6084 = vpow2.f32 %v436_v25  ;;  %v413_v32 = vsub.f32 %v7328_v33, %v397_v29  ;;  %454 = vadd.xlane.f32.xlu0 %v6073_v26  ;;  %vm13214_vm12 = vcmp.eq.f32.partialorder %v7380_v53, -inf }
  0xe5   : > { %v412_v37 = vsub.f32 %v7330_v34, %v396_v31  ;;  %v7488_v38 = vpop.xlane.xlu1 %364  ;;  %6086 = vpow2.f32 %v434_v30 }
  0xe6   : > { %v7490_v41 = vpop.xlane.xlu0 %362  ;;  %v6075_v42 = vpop.eup %6074  ;;  %v440_v43 = vmul.f32 1.442695, %v413_v32  ;;  %vm383_vm13 = vcmp.eq.f32.partialorder %v7488_v38, -inf }
  0xe7   : > { %vm13206_vm14 = vcmp.eq.f32.partialorder %v7490_v41, -inf  ;;  %v6077_v44 = vpop.eup %6076  ;;  %v399_v3 = vsel %vm383_vm13, 0.0, %v7488_v38  ;;  %v438_v7 = vmul.f32 1.442695, %v412_v37  ;;  %460 = vadd.xlane.f32.xlu1 %v6075_v42 }
  0xe8   : > { %v398_v9 = vsel %vm13206_vm14, 0.0, %v7490_v41  ;;  %6088 = vpow2.f32 %v440_v43  ;;  %v415_v10 = vsub.f32 %v7338_v39, %v399_v3  ;;  %456 = vadd.xlane.f32.xlu0 %v6077_v44  ;;  %v6079_v14 = vpop.eup %6078  ;;  %vm13209_vm14 = vcmp.eq.f32.partialorder %v7378_v52, -inf }
  0xe9   : > { %v414_v13 = vsub.f32 %v7340_v40, %v398_v9  ;;  %v7502_v17 = vpop.xlane.xlu1 %368  ;;  %6090 = vpow2.f32 %v438_v7 }
  0xea   : > { %v7504_v18 = vpop.xlane.xlu0 %366  ;;  %v6081_v25 = vpop.eup %6080  ;;  %v444_v26 = vmul.f32 1.442695, %v415_v10  ;;  %vm13208_vm15 = vcmp.eq.f32.partialorder %v7502_v17, -inf }
  0xeb   : > { %vm13207_vm0 = vcmp.eq.f32.partialorder %v7504_v18, -inf  ;;  %v401_v29 = vsel %vm13208_vm15, 0.0, %v7502_v17  ;;  %v442_v30 = vmul.f32 1.442695, %v414_v13  ;;  %464 = vadd.xlane.f32.xlu1 %v6081_v25  ;;  %v6083_v42 = vpop.eup %6082  ;;  %vm13212_vm15 = vcmp.eq.f32.partialorder %v7376_v51, -inf }
  0xec   : > { %v400_v31 = vsel %vm13207_vm0, 0.0, %v7504_v18  ;;  %6092 = vpow2.f32 %v444_v26  ;;  %v417_v32 = vsub.f32 %v7348_v45, %v401_v29  ;;  %458 = vadd.xlane.f32.xlu0 %v6079_v14  ;;  %v645_v14 = vsel %vm13209_vm14, 0.0, %v7378_v52 }
  0xed   : > { %v416_v37 = vsub.f32 %v7350_v46, %v400_v31  ;;  %6094 = vpow2.f32 %v442_v30  ;;  %vm13211_vm0 = vcmp.eq.f32.partialorder %v7372_v49, -inf  ;;  %v661_v26 = vsub.f32 %v7286_v8, %v645_v14 }
  0xee   : > { %v6085_v43 = vpop.eup %6084  ;;  %v448_v44 = vmul.f32 1.442695, %v417_v32  ;;  %v646_v30 = vsel %vm13211_vm0, 0.0, %v7372_v49  ;;  %vm13213_vm14 = vcmp.eq.f32.partialorder %v7374_v50, -inf  ;;  %vm13215_vm0 = vcmp.eq.f32.partialorder %v7382_v54, -inf }
  0xef   : > { %v446_v3 = vmul.f32 1.442695, %v416_v37  ;;  %468 = vadd.xlane.f32.xlu1 %v6085_v43  ;;  %v6087_v7 = vpop.eup %6086  ;;  %v662_v32 = vsub.f32 %v7279_v4, %v646_v30  ;;  %v678_v37 = vmul.f32 1.442695, %v661_v26  ;;  %v644_v43 = vsel %vm13213_vm14, 0.0, %v7374_v50 }
  0xf0   : > { %6096 = vpow2.f32 %v448_v44  ;;  %462 = vadd.xlane.f32.xlu0 %v6083_v42  ;;  %v647_v42 = vsel %vm13212_vm15, 0.0, %v7376_v51  ;;  %vm13216_vm15 = vcmp.eq.f32.partialorder %v7384_v55, -inf  ;;  %vm13219_vm14 = vcmp.eq.f32.partialorder %v7386_v56, -inf }
  0xf1   : > { %6098 = vpow2.f32 %v446_v3  ;;  %v680_v44 = vmul.f32 1.442695, %v662_v32  ;;  %v663_v3 = vsub.f32 %v7283_v6, %v647_v42  ;;  %v650_v30 = vsel %vm13219_vm14, 0.0, %v7386_v56 }
  0xf2   : > { %v6089_v9 = vpop.eup %6088  ;;  %6100 = vpow2.f32 %v678_v37  ;;  %vm640_vm14 = vcmp.eq.f32.partialorder %v7398_v62, -inf }
  0xf3   : > { %472 = vadd.xlane.f32.xlu1 %v6089_v9  ;;  %v6091_v10 = vpop.eup %6090  ;;  %v660_v9 = vsub.f32 %v7281_v5, %v644_v43  ;;  %6102 = vpow2.f32 %v680_v44  ;;  %v666_v44 = vsub.f32 %v7310_v22, %v650_v30 }
  0xf4   : > { %466 = vadd.xlane.f32.xlu0 %v6087_v7  ;;  %v649_v7 = vsel %vm13214_vm12, 0.0, %v7380_v53  ;;  %vm13217_vm12 = vcmp.eq.f32.partialorder %v7388_v57, -inf }
  0xf5   : > { %v665_v14 = vsub.f32 %v7298_v15, %v649_v7  ;;  %v676_v26 = vmul.f32 1.442695, %v660_v9  ;;  %v653_v37 = vsel %vm13217_vm12, 0.0, %v7388_v57  ;;  %vm638_vm12 = vcmp.eq.f32.partialorder %v7394_v60, -inf }
  0xf6   : > { %v6093_v13 = vpop.eup %6092  ;;  %v669_v9 = vsub.f32 %v7318_v27, %v653_v37 }
  0xf7   : > { %476 = vadd.xlane.f32.xlu1 %v6093_v13  ;;  %v6095_v25 = vpop.eup %6094  ;;  %v682_v13 = vmul.f32 1.442695, %v663_v3 }
  0xf8   : > { %470 = vadd.xlane.f32.xlu0 %v6091_v10  ;;  %v648_v10 = vsel %vm13215_vm0, 0.0, %v7382_v54  ;;  %vm13218_vm0 = vcmp.eq.f32.partialorder %v7390_v58, -inf }
  0xf9   : > { %6104 = vpow2.f32 %v682_v13  ;;  %v652_v3 = vsel %vm13218_vm0, 0.0, %v7390_v58  ;;  %vm13221_vm0 = vcmp.eq.f32.partialorder %v7396_v61, -inf }
  0xfa   : > { %v6097_v29 = vpop.eup %6096  ;;  %6106 = vpow2.f32 %v676_v26  ;;  %v654_v26 = vsel %vm638_vm12, 0.0, %v7394_v60 }
  0xfb   : > { %480 = vadd.xlane.f32.xlu1 %v6097_v29  ;;  %v6099_v31 = vpop.eup %6098  ;;  %v664_v29 = vsub.f32 %v7300_v16, %v648_v10 }
  0xfc   : > { %474 = vadd.xlane.f32.xlu0 %v6095_v25  ;;  %v651_v25 = vsel %vm13216_vm15, 0.0, %v7384_v55  ;;  %v6101_v42 = vpop.eup %6100  ;;  %vm13220_vm15 = vcmp.eq.f32.partialorder %v7392_v59, -inf }
  0xfd   : > { %v667_v32 = vsub.f32 %v7308_v21, %v651_v25  ;;  %v684_v43 = vmul.f32 1.442695, %v664_v29  ;;  %v655_v10 = vsel %vm13220_vm15, 0.0, %v7392_v59  ;;  %v6103_v13 = vpop.eup %6102  ;;  %v668_v25 = vsub.f32 %v7320_v28, %v652_v3 }
  0xfe   : > { %v694_v29 = vmul.f32 1.442695, %v669_v9  ;;  %v671_v30 = vsub.f32 %v7328_v33, %v655_v10  ;;  %vm643_vm15 = vcmp.eq.f32.partialorder %v7400_v63, -inf }
  0xff   : > { %v690_v7 = vmul.f32 1.442695, %v667_v32  ;;  %v692_v37 = vmul.f32 1.442695, %v668_v25  ;;  %v659_v9 = vsel %vm643_vm15, 0.0, %v7400_v63 }
 0x100   : > { %478 = vadd.xlane.f32.xlu0 %v6099_v31  ;;  %v686_v31 = vmul.f32 1.442695, %v665_v14  ;;  %v688_v14 = vmul.f32 1.442695, %v666_v44  ;;  %v698_v3 = vmul.f32 1.442695, %v671_v30  ;;  %v675_v30 = vsub.f32 %v7348_v45, %v659_v9 }
 0x102   : > { %6108 = vpow2.f32 %v686_v31  ;;  %v657_v31 = vsel %vm13221_vm0, 0.0, %v7396_v61  ;;  %vm642_vm0 = vcmp.eq.f32.partialorder %v7402_v0, -inf }
 0x103   : > { %6110 = vpow2.f32 %v684_v43  ;;  %v6105_v32 = vpop.eup %6104  ;;  %v656_v43 = vsel %vm640_vm14, 0.0, %v7398_v62  ;;  %v658_v25 = vsel %vm642_vm0, 0.0, %v7402_v0 }
 0x104   : > { %6112 = vpow2.f32 %v690_v7  ;;  %v6107_v44 = vpop.eup %6106  ;;  %v673_v7 = vsub.f32 %v7338_v39, %v657_v31 }
 0x105   : > { %6114 = vpow2.f32 %v688_v14  ;;  %v672_v14 = vsub.f32 %v7340_v40, %v656_v43  ;;  %v706_v43 = vmul.f32 1.442695, %v675_v30 }
 0x106   : > { %6116 = vpow2.f32 %v694_v29  ;;  %v702_v29 = vmul.f32 1.442695, %v673_v7 }
 0x107   : > { %6118 = vpow2.f32 %v692_v37  ;;  %v674_v37 = vsub.f32 %v7350_v46, %v658_v25 }
 0x108   : > { %6120 = vpow2.f32 %v698_v3 }
 0x109   : > { %v704_v3 = vmul.f32 1.442695, %v674_v37 }
 0x10c   : > { %726 = vrot.lane.b32.xlu1 %v6101_v42, %s7179_s10  ;;  %v670_v42 = vsub.f32 %v7330_v34, %v654_v26  ;;  %v6109_v10 = vpop.eup %6108 }
 0x10d   : > { %v6111_v26 = vpop.eup %6110 }
 0x10e   : > { %v6113_v31 = vpop.eup %6112 }
 0x110   : > { %728 = vrot.lane.b32.xlu1 %v6103_v13, %s7179_s10  ;;  %v696_v13 = vmul.f32 1.442695, %v670_v42  ;;  %v6115_v42 = vpop.eup %6114 }
 0x112   : > { %6122 = vpow2.f32 %v696_v13 }
 0x113   : > { %6124 = vpow2.f32 %v702_v29 }
 0x114   : > { %730 = vrot.lane.b32.xlu1 %v6105_v32, %s7179_s10  ;;  %v700_v32 = vmul.f32 1.442695, %v672_v14 }
 0x116   : > { %724 = vrot.lane.b32.xlu0 %v6107_v44, %s7179_s10  ;;  %v6117_v44 = vpop.eup %6116  ;;  %6126 = vpow2.f32 %v700_v32 }
 0x117   : > { %v6119_v7 = vpop.eup %6118  ;;  %6128 = vpow2.f32 %v706_v43 }
 0x118   : > { %734 = vrot.lane.b32.xlu1 %v6109_v10, %s7179_s10  ;;  %v6121_v9 = vpop.eup %6120  ;;  %6130 = vpow2.f32 %v704_v3 }
 0x11a   : > { %732 = vrot.lane.b32.xlu0 %v6111_v26, %s7179_s10 }
 0x11c   : > { %738 = vrot.lane.b32.xlu1 %v6113_v31, %s7179_s10  ;;  %v6123_v10 = vpop.eup %6122 }
 0x11d   : > { %v6125_v13 = vpop.eup %6124 }
 0x11e   : > { %736 = vrot.lane.b32.xlu0 %v6115_v42, %s7179_s10 }
 0x120   : > { %742 = vrot.lane.b32.xlu1 %v6117_v44, %s7179_s10  ;;  %v6127_v14 = vpop.eup %6126 }
 0x121   : > { %v6129_v25 = vpop.eup %6128 }
 0x122   : > { %740 = vrot.lane.b32.xlu0 %v6119_v7, %s7179_s10  ;;  %v6131_v26 = vpop.eup %6130 }
 0x124   : > { %746 = vrot.lane.b32.xlu1 %v6121_v9, %s7179_s10 }
 0x126   : > { %744 = vrot.lane.b32.xlu0 %v6123_v10, %s7179_s10 }
 0x128   : > { %750 = vrot.lane.b32.xlu1 %v6125_v13, %s7179_s10 }
 0x12a   : > { %748 = vrot.lane.b32.xlu0 %v6127_v14, %s7179_s10 }
 0x12c   : > { %754 = vrot.lane.b32.xlu1 %v6129_v25, %s7179_s10 }
 0x12e   : > { %752 = vrot.lane.b32.xlu0 %v6131_v26, %s7179_s10 }
 0x130   : > { %903 = vrot.lane.b32.xlu1 %v7286_v8, %s7180_s11 }
 0x132   : > { %901 = vrot.lane.b32.xlu0 %v7281_v5, %s7180_s11 }
 0x134   : > { %905 = vrot.lane.b32.xlu1 %v7279_v4, %s7180_s11 }
 0x136   : > { %909 = vrot.lane.b32.xlu0 %v7300_v16, %s7180_s11 }
 0x138   : > { %907 = vrot.lane.b32.xlu1 %v7283_v6, %s7180_s11 }
 0x13a   : > { %913 = vrot.lane.b32.xlu0 %v7310_v22, %s7180_s11 }
 0x13c   : > { %911 = vrot.lane.b32.xlu1 %v7298_v15, %s7180_s11 }
 0x13e   : > { %917 = vrot.lane.b32.xlu0 %v7320_v28, %s7180_s11 }
 0x140   : > { %915 = vrot.lane.b32.xlu1 %v7308_v21, %s7180_s11 }
 0x142   : > { %921 = vrot.lane.b32.xlu0 %v7330_v34, %s7180_s11 }
 0x144   : > { %919 = vrot.lane.b32.xlu1 %v7318_v27, %s7180_s11 }
 0x146   : > { %925 = vrot.lane.b32.xlu0 %v7340_v40, %s7180_s11 }
 0x148   : > { %923 = vrot.lane.b32.xlu1 %v7328_v33, %s7180_s11 }
 0x14a   : > { %929 = vrot.lane.b32.xlu0 %v7350_v46, %s7180_s11 }
 0x14c   : > { %927 = vrot.lane.b32.xlu1 %v7338_v39, %s7180_s11 }
 0x150   : > { %931 = vrot.lane.b32.xlu1 %v7348_v45, %s7180_s11 }
 0x16c   : > { %v453_v4 = vpop.xlane.xlu1 %452 }
 0x16d   : > { %v483_v5 = vsel %vm371_vm1, 1.0, %v453_v4  ;;  %v451_v6 = vpop.xlane.xlu0 %450  ;;  %vm562_vm1 = vcmask 7168  }
 0x16e   : > { %6132 = vlog2.f32 %v483_v5  ;;  %v482_v8 = vsel %vm370_vm2, 1.0, %v451_v6  ;;  %vm13339_vm2 = vcmp.eq.f32.partialorder %v7476_v20, -inf }
 0x16f   : > { %6134 = vlog2.f32 %v482_v8 }
 0x171   : > { %v455_v15 = vpop.xlane.xlu0 %454 }
 0x172   : > { %v484_v16 = vsel %vm372_vm4, 1.0, %v455_v15  ;;  %vm13224_vm4 = vcmask 15360  }
 0x173   : > { %6136 = vlog2.f32 %v484_v16 }
 0x174   : > { %v461_v21 = vpop.xlane.xlu1 %460 }
 0x175   : > { %v487_v22 = vsel %vm375_vm5, 1.0, %v461_v21  ;;  %v457_v27 = vpop.xlane.xlu0 %456  ;;  %vm13341_vm5 = vcmp.eq.f32.partialorder %v7490_v41, -inf }
 0x176   : > { %6138 = vlog2.f32 %v487_v22  ;;  %v485_v28 = vsel %vm373_vm3, 1.0, %v457_v27  ;;  %vm13340_vm3 = vcmp.eq.f32.partialorder %v7502_v17, -inf }
 0x177   : > { %6140 = vlog2.f32 %v485_v28 }
 0x178   : > { %v6133_v33 = vpop.eup %6132  ;;  %v465_v34 = vpop.xlane.xlu1 %464 }
 0x179   : > { %v6135_v39 = vpop.eup %6134  ;;  %v501_v40 = vmul.f32 0.6931472, %v6133_v33  ;;  %v489_v45 = vsel %vm377_vm7, 1.0, %v465_v34  ;;  %v459_v46 = vpop.xlane.xlu0 %458  ;;  %vm13343_vm7 = vcmp.eq.f32.partialorder %v7378_v52, -inf }
 0x17a   : > { %v499_v29 = vmul.f32 0.6931472, %v6135_v39  ;;  %6142 = vlog2.f32 %v489_v45  ;;  %v486_v30 = vsel %vm374_vm6, 1.0, %v459_v46  ;;  %vm13342_vm6 = vcmp.eq.f32.partialorder %v7504_v18, -inf }
 0x17b   : > { %6144 = vlog2.f32 %v486_v30  ;;  %v7660_v31 = vadd.f32 %v501_v40, %v7404_v1 }
 0x17c   : > { %v469_v32 = vpop.xlane.xlu1 %468  ;;  %v7668_v37 = vadd.f32 %v499_v29, %v7406_v2 }
 0x17d   : > { %v6137_v42 = vpop.eup %6136  ;;  %v491_v43 = vsel %vm379_vm9, 1.0, %v469_v32  ;;  %v463_v44 = vpop.xlane.xlu0 %462  ;;  %v547_v1 = vsub.f32 0.0, %v7660_v31  ;;  %vm13345_vm9 = vcmp.eq.f32.partialorder %v7376_v51, -inf }
 0x17e   : > { %v503_v3 = vmul.f32 0.6931472, %v6137_v42  ;;  %6146 = vlog2.f32 %v491_v43  ;;  %v488_v7 = vsel %vm376_vm8, 1.0, %v463_v44  ;;  %v546_v9 = vsub.f32 0.0, %v7668_v37 }
 0x17f   : > { %6148 = vlog2.f32 %v488_v7  ;;  %564 = vst.msk [vmem:[%s7665_s21 + $0x8] sm:$0xff] %vm562_vm1, %v547_v1  ;;  %vm13344_vm8 = vcmp.eq.f32.partialorder %v7374_v50, -inf }
 0x180   : > { %v6139_v2 = vpop.eup %6138  ;;  %v473_v10 = vpop.xlane.xlu1 %472  ;;  %563 = vst.msk [vmem:[%s7665_s21] sm:$0xff] %vm562_vm1, %v546_v9  ;;  %v7681_v13 = vadd.f32 %v503_v3, %v7420_v12 }
 0x181   : > { %v6141_v14 = vpop.eup %6140  ;;  %v509_v25 = vmul.f32 0.6931472, %v6139_v2  ;;  %v493_v26 = vsel %vm381_vm11, 1.0, %v473_v10  ;;  %v467_v4 = vpop.xlane.xlu0 %466 }
 0x182   : > { %v505_v5 = vmul.f32 0.6931472, %v6141_v14  ;;  %6150 = vlog2.f32 %v493_v26  ;;  %v490_v6 = vsel %vm378_vm10, 1.0, %v467_v4  ;;  %v548_v8 = vsub.f32 0.0, %v7681_v13 }
 0x183   : > { %6152 = vlog2.f32 %v490_v6  ;;  %v7689_v15 = vadd.f32 %v509_v25, %v7432_v23  ;;  %vm13346_vm10 = vcmp.eq.f32.partialorder %v7372_v49, -inf }
 0x184   : > { %v6143_v12 = vpop.eup %6142  ;;  %v477_v16 = vpop.xlane.xlu1 %476  ;;  %565 = vst.msk [vmem:[%s7665_s21 + $0x10] sm:$0xff] %vm562_vm1, %v548_v8  ;;  %v7694_v21 = vadd.f32 %v505_v5, %v7418_v11 }
 0x185   : > { %v6145_v22 = vpop.eup %6144  ;;  %v513_v27 = vmul.f32 0.6931472, %v6143_v12  ;;  %v495_v28 = vsel %vm383_vm13, 1.0, %v477_v16  ;;  %v471_v33 = vpop.xlane.xlu0 %470  ;;  %v551_v34 = vsub.f32 0.0, %v7689_v15  ;;  %vm13347_vm13 = vcmp.eq.f32.partialorder %v7380_v53, -inf }
 0x186   : > { %v507_v39 = vmul.f32 0.6931472, %v6145_v22  ;;  %6154 = vlog2.f32 %v495_v28  ;;  %v492_v23 = vsel %vm13339_vm2, 1.0, %v471_v33  ;;  %v549_v40 = vsub.f32 0.0, %v7694_v21 }
 0x187   : > { %6156 = vlog2.f32 %v492_v23  ;;  %568 = vst.msk [vmem:[%s7665_s21 + $0x28] sm:$0xff] %vm562_vm1, %v551_v34  ;;  %v7705_v11 = vadd.f32 %v513_v27, %v7446_v35 }
 0x188   : > { %v6147_v45 = vpop.eup %6146  ;;  %v481_v46 = vpop.xlane.xlu1 %480  ;;  %v7708_v29 = vadd.f32 %v507_v39, %v7434_v24  ;;  %566 = vst.msk [vmem:[%s7665_s21 + $0x18] sm:$0xff] %vm562_vm1, %v549_v40 }
 0x189   : > { %v6149_v30 = vpop.eup %6148  ;;  %v517_v32 = vmul.f32 0.6931472, %v6147_v45  ;;  %v497_v42 = vsel %vm13340_vm3, 1.0, %v481_v46  ;;  %v475_v43 = vpop.xlane.xlu0 %474  ;;  %v553_v44 = vsub.f32 0.0, %v7705_v11  ;;  %vm13349_vm3 = vcmp.eq.f32.partialorder %v7384_v55, -inf }
 0x18a   : > { %v511_v35 = vmul.f32 0.6931472, %v6149_v30  ;;  %6158 = vlog2.f32 %v497_v42  ;;  %v494_v1 = vsel %vm13341_vm5, 1.0, %v475_v43  ;;  %v550_v24 = vsub.f32 0.0, %v7708_v29 }
 0x18b   : > { %6160 = vlog2.f32 %v494_v1  ;;  %570 = vst.msk [vmem:[%s7665_s21 + $0x38] sm:$0xff] %vm562_vm1, %v553_v44  ;;  %v7721_v3 = vadd.f32 %v517_v32, %v7460_v47  ;;  %vm13350_vm5 = vcmp.eq.f32.partialorder %v7386_v56, -inf }
 0x18c   : > { %v6151_v7 = vpop.eup %6150  ;;  %v727_v9 = vpop.permute.xlu1 %726  ;;  %567 = vst.msk [vmem:[%s7665_s21 + $0x20] sm:$0xff] %vm562_vm1, %v550_v24  ;;  %v7726_v2 = vadd.f32 %v511_v35, %v7448_v36 }
 0x18d   : > { %v6153_v10 = vpop.eup %6152  ;;  %v521_v14 = vmul.f32 0.6931472, %v6151_v7  ;;  %v479_v25 = vpop.xlane.xlu0 %478  ;;  %v776_v26 = vsel %vm13224_vm4, %v727_v9, 0.0  ;;  %v555_v4 = vsub.f32 0.0, %v7721_v3 }
 0x18e   : > { %v515_v5 = vmul.f32 0.6931472, %v6153_v10  ;;  %v496_v47 = vsel %vm13342_vm6, 1.0, %v479_v25  ;;  %777 = vadd.xlane.f32.xlu1 %v776_v26  ;;  %v552_v6 = vsub.f32 0.0, %v7726_v2  ;;  %vm13351_vm6 = vcmp.eq.f32.partialorder %v7388_v57, -inf }
 0x18f   : > { %6162 = vlog2.f32 %v496_v47  ;;  %572 = vst.msk [vmem:[%s7665_s21 + $0x48] sm:$0xff] %vm562_vm1, %v555_v4  ;;  %v7736_v36 = vadd.f32 %v521_v14, %v7474_v19 }
 0x190   : > { %v6155_v8 = vpop.eup %6154  ;;  %v729_v12 = vpop.permute.xlu1 %728  ;;  %569 = vst.msk [vmem:[%s7665_s21 + $0x30] sm:$0xff] %vm562_vm1, %v552_v6  ;;  %v7741_v16 = vadd.f32 %v515_v5, %v7462_v48 }
 0x191   : > { %v6157_v22 = vpop.eup %6156  ;;  %v525_v27 = vmul.f32 0.6931472, %v6155_v8  ;;  %v725_v28 = vpop.permute.xlu0 %724  ;;  %v557_v33 = vsub.f32 0.0, %v7736_v36 }
 0x192   : > { %v519_v34 = vmul.f32 0.6931472, %v6157_v22  ;;  %v773_v39 = vsel %vm13224_vm4, %v725_v28, 0.0  ;;  %v554_v23 = vsub.f32 0.0, %v7741_v16 }
 0x193   : > { %774 = vadd.xlane.f32.xlu0 %v773_v39  ;;  %574 = vst.msk [vmem:[%s7665_s21 + $0x58] sm:$0xff] %vm562_vm1, %v557_v33  ;;  %v7749_v19 = vadd.f32 %v525_v27, %v7488_v38  ;;  %v779_v38 = vsel %vm13224_vm4, %v729_v12, 0.0 }
 0x194   : > { %v6159_v40 = vpop.eup %6158  ;;  %v731_v48 = vpop.permute.xlu1 %730  ;;  %571 = vst.msk [vmem:[%s7665_s21 + $0x40] sm:$0xff] %vm562_vm1, %v554_v23  ;;  %v7754_v45 = vadd.f32 %v519_v34, %v7476_v20 }
 0x195   : > { %v6161_v46 = vpop.eup %6160  ;;  %v529_v30 = vmul.f32 0.6931472, %v6159_v40  ;;  %v733_v32 = vpop.permute.xlu0 %732  ;;  %v782_v42 = vsel %vm13224_vm4, %v731_v48, 0.0  ;;  %v559_v43 = vsub.f32 0.0, %v7749_v19 }
 0x196   : > { %v523_v44 = vmul.f32 0.6931472, %v6161_v46  ;;  %783 = vadd.xlane.f32.xlu1 %v782_v42  ;;  %v556_v35 = vsub.f32 0.0, %v7754_v45  ;;  %v785_v26 = vsel %vm13224_vm4, %v733_v32, 0.0 }
 0x197   : > { %780 = vadd.xlane.f32.xlu0 %v779_v38  ;;  %576 = vst.msk [vmem:[%s7665_s21 + $0x68] sm:$0xff] %vm562_vm1, %v559_v43  ;;  %v7763_v20 = vadd.f32 %v529_v30, %v7502_v17 }
 0x198   : > { %v735_v1 = vpop.permute.xlu1 %734  ;;  %573 = vst.msk [vmem:[%s7665_s21 + $0x50] sm:$0xff] %vm562_vm1, %v556_v35  ;;  %v7768_v24 = vadd.f32 %v523_v44, %v7490_v41 }
 0x199   : > { %v6163_v7 = vpop.eup %6162  ;;  %v737_v9 = vpop.permute.xlu0 %736  ;;  %v788_v10 = vsel %vm13224_vm4, %v735_v1, 0.0  ;;  %v561_v14 = vsub.f32 0.0, %v7763_v20 }
 0x19a   : > { %v527_v25 = vmul.f32 0.6931472, %v6163_v7  ;;  %789 = vadd.xlane.f32.xlu1 %v788_v10  ;;  %v558_v17 = vsub.f32 0.0, %v7768_v24  ;;  %v791_v6 = vsel %vm13224_vm4, %v737_v9, 0.0 }
 0x19b   : > { %786 = vadd.xlane.f32.xlu0 %v785_v26  ;;  %578 = vst.msk [vmem:[%s7665_s21 + $0x78] sm:$0xff] %vm562_vm1, %v561_v14 }
 0x19c   : > { %v739_v4 = vpop.permute.xlu1 %738  ;;  %575 = vst.msk [vmem:[%s7665_s21 + $0x60] sm:$0xff] %vm562_vm1, %v558_v17  ;;  %v7779_v41 = vadd.f32 %v527_v25, %v7504_v18 }
 0x19d   : > { %v741_v5 = vpop.permute.xlu0 %740  ;;  %v794_v47 = vsel %vm13224_vm4, %v739_v4, 0.0 }
 0x19e   : > { %795 = vadd.xlane.f32.xlu1 %v794_v47  ;;  %v560_v8 = vsub.f32 0.0, %v7779_v41  ;;  %v797_v28 = vsel %vm13224_vm4, %v741_v5, 0.0 }
 0x19f   : > { %792 = vadd.xlane.f32.xlu0 %v791_v6 }
 0x1a0   : > { %v743_v12 = vpop.permute.xlu1 %742  ;;  %577 = vst.msk [vmem:[%s7665_s21 + $0x70] sm:$0xff] %vm562_vm1, %v560_v8  ;;  %vm13348_vm1 = vcmp.eq.f32.partialorder %v7382_v54, -inf }
 0x1a1   : > { %v745_v22 = vpop.permute.xlu0 %744  ;;  %v800_v27 = vsel %vm13224_vm4, %v743_v12, 0.0 }
 0x1a2   : > { %801 = vadd.xlane.f32.xlu1 %v800_v27  ;;  %v803_v39 = vsel %vm13224_vm4, %v745_v22, 0.0  ;;  %v286_v22 = vlaneseq }
 0x1a3   : > { %798 = vadd.xlane.f32.xlu0 %v797_v28 }
 0x1a4   : > { %v747_v18 = vpop.permute.xlu1 %746 }
 0x1a5   : > { %v749_v33 = vpop.permute.xlu0 %748  ;;  %v806_v34 = vsel %vm13224_vm4, %v747_v18, 0.0 }
 0x1a6   : > { %807 = vadd.xlane.f32.xlu1 %v806_v34  ;;  %v809_v48 = vsel %vm13224_vm4, %v749_v33, 0.0  ;;  %v7822_v33 = vand.u32 127, %v286_v22 }
 0x1a7   : > { %804 = vadd.xlane.f32.xlu0 %v803_v39 }
 0x1a8   : > { %v751_v23 = vpop.permute.xlu1 %750  ;;  %vm13223_vm11 = vcmp.eq.s32.totalorder %v7822_v33, 0  ;;  %vm13222_vm2 = vcmp.eq.s32.totalorder %v7822_v33, 127 }
 0x1a9   : > { %v812_v40 = vsel %vm13224_vm4, %v751_v23, 0.0  ;;  %v753_v46 = vpop.permute.xlu0 %752 }
 0x1aa   : > { %813 = vadd.xlane.f32.xlu1 %v812_v40  ;;  %v815_v42 = vsel %vm13224_vm4, %v753_v46, 0.0 }
 0x1ab   : > { %810 = vadd.xlane.f32.xlu0 %v809_v48 }
 0x1ac   : > { %v755_v30 = vpop.permute.xlu1 %754 }
 0x1ad   : > { %v818_v32 = vsel %vm13224_vm4, %v755_v30, 0.0  ;;  %v902_v35 = vpop.permute.xlu0 %901 }
 0x1ae   : > { %819 = vadd.xlane.f32.xlu1 %v818_v32  ;;  %v933_v48 = vsub.f32 %v902_v35, %v7668_v37 }
 0x1af   : > { %816 = vadd.xlane.f32.xlu0 %v815_v42 }
 0x1b0   : > { %v904_v43 = vpop.permute.xlu1 %903 }
 0x1b1   : > { %v910_v7 = vpop.permute.xlu0 %909  ;;  %v934_v46 = vsub.f32 %v904_v43, %v7660_v31  ;;  %v949_v43 = vsel %vm13223_vm11, 0.0, %v933_v48 }
 0x1b4   : > { %v906_v44 = vpop.permute.xlu1 %905 }
 0x1b5   : > { %v7800_v10 = vpop.permute.xlu0 %913 }
 0x1b8   : > { %v7794_v38 = vpop.permute.xlu1 %907 }
 0x1b9   : > { %v7804_v25 = vpop.permute.xlu0 %917 }
 0x1bc   : > { %v7796_v1 = vpop.permute.xlu1 %911 }
 0x1bd   : > { %v7808_v17 = vpop.permute.xlu0 %921 }
 0x1c0   : > { %v7798_v9 = vpop.permute.xlu1 %915 }
 0x1c1   : > { %v7812_v5 = vpop.permute.xlu0 %925 }
 0x1c4   : > { %v7802_v14 = vpop.permute.xlu1 %919 }
 0x1c5   : > { %v7816_v8 = vpop.permute.xlu0 %929 }
 0x1c8   : > { %v7806_v26 = vpop.permute.xlu1 %923 }
 0x1cc   : > { %v7810_v4 = vpop.permute.xlu1 %927 }
 0x1d0   : > { %v7814_v47 = vpop.permute.xlu1 %931 }
 0x21b   : > { %v778_v6 = vpop.xlane.xlu1 %777 }
 0x21c   : > { %v822_v12 = vsel %vm13343_vm7, 1.0, %v778_v6  ;;  %vm13352_vm7 = vcmp.eq.f32.partialorder %v7390_v58, -inf }
 0x21d   : > { %6164 = vlog2.f32 %v822_v12  ;;  %v937_v12 = vsub.f32 %v910_v7, %v7708_v29  ;;  %v939_v7 = vsub.f32 %v7800_v10, %v7726_v2 }
 0x21f   : > { %v7857_v48 = vsel %vm13223_vm11, 0.0, %v937_v12 }
 0x220   : > { %v775_v27 = vpop.xlane.xlu0 %774 }
 0x221   : > { %v821_v28 = vsel %vm13344_vm8, 1.0, %v775_v27  ;;  %v935_v27 = vsub.f32 %v906_v44, %v7681_v13  ;;  %vm13353_vm8 = vcmp.eq.f32.partialorder %v7392_v59, -inf }
 0x222   : > { %6166 = vlog2.f32 %v821_v28  ;;  %v950_v28 = vsel %vm13223_vm11, 0.0, %v934_v46  ;;  %v941_v46 = vsub.f32 %v7804_v25, %v7741_v16  ;;  %v7876_v25 = vsel %vm13223_vm11, 0.0, %v939_v7 }
 0x223   : > { %v784_v18 = vpop.xlane.xlu1 %783 }
 0x224   : > { %v824_v34 = vsel %vm13345_vm9, 1.0, %v784_v18  ;;  %v781_v39 = vpop.xlane.xlu0 %780  ;;  %v7887_v7 = vsel %vm13223_vm11, 0.0, %v941_v46 }
 0x225   : > { %6168 = vlog2.f32 %v824_v34  ;;  %v823_v23 = vsel %vm13346_vm10, 1.0, %v781_v39  ;;  %v936_v39 = vsub.f32 %v7794_v38, %v7694_v21 }
 0x226   : > { %6170 = vlog2.f32 %v823_v23 }
 0x227   : > { %v6165_v40 = vpop.eup %6164  ;;  %v790_v30 = vpop.xlane.xlu1 %789 }
 0x228   : > { %v840_v32 = vmul.f32 0.6931472, %v6165_v40  ;;  %v826_v42 = vsel %vm13347_vm13, 1.0, %v790_v30  ;;  %v787_v6 = vpop.xlane.xlu0 %786  ;;  %v7853_v40 = vld [vmem:[%s13202_s2] ss:$0 sm:$0xff] }
 0x229   : > { %6172 = vlog2.f32 %v826_v42  ;;  %v825_v22 = vsel %vm13348_vm1, 1.0, %v787_v6  ;;  %v938_v42 = vsub.f32 %v7796_v1, %v7689_v15  ;;  %v940_v6 = vsub.f32 %v7798_v9, %v7705_v11 }
 0x22a   : > { %v870_v35 = vadd.f32 %v840_v32, %v7378_v52  ;;  %6174 = vlog2.f32 %v825_v22 }
 0x22b   : > { %v796_v18 = vpop.xlane.xlu1 %795 }
 0x22c   : > { %v6167_v34 = vpop.eup %6166  ;;  %v886_v44 = vsub.f32 %v870_v35, %v7660_v31  ;;  %v828_v52 = vsel %vm13349_vm3, 1.0, %v796_v18  ;;  %v793_v23 = vpop.xlane.xlu0 %792  ;;  %v951_v31 = vsel %vm13223_vm11, 0.0, %v935_v27  ;;  %v998_v27 = vld [vmem:[%s7274_s9 + $0x48] sm:$0xff] }
 0x22d   : > { %v838_v10 = vmul.f32 0.6931472, %v6167_v34  ;;  %6176 = vlog2.f32 %v828_v52  ;;  %v827_v38 = vsel %vm13350_vm5, 1.0, %v793_v23 }
 0x22e   : > { %v966_v30 = vsel %vm13222_vm2, %v886_v44, %v950_v28  ;;  %6178 = vlog2.f32 %v827_v38  ;;  %v952_v28 = vsel %vm13223_vm11, 0.0, %v936_v39  ;;  %v954_v38 = vsel %vm13223_vm11, 0.0, %v938_v42 }
 0x22f   : > { %v6169_v32 = vpop.eup %6168  ;;  %v869_v12 = vadd.f32 %v838_v10, %v7374_v50  ;;  %v802_v22 = vpop.xlane.xlu1 %801  ;;  %v982_v35 = vadd.f32 %v7853_v40, %v966_v30 }
 0x230   : > { %v6171_v18 = vpop.eup %6170  ;;  %v844_v34 = vmul.f32 0.6931472, %v6169_v32  ;;  %v830_v1 = vsel %vm13351_vm6, 1.0, %v802_v22  ;;  %v799_v9 = vpop.xlane.xlu0 %798 }
 0x231   : > { %v885_v50 = vsub.f32 %v869_v12, %v7668_v37  ;;  %v842_v44 = vmul.f32 0.6931472, %v6171_v18  ;;  %6180 = vlog2.f32 %v830_v1  ;;  %v829_v52 = vsel %vm13352_vm7, 1.0, %v799_v9  ;;  %v997_v12 = vld [vmem:[%s7274_s9 + $0x8] sm:$0xff] }
 0x232   : > { %v872_v23 = vadd.f32 %v844_v34, %v7376_v51  ;;  %6182 = vlog2.f32 %v829_v52  ;;  %v7890_v39 = vadd.f32 %v998_v27, %v982_v35  ;;  %v7896_v37 = vsel %vm13223_vm11, 0.0, %v940_v6 }
 0x233   : > { %v6173_v10 = vpop.eup %6172  ;;  %v965_v30 = vsel %vm13222_vm2, %v885_v50, %v949_v43  ;;  %v871_v32 = vadd.f32 %v842_v44, %v7372_v49  ;;  %v808_v46 = vpop.xlane.xlu1 %807  ;;  %v942_v50 = vsub.f32 %v7802_v14, %v7721_v3 }
 0x234   : > { %v6175_v22 = vpop.eup %6174  ;;  %v888_v51 = vsub.f32 %v872_v23, %v7694_v21  ;;  %v848_v35 = vmul.f32 0.6931472, %v6173_v10  ;;  %1031 = vmax.xlane.f32.xlu1 %v7890_v39  ;;  %v832_v42 = vsel %vm13353_vm8, 1.0, %v808_v46  ;;  %v805_v27 = vpop.xlane.xlu0 %804  ;;  %v981_v6 = vadd.f32 %v7853_v40, %v965_v30  ;;  %v1000_v10 = vld [vmem:[%s7274_s9 + $0xc8] sm:$0xff] }
 0x235   : > { %v887_v18 = vsub.f32 %v871_v32, %v7681_v13  ;;  %v846_v43 = vmul.f32 0.6931472, %v6175_v22  ;;  %6184 = vlog2.f32 %v832_v42  ;;  %v831_v49 = vsel %vm638_vm12, 1.0, %v805_v27 }
 0x236   : > { %v968_v21 = vsel %vm13222_vm2, %v888_v51, %v952_v28  ;;  %v874_v34 = vadd.f32 %v848_v35, %v7380_v53  ;;  %6186 = vlog2.f32 %v831_v49  ;;  %v7913_v1 = vadd.f32 %v997_v12, %v981_v6  ;;  %v1002_v49 = vld [vmem:[%s7274_s9 + $0x148] sm:$0xff] }
 0x237   : > { %v6177_v9 = vpop.eup %6176  ;;  %v967_v13 = vsel %vm13222_vm2, %v887_v18, %v951_v31  ;;  %v873_v44 = vadd.f32 %v846_v43, %v7382_v54  ;;  %v814_v52 = vpop.xlane.xlu1 %813  ;;  %v984_v23 = vadd.f32 %v7853_v40, %v968_v21  ;;  %vm13354_vm12 = vcmp.eq.f32.partialorder %v7396_v61, -inf  ;;  %v999_v31 = vld [vmem:[%s7274_s9 + $0x88] sm:$0xff] }
 0x238   : > { %v6179_v28 = vpop.eup %6178  ;;  %v890_v53 = vsub.f32 %v874_v34, %v7689_v15  ;;  %v852_v30 = vmul.f32 0.6931472, %v6177_v9  ;;  %v834_v32 = vsel %vm13354_vm12, 1.0, %v814_v52  ;;  %1029 = vmax.xlane.f32.xlu0 %v7913_v1  ;;  %v811_v46 = vpop.xlane.xlu0 %810  ;;  %v983_v14 = vadd.f32 %v7853_v40, %v967_v13 }
 0x239   : > { %v889_v54 = vsub.f32 %v873_v44, %v7708_v29  ;;  %v850_v12 = vmul.f32 0.6931472, %v6179_v28  ;;  %6188 = vlog2.f32 %v834_v32  ;;  %v833_v22 = vsel %vm640_vm14, 1.0, %v811_v46  ;;  %v1004_v28 = vld [vmem:[%s7274_s9 + $0x1c8] sm:$0xff] }
 0x23a   : > { %v970_v15 = vsel %vm13222_vm2, %v890_v53, %v954_v38  ;;  %v876_v51 = vadd.f32 %v852_v30, %v7384_v55  ;;  %6190 = vlog2.f32 %v833_v22  ;;  %v7934_v35 = vadd.f32 %v1000_v10, %v984_v23 }
 0x23b   : > { %v6181_v42 = vpop.eup %6180  ;;  %v969_v27 = vsel %vm13222_vm2, %v889_v54, %v7857_v48  ;;  %v875_v29 = vadd.f32 %v850_v12, %v7386_v56  ;;  %v820_v6 = vpop.xlane.xlu1 %819  ;;  %v7940_v18 = vadd.f32 %v999_v31, %v983_v14  ;;  %v986_v43 = vadd.f32 %v7853_v40, %v970_v15  ;;  %v1001_v56 = vld [vmem:[%s7274_s9 + $0x108] sm:$0xff] }
 0x23c   : > { %v6183_v38 = vpop.eup %6182  ;;  %v892_v55 = vsub.f32 %v876_v51, %v7705_v11  ;;  %v856_v21 = vmul.f32 0.6931472, %v6181_v42  ;;  %v836_v34 = vsel %vm643_vm15, 1.0, %v820_v6  ;;  %1035 = vmax.xlane.f32.xlu1 %v7934_v35  ;;  %v817_v9 = vpop.xlane.xlu0 %816  ;;  %v985_v48 = vadd.f32 %v7853_v40, %v969_v27  ;;  %v1003_v14 = vld [vmem:[%s7274_s9 + $0x188] sm:$0xff] }
 0x23d   : > { %v891_v13 = vsub.f32 %v875_v29, %v7726_v2  ;;  %v854_v44 = vmul.f32 0.6931472, %v6183_v38  ;;  %6192 = vlog2.f32 %v836_v34  ;;  %1033 = vmax.xlane.f32.xlu0 %v7940_v18  ;;  %v835_v11 = vsel %vm642_vm0, 1.0, %v817_v9  ;;  %v1006_v27 = vld [vmem:[%s7274_s9 + $0x248] sm:$0xff] }
 0x23e   : > { %v972_v52 = vsel %vm13222_vm2, %v892_v55, %v7896_v37  ;;  %v878_v23 = vadd.f32 %v856_v21, %v7388_v57  ;;  %6194 = vlog2.f32 %v835_v11  ;;  %v7958_v10 = vadd.f32 %v1002_v49, %v986_v43  ;;  %v1005_v43 = vld [vmem:[%s7274_s9 + $0x208] sm:$0xff] }
 0x23f   : > { %v6185_v53 = vpop.eup %6184  ;;  %v971_v2 = vsel %vm13222_vm2, %v891_v13, %v7876_v25  ;;  %v877_v30 = vadd.f32 %v854_v44, %v7390_v58  ;;  %v7965_v32 = vadd.f32 %v1001_v56, %v985_v48  ;;  %v988_v46 = vadd.f32 %v7853_v40, %v972_v52  ;;  %v1008_v56 = vld [vmem:[%s7274_s9 + $0x2c8] sm:$0xff] }
 0x240   : > { %v6187_v37 = vpop.eup %6186  ;;  %v958_v57 = vsel %vm13223_vm11, 0.0, %v942_v50  ;;  %v894_v31 = vsub.f32 %v878_v23, %v7721_v3  ;;  %v860_v54 = vmul.f32 0.6931472, %v6185_v53  ;;  %1039 = vmax.xlane.f32.xlu1 %v7958_v10  ;;  %v987_v12 = vadd.f32 %v7853_v40, %v971_v2  ;;  %v1007_v23 = vld [vmem:[%s7274_s9 + $0x288] sm:$0xff] }
 0x241   : > { %v944_v58 = vsub.f32 %v7806_v26, %v7736_v36  ;;  %v893_v25 = vsub.f32 %v877_v30, %v7741_v16  ;;  %v858_v22 = vmul.f32 0.6931472, %v6187_v37  ;;  %1037 = vmax.xlane.f32.xlu0 %v7965_v32  ;;  %v7978_v15 = vadd.f32 %v1004_v28, %v988_v46 }
 0x242   : > { %v943_v50 = vsub.f32 %v7808_v17, %v7754_v45  ;;  %v974_v3 = vsel %vm13222_vm2, %v894_v31, %v958_v57  ;;  %v880_v51 = vadd.f32 %v860_v54, %v7392_v59  ;;  %v7985_v42 = vadd.f32 %v1003_v14, %v987_v12  ;;  %v1010_v12 = vld [vmem:[%s7274_s9 + $0x348] sm:$0xff] }
 0x243   : > { %v6189_v29 = vpop.eup %6188  ;;  %v945_v16 = vsub.f32 %v7812_v5, %v7768_v24  ;;  %v973_v26 = vsel %vm13222_vm2, %v893_v25, %v7887_v7  ;;  %v879_v6 = vadd.f32 %v858_v22, %v7394_v60  ;;  %v990_v17 = vadd.f32 %v7853_v40, %v974_v3  ;;  %v1009_v25 = vld [vmem:[%s7274_s9 + $0x308] sm:$0xff] }
 0x244   : > { %v6191_v49 = vpop.eup %6190  ;;  %v946_v59 = vsub.f32 %v7810_v4, %v7749_v19  ;;  %v896_v38 = vsub.f32 %v880_v51, %v7736_v36  ;;  %v864_v55 = vmul.f32 0.6931472, %v6189_v29  ;;  %1043 = vmax.xlane.f32.xlu1 %v7978_v15  ;;  %v989_v5 = vadd.f32 %v7853_v40, %v973_v26  ;;  %v1011_v26 = vld [vmem:[%s7274_s9 + $0x388] sm:$0xff] }
 0x245   : > { %v960_v7 = vsel %vm13223_vm11, 0.0, %v944_v58  ;;  %v895_v60 = vsub.f32 %v879_v6, %v7754_v45  ;;  %v862_v21 = vmul.f32 0.6931472, %v6191_v49  ;;  %1041 = vmax.xlane.f32.xlu0 %v7985_v42  ;;  %v8005_v34 = vadd.f32 %v1006_v27, %v990_v17  ;;  %v1012_v27 = vld [vmem:[%s7274_s9 + $0x3c8] sm:$0xff] }
 0x246   : > { %v959_v4 = vsel %vm13223_vm11, 0.0, %v943_v50  ;;  %v976_v36 = vsel %vm13222_vm2, %v896_v38, %v960_v7  ;;  %v882_v9 = vadd.f32 %v864_v55, %v7396_v61  ;;  %v8012_v48 = vadd.f32 %v1005_v43, %v989_v5 }
 0x247   : > { %v6193_v13 = vpop.eup %6192  ;;  %v961_v45 = vsel %vm13223_vm11, 0.0, %v945_v16  ;;  %v975_v44 = vsel %vm13222_vm2, %v895_v60, %v959_v4  ;;  %v881_v11 = vadd.f32 %v862_v21, %v7398_v62  ;;  %v992_v52 = vadd.f32 %v7853_v40, %v976_v36 }
 0x248   : > { %v6195_v28 = vpop.eup %6194  ;;  %v962_v61 = vsel %vm13223_vm11, 0.0, %v946_v59  ;;  %v898_v53 = vsub.f32 %v882_v9, %v7749_v19  ;;  %v868_v2 = vmul.f32 0.6931472, %v6193_v13  ;;  %1047 = vmax.xlane.f32.xlu1 %v8005_v34  ;;  %v991_v30 = vadd.f32 %v7853_v40, %v975_v44 }
 0x249   : > { %v948_v46 = vsub.f32 %v7814_v47, %v7763_v20  ;;  %v897_v62 = vsub.f32 %v881_v11, %v7768_v24  ;;  %v866_v14 = vmul.f32 0.6931472, %v6195_v28  ;;  %1045 = vmax.xlane.f32.xlu0 %v8012_v48  ;;  %v8031_v37 = vadd.f32 %v1008_v56, %v992_v52 }
 0x24a   : > { %v947_v57 = vsub.f32 %v7816_v8, %v7779_v41  ;;  %v978_v19 = vsel %vm13222_vm2, %v898_v53, %v962_v61  ;;  %v884_v31 = vadd.f32 %v868_v2, %v7400_v63  ;;  %v8038_v54 = vadd.f32 %v1007_v23, %v991_v30 }
 0x24b   : > { %v977_v24 = vsel %vm13222_vm2, %v897_v62, %v961_v45  ;;  %v883_v47 = vadd.f32 %v866_v14, %v7402_v0  ;;  %v994_v58 = vadd.f32 %v7853_v40, %v978_v19  ;;  %v964_v63 = vsel %vm13223_vm11, 0.0, %v948_v46 }
 0x24c   : > { %v900_v8 = vsub.f32 %v884_v31, %v7763_v20  ;;  %1051 = vmax.xlane.f32.xlu1 %v8031_v37  ;;  %v993_v22 = vadd.f32 %v7853_v40, %v977_v24  ;;  %v963_v0 = vsel %vm13223_vm11, 0.0, %v947_v57  ;;  %vm13355_vm0 = vcmask 1048560  }
 0x24d   : > { %v899_v50 = vsub.f32 %v883_v47, %v7779_v41  ;;  %1049 = vmax.xlane.f32.xlu0 %v8038_v54  ;;  %v8053_v3 = vadd.f32 %v1010_v12, %v994_v58  ;;  %vm13356_vm14 = vmmov %vm13355_vm0 }
 0x24e   : > { %v980_v51 = vsel %vm13222_vm2, %v900_v8, %v964_v63  ;;  %v8059_v20 = vadd.f32 %v1009_v25, %v993_v22  ;;  %v1276_v43 = vsel %vm13356_vm14, %v7940_v18, -inf  ;;  %vm13357_vm15 = vmmov %vm13355_vm0 }
 0x24f   : > { %v979_v29 = vsel %vm13222_vm2, %v899_v50, %v963_v0  ;;  %v996_v16 = vadd.f32 %v7853_v40, %v980_v51  ;;  %v1273_v49 = vsel %vm13357_vm15, %v7890_v39, -inf  ;;  %vm13358_vm9 = vmmov %vm13355_vm0 }
 0x250   : > { %1055 = vmax.xlane.f32.xlu1 %v8053_v3  ;;  %v995_v41 = vadd.f32 %v7853_v40, %v979_v29  ;;  %v1270_v40 = vsel %vm13355_vm0, %v7913_v1, -inf  ;;  %v1279_v59 = vsel %vm13358_vm9, %v7934_v35, -inf  ;;  %vm13359_vm10 = vmmov %vm13355_vm0  ;;  %v1306_v56 = vsel %vm13355_vm0, %v8059_v20, -inf }
 0x251   : > { %1053 = vmax.xlane.f32.xlu0 %v8059_v20  ;;  %v8069_v6 = vadd.f32 %v1012_v27, %v996_v16  ;;  %v1285_v38 = vsel %vm13359_vm10, %v7958_v10, -inf  ;;  %vm13360_vm13 = vmmov %vm13355_vm0 }
 0x252   : > { %v8071_v17 = vadd.f32 %v1011_v26, %v995_v41  ;;  %v1282_v55 = vsel %vm13360_vm13, %v7965_v32, -inf  ;;  %vm13361_vm1 = vmmov %vm13355_vm0 }
 0x253   : > { %v1291_v5 = vsel %vm13361_vm1, %v7978_v15, -inf  ;;  %vm13362_vm3 = vmmov %vm13355_vm0 }
 0x254   : > { %1059 = vmax.xlane.f32.xlu1 %v8069_v6  ;;  %v1288_v7 = vsel %vm13362_vm3, %v7985_v42, -inf  ;;  %vm13363_vm5 = vmmov %vm13355_vm0 }
 0x255   : > { %1057 = vmax.xlane.f32.xlu0 %v8071_v17  ;;  %v1297_v60 = vsel %vm13363_vm5, %v8005_v34, -inf  ;;  %vm13364_vm6 = vmmov %vm13355_vm0 }
 0x256   : > { %v1294_v21 = vsel %vm13364_vm6, %v8012_v48, -inf  ;;  %vm13365_vm7 = vmmov %vm13355_vm0 }
 0x257   : > { %v1303_v4 = vsel %vm13365_vm7, %v8031_v37, -inf  ;;  %vm13366_vm8 = vmmov %vm13355_vm0 }
 0x258   : > { %v1300_v36 = vsel %vm13366_vm8, %v8038_v54, -inf  ;;  %vm13367_vm12 = vmmov %vm13355_vm0 }
 0x259   : > { %v1309_v9 = vsel %vm13367_vm12, %v8053_v3, -inf  ;;  %vm13368_vm14 = vmmov %vm13355_vm0 }
 0x25a   : > { %v1315_v13 = vsel %vm13368_vm14, %v8069_v6, -inf  ;;  %vm13369_vm15 = vmmov %vm13355_vm0 }
 0x25b   : > { %v1312_v44 = vsel %vm13369_vm15, %v8071_v17, -inf }
 0x265   : > { %1592 = vrot.lane.b32.xlu1 %v7890_v39, %s7180_s11 }
 0x269   : > { %1594 = vrot.lane.b32.xlu1 %v7940_v18, %s7180_s11 }
 0x26b   : > { %1590 = vrot.lane.b32.xlu0 %v7913_v1, %s7180_s11 }
 0x26d   : > { %1596 = vrot.lane.b32.xlu1 %v7934_v35, %s7180_s11 }
 0x26f   : > { %1598 = vrot.lane.b32.xlu0 %v7965_v32, %s7180_s11 }
 0x271   : > { %1600 = vrot.lane.b32.xlu1 %v7958_v10, %s7180_s11 }
 0x273   : > { %1602 = vrot.lane.b32.xlu0 %v7985_v42, %s7180_s11 }
 0x275   : > { %1604 = vrot.lane.b32.xlu1 %v7978_v15, %s7180_s11 }
 0x277   : > { %1606 = vrot.lane.b32.xlu0 %v8012_v48, %s7180_s11 }
 0x279   : > { %1608 = vrot.lane.b32.xlu1 %v8005_v34, %s7180_s11 }
 0x27b   : > { %1610 = vrot.lane.b32.xlu0 %v8038_v54, %s7180_s11 }
 0x27d   : > { %1612 = vrot.lane.b32.xlu1 %v8031_v37, %s7180_s11 }
 0x27f   : > { %1614 = vrot.lane.b32.xlu0 %v8059_v20, %s7180_s11 }
 0x281   : > { %1616 = vrot.lane.b32.xlu1 %v8053_v3, %s7180_s11 }
 0x283   : > { %1618 = vrot.lane.b32.xlu0 %v8071_v17, %s7180_s11 }
 0x285   : > { %1620 = vrot.lane.b32.xlu1 %v8069_v6, %s7180_s11 }
 0x2a2   : > { %1271 = vmax.xlane.f32.xlu0 %v1270_v40 }
 0x2a6   : > { %1277 = vmax.xlane.f32.xlu0 %v1276_v43 }
 0x2a9   : > { %1274 = vmax.xlane.f32.xlu1 %v1273_v49 }
 0x2aa   : > { %1280 = vmax.xlane.f32.xlu0 %v1279_v59 }
 0x2ad   : > { %1286 = vmax.xlane.f32.xlu1 %v1285_v38 }
 0x2ae   : > { %1283 = vmax.xlane.f32.xlu0 %v1282_v55 }
 0x2b1   : > { %1292 = vmax.xlane.f32.xlu1 %v1291_v5 }
 0x2b2   : > { %1289 = vmax.xlane.f32.xlu0 %v1288_v7 }
 0x2b5   : > { %1298 = vmax.xlane.f32.xlu1 %v1297_v60 }
 0x2b6   : > { %1295 = vmax.xlane.f32.xlu0 %v1294_v21 }
 0x2b9   : > { %1304 = vmax.xlane.f32.xlu1 %v1303_v4 }
 0x2ba   : > { %1301 = vmax.xlane.f32.xlu0 %v1300_v36 }
 0x2bd   : > { %1310 = vmax.xlane.f32.xlu1 %v1309_v9 }
 0x2be   : > { %1307 = vmax.xlane.f32.xlu0 %v1306_v56 }
 0x2c1   : > { %v8137_v45 = vpop.xlane.xlu1 %1031  ;;  %1316 = vmax.xlane.f32.xlu1 %v1315_v13 }
 0x2c2   : > { %vm1062_vm9 = vcmp.eq.f32.partialorder %v8137_v45, -inf  ;;  %1313 = vmax.xlane.f32.xlu0 %v1312_v44 }
 0x2c3   : > { %v1078_v11 = vsel %vm1062_vm9, 0.0, %v8137_v45 }
 0x2c4   : > { %v1094_v52 = vsub.f32 %v7890_v39, %v1078_v11 }
 0x2c5   : > { %v8146_v23 = vpop.xlane.xlu0 %1029 }
 0x2c6   : > { %v1111_v28 = vmul.f32 1.442695, %v1094_v52  ;;  %vm1061_vm10 = vcmp.eq.f32.partialorder %v8146_v23, -inf }
 0x2c7   : > { %v1077_v61 = vsel %vm1061_vm10, 0.0, %v8146_v23 }
 0x2c8   : > { %6196 = vpow2.f32 %v1111_v28  ;;  %v1093_v53 = vsub.f32 %v7913_v1, %v1077_v61 }
 0x2c9   : > { %v8153_v2 = vpop.xlane.xlu1 %1035 }
 0x2ca   : > { %v1109_v30 = vmul.f32 1.442695, %v1093_v53  ;;  %vm1064_vm13 = vcmp.eq.f32.partialorder %v8153_v2, -inf  ;;  %v8156_v46 = vpop.xlane.xlu0 %1033 }
 0x2cb   : > { %v1080_v62 = vsel %vm1064_vm13, 0.0, %v8153_v2  ;;  %vm1063_vm1 = vcmp.eq.f32.partialorder %v8156_v46, -inf }
 0x2cc   : > { %6198 = vpow2.f32 %v1109_v30  ;;  %v1079_v14 = vsel %vm1063_vm1, 0.0, %v8156_v46  ;;  %v1096_v57 = vsub.f32 %v7934_v35, %v1080_v62 }
 0x2cd   : > { %v1095_v19 = vsub.f32 %v7940_v18, %v1079_v14  ;;  %v8167_v31 = vpop.xlane.xlu1 %1039 }
 0x2ce   : > { %vm1066_vm3 = vcmp.eq.f32.partialorder %v8167_v31, -inf  ;;  %v8170_v12 = vpop.xlane.xlu0 %1037  ;;  %v1115_v8 = vmul.f32 1.442695, %v1096_v57 }
 0x2cf   : > { %v1113_v24 = vmul.f32 1.442695, %v1095_v19  ;;  %v1082_v47 = vsel %vm1066_vm3, 0.0, %v8167_v31  ;;  %vm1065_vm5 = vcmp.eq.f32.partialorder %v8170_v12, -inf }
 0x2d0   : > { %v1098_v58 = vsub.f32 %v7958_v10, %v1082_v47  ;;  %v1081_v25 = vsel %vm1065_vm5, 0.0, %v8170_v12 }
 0x2d1   : > { %6200 = vpow2.f32 %v1113_v24  ;;  %v1097_v22 = vsub.f32 %v7965_v32, %v1081_v25  ;;  %v8181_v63 = vpop.xlane.xlu1 %1043 }
 0x2d2   : > { %v6197_v50 = vpop.eup %6196  ;;  %v1119_v0 = vmul.f32 1.442695, %v1098_v58  ;;  %vm1068_vm6 = vcmp.eq.f32.partialorder %v8181_v63, -inf  ;;  %v8184_v51 = vpop.xlane.xlu0 %1041 }
 0x2d3   : > { %v1084_v27 = vsel %vm1068_vm6, 0.0, %v8181_v63  ;;  %vm1067_vm7 = vcmp.eq.f32.partialorder %v8184_v51, -inf  ;;  %1143 = vadd.xlane.f32.xlu1 %v6197_v50  ;;  %v1117_v26 = vmul.f32 1.442695, %v1097_v22 }
 0x2d4   : > { %6202 = vpow2.f32 %v1119_v0  ;;  %v1100_v29 = vsub.f32 %v7978_v15, %v1084_v27  ;;  %v1083_v16 = vsel %vm1067_vm7, 0.0, %v8184_v51 }
 0x2d5   : > { %6204 = vpow2.f32 %v1115_v8  ;;  %v1099_v41 = vsub.f32 %v7985_v42, %v1083_v16  ;;  %v8195_v40 = vpop.xlane.xlu1 %1047 }
 0x2d6   : > { %v6199_v43 = vpop.eup %6198  ;;  %v1123_v49 = vmul.f32 1.442695, %v1100_v29  ;;  %vm1070_vm8 = vcmp.eq.f32.partialorder %v8195_v40, -inf  ;;  %v8198_v59 = vpop.xlane.xlu0 %1045 }
 0x2d7   : > { %v1086_v38 = vsel %vm1070_vm8, 0.0, %v8195_v40  ;;  %vm1069_vm12 = vcmp.eq.f32.partialorder %v8198_v59, -inf  ;;  %1141 = vadd.xlane.f32.xlu0 %v6199_v43  ;;  %v1121_v7 = vmul.f32 1.442695, %v1099_v41 }
 0x2d8   : > { %6206 = vpow2.f32 %v1123_v49  ;;  %v1102_v55 = vsub.f32 %v8005_v34, %v1086_v38  ;;  %v1085_v5 = vsel %vm1069_vm12, 0.0, %v8198_v59 }
 0x2d9   : > { %6208 = vpow2.f32 %v1117_v26  ;;  %v1101_v60 = vsub.f32 %v8012_v48, %v1085_v5  ;;  %v8209_v21 = vpop.xlane.xlu1 %1051 }
 0x2da   : > { %v1127_v4 = vmul.f32 1.442695, %v1102_v55  ;;  %vm1072_vm0 = vcmp.eq.f32.partialorder %v8209_v21, -inf  ;;  %v8212_v36 = vpop.xlane.xlu0 %1049 }
 0x2db   : > { %v6201_v9 = vpop.eup %6200  ;;  %v1088_v56 = vsel %vm1072_vm0, 0.0, %v8209_v21  ;;  %vm13230_vm14 = vcmp.eq.f32.partialorder %v8212_v36, -inf  ;;  %v1125_v11 = vmul.f32 1.442695, %v1101_v60 }
 0x2dc   : > { %6210 = vpow2.f32 %v1127_v4  ;;  %v1104_v13 = vsub.f32 %v8031_v37, %v1088_v56  ;;  %v1087_v44 = vsel %vm13230_vm14, 0.0, %v8212_v36  ;;  %1145 = vadd.xlane.f32.xlu0 %v6201_v9 }
 0x2dd   : > { %6212 = vpow2.f32 %v1121_v7  ;;  %v1103_v52 = vsub.f32 %v8038_v54, %v1087_v44  ;;  %v8223_v28 = vpop.xlane.xlu1 %1055 }
 0x2de   : > { %v6203_v61 = vpop.eup %6202  ;;  %v1131_v53 = vmul.f32 1.442695, %v1104_v13  ;;  %vm1074_vm15 = vcmp.eq.f32.partialorder %v8223_v28, -inf  ;;  %v8226_v30 = vpop.xlane.xlu0 %1053 }
 0x2df   : > { %v6205_v62 = vpop.eup %6204  ;;  %v1090_v14 = vsel %vm1074_vm15, 0.0, %v8223_v28  ;;  %vm13226_vm2 = vcmp.eq.f32.partialorder %v8226_v30, -inf  ;;  %1151 = vadd.xlane.f32.xlu1 %v6203_v61  ;;  %v1129_v24 = vmul.f32 1.442695, %v1103_v52 }
 0x2e0   : > { %6214 = vpow2.f32 %v1131_v53  ;;  %v1106_v57 = vsub.f32 %v8053_v3, %v1090_v14  ;;  %v1089_v19 = vsel %vm13226_vm2, 0.0, %v8226_v30  ;;  %1147 = vadd.xlane.f32.xlu0 %v6205_v62 }
 0x2e1   : > { %6216 = vpow2.f32 %v1125_v11  ;;  %v1105_v47 = vsub.f32 %v8059_v20, %v1089_v19  ;;  %v8237_v58 = vpop.xlane.xlu1 %1059 }
 0x2e2   : > { %v6207_v25 = vpop.eup %6206  ;;  %v1135_v8 = vmul.f32 1.442695, %v1106_v57  ;;  %vm13227_vm11 = vcmp.eq.f32.partialorder %v8237_v58, -inf  ;;  %v8240_v22 = vpop.xlane.xlu0 %1057 }
 0x2e3   : > { %v6209_v50 = vpop.eup %6208  ;;  %v1092_v0 = vsel %vm13227_vm11, 0.0, %v8237_v58  ;;  %vm13225_vm4 = vcmp.eq.f32.partialorder %v8240_v22, -inf  ;;  %1155 = vadd.xlane.f32.xlu1 %v6207_v25  ;;  %v1133_v16 = vmul.f32 1.442695, %v1105_v47 }
 0x2e4   : > { %6218 = vpow2.f32 %v1135_v8  ;;  %v1108_v27 = vsub.f32 %v8069_v6, %v1092_v0  ;;  %v1091_v29 = vsel %vm13225_vm4, 0.0, %v8240_v22  ;;  %1149 = vadd.xlane.f32.xlu0 %v6209_v50 }
 0x2e5   : > { %6220 = vpow2.f32 %v1129_v24  ;;  %v1107_v26 = vsub.f32 %v8071_v17, %v1091_v29  ;;  %v8251_v13 = vpop.permute.xlu1 %1592 }
 0x2e6   : > { %v6211_v41 = vpop.eup %6210  ;;  %v1139_v43 = vmul.f32 1.442695, %v1108_v27  ;;  %v8253_v44 = vpop.permute.xlu0 %1590 }
 0x2e7   : > { %v6213_v49 = vpop.eup %6212  ;;  %1159 = vadd.xlane.f32.xlu1 %v6211_v41  ;;  %v1137_v38 = vmul.f32 1.442695, %v1107_v26 }
 0x2e8   : > { %6222 = vpow2.f32 %v1139_v43  ;;  %1153 = vadd.xlane.f32.xlu0 %v6213_v49 }
 0x2e9   : > { %6224 = vpow2.f32 %v1133_v16  ;;  %v8255_v11 = vpop.permute.xlu1 %1594 }
 0x2ea   : > { %v6215_v55 = vpop.eup %6214  ;;  %6226 = vpow2.f32 %v1137_v38  ;;  %v8257_v52 = vpop.permute.xlu0 %1598 }
 0x2eb   : > { %v6217_v5 = vpop.eup %6216  ;;  %1163 = vadd.xlane.f32.xlu1 %v6215_v55 }
 0x2ec   : > { %1157 = vadd.xlane.f32.xlu0 %v6217_v5 }
 0x2ed   : > { %v8259_v61 = vpop.permute.xlu1 %1596 }
 0x2ee   : > { %v6219_v7 = vpop.eup %6218  ;;  %v8261_v53 = vpop.permute.xlu0 %1602 }
 0x2ef   : > { %v6221_v60 = vpop.eup %6220  ;;  %1167 = vadd.xlane.f32.xlu1 %v6219_v7 }
 0x2f0   : > { %1161 = vadd.xlane.f32.xlu0 %v6221_v60 }
 0x2f1   : > { %v8263_v62 = vpop.permute.xlu1 %1600 }
 0x2f2   : > { %v6223_v4 = vpop.eup %6222  ;;  %v8265_v14 = vpop.permute.xlu0 %1606 }
 0x2f3   : > { %v6225_v9 = vpop.eup %6224  ;;  %1171 = vadd.xlane.f32.xlu1 %v6223_v4 }
 0x2f4   : > { %1165 = vadd.xlane.f32.xlu0 %v6225_v9  ;;  %v6227_v56 = vpop.eup %6226 }
 0x2f5   : > { %v8267_v57 = vpop.permute.xlu1 %1604 }
 0x2f6   : > { %v8269_v19 = vpop.permute.xlu0 %1610 }
 0x2f8   : > { %1169 = vadd.xlane.f32.xlu0 %v6227_v56 }
 0x2f9   : > { %v8271_v24 = vpop.permute.xlu1 %1608 }
 0x2fa   : > { %v8273_v47 = vpop.permute.xlu0 %1614 }
 0x2fd   : > { %v8275_v25 = vpop.permute.xlu1 %1612 }
 0x2fe   : > { %v8277_v8 = vpop.permute.xlu0 %1618 }
 0x301   : > { %v8279_v50 = vpop.permute.xlu1 %1616 }
 0x305   : > { %v8287_v29 = vpop.permute.xlu1 %1620 }
 0x306   : > { %13370 = vst [vmem:[#allocation6_spill] sm:$0xff] %v8287_v29 }
 0x32f   : > { %v8281_v0 = vpop.xlane.xlu0 %1271 }
 0x330   : > { %vm13228_vm4 = vcmp.eq.f32.partialorder %v8281_v0, -inf }
 0x331   : > { %v1334_v27 = vsel %vm13228_vm4, 0.0, %v8281_v0 }
 0x332   : > { %v1350_v16 = vsub.f32 %v7913_v1, %v1334_v27 }
 0x333   : > { %v8290_v26 = vpop.xlane.xlu0 %1277 }
 0x334   : > { %v1366_v41 = vmul.f32 1.442695, %v1350_v16  ;;  %vm13229_vm2 = vcmp.eq.f32.partialorder %v8290_v26, -inf }
 0x335   : > { %v1336_v43 = vsel %vm13229_vm2, 0.0, %v8290_v26 }
 0x336   : > { %6228 = vpow2.f32 %v1366_v41  ;;  %v8296_v49 = vpop.xlane.xlu1 %1274  ;;  %v1352_v55 = vsub.f32 %v7940_v18, %v1336_v43 }
 0x337   : > { %vm13232_vm11 = vcmp.eq.f32.partialorder %v8296_v49, -inf  ;;  %v8299_v38 = vpop.xlane.xlu0 %1280 }
 0x338   : > { %v1335_v1 = vsel %vm13232_vm11, 0.0, %v8296_v49  ;;  %vm13231_vm4 = vcmp.eq.f32.partialorder %v8299_v38, -inf  ;;  %v1370_v56 = vmul.f32 1.442695, %v1352_v55 }
 0x339   : > { %v1351_v5 = vsub.f32 %v7890_v39, %v1335_v1  ;;  %v1337_v7 = vsel %vm13231_vm4, 0.0, %v8299_v38 }
 0x33a   : > { %v8310_v60 = vpop.xlane.xlu1 %1286  ;;  %v1353_v27 = vsub.f32 %v7934_v35, %v1337_v7 }
 0x33b   : > { %v1368_v4 = vmul.f32 1.442695, %v1351_v5  ;;  %vm13233_vm2 = vcmp.eq.f32.partialorder %v8310_v60, -inf  ;;  %v8313_v9 = vpop.xlane.xlu0 %1283 }
 0x33c   : > { %vm13234_vm14 = vcmp.eq.f32.partialorder %v8313_v9, -inf  ;;  %v1339_v18 = vsel %vm13233_vm2, 0.0, %v8310_v60  ;;  %v1372_v35 = vmul.f32 1.442695, %v1353_v27 }
 0x33d   : > { %6230 = vpow2.f32 %v1368_v4  ;;  %v1338_v39 = vsel %vm13234_vm14, 0.0, %v8313_v9  ;;  %v1355_v5 = vsub.f32 %v7958_v10, %v1339_v18 }
 0x33e   : > { %v1354_v16 = vsub.f32 %v7965_v32, %v1338_v39  ;;  %v8324_v41 = vpop.xlane.xlu1 %1292  ;;  %6232 = vpow2.f32 %v1370_v56 }
 0x33f   : > { %vm13235_vm4 = vcmp.eq.f32.partialorder %v8324_v41, -inf  ;;  %v8327_v43 = vpop.xlane.xlu0 %1289  ;;  %v1376_v27 = vmul.f32 1.442695, %v1355_v5 }
 0x340   : > { %v6229_v1 = vpop.eup %6228  ;;  %v1374_v55 = vmul.f32 1.442695, %v1354_v16  ;;  %vm13236_vm11 = vcmp.eq.f32.partialorder %v8327_v43, -inf  ;;  %v1341_v32 = vsel %vm13235_vm4, 0.0, %v8324_v41 }
 0x341   : > { %v1340_v7 = vsel %vm13236_vm11, 0.0, %v8327_v43  ;;  %1414 = vrot.lane.b32.xlu0 %v6229_v1, %s7179_s10  ;;  %v1357_v18 = vsub.f32 %v7978_v15, %v1341_v32 }
 0x342   : > { %6234 = vpow2.f32 %v1374_v55  ;;  %v1356_v4 = vsub.f32 %v7985_v42, %v1340_v7  ;;  %v8339_v39 = vpop.xlane.xlu1 %1298 }
 0x343   : > { %vm13237_vm2 = vcmp.eq.f32.partialorder %v8339_v39, -inf  ;;  %v8342_v56 = vpop.xlane.xlu0 %1295  ;;  %6236 = vpow2.f32 %v1372_v35  ;;  %v1380_v15 = vmul.f32 1.442695, %v1357_v18 }
 0x344   : > { %v1378_v10 = vmul.f32 1.442695, %v1356_v4  ;;  %vm13238_vm14 = vcmp.eq.f32.partialorder %v8342_v56, -inf  ;;  %v1343_v42 = vsel %vm13237_vm2, 0.0, %v8339_v39 }
 0x345   : > { %v1342_v16 = vsel %vm13238_vm14, 0.0, %v8342_v56  ;;  %v1359_v32 = vsub.f32 %v8005_v34, %v1343_v42 }
 0x346   : > { %6238 = vpow2.f32 %v1378_v10  ;;  %v1358_v1 = vsub.f32 %v8012_v48, %v1342_v16  ;;  %v8353_v55 = vpop.xlane.xlu1 %1304 }
 0x347   : > { %v6231_v7 = vpop.eup %6230  ;;  %vm13239_vm4 = vcmp.eq.f32.partialorder %v8353_v55, -inf  ;;  %v8356_v35 = vpop.xlane.xlu0 %1301  ;;  %6240 = vpow2.f32 %v1376_v27  ;;  %v1384_v42 = vmul.f32 1.442695, %v1359_v32 }
 0x348   : > { %v1382_v5 = vmul.f32 1.442695, %v1358_v1  ;;  %vm1328_vm11 = vcmp.eq.f32.partialorder %v8356_v35, -inf  ;;  %1416 = vrot.lane.b32.xlu1 %v6231_v7, %s7179_s10  ;;  %v1345_v4 = vsel %vm13239_vm4, 0.0, %v8353_v55  ;;  %v6233_v1 = vpop.eup %6232 }
 0x349   : > { %v1344_v48 = vsel %vm1328_vm11, 0.0, %v8356_v35  ;;  %v1361_v7 = vsub.f32 %v8031_v37, %v1345_v4 }
 0x34a   : > { %6242 = vpow2.f32 %v1382_v5  ;;  %v1360_v10 = vsub.f32 %v8038_v54, %v1344_v48  ;;  %v8368_v16 = vpop.xlane.xlu1 %1310 }
 0x34b   : > { %vm1331_vm2 = vcmp.eq.f32.partialorder %v8368_v16, -inf  ;;  %v8371_v27 = vpop.xlane.xlu0 %1307  ;;  %6244 = vpow2.f32 %v1380_v15  ;;  %v1388_v4 = vmul.f32 1.442695, %v1361_v7 }
 0x34c   : > { %v6235_v18 = vpop.eup %6234  ;;  %v1386_v34 = vmul.f32 1.442695, %v1360_v10  ;;  %vm13240_vm14 = vcmp.eq.f32.partialorder %v8371_v27, -inf  ;;  %1418 = vrot.lane.b32.xlu1 %v6233_v1, %s7179_s10  ;;  %v1347_v5 = vsel %vm1331_vm2, 0.0, %v8368_v16 }
 0x34d   : > { %v1346_v54 = vsel %vm13240_vm14, 0.0, %v8371_v27  ;;  %1422 = vrot.lane.b32.xlu0 %v6235_v18, %s7179_s10  ;;  %v6237_v1 = vpop.eup %6236  ;;  %v1363_v18 = vsub.f32 %v8053_v3, %v1347_v5 }
 0x34e   : > { %6246 = vpow2.f32 %v1386_v34  ;;  %v1362_v48 = vsub.f32 %v8059_v20, %v1346_v54  ;;  %v8384_v10 = vpop.xlane.xlu1 %1316 }
 0x34f   : > { %vm1333_vm4 = vcmp.eq.f32.partialorder %v8384_v10, -inf  ;;  %v8387_v15 = vpop.xlane.xlu0 %1313  ;;  %6248 = vpow2.f32 %v1384_v42  ;;  %v1392_v3 = vmul.f32 1.442695, %v1363_v18 }
 0x350   : > { %v6239_v37 = vpop.eup %6238  ;;  %v1390_v32 = vmul.f32 1.442695, %v1362_v48  ;;  %vm1332_vm14 = vcmp.eq.f32.partialorder %v8387_v15, -inf  ;;  %1420 = vrot.lane.b32.xlu1 %v6237_v1, %s7179_s10  ;;  %v1349_v34 = vsel %vm1333_vm4, 0.0, %v8384_v10 }
 0x351   : > { %v1348_v20 = vsel %vm1332_vm14, 0.0, %v8387_v15  ;;  %1426 = vrot.lane.b32.xlu0 %v6239_v37, %s7179_s10  ;;  %v6241_v48 = vpop.eup %6240  ;;  %v1365_v42 = vsub.f32 %v8069_v6, %v1349_v34 }
 0x352   : > { %6250 = vpow2.f32 %v1390_v32  ;;  %v1364_v54 = vsub.f32 %v8071_v17, %v1348_v20 }
 0x353   : > { %6252 = vpow2.f32 %v1388_v4  ;;  %v1396_v37 = vmul.f32 1.442695, %v1365_v42 }
 0x354   : > { %v6243_v29 = vpop.eup %6242  ;;  %v1394_v1 = vmul.f32 1.442695, %v1364_v54  ;;  %1424 = vrot.lane.b32.xlu1 %v6241_v48, %s7179_s10 }
 0x355   : > { %1430 = vrot.lane.b32.xlu0 %v6243_v29, %s7179_s10  ;;  %v6245_v7 = vpop.eup %6244 }
 0x356   : > { %6254 = vpow2.f32 %v1394_v1 }
 0x357   : > { %6256 = vpow2.f32 %v1392_v3 }
 0x358   : > { %v6247_v5 = vpop.eup %6246  ;;  %1428 = vrot.lane.b32.xlu1 %v6245_v7, %s7179_s10  ;;  %6258 = vpow2.f32 %v1396_v37 }
 0x359   : > { %1434 = vrot.lane.b32.xlu0 %v6247_v5, %s7179_s10  ;;  %v6249_v17 = vpop.eup %6248 }
 0x35c   : > { %v6251_v32 = vpop.eup %6250  ;;  %1432 = vrot.lane.b32.xlu1 %v6249_v17, %s7179_s10 }
 0x35d   : > { %1438 = vrot.lane.b32.xlu0 %v6251_v32, %s7179_s10  ;;  %v6253_v4 = vpop.eup %6252 }
 0x360   : > { %v6255_v6 = vpop.eup %6254  ;;  %v1144_v18 = vpop.xlane.xlu1 %1143  ;;  %1436 = vrot.lane.b32.xlu1 %v6253_v4, %s7179_s10 }
 0x361   : > { %v1174_v29 = vsel %vm1062_vm9, 1.0, %v1144_v18  ;;  %1442 = vrot.lane.b32.xlu0 %v6255_v6, %s7179_s10  ;;  %v6257_v20 = vpop.eup %6256  ;;  %vm1253_vm9 = vcmask 15368  }
 0x362   : > { %6260 = vlog2.f32 %v1174_v29  ;;  %v6259_v48 = vpop.eup %6258 }
 0x364   : > { %1440 = vrot.lane.b32.xlu1 %v6257_v20, %s7179_s10  ;;  %v1142_v34 = vpop.xlane.xlu0 %1141 }
 0x365   : > { %v1173_v54 = vsel %vm1061_vm10, 1.0, %v1142_v34  ;;  %vm13371_vm10 = vcmp.eq.f32.partialorder %v8212_v36, -inf }
 0x366   : > { %6262 = vlog2.f32 %v1173_v54 }
 0x368   : > { %1444 = vrot.lane.b32.xlu1 %v6259_v48, %s7179_s10 }
 0x369   : > { %v1146_v1 = vpop.xlane.xlu0 %1145 }
 0x36a   : > { %v1175_v3 = vsel %vm1063_vm1, 1.0, %v1146_v1  ;;  %vm13373_vm1 = vcmp.eq.f32.partialorder %v8226_v30, -inf }
 0x36b   : > { %6264 = vlog2.f32 %v1175_v3 }
 0x36c   : > { %v6261_v42 = vpop.eup %6260  ;;  %v1152_v7 = vpop.xlane.xlu1 %1151 }
 0x36d   : > { %v1192_v5 = vmul.f32 0.6931472, %v6261_v42  ;;  %v1178_v37 = vsel %vm1066_vm3, 1.0, %v1152_v7  ;;  %v1148_v17 = vpop.xlane.xlu0 %1147  ;;  %vm13374_vm3 = vcmp.eq.f32.partialorder %v8240_v22, -inf }
 0x36e   : > { %6266 = vlog2.f32 %v1178_v37  ;;  %v1176_v32 = vsel %vm1064_vm13, 1.0, %v1148_v17  ;;  %vm13372_vm13 = vcmp.eq.f32.partialorder %v8237_v58, -inf }
 0x36f   : > { %v8422_v4 = vadd.f32 %v1192_v5, %v8137_v45  ;;  %6268 = vlog2.f32 %v1176_v32 }
 0x370   : > { %v6263_v6 = vpop.eup %6262  ;;  %v1156_v18 = vpop.xlane.xlu1 %1155 }
 0x371   : > { %v1238_v29 = vsub.f32 0.0, %v8422_v4  ;;  %v1190_v20 = vmul.f32 0.6931472, %v6263_v6  ;;  %v1180_v34 = vsel %vm1068_vm6, 1.0, %v1156_v18  ;;  %v1150_v54 = vpop.xlane.xlu0 %1149 }
 0x372   : > { %6270 = vlog2.f32 %v1180_v34  ;;  %v1177_v48 = vsel %vm1065_vm5, 1.0, %v1150_v54  ;;  %vm13375_vm5 = vcmask 15360  }
 0x373   : > { %1255 = vst.msk [vmem:[%s7665_s21 + $0x8] sm:$0xff] %vm1253_vm9, %v1238_v29  ;;  %v8432_v45 = vadd.f32 %v1190_v20, %v8146_v23  ;;  %6272 = vlog2.f32 %v1177_v48  ;;  %vm13376_vm6 = vmmov %vm13375_vm5 }
 0x374   : > { %v1160_v1 = vpop.xlane.xlu1 %1159 }
 0x375   : > { %v6265_v3 = vpop.eup %6264  ;;  %v1237_v42 = vsub.f32 0.0, %v8432_v45  ;;  %v1182_v7 = vsel %vm1070_vm8, 1.0, %v1160_v1  ;;  %v1154_v5 = vpop.xlane.xlu0 %1153  ;;  %vm13378_vm8 = vmmov %vm13375_vm5 }
 0x376   : > { %v1194_v37 = vmul.f32 0.6931472, %v6265_v3  ;;  %6274 = vlog2.f32 %v1182_v7  ;;  %v1179_v17 = vsel %vm1067_vm7, 1.0, %v1154_v5  ;;  %vm13377_vm7 = vmmov %vm13375_vm5 }
 0x377   : > { %1254 = vst.msk [vmem:[%s7665_s21] sm:$0xff] %vm1253_vm9, %v1237_v42  ;;  %6276 = vlog2.f32 %v1179_v17 }
 0x378   : > { %v6267_v23 = vpop.eup %6266  ;;  %v8442_v32 = vadd.f32 %v1194_v37, %v8156_v46  ;;  %v1164_v6 = vpop.xlane.xlu1 %1163 }
 0x379   : > { %v6269_v18 = vpop.eup %6268  ;;  %v1200_v29 = vmul.f32 0.6931472, %v6267_v23  ;;  %v1184_v20 = vsel %vm1072_vm0, 1.0, %v1164_v6  ;;  %v1158_v34 = vpop.xlane.xlu0 %1157  ;;  %vm13380_vm0 = vmmov %vm13375_vm5 }
 0x37a   : > { %v1239_v54 = vsub.f32 0.0, %v8442_v32  ;;  %v1196_v48 = vmul.f32 0.6931472, %v6269_v18  ;;  %6278 = vlog2.f32 %v1184_v20  ;;  %v1181_v3 = vsel %vm1069_vm12, 1.0, %v1158_v34  ;;  %vm13379_vm12 = vmmov %vm13375_vm5 }
 0x37b   : > { %v8448_v1 = vadd.f32 %v1200_v29, %v8167_v31  ;;  %6280 = vlog2.f32 %v1181_v3 }
 0x37c   : > { %v6271_v46 = vpop.eup %6270  ;;  %1256 = vst.msk [vmem:[%s7665_s21 + $0x10] sm:$0xff] %vm1253_vm9, %v1239_v54  ;;  %v8455_v42 = vadd.f32 %v1196_v48, %v8153_v2  ;;  %v1168_v7 = vpop.xlane.xlu1 %1167 }
 0x37d   : > { %v6273_v5 = vpop.eup %6272  ;;  %v1242_v37 = vsub.f32 0.0, %v8448_v1  ;;  %v1204_v17 = vmul.f32 0.6931472, %v6271_v46  ;;  %v1186_v31 = vsel %vm1074_vm15, 1.0, %v1168_v7  ;;  %v1162_v23 = vpop.xlane.xlu0 %1161  ;;  %vm13381_vm15 = vmmov %vm13380_vm0 }
 0x37e   : > { %v1240_v6 = vsub.f32 0.0, %v8455_v42  ;;  %v1198_v18 = vmul.f32 0.6931472, %v6273_v5  ;;  %6282 = vlog2.f32 %v1186_v31  ;;  %v1183_v29 = vsel %vm13371_vm10, 1.0, %v1162_v23  ;;  %vm13383_vm10 = vmmov %vm13380_vm0 }
 0x37f   : > { %1259 = vst.msk [vmem:[%s7665_s21 + $0x28] sm:$0xff] %vm1253_vm9, %v1242_v37  ;;  %v8464_v2 = vadd.f32 %v1204_v17, %v8181_v63  ;;  %6284 = vlog2.f32 %v1183_v29 }
 0x380   : > { %v6275_v20 = vpop.eup %6274  ;;  %1257 = vst.msk [vmem:[%s7665_s21 + $0x18] sm:$0xff] %vm1253_vm9, %v1240_v6  ;;  %v8471_v34 = vadd.f32 %v1198_v18, %v8170_v12  ;;  %v1172_v54 = vpop.xlane.xlu1 %1171 }
 0x381   : > { %v6277_v48 = vpop.eup %6276  ;;  %v1244_v3 = vsub.f32 0.0, %v8464_v2  ;;  %v1208_v46 = vmul.f32 0.6931472, %v6275_v20  ;;  %v1188_v63 = vsel %vm13372_vm13, 1.0, %v1172_v54  ;;  %v1166_v7 = vpop.xlane.xlu0 %1165  ;;  %vm13384_vm13 = vmmov %vm13380_vm0 }
 0x382   : > { %v1241_v5 = vsub.f32 0.0, %v8471_v34  ;;  %v1202_v37 = vmul.f32 0.6931472, %v6277_v48  ;;  %6286 = vlog2.f32 %v1188_v63  ;;  %v1185_v17 = vsel %vm13373_vm1, 1.0, %v1166_v7  ;;  %vm13385_vm1 = vmmov %vm13380_vm0 }
 0x383   : > { %1261 = vst.msk [vmem:[%s7665_s21 + $0x38] sm:$0xff] %vm1253_vm9, %v1244_v3  ;;  %v8480_v12 = vadd.f32 %v1208_v46, %v8195_v40  ;;  %6288 = vlog2.f32 %v1185_v17 }
 0x384   : > { %v6279_v31 = vpop.eup %6278  ;;  %1258 = vst.msk [vmem:[%s7665_s21 + $0x20] sm:$0xff] %vm1253_vm9, %v1241_v5  ;;  %v8487_v23 = vadd.f32 %v1202_v37, %v8184_v51 }
 0x385   : > { %v1246_v6 = vsub.f32 0.0, %v8480_v12  ;;  %v1212_v18 = vmul.f32 0.6931472, %v6279_v31  ;;  %v1170_v29 = vpop.xlane.xlu0 %1169  ;;  %v6281_v20 = vpop.eup %6280 }
 0x386   : > { %v1243_v40 = vsub.f32 0.0, %v8487_v23  ;;  %v1187_v54 = vsel %vm13374_vm3, 1.0, %v1170_v29  ;;  %v1206_v51 = vmul.f32 0.6931472, %v6281_v20  ;;  %vm13386_vm3 = vmmov %vm13380_vm0 }
 0x387   : > { %1263 = vst.msk [vmem:[%s7665_s21 + $0x48] sm:$0xff] %vm1253_vm9, %v1246_v6  ;;  %v8496_v48 = vadd.f32 %v1212_v18, %v8209_v21  ;;  %6290 = vlog2.f32 %v1187_v54 }
 0x388   : > { %v6283_v3 = vpop.eup %6282  ;;  %1260 = vst.msk [vmem:[%s7665_s21 + $0x30] sm:$0xff] %vm1253_vm9, %v1243_v40  ;;  %v8502_v63 = vadd.f32 %v1206_v51, %v8198_v59 }
 0x389   : > { %v1248_v46 = vsub.f32 0.0, %v8496_v48  ;;  %v1216_v7 = vmul.f32 0.6931472, %v6283_v3  ;;  %v6285_v5 = vpop.eup %6284 }
 0x38a   : > { %v1245_v37 = vsub.f32 0.0, %v8502_v63  ;;  %v1210_v31 = vmul.f32 0.6931472, %v6285_v5 }
 0x38b   : > { %1265 = vst.msk [vmem:[%s7665_s21 + $0x58] sm:$0xff] %vm1253_vm9, %v1248_v46  ;;  %v8508_v21 = vadd.f32 %v1216_v7, %v8223_v28 }
 0x38c   : > { %v6287_v17 = vpop.eup %6286  ;;  %1262 = vst.msk [vmem:[%s7665_s21 + $0x40] sm:$0xff] %vm1253_vm9, %v1245_v37  ;;  %v8514_v29 = vadd.f32 %v1210_v31, %v8212_v36 }
 0x38d   : > { %v1250_v6 = vsub.f32 0.0, %v8508_v21  ;;  %v1220_v59 = vmul.f32 0.6931472, %v6287_v17  ;;  %v6289_v18 = vpop.eup %6288 }
 0x38e   : > { %v1214_v28 = vmul.f32 0.6931472, %v6289_v18  ;;  %v1247_v40 = vsub.f32 0.0, %v8514_v29 }
 0x38f   : > { %1267 = vst.msk [vmem:[%s7665_s21 + $0x68] sm:$0xff] %vm1253_vm9, %v1250_v6  ;;  %v8519_v20 = vadd.f32 %v1220_v59, %v8237_v58 }
 0x390   : > { %v8524_v3 = vadd.f32 %v1214_v28, %v8226_v30  ;;  %1264 = vst.msk [vmem:[%s7665_s21 + $0x50] sm:$0xff] %vm1253_vm9, %v1247_v40 }
 0x391   : > { %v6291_v54 = vpop.eup %6290  ;;  %v1252_v51 = vsub.f32 0.0, %v8519_v20 }
 0x392   : > { %v1218_v46 = vmul.f32 0.6931472, %v6291_v54  ;;  %v1249_v36 = vsub.f32 0.0, %v8524_v3 }
 0x393   : > { %1269 = vst.msk [vmem:[%s7665_s21 + $0x78] sm:$0xff] %vm1253_vm9, %v1252_v51 }
 0x394   : > { %v8532_v7 = vadd.f32 %v1218_v46, %v8240_v22  ;;  %1266 = vst.msk [vmem:[%s7665_s21 + $0x60] sm:$0xff] %vm1253_vm9, %v1249_v36 }
 0x396   : > { %v1251_v58 = vsub.f32 0.0, %v8532_v7 }
 0x398   : > { %1268 = vst.msk [vmem:[%s7665_s21 + $0x70] sm:$0xff] %vm1253_vm9, %v1251_v58  ;;  %vm13382_vm9 = vmmov %vm13380_vm0 }
 0x3b3   : > { %v1415_v5 = vpop.permute.xlu0 %1414 }
 0x3b4   : > { %v1462_v30 = vsel %vm13375_vm5, %v1415_v5, 0.0  ;;  %vm13387_vm5 = vmmov %vm13380_vm0 }
 0x3b5   : > { %1463 = vadd.xlane.f32.xlu0 %v1462_v30 }
 0x3ba   : > { %v1417_v37 = vpop.permute.xlu1 %1416 }
 0x3bb   : > { %v1465_v17 = vsel %vm13376_vm6, %v1417_v37, 0.0  ;;  %vm13388_vm6 = vmmov %vm13380_vm0 }
 0x3bc   : > { %1466 = vadd.xlane.f32.xlu1 %v1465_v17 }
 0x3be   : > { %v1419_v31 = vpop.permute.xlu1 %1418 }
 0x3bf   : > { %v1423_v6 = vpop.permute.xlu0 %1422  ;;  %v1468_v59 = vsel %vm13377_vm7, %v1419_v31, 0.0  ;;  %vm13389_vm7 = vmmov %vm13380_vm0 }
 0x3c0   : > { %1469 = vadd.xlane.f32.xlu0 %v1468_v59  ;;  %v1474_v40 = vsel %vm13379_vm12, %v1423_v6, 0.0  ;;  %vm13391_vm12 = vcmp.eq.f32.partialorder %v8281_v0, -inf }
 0x3c2   : > { %v1421_v22 = vpop.permute.xlu1 %1420 }
 0x3c3   : > { %v1427_v18 = vpop.permute.xlu0 %1426  ;;  %v1471_v28 = vsel %vm13378_vm8, %v1421_v22, 0.0  ;;  %vm13390_vm8 = vmmov %vm13380_vm0 }
 0x3c4   : > { %1472 = vadd.xlane.f32.xlu1 %v1471_v28  ;;  %1475 = vadd.xlane.f32.xlu0 %v1474_v40  ;;  %v1480_v36 = vsel %vm13381_vm15, %v1427_v18, 0.0  ;;  %vm13393_vm15 = vcmp.eq.f32.partialorder %v8290_v26, -inf }
 0x3c6   : > { %v1425_v54 = vpop.permute.xlu1 %1424 }
 0x3c7   : > { %v1431_v51 = vpop.permute.xlu0 %1430  ;;  %v1477_v46 = vsel %vm13380_vm0, %v1425_v54, 0.0  ;;  %vm13392_vm0 = vcmp.eq.f32.partialorder %v8296_v49, -inf }
 0x3c8   : > { %1478 = vadd.xlane.f32.xlu1 %v1477_v46  ;;  %1481 = vadd.xlane.f32.xlu0 %v1480_v36  ;;  %v1486_v37 = vsel %vm13383_vm10, %v1431_v51, 0.0  ;;  %vm13395_vm10 = vcmp.eq.f32.partialorder %v8313_v9, -inf }
 0x3ca   : > { %v1429_v58 = vpop.permute.xlu1 %1428 }
 0x3cb   : > { %v1435_v5 = vpop.permute.xlu0 %1434  ;;  %v1483_v30 = vsel %vm13382_vm9, %v1429_v58, 0.0  ;;  %vm13394_vm9 = vcmp.eq.f32.partialorder %v8299_v38, -inf }
 0x3cc   : > { %1484 = vadd.xlane.f32.xlu1 %v1483_v30  ;;  %1487 = vadd.xlane.f32.xlu0 %v1486_v37  ;;  %v1492_v59 = vsel %vm13385_vm1, %v1435_v5, 0.0  ;;  %vm13397_vm1 = vcmp.eq.s32.totalorder %v7822_v33, 127 }
 0x3ce   : > { %v1433_v17 = vpop.permute.xlu1 %1432 }
 0x3cf   : > { %v1439_v31 = vpop.permute.xlu0 %1438  ;;  %v1489_v6 = vsel %vm13384_vm13, %v1433_v17, 0.0  ;;  %vm13396_vm13 = vcmp.eq.s32.totalorder %v7822_v33, 0 }
 0x3d0   : > { %1490 = vadd.xlane.f32.xlu1 %v1489_v6  ;;  %1493 = vadd.xlane.f32.xlu0 %v1492_v59  ;;  %v1498_v28 = vsel %vm13387_vm5, %v1439_v31, 0.0  ;;  %vm13399_vm5 = vcmp.eq.f32.partialorder %v8327_v43, -inf }
 0x3d2   : > { %v1437_v22 = vpop.permute.xlu1 %1436 }
 0x3d3   : > { %v1495_v18 = vsel %vm13386_vm3, %v1437_v22, 0.0  ;;  %v1443_v40 = vpop.permute.xlu0 %1442  ;;  %vm13398_vm3 = vcmp.eq.f32.partialorder %v8310_v60, -inf }
 0x3d4   : > { %1496 = vadd.xlane.f32.xlu1 %v1495_v18  ;;  %1499 = vadd.xlane.f32.xlu0 %v1498_v28  ;;  %v1504_v46 = vsel %vm13389_vm7, %v1443_v40, 0.0  ;;  %v1622_v18 = vsub.f32 %v8253_v44, %v8432_v45  ;;  %vm13401_vm7 = vcmp.eq.f32.partialorder %v8342_v56, -inf }
 0x3d6   : > { %v1441_v54 = vpop.permute.xlu1 %1440 }
 0x3d7   : > { %v1501_v51 = vsel %vm13388_vm6, %v1441_v54, 0.0  ;;  %vm13400_vm6 = vcmp.eq.f32.partialorder %v8324_v41, -inf }
 0x3d8   : > { %1502 = vadd.xlane.f32.xlu1 %v1501_v51  ;;  %1505 = vadd.xlane.f32.xlu0 %v1504_v46 }
 0x3da   : > { %v1445_v36 = vpop.permute.xlu1 %1444 }
 0x3db   : > { %v1507_v58 = vsel %vm13390_vm8, %v1445_v36, 0.0  ;;  %vm13402_vm8 = vmmov %vm13396_vm13 }
 0x3dc   : > { %1508 = vadd.xlane.f32.xlu1 %v1507_v58  ;;  %v1638_v58 = vsel %vm13396_vm13, 0.0, %v1622_v18  ;;  %v1624_v18 = vsub.f32 %v8255_v11, %v8442_v32 }
 0x442   : > { %v1464_v5 = vpop.xlane.xlu0 %1463 }
 0x443   : > { %v1510_v30 = vsel %vm13391_vm12, 1.0, %v1464_v5  ;;  %vm13403_vm12 = vmmov %vm13402_vm8 }
 0x444   : > { %6292 = vlog2.f32 %v1510_v30 }
 0x449   : > { %v1467_v37 = vpop.xlane.xlu1 %1466 }
 0x44a   : > { %v1511_v17 = vsel %vm13392_vm0, 1.0, %v1467_v37  ;;  %v1686_v37 = vld [vmem:[%s7274_s9 + $0x10] sm:$0xff]  ;;  %vm13404_vm0 = vmmov %vm13402_vm8 }
 0x44b   : > { %6294 = vlog2.f32 %v1511_v17  ;;  %vm13408_vm13 = vmmov %vm13404_vm0 }
 0x44d   : > { %v1470_v31 = vpop.xlane.xlu0 %1469 }
 0x44e   : > { %v6293_v6 = vpop.eup %6292  ;;  %v1512_v59 = vsel %vm13393_vm15, 1.0, %v1470_v31  ;;  %vm13405_vm15 = vmmov %vm13397_vm1 }
 0x44f   : > { %v1527_v22 = vmul.f32 0.6931472, %v6293_v6  ;;  %6296 = vlog2.f32 %v1512_v59 }
 0x451   : > { %v1558_v28 = vadd.f32 %v1527_v22, %v8281_v0  ;;  %v1473_v40 = vpop.xlane.xlu1 %1472  ;;  %v1476_v54 = vpop.xlane.xlu0 %1475  ;;  %v1623_v22 = vsub.f32 %v8251_v13, %v8422_v4 }
 0x452   : > { %v1513_v51 = vsel %vm13394_vm9, 1.0, %v1473_v40  ;;  %v1514_v46 = vsel %vm13395_vm10, 1.0, %v1476_v54  ;;  %vm13406_vm9 = vmmov %vm13404_vm0  ;;  %vm13407_vm10 = vcmp.eq.f32.partialorder %v8339_v39, -inf }
 0x453   : > { %v1574_v36 = vsub.f32 %v1558_v28, %v8432_v45  ;;  %6298 = vlog2.f32 %v1513_v51  ;;  %v8581_v45 = vld [vmem:[%s13202_s2] ss:$0 sm:$0xff]  ;;  %v1627_v28 = vsub.f32 %v8263_v62, %v8448_v1 }
 0x454   : > { %6300 = vlog2.f32 %v1514_v46  ;;  %v1625_v46 = vsub.f32 %v8259_v61, %v8455_v42  ;;  %v1640_v61 = vsel %vm13403_vm12, 0.0, %v1624_v18  ;;  %vm13415_vm12 = vmmov %vm13397_vm1 }
 0x455   : > { %v6295_v5 = vpop.eup %6294  ;;  %v1654_v44 = vsel %vm13397_vm1, %v1574_v36, %v1638_v58  ;;  %v1479_v0 = vpop.xlane.xlu1 %1478 }
 0x456   : > { %v1482_v30 = vpop.xlane.xlu0 %1481  ;;  %v1529_v17 = vmul.f32 0.6931472, %v6295_v5  ;;  %v1515_v31 = vsel %vm13398_vm3, 1.0, %v1479_v0  ;;  %v1670_v59 = vadd.f32 %v8581_v45, %v1654_v44  ;;  %v1629_v44 = vsub.f32 %v8267_v57, %v8464_v2  ;;  %vm13410_vm3 = vmmov %vm13404_vm0 }
 0x457   : > { %v1516_v6 = vsel %vm13399_vm5, 1.0, %v1482_v30  ;;  %6302 = vlog2.f32 %v1515_v31  ;;  %v1641_v31 = vsel %vm13406_vm9, 0.0, %v1625_v46  ;;  %v1631_v57 = vsub.f32 %v8271_v24, %v8480_v12 }
 0x458   : > { %v1559_v40 = vadd.f32 %v1529_v17, %v8296_v49  ;;  %6304 = vlog2.f32 %v1516_v6  ;;  %v8591_v54 = vadd.f32 %v1686_v37, %v1670_v59  ;;  %v1639_v49 = vsel %vm13402_vm8, 0.0, %v1623_v22  ;;  %v1687_v37 = vld [vmem:[%s7274_s9 + $0x50] sm:$0xff]  ;;  %vm13414_vm8 = vmmov %vm13397_vm1 }
 0x459   : > { %v6297_v51 = vpop.eup %6296  ;;  %v1485_v36 = vpop.xlane.xlu1 %1484  ;;  %v1626_v6 = vsub.f32 %v8257_v52, %v8471_v34  ;;  %v8629_v52 = vsel %vm13408_vm13, 0.0, %v1629_v44  ;;  %vm13411_vm5 = vcmp.eq.f32.partialorder %v8353_v55, -inf }
 0x45a   : > { %v1488_v58 = vpop.xlane.xlu0 %1487  ;;  %v1575_v13 = vsub.f32 %v1559_v40, %v8422_v4  ;;  %v1531_v5 = vmul.f32 0.6931472, %v6297_v51  ;;  %v1517_v11 = vsel %vm13400_vm6, 1.0, %v1485_v36  ;;  %1718 = vmax.xlane.f32.xlu0 %v8591_v54  ;;  %v8609_v4 = vsel %vm13404_vm0, 0.0, %v1627_v28 }
 0x45b   : > { %v1518_v62 = vsel %vm13401_vm7, 1.0, %v1488_v58  ;;  %6306 = vlog2.f32 %v1517_v11  ;;  %v1628_v58 = vsub.f32 %v8261_v53, %v8487_v23  ;;  %vm13412_vm6 = vcmp.eq.f32.partialorder %v8371_v27, -inf  ;;  %vm13413_vm7 = vmmov %vm13404_vm0 }
 0x45c   : > { %v1655_v0 = vsel %vm13405_vm15, %v1575_v13, %v1639_v49  ;;  %v1560_v30 = vadd.f32 %v1531_v5, %v8290_v26  ;;  %6308 = vlog2.f32 %v1518_v62  ;;  %v1688_v5 = vld [vmem:[%s7274_s9 + $0x90] sm:$0xff]  ;;  %v8643_v49 = vsel %vm13410_vm3, 0.0, %v1631_v57 }
 0x45d   : > { %v6299_v17 = vpop.eup %6298  ;;  %v1491_v59 = vpop.xlane.xlu1 %1490  ;;  %v1671_v18 = vadd.f32 %v8581_v45, %v1655_v0 }
 0x45e   : > { %v1494_v22 = vpop.xlane.xlu0 %1493  ;;  %v6301_v28 = vpop.eup %6300  ;;  %v1576_v26 = vsub.f32 %v1560_v30, %v8442_v32  ;;  %v1533_v40 = vmul.f32 0.6931472, %v6299_v17  ;;  %v1519_v51 = vsel %vm13407_vm10, 1.0, %v1491_v59 }
 0x45f   : > { %v1520_v46 = vsel %vm1328_vm11, 1.0, %v1494_v22  ;;  %v1535_v24 = vmul.f32 0.6931472, %v6301_v28  ;;  %6310 = vlog2.f32 %v1519_v51  ;;  %v8631_v36 = vadd.f32 %v1687_v37, %v1671_v18  ;;  %vm13409_vm11 = vmmov %vm13404_vm0  ;;  %v1689_v28 = vld [vmem:[%s7274_s9 + $0xd0] sm:$0xff] }
 0x460   : > { %v1656_v32 = vsel %vm13397_vm1, %v1576_v26, %v1640_v61  ;;  %v1561_v13 = vadd.f32 %v1533_v40, %v8299_v38  ;;  %6312 = vlog2.f32 %v1520_v46  ;;  %v1642_v62 = vsel %vm13409_vm11, 0.0, %v1626_v6  ;;  %vm13416_vm0 = vmmov %vm13397_vm1 }
 0x461   : > { %v6303_v11 = vpop.eup %6302  ;;  %v1562_v44 = vadd.f32 %v1535_v24, %v8313_v9  ;;  %1720 = vmax.xlane.f32.xlu1 %v8631_v36  ;;  %v1497_v53 = vpop.xlane.xlu1 %1496  ;;  %v1672_v61 = vadd.f32 %v8581_v45, %v1656_v32  ;;  %v1644_v22 = vsel %vm13413_vm7, 0.0, %v1628_v58  ;;  %v1630_v40 = vsub.f32 %v8265_v14, %v8502_v63  ;;  %vm13419_vm15 = vmmov %vm13416_vm0 }
 0x462   : > { %v1500_v0 = vpop.xlane.xlu0 %1499  ;;  %v6305_v38 = vpop.eup %6304  ;;  %v1577_v30 = vsub.f32 %v1561_v13, %v8455_v42  ;;  %v1537_v37 = vmul.f32 0.6931472, %v6303_v11  ;;  %v1521_v17 = vsel %vm13411_vm5, 1.0, %v1497_v53  ;;  %vm13422_vm10 = vmmov %vm13416_vm0 }
 0x463   : > { %v1522_v6 = vsel %vm13412_vm6, 1.0, %v1500_v0  ;;  %v1578_v57 = vsub.f32 %v1562_v44, %v8471_v34  ;;  %v1539_v9 = vmul.f32 0.6931472, %v6305_v38  ;;  %6314 = vlog2.f32 %v1521_v17  ;;  %v1691_v0 = vld [vmem:[%s7274_s9 + $0x150] sm:$0xff]  ;;  %vm13424_vm1 = vmmov %vm13416_vm0 }
 0x464   : > { %v8654_v59 = vadd.f32 %v1688_v5, %v1672_v61  ;;  %v1657_v18 = vsel %vm13414_vm8, %v1577_v30, %v1641_v31  ;;  %v1563_v42 = vadd.f32 %v1537_v37, %v8310_v60  ;;  %6316 = vlog2.f32 %v1522_v6  ;;  %vm13427_vm5 = vmmov %vm13416_vm0 }
 0x465   : > { %v6307_v26 = vpop.eup %6306  ;;  %v1658_v34 = vsel %vm13415_vm12, %v1578_v57, %v1642_v62  ;;  %v1564_v51 = vadd.f32 %v1539_v9, %v8327_v43  ;;  %v1503_v46 = vpop.xlane.xlu1 %1502  ;;  %v1673_v31 = vadd.f32 %v8581_v45, %v1657_v18  ;;  %v1690_v62 = vld [vmem:[%s7274_s9 + $0x110] sm:$0xff]  ;;  %vm13431_vm8 = vmmov %vm13416_vm0 }
 0x466   : > { %1722 = vmax.xlane.f32.xlu0 %v8654_v59  ;;  %v1506_v24 = vpop.xlane.xlu0 %1505  ;;  %v6309_v60 = vpop.eup %6308  ;;  %v1579_v58 = vsub.f32 %v1563_v42, %v8448_v1  ;;  %v1541_v32 = vmul.f32 0.6931472, %v6307_v26  ;;  %v1523_v14 = vsel %vm1331_vm2, 1.0, %v1503_v46  ;;  %v1674_v53 = vadd.f32 %v8581_v45, %v1658_v34  ;;  %vm13417_vm2 = vmmov %vm13410_vm3  ;;  %v1692_v42 = vld [vmem:[%s7274_s9 + $0x190] sm:$0xff] }
 0x467   : > { %v1524_v13 = vsel %vm1332_vm14, 1.0, %v1506_v24  ;;  %v1580_v5 = vsub.f32 %v1564_v51, %v8487_v23  ;;  %v1543_v43 = vmul.f32 0.6931472, %v6309_v60  ;;  %6318 = vlog2.f32 %v1523_v14  ;;  %vm13418_vm14 = vmmov %vm13416_vm0 }
 0x468   : > { %v8675_v11 = vadd.f32 %v1689_v28, %v1673_v31  ;;  %v1659_v44 = vsel %vm13416_vm0, %v1579_v58, %v8609_v4  ;;  %v1565_v1 = vadd.f32 %v1541_v32, %v8324_v41  ;;  %6320 = vlog2.f32 %v1524_v13  ;;  %vm13421_vm9 = vmmov %vm13417_vm2 }
 0x469   : > { %v6311_v61 = vpop.eup %6310  ;;  %v1646_v23 = vsel %vm13417_vm2, 0.0, %v1630_v40  ;;  %v1660_v38 = vsel %vm13418_vm14, %v1580_v5, %v1644_v22  ;;  %v1566_v30 = vadd.f32 %v1543_v43, %v8342_v56  ;;  %v1509_v37 = vpop.xlane.xlu1 %1508  ;;  %v1675_v4 = vadd.f32 %v8581_v45, %v1659_v44  ;;  %vm13423_vm13 = vmmov %vm13417_vm2 }
 0x46a   : > { %1724 = vmax.xlane.f32.xlu1 %v8675_v11  ;;  %v6313_v41 = vpop.eup %6312  ;;  %v1581_v17 = vsub.f32 %v1565_v1, %v8464_v2  ;;  %v1545_v6 = vmul.f32 0.6931472, %v6311_v61  ;;  %v1525_v57 = vsel %vm1333_vm4, 1.0, %v1509_v37  ;;  %v8694_v9 = vadd.f32 %v1690_v62, %v1674_v53  ;;  %vm13420_vm4 = vmmov %vm13416_vm0 }
 0x46b   : > { %v1582_v18 = vsub.f32 %v1566_v30, %v8502_v63  ;;  %v1547_v22 = vmul.f32 0.6931472, %v6313_v41  ;;  %6322 = vlog2.f32 %v1525_v57  ;;  %v8697_v56 = vadd.f32 %v1691_v0, %v1675_v4  ;;  %v1693_v63 = vld [vmem:[%s7274_s9 + $0x1d0] sm:$0xff]  ;;  %vm13425_vm11 = vmmov %vm13417_vm2 }
 0x46c   : > { %v1632_v28 = vsub.f32 %v8269_v19, %v8514_v29  ;;  %v1661_v2 = vsel %vm13419_vm15, %v1581_v17, %v8629_v52  ;;  %v1567_v26 = vadd.f32 %v1545_v6, %v8339_v39  ;;  %1726 = vmax.xlane.f32.xlu0 %v8694_v9  ;;  %v1676_v40 = vadd.f32 %v8581_v45, %v1660_v38  ;;  %v1694_v39 = vld [vmem:[%s7274_s9 + $0x210] sm:$0xff]  ;;  %vm13426_vm3 = vmmov %vm13416_vm0 }
 0x46d   : > { %v6315_v34 = vpop.eup %6314  ;;  %v1633_v51 = vsub.f32 %v8275_v25, %v8496_v48  ;;  %v1662_v46 = vsel %vm13420_vm4, %v1582_v18, %v1646_v23  ;;  %v1568_v19 = vadd.f32 %v1547_v22, %v8356_v35  ;;  %v1677_v52 = vadd.f32 %v8581_v45, %v1661_v2  ;;  %v1697_v57 = vld [vmem:[%s7274_s9 + $0x2d0] sm:$0xff]  ;;  %vm13428_vm6 = vmmov %vm13417_vm2 }
 0x46e   : > { %1728 = vmax.xlane.f32.xlu1 %v8697_v56  ;;  %v6317_v24 = vpop.eup %6316  ;;  %v1583_v31 = vsub.f32 %v1567_v26, %v8480_v12  ;;  %v1549_v60 = vmul.f32 0.6931472, %v6315_v34  ;;  %v8718_v58 = vadd.f32 %v1692_v42, %v1676_v40  ;;  %v1678_v32 = vadd.f32 %v8581_v45, %v1662_v46  ;;  %v1698_v42 = vld [vmem:[%s7274_s9 + $0x310] sm:$0xff]  ;;  %v13429_v40 = vld [vmem:[#allocation6_spill] sm:$0xff]  ;;  %vm13430_vm7 = vmmov %vm13417_vm2 }
 0x46f   : > { %v1634_v25 = vsub.f32 %v8273_v47, %v8524_v3  ;;  %v1584_v35 = vsub.f32 %v1568_v19, %v8514_v29  ;;  %v1551_v14 = vmul.f32 0.6931472, %v6317_v24  ;;  %v8724_v13 = vadd.f32 %v1693_v63, %v1677_v52  ;;  %v1695_v47 = vld [vmem:[%s7274_s9 + $0x250] sm:$0xff]  ;;  %vm13432_vm12 = vmmov %vm13416_vm0 }
 0x470   : > { %v1648_v5 = vsel %vm13421_vm9, 0.0, %v1632_v28  ;;  %v1663_v12 = vsel %vm13422_vm10, %v1583_v31, %v8643_v49  ;;  %v1569_v43 = vadd.f32 %v1549_v60, %v8353_v55  ;;  %1730 = vmax.xlane.f32.xlu0 %v8718_v58  ;;  %v8733_v62 = vadd.f32 %v1694_v39, %v1678_v32  ;;  %v1696_v55 = vld [vmem:[%s7274_s9 + $0x290] sm:$0xff]  ;;  %vm13433_vm0 = vmmov %vm13417_vm2 }
 0x471   : > { %v6319_v44 = vpop.eup %6318  ;;  %v1649_v29 = vsel %vm13423_vm13, 0.0, %v1633_v51  ;;  %v1664_v1 = vsel %vm13424_vm1, %v1584_v35, %v1648_v5  ;;  %v1570_v53 = vadd.f32 %v1551_v14, %v8371_v27  ;;  %v1679_v49 = vadd.f32 %v8581_v45, %v1663_v12  ;;  %v1699_v52 = vld [vmem:[%s7274_s9 + $0x350] sm:$0xff]  ;;  %vm13434_vm2 = vmmov %vm13424_vm1 }
 0x472   : > { %1732 = vmax.xlane.f32.xlu1 %v8724_v13  ;;  %v6321_v0 = vpop.eup %6320  ;;  %v1635_v61 = vsub.f32 %v8279_v50, %v8508_v21  ;;  %v1585_v23 = vsub.f32 %v1569_v43, %v8496_v48  ;;  %v1553_v38 = vmul.f32 0.6931472, %v6319_v44  ;;  %v1680_v30 = vadd.f32 %v8581_v45, %v1664_v1  ;;  %v1700_v24 = vld [vmem:[%s7274_s9 + $0x390] sm:$0xff] }
 0x473   : > { %v1650_v37 = vsel %vm13425_vm11, 0.0, %v1634_v25  ;;  %v1586_v27 = vsub.f32 %v1570_v53, %v8524_v3  ;;  %v1555_v4 = vmul.f32 0.6931472, %v6321_v0  ;;  %v8751_v41 = vadd.f32 %v1695_v47, %v1679_v49  ;;  %v1701_v14 = vld [vmem:[%s7274_s9 + $0x3d0] sm:$0xff] }
 0x474   : > { %v1636_v17 = vsub.f32 %v8277_v8, %v8532_v7  ;;  %v1665_v50 = vsel %vm13426_vm3, %v1585_v23, %v1649_v29  ;;  %v1571_v48 = vadd.f32 %v1553_v38, %v8368_v16  ;;  %1734 = vmax.xlane.f32.xlu0 %v8733_v62  ;;  %v8759_v6 = vadd.f32 %v1696_v55, %v1680_v30 }
 0x475   : > { %v6323_v18 = vpop.eup %6322  ;;  %v1666_v3 = vsel %vm13427_vm5, %v1586_v27, %v1650_v37  ;;  %v1572_v22 = vadd.f32 %v1555_v4, %v8387_v15  ;;  %v1681_v8 = vadd.f32 %v8581_v45, %v1665_v50  ;;  %v1651_v26 = vsel %vm13428_vm6, 0.0, %v1635_v61 }
 0x476   : > { %1736 = vmax.xlane.f32.xlu1 %v8751_v41  ;;  %v1587_v28 = vsub.f32 %v1571_v48, %v8508_v21  ;;  %v1557_v16 = vmul.f32 0.6931472, %v6323_v18  ;;  %v1682_v2 = vadd.f32 %v8581_v45, %v1666_v3  ;;  %v1637_v63 = vsub.f32 %v13429_v40, %v8519_v20 }
 0x477   : > { %v1588_v15 = vsub.f32 %v1572_v22, %v8532_v7  ;;  %v8775_v34 = vadd.f32 %v1697_v57, %v1681_v8  ;;  %v1652_v51 = vsel %vm13430_vm7, 0.0, %v1636_v17  ;;  %vm13435_vm14 = vcmask 1048560  }
 0x478   : > { %v1667_v21 = vsel %vm13431_vm8, %v1587_v28, %v1651_v26  ;;  %v1573_v46 = vadd.f32 %v1557_v16, %v8384_v10  ;;  %1738 = vmax.xlane.f32.xlu0 %v8759_v6  ;;  %v8783_v19 = vadd.f32 %v1698_v42, %v1682_v2  ;;  %v1653_v10 = vsel %vm13433_vm0, 0.0, %v1637_v63  ;;  %vm13436_vm15 = vmmov %vm13435_vm14 }
 0x479   : > { %v1668_v39 = vsel %vm13432_vm12, %v1588_v15, %v1652_v51  ;;  %v1683_v7 = vadd.f32 %v8581_v45, %v1667_v21  ;;  %v1965_v12 = vsel %vm13436_vm15, %v8654_v59, -inf  ;;  %vm13437_vm4 = vmmov %vm13435_vm14 }
 0x47a   : > { %1740 = vmax.xlane.f32.xlu1 %v8775_v34  ;;  %v1589_v31 = vsub.f32 %v1573_v46, %v8519_v20  ;;  %v1684_v60 = vadd.f32 %v8581_v45, %v1668_v39  ;;  %v1968_v43 = vsel %vm13437_vm4, %v8675_v11, -inf  ;;  %vm13438_vm9 = vmmov %vm13437_vm4 }
 0x47b   : > { %v8795_v32 = vadd.f32 %v1699_v52, %v1683_v7  ;;  %v1962_v47 = vsel %vm13438_vm9, %v8631_v36, -inf  ;;  %vm13439_vm10 = vmmov %vm13437_vm4 }
 0x47c   : > { %v1669_v25 = vsel %vm13434_vm2, %v1589_v31, %v1653_v10  ;;  %1742 = vmax.xlane.f32.xlu0 %v8783_v19  ;;  %v8800_v35 = vadd.f32 %v1700_v24, %v1684_v60  ;;  %v1971_v44 = vsel %vm13439_vm10, %v8694_v9, -inf  ;;  %vm13440_vm13 = vmmov %vm13437_vm4 }
 0x47d   : > { %v1685_v5 = vadd.f32 %v8581_v45, %v1669_v25  ;;  %v1959_v45 = vsel %vm13435_vm14, %v8591_v54, -inf  ;;  %v1974_v29 = vsel %vm13440_vm13, %v8697_v56, -inf  ;;  %vm13441_vm1 = vmmov %vm13437_vm4 }
 0x47e   : > { %1744 = vmax.xlane.f32.xlu1 %v8795_v32  ;;  %v1977_v1 = vsel %vm13441_vm1, %v8718_v58, -inf  ;;  %vm13442_vm11 = vmmov %vm13441_vm1 }
 0x47f   : > { %v8805_v20 = vadd.f32 %v1701_v14, %v1685_v5  ;;  %v1980_v53 = vsel %vm13442_vm11, %v8724_v13, -inf  ;;  %vm13443_vm3 = vmmov %vm13441_vm1 }
 0x480   : > { %1746 = vmax.xlane.f32.xlu0 %v8800_v35  ;;  %v1983_v49 = vsel %vm13443_vm3, %v8733_v62, -inf  ;;  %vm13444_vm5 = vmmov %vm13441_vm1 }
 0x481   : > { %v1986_v55 = vsel %vm13444_vm5, %v8751_v41, -inf  ;;  %vm13445_vm6 = vmmov %vm13441_vm1 }
 0x482   : > { %1748 = vmax.xlane.f32.xlu1 %v8805_v20  ;;  %v1989_v0 = vsel %vm13445_vm6, %v8759_v6, -inf  ;;  %vm13446_vm7 = vmmov %vm13441_vm1 }
 0x483   : > { %v1992_v61 = vsel %vm13446_vm7, %v8775_v34, -inf  ;;  %vm13447_vm8 = vmmov %vm13441_vm1 }
 0x484   : > { %v1995_v38 = vsel %vm13447_vm8, %v8783_v19, -inf  ;;  %vm13448_vm0 = vmmov %vm13441_vm1 }
 0x485   : > { %v1998_v37 = vsel %vm13448_vm0, %v8795_v32, -inf  ;;  %vm13449_vm2 = vmmov %vm13448_vm0 }
 0x486   : > { %v2001_v17 = vsel %vm13449_vm2, %v8800_v35, -inf  ;;  %vm13450_vm14 = vmmov %vm13448_vm0 }
 0x487   : > { %v2004_v50 = vsel %vm13450_vm14, %v8805_v20, -inf }
 0x493   : > { %2281 = vrot.lane.b32.xlu1 %v8631_v36, %s7180_s11 }
 0x496   : > { %2279 = vrot.lane.b32.xlu0 %v8591_v54, %s7180_s11 }
 0x497   : > { %2283 = vrot.lane.b32.xlu1 %v8654_v59, %s7180_s11 }
 0x49a   : > { %2287 = vrot.lane.b32.xlu0 %v8694_v9, %s7180_s11 }
 0x49b   : > { %2285 = vrot.lane.b32.xlu1 %v8675_v11, %s7180_s11 }
 0x49e   : > { %2291 = vrot.lane.b32.xlu0 %v8718_v58, %s7180_s11 }
 0x49f   : > { %2289 = vrot.lane.b32.xlu1 %v8697_v56, %s7180_s11 }
 0x4a2   : > { %2295 = vrot.lane.b32.xlu0 %v8733_v62, %s7180_s11 }
 0x4a3   : > { %2293 = vrot.lane.b32.xlu1 %v8724_v13, %s7180_s11 }
 0x4a6   : > { %2299 = vrot.lane.b32.xlu0 %v8759_v6, %s7180_s11 }
 0x4a7   : > { %2297 = vrot.lane.b32.xlu1 %v8751_v41, %s7180_s11 }
 0x4aa   : > { %2303 = vrot.lane.b32.xlu0 %v8783_v19, %s7180_s11 }
 0x4ab   : > { %2301 = vrot.lane.b32.xlu1 %v8775_v34, %s7180_s11 }
 0x4ae   : > { %2307 = vrot.lane.b32.xlu0 %v8800_v35, %s7180_s11 }
 0x4af   : > { %2305 = vrot.lane.b32.xlu1 %v8795_v32, %s7180_s11 }
 0x4b3   : > { %2309 = vrot.lane.b32.xlu1 %v8805_v20, %s7180_s11 }
 0x4cd   : > { %1960 = vmax.xlane.f32.xlu0 %v1959_v45 }
 0x4d1   : > { %1966 = vmax.xlane.f32.xlu0 %v1965_v12 }
 0x4d5   : > { %1969 = vmax.xlane.f32.xlu0 %v1968_v43 }
 0x4d7   : > { %1963 = vmax.xlane.f32.xlu1 %v1962_v47 }
 0x4d9   : > { %1972 = vmax.xlane.f32.xlu0 %v1971_v44 }
 0x4db   : > { %1975 = vmax.xlane.f32.xlu1 %v1974_v29 }
 0x4dd   : > { %1978 = vmax.xlane.f32.xlu0 %v1977_v1 }
 0x4df   : > { %1981 = vmax.xlane.f32.xlu1 %v1980_v53 }
 0x4e1   : > { %1984 = vmax.xlane.f32.xlu0 %v1983_v49 }
 0x4e3   : > { %1987 = vmax.xlane.f32.xlu1 %v1986_v55 }
 0x4e5   : > { %1990 = vmax.xlane.f32.xlu0 %v1989_v0 }
 0x4e7   : > { %1993 = vmax.xlane.f32.xlu1 %v1992_v61  ;;  %v8865_v23 = vpop.xlane.xlu0 %1718 }
 0x4e8   : > { %vm1750_vm12 = vcmp.eq.f32.partialorder %v8865_v23, -inf }
 0x4e9   : > { %1996 = vmax.xlane.f32.xlu0 %v1995_v38  ;;  %v1766_v30 = vsel %vm1750_vm12, 0.0, %v8865_v23 }
 0x4ea   : > { %v1782_v27 = vsub.f32 %v8591_v54, %v1766_v30 }
 0x4eb   : > { %1999 = vmax.xlane.f32.xlu1 %v1998_v37 }
 0x4ec   : > { %v1798_v4 = vmul.f32 1.442695, %v1782_v27 }
 0x4ed   : > { %2002 = vmax.xlane.f32.xlu0 %v2001_v17 }
 0x4ee   : > { %6324 = vpow2.f32 %v1798_v4  ;;  %v8880_v48 = vpop.xlane.xlu1 %1720 }
 0x4ef   : > { %2005 = vmax.xlane.f32.xlu1 %v2004_v50  ;;  %vm1751_vm15 = vcmp.eq.f32.partialorder %v8880_v48, -inf }
 0x4f0   : > { %v1767_v57 = vsel %vm1751_vm15, 0.0, %v8880_v48 }
 0x4f1   : > { %v1783_v18 = vsub.f32 %v8631_v36, %v1767_v57 }
 0x4f3   : > { %v8887_v3 = vpop.xlane.xlu0 %1722  ;;  %v1800_v22 = vmul.f32 1.442695, %v1783_v18 }
 0x4f4   : > { %vm1752_vm4 = vcmp.eq.f32.partialorder %v8887_v3, -inf }
 0x4f5   : > { %v1768_v8 = vsel %vm1752_vm4, 0.0, %v8887_v3  ;;  %6326 = vpow2.f32 %v1800_v22 }
 0x4f6   : > { %v1784_v42 = vsub.f32 %v8654_v59, %v1768_v8 }
 0x4f7   : > { %v8894_v28 = vpop.xlane.xlu1 %1724 }
 0x4f8   : > { %v1802_v16 = vmul.f32 1.442695, %v1784_v42  ;;  %vm1753_vm9 = vcmp.eq.f32.partialorder %v8894_v28, -inf  ;;  %v6325_v2 = vpop.eup %6324 }
 0x4f9   : > { %v1769_v26 = vsel %vm1753_vm9, 0.0, %v8894_v28  ;;  %v8901_v63 = vpop.xlane.xlu0 %1726  ;;  %1830 = vadd.xlane.f32.xlu0 %v6325_v2 }
 0x4fa   : > { %6328 = vpow2.f32 %v1802_v16  ;;  %v1785_v40 = vsub.f32 %v8675_v11, %v1769_v26  ;;  %vm1754_vm10 = vcmp.eq.f32.partialorder %v8901_v63, -inf }
 0x4fb   : > { %v8904_v15 = vpop.xlane.xlu1 %1728  ;;  %v1770_v21 = vsel %vm1754_vm10, 0.0, %v8901_v63 }
 0x4fc   : > { %v1804_v51 = vmul.f32 1.442695, %v1785_v40  ;;  %vm1755_vm13 = vcmp.eq.f32.partialorder %v8904_v15, -inf  ;;  %v1786_v46 = vsub.f32 %v8694_v9, %v1770_v21 }
 0x4fd   : > { %v1771_v52 = vsel %vm1755_vm13, 0.0, %v8904_v15  ;;  %v8915_v7 = vpop.xlane.xlu0 %1730 }
 0x4fe   : > { %6330 = vpow2.f32 %v1804_v51  ;;  %v1787_v39 = vsub.f32 %v8697_v56, %v1771_v52  ;;  %v1806_v24 = vmul.f32 1.442695, %v1786_v46  ;;  %vm1756_vm1 = vcmp.eq.f32.partialorder %v8915_v7, -inf }
 0x4ff   : > { %v8918_v31 = vpop.xlane.xlu1 %1732  ;;  %v6327_v60 = vpop.eup %6326  ;;  %v1772_v25 = vsel %vm1756_vm1, 0.0, %v8915_v7 }
 0x500   : > { %v1808_v10 = vmul.f32 1.442695, %v1787_v39  ;;  %vm1757_vm11 = vcmp.eq.f32.partialorder %v8918_v31, -inf  ;;  %6332 = vpow2.f32 %v1806_v24  ;;  %v1788_v14 = vsub.f32 %v8718_v58, %v1772_v25  ;;  %1832 = vadd.xlane.f32.xlu1 %v6327_v60 }
 0x501   : > { %v1773_v5 = vsel %vm1757_vm11, 0.0, %v8918_v31  ;;  %v8929_v12 = vpop.xlane.xlu0 %1734 }
 0x502   : > { %6334 = vpow2.f32 %v1808_v10  ;;  %v1789_v45 = vsub.f32 %v8724_v13, %v1773_v5  ;;  %v1810_v43 = vmul.f32 1.442695, %v1788_v14  ;;  %vm1758_vm3 = vcmp.eq.f32.partialorder %v8929_v12, -inf }
 0x503   : > { %v8932_v47 = vpop.xlane.xlu1 %1736  ;;  %v1774_v1 = vsel %vm1758_vm3, 0.0, %v8929_v12 }
 0x504   : > { %v6329_v44 = vpop.eup %6328  ;;  %v1812_v29 = vmul.f32 1.442695, %v1789_v45  ;;  %vm1759_vm5 = vcmp.eq.f32.partialorder %v8932_v47, -inf  ;;  %6336 = vpow2.f32 %v1810_v43  ;;  %v1790_v53 = vsub.f32 %v8733_v62, %v1774_v1 }
 0x505   : > { %v1775_v49 = vsel %vm1759_vm5, 0.0, %v8932_v47  ;;  %1834 = vadd.xlane.f32.xlu0 %v6329_v44  ;;  %v8943_v0 = vpop.xlane.xlu0 %1738 }
 0x506   : > { %6338 = vpow2.f32 %v1812_v29  ;;  %v1791_v55 = vsub.f32 %v8751_v41, %v1775_v49  ;;  %v1814_v61 = vmul.f32 1.442695, %v1790_v53  ;;  %vm1760_vm6 = vcmp.eq.f32.partialorder %v8943_v0, -inf }
 0x507   : > { %v8946_v38 = vpop.xlane.xlu1 %1740  ;;  %v1776_v27 = vsel %vm1760_vm6, 0.0, %v8943_v0 }
 0x508   : > { %v6331_v30 = vpop.eup %6330  ;;  %v1816_v37 = vmul.f32 1.442695, %v1791_v55  ;;  %vm1761_vm7 = vcmp.eq.f32.partialorder %v8946_v38, -inf  ;;  %6340 = vpow2.f32 %v1814_v61  ;;  %v1792_v4 = vsub.f32 %v8759_v6, %v1776_v27 }
 0x509   : > { %v1777_v17 = vsel %vm1761_vm7, 0.0, %v8946_v38  ;;  %1836 = vadd.xlane.f32.xlu0 %v6331_v30  ;;  %v8957_v57 = vpop.xlane.xlu0 %1742 }
 0x50a   : > { %6342 = vpow2.f32 %v1816_v37  ;;  %v1793_v50 = vsub.f32 %v8775_v34, %v1777_v17  ;;  %v6333_v18 = vpop.eup %6332  ;;  %v1818_v22 = vmul.f32 1.442695, %v1792_v4  ;;  %vm13244_vm8 = vcmp.eq.f32.partialorder %v8957_v57, -inf }
 0x50b   : > { %v8960_v8 = vpop.xlane.xlu1 %1744  ;;  %v1778_v2 = vsel %vm13244_vm8, 0.0, %v8957_v57 }
 0x50c   : > { %v6335_v42 = vpop.eup %6334  ;;  %v1820_v16 = vmul.f32 1.442695, %v1793_v50  ;;  %vm1763_vm0 = vcmp.eq.f32.partialorder %v8960_v8, -inf  ;;  %6344 = vpow2.f32 %v1818_v22  ;;  %v1794_v26 = vsub.f32 %v8783_v19, %v1778_v2 }
 0x50d   : > { %v1779_v40 = vsel %vm1763_vm0, 0.0, %v8960_v8  ;;  %1840 = vadd.xlane.f32.xlu1 %v6335_v42  ;;  %1838 = vadd.xlane.f32.xlu0 %v6333_v18  ;;  %v8971_v21 = vpop.xlane.xlu0 %1746 }
 0x50e   : > { %6346 = vpow2.f32 %v1820_v16  ;;  %v1795_v51 = vsub.f32 %v8795_v32, %v1779_v40  ;;  %v6337_v46 = vpop.eup %6336  ;;  %v1822_v52 = vmul.f32 1.442695, %v1794_v26  ;;  %vm13241_vm2 = vcmp.eq.f32.partialorder %v8971_v21, -inf }
 0x50f   : > { %v8974_v39 = vpop.xlane.xlu1 %1748  ;;  %v1780_v10 = vsel %vm13241_vm2, 0.0, %v8971_v21 }
 0x510   : > { %v6339_v24 = vpop.eup %6338  ;;  %v1824_v60 = vmul.f32 1.442695, %v1795_v51  ;;  %vm13242_vm14 = vcmp.eq.f32.partialorder %v8974_v39, -inf  ;;  %6348 = vpow2.f32 %v1822_v52  ;;  %v1796_v25 = vsub.f32 %v8800_v35, %v1780_v10 }
 0x511   : > { %v1781_v14 = vsel %vm13242_vm14, 0.0, %v8974_v39  ;;  %1844 = vadd.xlane.f32.xlu1 %v6339_v24  ;;  %1842 = vadd.xlane.f32.xlu0 %v6337_v46  ;;  %v8987_v27 = vpop.permute.xlu0 %2279 }
 0x512   : > { %6350 = vpow2.f32 %v1824_v60  ;;  %v1797_v5 = vsub.f32 %v8805_v20, %v1781_v14  ;;  %v6341_v45 = vpop.eup %6340  ;;  %v1826_v43 = vmul.f32 1.442695, %v1796_v25 }
 0x513   : > { %v8985_v37 = vpop.permute.xlu1 %2281 }
 0x514   : > { %v6343_v44 = vpop.eup %6342  ;;  %v1828_v29 = vmul.f32 1.442695, %v1797_v5  ;;  %6352 = vpow2.f32 %v1826_v43 }
 0x515   : > { %1848 = vadd.xlane.f32.xlu1 %v6343_v44  ;;  %1846 = vadd.xlane.f32.xlu0 %v6341_v45  ;;  %v8991_v17 = vpop.permute.xlu0 %2287 }
 0x516   : > { %6354 = vpow2.f32 %v1828_v29  ;;  %v6345_v1 = vpop.eup %6344 }
 0x517   : > { %v8989_v4 = vpop.permute.xlu1 %2283 }
 0x518   : > { %v6347_v53 = vpop.eup %6346 }
 0x519   : > { %1852 = vadd.xlane.f32.xlu1 %v6347_v53  ;;  %1850 = vadd.xlane.f32.xlu0 %v6345_v1  ;;  %v8995_v18 = vpop.permute.xlu0 %2291 }
 0x51a   : > { %v6349_v49 = vpop.eup %6348 }
 0x51b   : > { %v8993_v50 = vpop.permute.xlu1 %2285 }
 0x51c   : > { %v6351_v55 = vpop.eup %6350 }
 0x51d   : > { %1856 = vadd.xlane.f32.xlu1 %v6351_v55  ;;  %1854 = vadd.xlane.f32.xlu0 %v6349_v49  ;;  %v8999_v42 = vpop.permute.xlu0 %2295 }
 0x51e   : > { %v6353_v61 = vpop.eup %6352 }
 0x51f   : > { %v8997_v22 = vpop.permute.xlu1 %2289 }
 0x520   : > { %v6355_v30 = vpop.eup %6354 }
 0x521   : > { %1860 = vadd.xlane.f32.xlu1 %v6355_v30  ;;  %1858 = vadd.xlane.f32.xlu0 %v6353_v61  ;;  %v9003_v2 = vpop.permute.xlu0 %2299 }
 0x523   : > { %v9001_v16 = vpop.permute.xlu1 %2293 }
 0x525   : > { %v9007_v40 = vpop.permute.xlu0 %2303 }
 0x527   : > { %v9005_v26 = vpop.permute.xlu1 %2297 }
 0x529   : > { %v9011_v46 = vpop.permute.xlu0 %2307 }
 0x52a   : > { %13451 = vst [vmem:[#allocation6_spill] sm:$0xff] %v9011_v46 }
 0x52b   : > { %v9009_v51 = vpop.permute.xlu1 %2301 }
 0x52f   : > { %v9013_v52 = vpop.permute.xlu1 %2305 }
 0x533   : > { %v9024_v14 = vpop.permute.xlu1 %2309 }
 0x534   : > { %13452 = vst [vmem:[#allocation7_spill] sm:$0xff] %v9024_v14 }
 0x55a   : > { %v9015_v24 = vpop.xlane.xlu0 %1960 }
 0x55b   : > { %vm13243_vm2 = vcmp.eq.f32.partialorder %v9015_v24, -inf }
 0x55c   : > { %v2023_v60 = vsel %vm13243_vm2, 0.0, %v9015_v24 }
 0x55d   : > { %v2039_v10 = vsub.f32 %v8591_v54, %v2023_v60 }
 0x55e   : > { %v9022_v25 = vpop.xlane.xlu0 %1966 }
 0x55f   : > { %v2055_v5 = vmul.f32 1.442695, %v2039_v10  ;;  %vm13245_vm14 = vcmp.eq.f32.partialorder %v9022_v25, -inf }
 0x560   : > { %v2025_v43 = vsel %vm13245_vm14, 0.0, %v9022_v25 }
 0x561   : > { %6356 = vpow2.f32 %v2055_v5  ;;  %v2041_v29 = vsub.f32 %v8654_v59, %v2025_v43 }
 0x562   : > { %v9027_v45 = vpop.xlane.xlu0 %1969 }
 0x563   : > { %vm13247_vm2 = vcmp.eq.f32.partialorder %v9027_v45, -inf }
 0x564   : > { %v9032_v44 = vpop.xlane.xlu1 %1963  ;;  %v2026_v49 = vsel %vm13247_vm2, 0.0, %v9027_v45 }
 0x565   : > { %vm13246_vm8 = vcmp.eq.f32.partialorder %v9032_v44, -inf  ;;  %v2042_v60 = vsub.f32 %v8675_v11, %v2026_v49 }
 0x566   : > { %v2024_v54 = vsel %vm13246_vm8, 0.0, %v9032_v44  ;;  %v9041_v53 = vpop.xlane.xlu0 %1972 }
 0x567   : > { %v2040_v1 = vsub.f32 %v8631_v36, %v2024_v54  ;;  %vm13248_vm14 = vcmp.eq.f32.partialorder %v9041_v53, -inf  ;;  %v2059_v36 = vmul.f32 1.442695, %v2041_v29  ;;  %v2061_v29 = vmul.f32 1.442695, %v2042_v60 }
 0x568   : > { %v9047_v55 = vpop.xlane.xlu1 %1975  ;;  %v2027_v30 = vsel %vm13248_vm14, 0.0, %v9041_v53 }
 0x569   : > { %v2057_v61 = vmul.f32 1.442695, %v2040_v1  ;;  %vm13250_vm8 = vcmp.eq.f32.partialorder %v9047_v55, -inf  ;;  %v2043_v59 = vsub.f32 %v8694_v9, %v2027_v30 }
 0x56a   : > { %v9055_v10 = vpop.xlane.xlu0 %1978  ;;  %v2028_v54 = vsel %vm13250_vm8, 0.0, %v9047_v55 }
 0x56b   : > { %6358 = vpow2.f32 %v2057_v61  ;;  %v6357_v5 = vpop.eup %6356  ;;  %v2063_v43 = vmul.f32 1.442695, %v2043_v59  ;;  %vm13249_vm2 = vcmp.eq.f32.partialorder %v9055_v10, -inf  ;;  %v2044_v49 = vsub.f32 %v8697_v56, %v2028_v54 }
 0x56c   : > { %v9061_v1 = vpop.xlane.xlu1 %1981  ;;  %v2029_v9 = vsel %vm13249_vm2, 0.0, %v9055_v10  ;;  %2103 = vrot.lane.b32.xlu0 %v6357_v5, %s7179_s10 }
 0x56d   : > { %vm13251_vm14 = vcmp.eq.f32.partialorder %v9061_v1, -inf  ;;  %6360 = vpow2.f32 %v2063_v43  ;;  %v2045_v11 = vsub.f32 %v8718_v58, %v2029_v9  ;;  %v2065_v58 = vmul.f32 1.442695, %v2044_v49 }
 0x56e   : > { %6362 = vpow2.f32 %v2059_v36  ;;  %v9070_v61 = vpop.xlane.xlu0 %1984  ;;  %v2030_v59 = vsel %vm13251_vm14, 0.0, %v9061_v1 }
 0x56f   : > { %v2067_v30 = vmul.f32 1.442695, %v2045_v11  ;;  %vm13252_vm2 = vcmp.eq.f32.partialorder %v9070_v61, -inf  ;;  %v2046_v36 = vsub.f32 %v8724_v13, %v2030_v59 }
 0x570   : > { %v9076_v14 = vpop.xlane.xlu1 %1987  ;;  %v2031_v5 = vsel %vm13252_vm2, 0.0, %v9070_v61 }
 0x571   : > { %vm13254_vm8 = vcmp.eq.f32.partialorder %v9076_v14, -inf  ;;  %6364 = vpow2.f32 %v2067_v30  ;;  %v2047_v56 = vsub.f32 %v8733_v62, %v2031_v5 }
 0x572   : > { %6366 = vpow2.f32 %v2061_v29  ;;  %v9084_v60 = vpop.xlane.xlu0 %1990  ;;  %v2032_v54 = vsel %vm13254_vm8, 0.0, %v9076_v14  ;;  %v2069_v29 = vmul.f32 1.442695, %v2046_v36 }
 0x573   : > { %v2071_v43 = vmul.f32 1.442695, %v2047_v56  ;;  %vm13253_vm14 = vcmp.eq.f32.partialorder %v9084_v60, -inf  ;;  %v2048_v49 = vsub.f32 %v8751_v41, %v2032_v54 }
 0x574   : > { %v9090_v9 = vpop.xlane.xlu1 %1993  ;;  %v2033_v62 = vsel %vm13253_vm14, 0.0, %v9084_v60 }
 0x575   : > { %v6359_v11 = vpop.eup %6358  ;;  %vm13256_vm2 = vcmp.eq.f32.partialorder %v9090_v9, -inf  ;;  %6368 = vpow2.f32 %v2071_v43  ;;  %v2049_v13 = vsub.f32 %v8759_v6, %v2033_v62 }
 0x576   : > { %2105 = vrot.lane.b32.xlu1 %v6359_v11, %s7179_s10  ;;  %6370 = vpow2.f32 %v2065_v58  ;;  %v9099_v30 = vpop.xlane.xlu0 %1996  ;;  %v2034_v56 = vsel %vm13256_vm2, 0.0, %v9090_v9  ;;  %v2073_v58 = vmul.f32 1.442695, %v2048_v49 }
 0x577   : > { %v6361_v59 = vpop.eup %6360  ;;  %v2075_v5 = vmul.f32 1.442695, %v2049_v13  ;;  %vm13255_vm14 = vcmp.eq.f32.partialorder %v9099_v30, -inf  ;;  %v2050_v36 = vsub.f32 %v8775_v34, %v2034_v56 }
 0x578   : > { %v9105_v46 = vpop.xlane.xlu1 %1999  ;;  %v6363_v43 = vpop.eup %6362  ;;  %v2035_v6 = vsel %vm13255_vm14, 0.0, %v9099_v30  ;;  %2111 = vrot.lane.b32.xlu0 %v6361_v59, %s7179_s10 }
 0x579   : > { %vm2020_vm8 = vcmp.eq.f32.partialorder %v9105_v46, -inf  ;;  %6372 = vpow2.f32 %v2075_v5  ;;  %v2051_v41 = vsub.f32 %v8783_v19, %v2035_v6 }
 0x57a   : > { %2107 = vrot.lane.b32.xlu1 %v6363_v43, %s7179_s10  ;;  %6374 = vpow2.f32 %v2069_v29  ;;  %v9115_v54 = vpop.xlane.xlu0 %2002  ;;  %v2036_v13 = vsel %vm2020_vm8, 0.0, %v9105_v46  ;;  %v2077_v29 = vmul.f32 1.442695, %v2050_v36 }
 0x57b   : > { %v6365_v11 = vpop.eup %6364  ;;  %v2079_v62 = vmul.f32 1.442695, %v2051_v41  ;;  %vm2021_vm14 = vcmp.eq.f32.partialorder %v9115_v54, -inf  ;;  %v2052_v49 = vsub.f32 %v8795_v32, %v2036_v13 }
 0x57c   : > { %v9121_v59 = vpop.xlane.xlu1 %2005  ;;  %v6367_v5 = vpop.eup %6366  ;;  %v2037_v19 = vsel %vm2021_vm14, 0.0, %v9115_v54  ;;  %2115 = vrot.lane.b32.xlu0 %v6365_v11, %s7179_s10 }
 0x57d   : > { %vm2022_vm2 = vcmp.eq.f32.partialorder %v9121_v59, -inf  ;;  %6376 = vpow2.f32 %v2079_v62  ;;  %v2053_v34 = vsub.f32 %v8800_v35, %v2037_v19  ;;  %v2081_v35 = vmul.f32 1.442695, %v2052_v49 }
 0x57e   : > { %2109 = vrot.lane.b32.xlu1 %v6367_v5, %s7179_s10  ;;  %6378 = vpow2.f32 %v2073_v58  ;;  %v2038_v6 = vsel %vm2022_vm2, 0.0, %v9121_v59 }
 0x57f   : > { %v6369_v56 = vpop.eup %6368  ;;  %v2083_v43 = vmul.f32 1.442695, %v2053_v34  ;;  %v2054_v11 = vsub.f32 %v8805_v20, %v2038_v6 }
 0x580   : > { %v6371_v41 = vpop.eup %6370  ;;  %2119 = vrot.lane.b32.xlu0 %v6369_v56, %s7179_s10 }
 0x581   : > { %6380 = vpow2.f32 %v2083_v43  ;;  %v2085_v32 = vmul.f32 1.442695, %v2054_v11 }
 0x582   : > { %2113 = vrot.lane.b32.xlu1 %v6371_v41, %s7179_s10  ;;  %6382 = vpow2.f32 %v2077_v29 }
 0x583   : > { %v6373_v58 = vpop.eup %6372  ;;  %6384 = vpow2.f32 %v2081_v35 }
 0x584   : > { %v6375_v36 = vpop.eup %6374  ;;  %2123 = vrot.lane.b32.xlu0 %v6373_v58, %s7179_s10 }
 0x586   : > { %2117 = vrot.lane.b32.xlu1 %v6375_v36, %s7179_s10  ;;  %v1831_v62 = vpop.xlane.xlu0 %1830 }
 0x587   : > { %v6377_v13 = vpop.eup %6376  ;;  %v1862_v5 = vsel %vm1750_vm12, 1.0, %v1831_v62  ;;  %vm1942_vm12 = vcmask 23568  }
 0x588   : > { %v6379_v19 = vpop.eup %6378  ;;  %2127 = vrot.lane.b32.xlu0 %v6377_v13, %s7179_s10  ;;  %6386 = vlog2.f32 %v1862_v5 }
 0x589   : > { %6388 = vpow2.f32 %v2085_v32 }
 0x58a   : > { %2121 = vrot.lane.b32.xlu1 %v6379_v19, %s7179_s10 }
 0x58b   : > { %v6381_v20 = vpop.eup %6380 }
 0x58c   : > { %v6383_v34 = vpop.eup %6382  ;;  %2131 = vrot.lane.b32.xlu0 %v6381_v20, %s7179_s10 }
 0x58d   : > { %v1833_v29 = vpop.xlane.xlu1 %1832  ;;  %v6385_v56 = vpop.eup %6384 }
 0x58e   : > { %2125 = vrot.lane.b32.xlu1 %v6383_v34, %s7179_s10  ;;  %v1863_v49 = vsel %vm1751_vm15, 1.0, %v1833_v29  ;;  %vm13453_vm15 = vcmp.eq.f32.partialorder %v8957_v57, -inf }
 0x58f   : > { %6390 = vlog2.f32 %v1863_v49 }
 0x592   : > { %2129 = vrot.lane.b32.xlu1 %v6385_v56, %s7179_s10  ;;  %v1835_v43 = vpop.xlane.xlu0 %1834  ;;  %v6387_v6 = vpop.eup %6386 }
 0x593   : > { %v1864_v41 = vsel %vm1752_vm4, 1.0, %v1835_v43  ;;  %v1879_v35 = vmul.f32 0.6931472, %v6387_v6  ;;  %v6389_v11 = vpop.eup %6388  ;;  %vm13454_vm4 = vcmp.eq.f32.partialorder %v8974_v39, -inf }
 0x594   : > { %6392 = vlog2.f32 %v1864_v41 }
 0x595   : > { %v9151_v58 = vadd.f32 %v1879_v35, %v8865_v23 }
 0x596   : > { %2133 = vrot.lane.b32.xlu1 %v6389_v11, %s7179_s10  ;;  %v1837_v36 = vpop.xlane.xlu0 %1836 }
 0x597   : > { %v1865_v32 = vsel %vm1753_vm9, 1.0, %v1837_v36  ;;  %v1926_v62 = vsub.f32 0.0, %v9151_v58  ;;  %vm13455_vm9 = vcmp.eq.f32.partialorder %v8971_v21, -inf }
 0x598   : > { %6394 = vlog2.f32 %v1865_v32 }
 0x599   : > { %v6391_v13 = vpop.eup %6390  ;;  %1943 = vst.msk [vmem:[%s7665_s21] sm:$0xff] %vm1942_vm12, %v1926_v62 }
 0x59a   : > { %v1841_v5 = vpop.xlane.xlu1 %1840  ;;  %v1839_v19 = vpop.xlane.xlu0 %1838  ;;  %v1881_v20 = vmul.f32 0.6931472, %v6391_v13 }
 0x59b   : > { %v1867_v23 = vsel %vm1755_vm13, 1.0, %v1841_v5  ;;  %v1866_v34 = vsel %vm1754_vm10, 1.0, %v1839_v19  ;;  %vm13456_vm10 = vcmask 15360  }
 0x59c   : > { %6396 = vlog2.f32 %v1867_v23  ;;  %v9164_v29 = vadd.f32 %v1881_v20, %v8880_v48  ;;  %vm13457_vm13 = vmmov %vm13456_vm10 }
 0x59d   : > { %6398 = vlog2.f32 %v1866_v34 }
 0x59e   : > { %v6393_v49 = vpop.eup %6392  ;;  %v1845_v56 = vpop.xlane.xlu1 %1844  ;;  %v1927_v6 = vsub.f32 0.0, %v9164_v29 }
 0x59f   : > { %v1843_v43 = vpop.xlane.xlu0 %1842  ;;  %v1883_v41 = vmul.f32 0.6931472, %v6393_v49  ;;  %v1869_v35 = vsel %vm1757_vm11, 1.0, %v1845_v56 }
 0x5a0   : > { %6400 = vlog2.f32 %v1869_v35  ;;  %v1868_v11 = vsel %vm1756_vm1, 1.0, %v1843_v43  ;;  %1944 = vst.msk [vmem:[%s7665_s21 + $0x8] sm:$0xff] %vm1942_vm12, %v1927_v6  ;;  %vm13458_vm1 = vmmov %vm13456_vm10 }
 0x5a1   : > { %v9174_v48 = vadd.f32 %v1883_v41, %v8887_v3  ;;  %6402 = vlog2.f32 %v1868_v11  ;;  %vm13459_vm11 = vmmov %vm13458_vm1 }
 0x5a2   : > { %v6395_v36 = vpop.eup %6394  ;;  %v1849_v32 = vpop.xlane.xlu1 %1848 }
 0x5a3   : > { %v1847_v62 = vpop.xlane.xlu0 %1846  ;;  %v1928_v13 = vsub.f32 0.0, %v9174_v48  ;;  %v1885_v5 = vmul.f32 0.6931472, %v6395_v36  ;;  %v1871_v19 = vsel %vm1759_vm5, 1.0, %v1849_v32  ;;  %vm13461_vm5 = vmmov %vm13458_vm1 }
 0x5a4   : > { %6404 = vlog2.f32 %v1871_v19  ;;  %v1870_v20 = vsel %vm1758_vm3, 1.0, %v1847_v62  ;;  %vm13460_vm3 = vmmov %vm13458_vm1 }
 0x5a5   : > { %1945 = vst.msk [vmem:[%s7665_s21 + $0x10] sm:$0xff] %vm1942_vm12, %v1928_v13  ;;  %v9184_v3 = vadd.f32 %v1885_v5, %v8894_v28  ;;  %6406 = vlog2.f32 %v1870_v20 }
 0x5a6   : > { %v6397_v23 = vpop.eup %6396  ;;  %v1853_v34 = vpop.xlane.xlu1 %1852 }
 0x5a7   : > { %v1851_v49 = vpop.xlane.xlu0 %1850  ;;  %v6399_v56 = vpop.eup %6398  ;;  %v1929_v43 = vsub.f32 0.0, %v9184_v3  ;;  %v1889_v6 = vmul.f32 0.6931472, %v6397_v23  ;;  %v1873_v41 = vsel %vm1761_vm7, 1.0, %v1853_v34  ;;  %vm13463_vm7 = vmmov %vm13458_vm1 }
 0x5a8   : > { %v1887_v35 = vmul.f32 0.6931472, %v6399_v56  ;;  %6408 = vlog2.f32 %v1873_v41  ;;  %v1872_v11 = vsel %vm1760_vm6, 1.0, %v1851_v49  ;;  %vm13462_vm6 = vmmov %vm13458_vm1 }
 0x5a9   : > { %1946 = vst.msk [vmem:[%s7665_s21 + $0x18] sm:$0xff] %vm1942_vm12, %v1929_v43  ;;  %v9194_v28 = vadd.f32 %v1889_v6, %v8904_v15  ;;  %6410 = vlog2.f32 %v1872_v11 }
 0x5aa   : > { %v6401_v36 = vpop.eup %6400  ;;  %v9197_v32 = vadd.f32 %v1887_v35, %v8901_v63  ;;  %v1857_v62 = vpop.xlane.xlu1 %1856 }
 0x5ab   : > { %v1855_v13 = vpop.xlane.xlu0 %1854  ;;  %v6403_v5 = vpop.eup %6402  ;;  %v1931_v19 = vsub.f32 0.0, %v9194_v28  ;;  %v1893_v20 = vmul.f32 0.6931472, %v6401_v36  ;;  %v1875_v23 = vsel %vm1763_vm0, 1.0, %v1857_v62  ;;  %vm13464_vm0 = vmmov %vm13458_vm1 }
 0x5ac   : > { %v1930_v34 = vsub.f32 0.0, %v9197_v32  ;;  %v1891_v49 = vmul.f32 0.6931472, %v6403_v5  ;;  %6412 = vlog2.f32 %v1875_v23  ;;  %v1874_v63 = vsel %vm13453_vm15, 1.0, %v1855_v13  ;;  %vm13466_vm15 = vmmov %vm13464_vm0 }
 0x5ad   : > { %1948 = vst.msk [vmem:[%s7665_s21 + $0x28] sm:$0xff] %vm1942_vm12, %v1931_v19  ;;  %v9206_v15 = vadd.f32 %v1893_v20, %v8918_v31  ;;  %6414 = vlog2.f32 %v1874_v63 }
 0x5ae   : > { %v6405_v56 = vpop.eup %6404  ;;  %1947 = vst.msk [vmem:[%s7665_s21 + $0x20] sm:$0xff] %vm1942_vm12, %v1930_v34  ;;  %v9213_v43 = vadd.f32 %v1891_v49, %v8915_v7  ;;  %v1861_v6 = vpop.xlane.xlu1 %1860 }
 0x5af   : > { %v1859_v41 = vpop.xlane.xlu0 %1858  ;;  %v6407_v35 = vpop.eup %6406  ;;  %v1933_v11 = vsub.f32 0.0, %v9206_v15  ;;  %v1897_v36 = vmul.f32 0.6931472, %v6405_v56  ;;  %v1877_v31 = vsel %vm13454_vm4, 1.0, %v1861_v6  ;;  %vm13467_vm4 = vmmov %vm13464_vm0 }
 0x5b0   : > { %v1932_v62 = vsub.f32 0.0, %v9213_v43  ;;  %v1895_v13 = vmul.f32 0.6931472, %v6407_v35  ;;  %6416 = vlog2.f32 %v1877_v31  ;;  %v1876_v5 = vsel %vm13455_vm9, 1.0, %v1859_v41  ;;  %vm13468_vm9 = vmmov %vm13464_vm0 }
 0x5b1   : > { %1950 = vst.msk [vmem:[%s7665_s21 + $0x38] sm:$0xff] %vm1942_vm12, %v1933_v11  ;;  %v9222_v7 = vadd.f32 %v1897_v36, %v8932_v47  ;;  %6418 = vlog2.f32 %v1876_v5 }
 0x5b2   : > { %v6409_v19 = vpop.eup %6408  ;;  %1949 = vst.msk [vmem:[%s7665_s21 + $0x30] sm:$0xff] %vm1942_vm12, %v1932_v62  ;;  %v9229_v20 = vadd.f32 %v1895_v13, %v8929_v12 }
 0x5b3   : > { %v6411_v23 = vpop.eup %6410  ;;  %v1935_v34 = vsub.f32 0.0, %v9222_v7  ;;  %v1901_v49 = vmul.f32 0.6931472, %v6409_v19 }
 0x5b4   : > { %v1934_v63 = vsub.f32 0.0, %v9229_v20  ;;  %v1899_v47 = vmul.f32 0.6931472, %v6411_v23 }
 0x5b5   : > { %1952 = vst.msk [vmem:[%s7665_s21 + $0x48] sm:$0xff] %vm1942_vm12, %v1935_v34  ;;  %v9236_v56 = vadd.f32 %v1901_v49, %v8946_v38 }
 0x5b6   : > { %v6413_v6 = vpop.eup %6412  ;;  %1951 = vst.msk [vmem:[%s7665_s21 + $0x40] sm:$0xff] %vm1942_vm12, %v1934_v63  ;;  %v9241_v12 = vadd.f32 %v1899_v47, %v8943_v0 }
 0x5b7   : > { %v1937_v41 = vsub.f32 0.0, %v9236_v56  ;;  %v1905_v35 = vmul.f32 0.6931472, %v6413_v6  ;;  %v6415_v11 = vpop.eup %6414 }
 0x5b8   : > { %v1936_v36 = vsub.f32 0.0, %v9241_v12  ;;  %v1903_v31 = vmul.f32 0.6931472, %v6415_v11 }
 0x5b9   : > { %1954 = vst.msk [vmem:[%s7665_s21 + $0x58] sm:$0xff] %vm1942_vm12, %v1937_v41  ;;  %v9248_v38 = vadd.f32 %v1905_v35, %v8960_v8 }
 0x5ba   : > { %v6417_v62 = vpop.eup %6416  ;;  %1953 = vst.msk [vmem:[%s7665_s21 + $0x50] sm:$0xff] %vm1942_vm12, %v1936_v36  ;;  %v9254_v13 = vadd.f32 %v1903_v31, %v8957_v57 }
 0x5bb   : > { %v1939_v0 = vsub.f32 0.0, %v9248_v38  ;;  %v1909_v5 = vmul.f32 0.6931472, %v6417_v62  ;;  %v6419_v19 = vpop.eup %6418 }
 0x5bc   : > { %v1938_v23 = vsub.f32 0.0, %v9254_v13  ;;  %v1907_v8 = vmul.f32 0.6931472, %v6419_v19 }
 0x5bd   : > { %1956 = vst.msk [vmem:[%s7665_s21 + $0x68] sm:$0xff] %vm1942_vm12, %v1939_v0  ;;  %v9260_v34 = vadd.f32 %v1909_v5, %v8974_v39 }
 0x5be   : > { %1955 = vst.msk [vmem:[%s7665_s21 + $0x60] sm:$0xff] %vm1942_vm12, %v1938_v23  ;;  %v9266_v63 = vadd.f32 %v1907_v8, %v8971_v21 }
 0x5bf   : > { %v1941_v49 = vsub.f32 0.0, %v9260_v34 }
 0x5c0   : > { %v1940_v57 = vsub.f32 0.0, %v9266_v63 }
 0x5c1   : > { %1958 = vst.msk [vmem:[%s7665_s21 + $0x78] sm:$0xff] %vm1942_vm12, %v1941_v49 }
 0x5c2   : > { %1957 = vst.msk [vmem:[%s7665_s21 + $0x70] sm:$0xff] %vm1942_vm12, %v1940_v57  ;;  %vm13465_vm12 = vmmov %vm13464_vm0 }
 0x5de   : > { %v2104_v47 = vpop.permute.xlu0 %2103 }
 0x5df   : > { %v2151_v6 = vsel %vm13456_vm10, %v2104_v47, 0.0  ;;  %vm13469_vm10 = vmmov %vm13464_vm0 }
 0x5e0   : > { %2152 = vadd.xlane.f32.xlu0 %v2151_v6 }
 0x5e8   : > { %v2106_v39 = vpop.permute.xlu1 %2105 }
 0x5e9   : > { %v2154_v41 = vsel %vm13457_vm13, %v2106_v39, 0.0  ;;  %vm13470_vm13 = vmmov %vm13464_vm0 }
 0x5ea   : > { %2155 = vadd.xlane.f32.xlu1 %v2154_v41  ;;  %v2112_v35 = vpop.permute.xlu0 %2111 }
 0x5eb   : > { %v2163_v0 = vsel %vm13460_vm3, %v2112_v35, 0.0  ;;  %vm13473_vm3 = vcmp.eq.f32.partialorder %v9032_v44, -inf }
 0x5ec   : > { %v2108_v11 = vpop.permute.xlu1 %2107 }
 0x5ed   : > { %v2157_v36 = vsel %vm13458_vm1, %v2108_v11, 0.0  ;;  %vm13471_vm1 = vmmov %vm13464_vm0 }
 0x5ee   : > { %2158 = vadd.xlane.f32.xlu0 %v2157_v36  ;;  %v2116_v21 = vpop.permute.xlu0 %2115 }
 0x5ef   : > { %v2169_v8 = vsel %vm13462_vm6, %v2116_v21, 0.0  ;;  %vm13475_vm6 = vcmp.eq.s32.totalorder %v7822_v33, 0 }
 0x5f0   : > { %v2110_v31 = vpop.permute.xlu1 %2109 }
 0x5f1   : > { %v2160_v62 = vsel %vm13459_vm11, %v2110_v31, 0.0  ;;  %vm13472_vm11 = vcmp.eq.f32.partialorder %v9015_v24, -inf }
 0x5f2   : > { %2161 = vadd.xlane.f32.xlu1 %v2160_v62  ;;  %2164 = vadd.xlane.f32.xlu0 %v2163_v0  ;;  %v2120_v5 = vpop.permute.xlu0 %2119 }
 0x5f3   : > { %v2175_v6 = vsel %vm13464_vm0, %v2120_v5, 0.0  ;;  %vm13477_vm0 = vcmp.eq.f32.partialorder %v9041_v53, -inf }
 0x5f4   : > { %v2114_v19 = vpop.permute.xlu1 %2113 }
 0x5f5   : > { %v2166_v23 = vsel %vm13461_vm5, %v2114_v19, 0.0  ;;  %vm13474_vm5 = vcmp.eq.f32.partialorder %v9022_v25, -inf }
 0x5f6   : > { %2167 = vadd.xlane.f32.xlu1 %v2166_v23  ;;  %2170 = vadd.xlane.f32.xlu0 %v2169_v8  ;;  %v2124_v49 = vpop.permute.xlu0 %2123 }
 0x5f7   : > { %v2181_v11 = vsel %vm13466_vm15, %v2124_v49, 0.0  ;;  %vm13479_vm15 = vcmp.eq.f32.partialorder %v9047_v55, -inf }
 0x5f8   : > { %v2118_v57 = vpop.permute.xlu1 %2117 }
 0x5f9   : > { %v2172_v47 = vsel %vm13463_vm7, %v2118_v57, 0.0  ;;  %vm13476_vm7 = vcmp.eq.f32.partialorder %v9027_v45, -inf }
 0x5fa   : > { %2173 = vadd.xlane.f32.xlu1 %v2172_v47  ;;  %2176 = vadd.xlane.f32.xlu0 %v2175_v6  ;;  %v2128_v39 = vpop.permute.xlu0 %2127 }
 0x5fb   : > { %v2187_v31 = vsel %vm13468_vm9, %v2128_v39, 0.0  ;;  %vm13481_vm9 = vcmp.eq.f32.partialorder %v9061_v1, -inf }
 0x5fc   : > { %v2122_v41 = vpop.permute.xlu1 %2121 }
 0x5fd   : > { %v2178_v35 = vsel %vm13465_vm12, %v2122_v41, 0.0  ;;  %vm13478_vm12 = vcmp.eq.s32.totalorder %v7822_v33, 127 }
 0x5fe   : > { %2179 = vadd.xlane.f32.xlu1 %v2178_v35  ;;  %2182 = vadd.xlane.f32.xlu0 %v2181_v11  ;;  %v2132_v62 = vpop.permute.xlu0 %2131  ;;  %v2311_v11 = vsub.f32 %v8987_v27, %v9151_v58 }
 0x5ff   : > { %v2193_v19 = vsel %vm13470_vm13, %v2132_v62, 0.0  ;;  %vm13483_vm13 = vmmov %vm13475_vm6 }
 0x600   : > { %v2126_v36 = vpop.permute.xlu1 %2125 }
 0x601   : > { %v2184_v21 = vsel %vm13467_vm4, %v2126_v36, 0.0  ;;  %vm13480_vm4 = vcmp.eq.f32.partialorder %v9055_v10, -inf }
 0x602   : > { %2185 = vadd.xlane.f32.xlu1 %v2184_v21  ;;  %2188 = vadd.xlane.f32.xlu0 %v2187_v31 }
 0x604   : > { %v2130_v0 = vpop.permute.xlu1 %2129 }
 0x605   : > { %v2190_v5 = vsel %vm13469_vm10, %v2130_v0, 0.0  ;;  %vm13482_vm10 = vcmp.eq.f32.partialorder %v9070_v61, -inf }
 0x606   : > { %2191 = vadd.xlane.f32.xlu1 %v2190_v5  ;;  %2194 = vadd.xlane.f32.xlu0 %v2193_v19  ;;  %v2327_v5 = vsel %vm13475_vm6, 0.0, %v2311_v11  ;;  %v2312_v11 = vsub.f32 %v8985_v37, %v9164_v29 }
 0x608   : > { %v2134_v23 = vpop.permute.xlu1 %2133 }
 0x609   : > { %v2196_v8 = vsel %vm13471_vm1, %v2134_v23, 0.0  ;;  %vm13484_vm1 = vmmov %vm13475_vm6  ;;  %vm13488_vm6 = vcmp.eq.f32.partialorder %v9076_v14, -inf }
 0x60a   : > { %2197 = vadd.xlane.f32.xlu1 %v2196_v8  ;;  %v2375_v8 = vld [vmem:[%s7274_s9 + $0x18] sm:$0xff] }
 0x66d   : > { %v2153_v49 = vpop.xlane.xlu0 %2152 }
 0x66e   : > { %v2199_v57 = vsel %vm13472_vm11, 1.0, %v2153_v49  ;;  %vm13485_vm11 = vmmov %vm13478_vm12 }
 0x66f   : > { %6420 = vlog2.f32 %v2199_v57 }
 0x677   : > { %v2156_v47 = vpop.xlane.xlu1 %2155 }
 0x678   : > { %v2200_v6 = vsel %vm13473_vm3, 1.0, %v2156_v47  ;;  %vm13486_vm3 = vmmov %vm13484_vm1 }
 0x679   : > { %6422 = vlog2.f32 %v2200_v6  ;;  %v6421_v39 = vpop.eup %6420 }
 0x67a   : > { %v2216_v41 = vmul.f32 0.6931472, %v6421_v39 }
 0x67b   : > { %v2159_v35 = vpop.xlane.xlu0 %2158 }
 0x67c   : > { %v2201_v36 = vsel %vm13474_vm5, 1.0, %v2159_v35  ;;  %v2247_v21 = vadd.f32 %v2216_v41, %v9015_v24  ;;  %v9311_v24 = vld [vmem:[%s13202_s2] ss:$0 sm:$0xff]  ;;  %vm13487_vm5 = vmmov %vm13484_vm1 }
 0x67d   : > { %6424 = vlog2.f32 %v2201_v36  ;;  %v2313_v36 = vsub.f32 %v8989_v4, %v9174_v48 }
 0x67e   : > { %v2263_v31 = vsub.f32 %v2247_v21, %v9151_v58 }
 0x67f   : > { %v2162_v62 = vpop.xlane.xlu1 %2161  ;;  %v2165_v0 = vpop.xlane.xlu0 %2164 }
 0x680   : > { %v2202_v19 = vsel %vm13476_vm7, 1.0, %v2162_v62  ;;  %v2203_v23 = vsel %vm13477_vm0, 1.0, %v2165_v0  ;;  %v2343_v27 = vsel %vm13478_vm12, %v2263_v31, %v2327_v5  ;;  %v2314_v62 = vsub.f32 %v8993_v50, %v9184_v3  ;;  %vm13490_vm0 = vmmov %vm13484_vm1 }
 0x681   : > { %6426 = vlog2.f32 %v2202_v19  ;;  %v2359_v58 = vadd.f32 %v9311_v24, %v2343_v27  ;;  %v2316_v0 = vsub.f32 %v8997_v22, %v9194_v28  ;;  %v2328_v27 = vsel %vm13483_vm13, 0.0, %v2312_v11  ;;  %vm13491_vm12 = vmmov %vm13490_vm0 }
 0x682   : > { %6428 = vlog2.f32 %v2203_v23  ;;  %v2329_v50 = vsel %vm13484_vm1, 0.0, %v2313_v36  ;;  %v2315_v22 = vsub.f32 %v8991_v17, %v9197_v32  ;;  %v2317_v17 = vsub.f32 %v8995_v18, %v9213_v43  ;;  %vm13496_vm13 = vmmov %vm13485_vm11 }
 0x683   : > { %v6423_v49 = vpop.eup %6422  ;;  %v2168_v57 = vpop.xlane.xlu1 %2167  ;;  %v9316_v41 = vadd.f32 %v2375_v8, %v2359_v58  ;;  %vm13489_vm7 = vcmp.eq.f32.partialorder %v9084_v60, -inf  ;;  %vm13497_vm1 = vmmov %vm13490_vm0 }
 0x684   : > { %v2171_v47 = vpop.xlane.xlu0 %2170  ;;  %v2218_v6 = vmul.f32 0.6931472, %v6423_v49  ;;  %v2204_v39 = vsel %vm13479_vm15, 1.0, %v2168_v57  ;;  %v2376_v49 = vld [vmem:[%s7274_s9 + $0x58] sm:$0xff]  ;;  %vm13492_vm15 = vmmov %vm13485_vm11 }
 0x685   : > { %v2205_v35 = vsel %vm13480_vm4, 1.0, %v2171_v47  ;;  %6430 = vlog2.f32 %v2204_v39  ;;  %2407 = vmax.xlane.f32.xlu0 %v9316_v41  ;;  %v2330_v47 = vsel %vm13486_vm3, 0.0, %v2314_v62  ;;  %v2331_v62 = vsel %vm13490_vm0, 0.0, %v2315_v22  ;;  %vm13493_vm4 = vmmov %vm13490_vm0 }
 0x686   : > { %v2248_v21 = vadd.f32 %v2218_v6, %v9032_v44  ;;  %6432 = vlog2.f32 %v2205_v35  ;;  %v2332_v6 = vsel %vm13487_vm5, 0.0, %v2316_v0  ;;  %vm13498_vm3 = vmmov %vm13485_vm11 }
 0x687   : > { %v6425_v31 = vpop.eup %6424  ;;  %v2174_v5 = vpop.xlane.xlu1 %2173  ;;  %vm13501_vm5 = vmmov %vm13498_vm3 }
 0x688   : > { %v2177_v19 = vpop.xlane.xlu0 %2176  ;;  %v2264_v37 = vsub.f32 %v2248_v21, %v9164_v29  ;;  %v2220_v23 = vmul.f32 0.6931472, %v6425_v31  ;;  %v2206_v4 = vsel %vm13481_vm9, 1.0, %v2174_v5  ;;  %v2318_v29 = vsub.f32 %v9001_v16, %v9206_v15 }
 0x689   : > { %v2207_v44 = vsel %vm13482_vm10, 1.0, %v2177_v19  ;;  %6434 = vlog2.f32 %v2206_v4  ;;  %v2333_v4 = vsel %vm13493_vm4, 0.0, %v2317_v17  ;;  %vm13494_vm9 = vcmp.eq.f32.partialorder %v9090_v9, -inf }
 0x68a   : > { %v2344_v8 = vsel %vm13485_vm11, %v2264_v37, %v2328_v27  ;;  %v2249_v58 = vadd.f32 %v2220_v23, %v9022_v25  ;;  %6436 = vlog2.f32 %v2207_v44  ;;  %v9365_v5 = vsel %vm13491_vm12, 0.0, %v2318_v29  ;;  %v2377_v37 = vld [vmem:[%s7274_s9 + $0x98] sm:$0xff] }
 0x68b   : > { %v6427_v57 = vpop.eup %6426  ;;  %v2180_v39 = vpop.xlane.xlu1 %2179  ;;  %v2360_v35 = vadd.f32 %v9311_v24, %v2344_v8  ;;  %v2320_v44 = vsub.f32 %v9005_v26, %v9222_v7  ;;  %vm13495_vm10 = vcmp.eq.f32.partialorder %v9099_v30, -inf }
 0x68c   : > { %v2183_v16 = vpop.xlane.xlu0 %2182  ;;  %v6429_v11 = vpop.eup %6428  ;;  %v2265_v25 = vsub.f32 %v2249_v58, %v9174_v48  ;;  %v2222_v36 = vmul.f32 0.6931472, %v6427_v57  ;;  %v2208_v21 = vsel %vm13488_vm6, 1.0, %v2180_v39  ;;  %v2319_v39 = vsub.f32 %v8999_v42, %v9229_v20  ;;  %vm13503_vm6 = vmmov %vm13490_vm0 }
 0x68d   : > { %v2209_v31 = vsel %vm13489_vm7, 1.0, %v2183_v16  ;;  %v2224_v0 = vmul.f32 0.6931472, %v6429_v11  ;;  %6438 = vlog2.f32 %v2208_v21  ;;  %v9361_v18 = vadd.f32 %v2376_v49, %v2360_v35  ;;  %v2378_v35 = vld [vmem:[%s7274_s9 + $0xd8] sm:$0xff] }
 0x68e   : > { %v2345_v48 = vsel %vm13492_vm15, %v2265_v25, %v2329_v50  ;;  %v2250_v19 = vadd.f32 %v2222_v36, %v9027_v45  ;;  %6440 = vlog2.f32 %v2209_v31  ;;  %v9394_v25 = vsel %vm13497_vm1, 0.0, %v2320_v44  ;;  %vm13506_vm15 = vmmov %vm13490_vm0 }
 0x68f   : > { %v6431_v23 = vpop.eup %6430  ;;  %v2251_v27 = vadd.f32 %v2224_v0, %v9041_v53  ;;  %2409 = vmax.xlane.f32.xlu1 %v9361_v18  ;;  %v2186_v22 = vpop.xlane.xlu1 %2185  ;;  %v2361_v50 = vadd.f32 %v9311_v24, %v2345_v48 }
 0x690   : > { %v2189_v29 = vpop.xlane.xlu0 %2188  ;;  %v6433_v8 = vpop.eup %6432  ;;  %v2266_v45 = vsub.f32 %v2250_v19, %v9184_v3  ;;  %v2226_v58 = vmul.f32 0.6931472, %v6431_v23  ;;  %v2210_v49 = vsel %vm13494_vm9, 1.0, %v2186_v22  ;;  %v2379_v23 = vld [vmem:[%s7274_s9 + $0x118] sm:$0xff] }
 0x691   : > { %v2211_v57 = vsel %vm13495_vm10, 1.0, %v2189_v29  ;;  %v2267_v26 = vsub.f32 %v2251_v27, %v9197_v32  ;;  %v2228_v53 = vmul.f32 0.6931472, %v6433_v8  ;;  %6442 = vlog2.f32 %v2210_v49  ;;  %v2380_v22 = vld [vmem:[%s7274_s9 + $0x158] sm:$0xff]  ;;  %vm13510_vm10 = vmmov %vm13490_vm0 }
 0x692   : > { %v9384_v17 = vadd.f32 %v2377_v37, %v2361_v50  ;;  %v2346_v16 = vsel %vm13496_vm13, %v2266_v45, %v2330_v47  ;;  %v2252_v3 = vadd.f32 %v2226_v58, %v9047_v55  ;;  %6444 = vlog2.f32 %v2211_v57  ;;  %vm13512_vm13 = vmmov %vm13490_vm0 }
 0x693   : > { %v6435_v11 = vpop.eup %6434  ;;  %v2347_v32 = vsel %vm13485_vm11, %v2267_v26, %v2331_v62  ;;  %v2253_v36 = vadd.f32 %v2228_v53, %v9055_v10  ;;  %v2192_v21 = vpop.xlane.xlu1 %2191  ;;  %v2362_v55 = vadd.f32 %v9311_v24, %v2346_v16  ;;  %v2321_v16 = vsub.f32 %v9003_v2, %v9241_v12 }
 0x694   : > { %2411 = vmax.xlane.f32.xlu0 %v9384_v17  ;;  %v2195_v42 = vpop.xlane.xlu0 %2194  ;;  %v6437_v47 = vpop.eup %6436  ;;  %v2268_v31 = vsub.f32 %v2252_v3, %v9194_v28  ;;  %v2230_v0 = vmul.f32 0.6931472, %v6435_v11  ;;  %v2212_v48 = vsel %vm2020_vm8, 1.0, %v2192_v21  ;;  %v2363_v28 = vadd.f32 %v9311_v24, %v2347_v32  ;;  %vm13499_vm8 = vmmov %vm13490_vm0 }
 0x695   : > { %v2213_v19 = vsel %vm2021_vm14, 1.0, %v2195_v42  ;;  %v2269_v62 = vsub.f32 %v2253_v36, %v9213_v43  ;;  %v2232_v10 = vmul.f32 0.6931472, %v6437_v47  ;;  %6446 = vlog2.f32 %v2212_v48  ;;  %vm13500_vm14 = vmmov %vm13498_vm3 }
 0x696   : > { %v9407_v37 = vadd.f32 %v2378_v35, %v2362_v55  ;;  %v2348_v44 = vsel %vm13498_vm3, %v2268_v31, %v2332_v6  ;;  %v2254_v27 = vadd.f32 %v2230_v0, %v9061_v1  ;;  %6448 = vlog2.f32 %v2213_v19 }
 0x697   : > { %v6439_v29 = vpop.eup %6438  ;;  %v2335_v50 = vsel %vm13499_vm8, 0.0, %v2319_v39  ;;  %v2349_v43 = vsel %vm13500_vm14, %v2269_v62, %v2333_v4  ;;  %v2255_v8 = vadd.f32 %v2232_v10, %v9070_v61  ;;  %v2198_v45 = vpop.xlane.xlu1 %2197  ;;  %v2364_v6 = vadd.f32 %v9311_v24, %v2348_v44  ;;  %v2381_v39 = vld [vmem:[%s7274_s9 + $0x198] sm:$0xff] }
 0x698   : > { %2413 = vmax.xlane.f32.xlu1 %v9407_v37  ;;  %v6441_v1 = vpop.eup %6440  ;;  %v2270_v58 = vsub.f32 %v2254_v27, %v9206_v15  ;;  %v2234_v49 = vmul.f32 0.6931472, %v6439_v29  ;;  %v2214_v57 = vsel %vm2022_vm2, 1.0, %v2198_v45  ;;  %v9425_v26 = vadd.f32 %v2379_v23, %v2363_v28  ;;  %vm13502_vm2 = vmmov %vm13498_vm3 }
 0x699   : > { %v2271_v53 = vsub.f32 %v2255_v8, %v9229_v20  ;;  %v2236_v4 = vmul.f32 0.6931472, %v6441_v1  ;;  %6450 = vlog2.f32 %v2214_v57  ;;  %v9428_v61 = vadd.f32 %v2380_v22, %v2364_v6  ;;  %v2382_v20 = vld [vmem:[%s7274_s9 + $0x1d8] sm:$0xff]  ;;  %vm13504_vm7 = vmmov %vm13502_vm2  ;;  %v13507_v1 = vld [vmem:[#allocation6_spill] sm:$0xff] }
 0x69a   : > { %v2350_v15 = vsel %vm13501_vm5, %v2270_v58, %v9365_v5  ;;  %v2256_v3 = vadd.f32 %v2234_v49, %v9076_v14  ;;  %2415 = vmax.xlane.f32.xlu0 %v9425_v26  ;;  %v2365_v35 = vadd.f32 %v9311_v24, %v2349_v43  ;;  %v2322_v32 = vsub.f32 %v9009_v51, %v9236_v56  ;;  %v2383_v14 = vld [vmem:[%s7274_s9 + $0x218] sm:$0xff]  ;;  %vm13505_vm12 = vmmov %vm13502_vm2 }
 0x69b   : > { %v6443_v11 = vpop.eup %6442  ;;  %v2351_v36 = vsel %vm13502_vm2, %v2271_v53, %v2335_v50  ;;  %v2257_v2 = vadd.f32 %v2236_v4, %v9084_v60  ;;  %v2366_v5 = vadd.f32 %v9311_v24, %v2350_v15  ;;  %v2323_v51 = vsub.f32 %v9007_v40, %v9254_v13  ;;  %v2384_v40 = vld [vmem:[%s7274_s9 + $0x258] sm:$0xff]  ;;  %vm13508_vm4 = vmmov %vm13502_vm2 }
 0x69c   : > { %2417 = vmax.xlane.f32.xlu1 %v9428_v61  ;;  %v6445_v21 = vpop.eup %6444  ;;  %v2272_v42 = vsub.f32 %v2256_v3, %v9222_v7  ;;  %v2238_v55 = vmul.f32 0.6931472, %v6443_v11  ;;  %v9449_v47 = vadd.f32 %v2381_v39, %v2365_v35  ;;  %v2367_v31 = vadd.f32 %v9311_v24, %v2351_v36  ;;  %v2386_v57 = vld [vmem:[%s7274_s9 + $0x2d8] sm:$0xff]  ;;  %vm13509_vm9 = vmmov %vm13502_vm2 }
 0x69d   : > { %v2273_v60 = vsub.f32 %v2257_v2, %v9241_v12  ;;  %v2240_v0 = vmul.f32 0.6931472, %v6445_v21  ;;  %v9455_v48 = vadd.f32 %v2382_v20, %v2366_v5  ;;  %v2337_v19 = vsel %vm13503_vm6, 0.0, %v2321_v16  ;;  %v2387_v16 = vld [vmem:[%s7274_s9 + $0x318] sm:$0xff]  ;;  %v13511_v20 = vld [vmem:[#allocation7_spill] sm:$0xff]  ;;  %vm13513_vm1 = vmmov %vm13502_vm2 }
 0x69e   : > { %v2352_v7 = vsel %vm13504_vm7, %v2272_v42, %v9394_v25  ;;  %v2258_v62 = vadd.f32 %v2238_v55, %v9090_v9  ;;  %2419 = vmax.xlane.f32.xlu0 %v9449_v47  ;;  %v9464_v10 = vadd.f32 %v2383_v14, %v2367_v31  ;;  %v2338_v12 = vsel %vm13490_vm0, 0.0, %v2322_v32  ;;  %v2385_v9 = vld [vmem:[%s7274_s9 + $0x298] sm:$0xff]  ;;  %vm13514_vm11 = vmmov %vm13513_vm1 }
 0x69f   : > { %v6447_v23 = vpop.eup %6446  ;;  %v2353_v44 = vsel %vm13505_vm12, %v2273_v60, %v2337_v19  ;;  %v2259_v27 = vadd.f32 %v2240_v0, %v9099_v30  ;;  %v2368_v25 = vadd.f32 %v9311_v24, %v2352_v7  ;;  %v2324_v22 = vsub.f32 %v9013_v52, %v9248_v38  ;;  %v2388_v14 = vld [vmem:[%s7274_s9 + $0x358] sm:$0xff]  ;;  %vm13515_vm3 = vmmov %vm13490_vm0 }
 0x6a0   : > { %2421 = vmax.xlane.f32.xlu1 %v9455_v48  ;;  %v6449_v28 = vpop.eup %6448  ;;  %v2274_v29 = vsub.f32 %v2258_v62, %v9236_v56  ;;  %v2242_v50 = vmul.f32 0.6931472, %v6447_v23  ;;  %v2369_v43 = vadd.f32 %v9311_v24, %v2353_v44  ;;  %v2339_v8 = vsel %vm13506_vm15, 0.0, %v2323_v51  ;;  %v2389_v42 = vld [vmem:[%s7274_s9 + $0x398] sm:$0xff]  ;;  %vm13516_vm8 = vmmov %vm13513_vm1 }
 0x6a1   : > { %v2275_v30 = vsub.f32 %v2259_v27, %v9254_v13  ;;  %v2244_v45 = vmul.f32 0.6931472, %v6449_v28  ;;  %v9482_v6 = vadd.f32 %v2384_v40, %v2368_v25  ;;  %v2325_v58 = vsub.f32 %v13507_v1, %v9266_v63  ;;  %v2390_v19 = vld [vmem:[%s7274_s9 + $0x3d8] sm:$0xff] }
 0x6a2   : > { %v2354_v52 = vsel %vm13508_vm4, %v2274_v29, %v2338_v12  ;;  %v2260_v56 = vadd.f32 %v2242_v50, %v9105_v46  ;;  %2423 = vmax.xlane.f32.xlu0 %v9464_v10  ;;  %v9490_v49 = vadd.f32 %v2385_v9, %v2369_v43  ;;  %v2340_v35 = vsel %vm13510_vm10, 0.0, %v2324_v22 }
 0x6a3   : > { %v6451_v53 = vpop.eup %6450  ;;  %v2355_v13 = vsel %vm13509_vm9, %v2275_v30, %v2339_v8  ;;  %v2261_v4 = vadd.f32 %v2244_v45, %v9115_v54  ;;  %v2370_v39 = vadd.f32 %v9311_v24, %v2354_v52  ;;  %v2326_v11 = vsub.f32 %v13511_v20, %v9260_v34 }
 0x6a4   : > { %2425 = vmax.xlane.f32.xlu1 %v9482_v6  ;;  %v2276_v15 = vsub.f32 %v2260_v56, %v9248_v38  ;;  %v2246_v46 = vmul.f32 0.6931472, %v6451_v53  ;;  %v2371_v3 = vadd.f32 %v9311_v24, %v2355_v13  ;;  %v2341_v36 = vsel %vm13512_vm13, 0.0, %v2325_v58 }
 0x6a5   : > { %v2277_v54 = vsub.f32 %v2261_v4, %v9266_v63  ;;  %v9506_v32 = vadd.f32 %v2386_v57, %v2370_v39  ;;  %vm13517_vm14 = vcmask 1048560  }
 0x6a6   : > { %v2356_v38 = vsel %vm13513_vm1, %v2276_v15, %v2340_v35  ;;  %v2262_v2 = vadd.f32 %v2246_v46, %v9121_v59  ;;  %2427 = vmax.xlane.f32.xlu0 %v9490_v49  ;;  %v9514_v5 = vadd.f32 %v2387_v16, %v2371_v3  ;;  %v2342_v59 = vsel %vm13515_vm3, 0.0, %v2326_v11  ;;  %vm13518_vm5 = vmmov %vm13517_vm14 }
 0x6a7   : > { %v2357_v21 = vsel %vm13514_vm11, %v2277_v54, %v2341_v36  ;;  %v2372_v63 = vadd.f32 %v9311_v24, %v2356_v38  ;;  %v2654_v62 = vsel %vm13518_vm5, %v9384_v17, -inf  ;;  %vm13519_vm2 = vmmov %vm13518_vm5 }
 0x6a8   : > { %2429 = vmax.xlane.f32.xlu1 %v9506_v32  ;;  %v2278_v55 = vsub.f32 %v2262_v2, %v9260_v34  ;;  %v2373_v31 = vadd.f32 %v9311_v24, %v2357_v21  ;;  %v2657_v40 = vsel %vm13519_vm2, %v9407_v37, -inf  ;;  %vm13520_vm6 = vmmov %vm13519_vm2 }
 0x6a9   : > { %v9526_v51 = vadd.f32 %v2388_v14, %v2372_v63  ;;  %v2651_v23 = vsel %vm13520_vm6, %v9361_v18, -inf  ;;  %vm13521_vm7 = vmmov %vm13519_vm2 }
 0x6aa   : > { %v2358_v60 = vsel %vm13516_vm8, %v2278_v55, %v2342_v59  ;;  %2431 = vmax.xlane.f32.xlu0 %v9514_v5  ;;  %v9531_v0 = vadd.f32 %v2389_v42, %v2373_v31  ;;  %v2660_v12 = vsel %vm13521_vm7, %v9425_v26, -inf  ;;  %vm13522_vm0 = vmmov %vm13519_vm2 }
 0x6ab   : > { %v2374_v7 = vadd.f32 %v9311_v24, %v2358_v60  ;;  %v2648_v24 = vsel %vm13517_vm14, %v9316_v41, -inf  ;;  %v2663_v44 = vsel %vm13522_vm0, %v9428_v61, -inf  ;;  %vm13523_vm12 = vmmov %vm13522_vm0 }
 0x6ac   : > { %2433 = vmax.xlane.f32.xlu1 %v9526_v51  ;;  %v2666_v27 = vsel %vm13523_vm12, %v9449_v47, -inf  ;;  %vm13524_vm15 = vmmov %vm13522_vm0 }
 0x6ad   : > { %v9536_v34 = vadd.f32 %v2390_v19, %v2374_v7  ;;  %v2669_v25 = vsel %vm13524_vm15, %v9455_v48, -inf  ;;  %vm13525_vm4 = vmmov %vm13522_vm0 }
 0x6ae   : > { %2435 = vmax.xlane.f32.xlu0 %v9531_v0  ;;  %v2672_v9 = vsel %vm13525_vm4, %v9464_v10, -inf  ;;  %vm13526_vm9 = vmmov %vm13522_vm0 }
 0x6af   : > { %v2675_v28 = vsel %vm13526_vm9, %v9482_v6, -inf  ;;  %vm13527_vm10 = vmmov %vm13522_vm0 }
 0x6b0   : > { %2437 = vmax.xlane.f32.xlu1 %v9536_v34  ;;  %v2678_v22 = vsel %vm13527_vm10, %v9490_v49, -inf  ;;  %vm13528_vm13 = vmmov %vm13522_vm0 }
 0x6b1   : > { %v2681_v50 = vsel %vm13528_vm13, %v9506_v32, -inf  ;;  %vm13529_vm11 = vmmov %vm13522_vm0 }
 0x6b2   : > { %v2684_v30 = vsel %vm13529_vm11, %v9514_v5, -inf  ;;  %vm13530_vm3 = vmmov %vm13522_vm0 }
 0x6b3   : > { %v2687_v45 = vsel %vm13530_vm3, %v9526_v51, -inf  ;;  %vm13531_vm8 = vmmov %vm13522_vm0 }
 0x6b4   : > { %v2690_v58 = vsel %vm13531_vm8, %v9531_v0, -inf  ;;  %vm13532_vm14 = vmmov %vm13522_vm0 }
 0x6b5   : > { %v2693_v52 = vsel %vm13532_vm14, %v9536_v34, -inf }
 0x6c1   : > { %2970 = vrot.lane.b32.xlu1 %v9361_v18, %s7180_s11 }
 0x6c4   : > { %2968 = vrot.lane.b32.xlu0 %v9316_v41, %s7180_s11 }
 0x6c5   : > { %2972 = vrot.lane.b32.xlu1 %v9384_v17, %s7180_s11 }
 0x6c8   : > { %2976 = vrot.lane.b32.xlu0 %v9425_v26, %s7180_s11 }
 0x6c9   : > { %2974 = vrot.lane.b32.xlu1 %v9407_v37, %s7180_s11 }
 0x6cc   : > { %2980 = vrot.lane.b32.xlu0 %v9449_v47, %s7180_s11 }
 0x6cd   : > { %2978 = vrot.lane.b32.xlu1 %v9428_v61, %s7180_s11 }
 0x6d0   : > { %2984 = vrot.lane.b32.xlu0 %v9464_v10, %s7180_s11 }
 0x6d1   : > { %2982 = vrot.lane.b32.xlu1 %v9455_v48, %s7180_s11 }
 0x6d4   : > { %2988 = vrot.lane.b32.xlu0 %v9490_v49, %s7180_s11 }
 0x6d5   : > { %2986 = vrot.lane.b32.xlu1 %v9482_v6, %s7180_s11 }
 0x6d8   : > { %2992 = vrot.lane.b32.xlu0 %v9514_v5, %s7180_s11 }
 0x6d9   : > { %2990 = vrot.lane.b32.xlu1 %v9506_v32, %s7180_s11 }
 0x6dc   : > { %2996 = vrot.lane.b32.xlu0 %v9531_v0, %s7180_s11 }
 0x6dd   : > { %2994 = vrot.lane.b32.xlu1 %v9526_v51, %s7180_s11 }
 0x6e1   : > { %2998 = vrot.lane.b32.xlu1 %v9536_v34, %s7180_s11 }
 0x6fb   : > { %2649 = vmax.xlane.f32.xlu0 %v2648_v24 }
 0x6ff   : > { %2655 = vmax.xlane.f32.xlu0 %v2654_v62 }
 0x703   : > { %2658 = vmax.xlane.f32.xlu0 %v2657_v40 }
 0x705   : > { %2652 = vmax.xlane.f32.xlu1 %v2651_v23 }
 0x707   : > { %2661 = vmax.xlane.f32.xlu0 %v2660_v12 }
 0x709   : > { %2664 = vmax.xlane.f32.xlu1 %v2663_v44 }
 0x70b   : > { %2667 = vmax.xlane.f32.xlu0 %v2666_v27 }
 0x70d   : > { %2670 = vmax.xlane.f32.xlu1 %v2669_v25 }
 0x70f   : > { %2673 = vmax.xlane.f32.xlu0 %v2672_v9 }
 0x711   : > { %2676 = vmax.xlane.f32.xlu1 %v2675_v28 }
 0x712   : > { %v9594_v29 = vpop.xlane.xlu0 %2407 }
 0x713   : > { %2679 = vmax.xlane.f32.xlu0 %v2678_v22  ;;  %vm2439_vm1 = vcmp.eq.f32.partialorder %v9594_v29, -inf }
 0x714   : > { %v2455_v43 = vsel %vm2439_vm1, 0.0, %v9594_v29 }
 0x715   : > { %2682 = vmax.xlane.f32.xlu1 %v2681_v50  ;;  %v2471_v8 = vsub.f32 %v9316_v41, %v2455_v43 }
 0x717   : > { %2685 = vmax.xlane.f32.xlu0 %v2684_v30  ;;  %v2487_v1 = vmul.f32 1.442695, %v2471_v8 }
 0x719   : > { %2688 = vmax.xlane.f32.xlu1 %v2687_v45  ;;  %6452 = vpow2.f32 %v2487_v1 }
 0x71b   : > { %2691 = vmax.xlane.f32.xlu0 %v2690_v58 }
 0x71c   : > { %v9611_v56 = vpop.xlane.xlu1 %2409 }
 0x71d   : > { %2694 = vmax.xlane.f32.xlu1 %v2693_v52  ;;  %vm2440_vm5 = vcmp.eq.f32.partialorder %v9611_v56, -inf }
 0x71e   : > { %v2456_v57 = vsel %vm2440_vm5, 0.0, %v9611_v56 }
 0x71f   : > { %v2472_v53 = vsub.f32 %v9361_v18, %v2456_v57 }
 0x721   : > { %v9618_v13 = vpop.xlane.xlu0 %2411  ;;  %v2489_v4 = vmul.f32 1.442695, %v2472_v53 }
 0x722   : > { %vm2441_vm2 = vcmp.eq.f32.partialorder %v9618_v13, -inf }
 0x723   : > { %v2457_v39 = vsel %vm2441_vm2, 0.0, %v9618_v13  ;;  %6454 = vpow2.f32 %v2489_v4  ;;  %v6453_v15 = vpop.eup %6452 }
 0x724   : > { %v2473_v16 = vsub.f32 %v9384_v17, %v2457_v39  ;;  %2519 = vadd.xlane.f32.xlu0 %v6453_v15 }
 0x725   : > { %v9625_v46 = vpop.xlane.xlu1 %2413 }
 0x726   : > { %v2491_v3 = vmul.f32 1.442695, %v2473_v16  ;;  %vm2442_vm6 = vcmp.eq.f32.partialorder %v9625_v46, -inf }
 0x727   : > { %v2458_v35 = vsel %vm2442_vm6, 0.0, %v9625_v46  ;;  %v9632_v11 = vpop.xlane.xlu0 %2415 }
 0x728   : > { %6456 = vpow2.f32 %v2491_v3  ;;  %v2474_v20 = vsub.f32 %v9407_v37, %v2458_v35  ;;  %vm2443_vm7 = vcmp.eq.f32.partialorder %v9632_v11, -inf }
 0x729   : > { %v9635_v54 = vpop.xlane.xlu1 %2417  ;;  %v2459_v38 = vsel %vm2443_vm7, 0.0, %v9632_v11 }
 0x72a   : > { %v2493_v36 = vmul.f32 1.442695, %v2474_v20  ;;  %vm2444_vm0 = vcmp.eq.f32.partialorder %v9635_v54, -inf  ;;  %v2475_v2 = vsub.f32 %v9425_v26, %v2459_v38 }
 0x72b   : > { %v2460_v14 = vsel %vm2444_vm0, 0.0, %v9635_v54  ;;  %v9646_v63 = vpop.xlane.xlu0 %2419 }
 0x72c   : > { %6458 = vpow2.f32 %v2493_v36  ;;  %v2476_v21 = vsub.f32 %v9428_v61, %v2460_v14  ;;  %v2495_v42 = vmul.f32 1.442695, %v2475_v2  ;;  %vm2445_vm12 = vcmp.eq.f32.partialorder %v9646_v63, -inf }
 0x72d   : > { %v9649_v55 = vpop.xlane.xlu1 %2421  ;;  %v6455_v31 = vpop.eup %6454  ;;  %v2461_v60 = vsel %vm2445_vm12, 0.0, %v9646_v63 }
 0x72e   : > { %v2497_v59 = vmul.f32 1.442695, %v2476_v21  ;;  %vm2446_vm15 = vcmp.eq.f32.partialorder %v9649_v55, -inf  ;;  %6460 = vpow2.f32 %v2495_v42  ;;  %v2477_v19 = vsub.f32 %v9449_v47, %v2461_v60  ;;  %2521 = vadd.xlane.f32.xlu1 %v6455_v31 }
 0x72f   : > { %v2462_v7 = vsel %vm2446_vm15, 0.0, %v9649_v55  ;;  %v9660_v62 = vpop.xlane.xlu0 %2423 }
 0x730   : > { %6462 = vpow2.f32 %v2497_v59  ;;  %v2478_v24 = vsub.f32 %v9455_v48, %v2462_v7  ;;  %v2499_v40 = vmul.f32 1.442695, %v2477_v19  ;;  %vm2447_vm4 = vcmp.eq.f32.partialorder %v9660_v62, -inf }
 0x731   : > { %v9663_v23 = vpop.xlane.xlu1 %2425  ;;  %v2463_v27 = vsel %vm2447_vm4, 0.0, %v9660_v62 }
 0x732   : > { %v6457_v12 = vpop.eup %6456  ;;  %v2501_v44 = vmul.f32 1.442695, %v2478_v24  ;;  %vm2448_vm9 = vcmp.eq.f32.partialorder %v9663_v23, -inf  ;;  %6464 = vpow2.f32 %v2499_v40  ;;  %v2479_v25 = vsub.f32 %v9464_v10, %v2463_v27 }
 0x733   : > { %v2464_v9 = vsel %vm2448_vm9, 0.0, %v9663_v23  ;;  %2523 = vadd.xlane.f32.xlu0 %v6457_v12  ;;  %v9674_v22 = vpop.xlane.xlu0 %2427 }
 0x734   : > { %6466 = vpow2.f32 %v2501_v44  ;;  %v2480_v28 = vsub.f32 %v9482_v6, %v2464_v9  ;;  %v2503_v50 = vmul.f32 1.442695, %v2479_v25  ;;  %vm2449_vm10 = vcmp.eq.f32.partialorder %v9674_v22, -inf }
 0x735   : > { %v9677_v43 = vpop.xlane.xlu1 %2429  ;;  %v2465_v45 = vsel %vm2449_vm10, 0.0, %v9674_v22 }
 0x736   : > { %v6459_v8 = vpop.eup %6458  ;;  %v2505_v30 = vmul.f32 1.442695, %v2480_v28  ;;  %vm2450_vm13 = vcmp.eq.f32.partialorder %v9677_v43, -inf  ;;  %6468 = vpow2.f32 %v2503_v50  ;;  %v2481_v1 = vsub.f32 %v9490_v49, %v2465_v45 }
 0x737   : > { %v2466_v58 = vsel %vm2450_vm13, 0.0, %v9677_v43  ;;  %2525 = vadd.xlane.f32.xlu0 %v6459_v8  ;;  %v9688_v57 = vpop.xlane.xlu0 %2431 }
 0x738   : > { %6470 = vpow2.f32 %v2505_v30  ;;  %v2482_v52 = vsub.f32 %v9506_v32, %v2466_v58  ;;  %v6461_v53 = vpop.eup %6460  ;;  %v2507_v4 = vmul.f32 1.442695, %v2481_v1  ;;  %vm13260_vm11 = vcmp.eq.f32.partialorder %v9688_v57, -inf }
 0x739   : > { %v9691_v39 = vpop.xlane.xlu1 %2433  ;;  %v2467_v3 = vsel %vm13260_vm11, 0.0, %v9688_v57 }
 0x73a   : > { %v6463_v16 = vpop.eup %6462  ;;  %v2509_v15 = vmul.f32 1.442695, %v2482_v52  ;;  %vm2452_vm3 = vcmp.eq.f32.partialorder %v9691_v39, -inf  ;;  %6472 = vpow2.f32 %v2507_v4  ;;  %v2483_v35 = vsub.f32 %v9514_v5, %v2467_v3 }
 0x73b   : > { %v2468_v20 = vsel %vm2452_vm3, 0.0, %v9691_v39  ;;  %2529 = vadd.xlane.f32.xlu1 %v6463_v16  ;;  %2527 = vadd.xlane.f32.xlu0 %v6461_v53  ;;  %v9702_v38 = vpop.xlane.xlu0 %2435 }
 0x73c   : > { %6474 = vpow2.f32 %v2509_v15  ;;  %v2484_v36 = vsub.f32 %v9526_v51, %v2468_v20  ;;  %v6465_v2 = vpop.eup %6464  ;;  %v2511_v14 = vmul.f32 1.442695, %v2483_v35  ;;  %vm13257_vm8 = vcmp.eq.f32.partialorder %v9702_v38, -inf }
 0x73d   : > { %v9705_v21 = vpop.xlane.xlu1 %2437  ;;  %v2469_v59 = vsel %vm13257_vm8, 0.0, %v9702_v38 }
 0x73e   : > { %v6467_v42 = vpop.eup %6466  ;;  %v2513_v31 = vmul.f32 1.442695, %v2484_v36  ;;  %vm13258_vm14 = vcmp.eq.f32.partialorder %v9705_v21, -inf  ;;  %6476 = vpow2.f32 %v2511_v14  ;;  %v2485_v60 = vsub.f32 %v9531_v0, %v2469_v59 }
 0x73f   : > { %v2470_v19 = vsel %vm13258_vm14, 0.0, %v9705_v21  ;;  %2533 = vadd.xlane.f32.xlu1 %v6467_v42  ;;  %2531 = vadd.xlane.f32.xlu0 %v6465_v2  ;;  %v9718_v45 = vpop.permute.xlu0 %2968 }
 0x740   : > { %6478 = vpow2.f32 %v2513_v31  ;;  %v2486_v7 = vsub.f32 %v9536_v34, %v2470_v19  ;;  %v6469_v24 = vpop.eup %6468  ;;  %v2515_v40 = vmul.f32 1.442695, %v2485_v60 }
 0x741   : > { %v9716_v30 = vpop.permute.xlu1 %2970 }
 0x742   : > { %v6471_v12 = vpop.eup %6470  ;;  %v2517_v44 = vmul.f32 1.442695, %v2486_v7  ;;  %6480 = vpow2.f32 %v2515_v40 }
 0x743   : > { %2537 = vadd.xlane.f32.xlu1 %v6471_v12  ;;  %2535 = vadd.xlane.f32.xlu0 %v6469_v24  ;;  %v9722_v58 = vpop.permute.xlu0 %2976 }
 0x744   : > { %6482 = vpow2.f32 %v2517_v44  ;;  %v6473_v27 = vpop.eup %6472 }
 0x745   : > { %v9720_v1 = vpop.permute.xlu1 %2972 }
 0x746   : > { %v6475_v25 = vpop.eup %6474 }
 0x747   : > { %2541 = vadd.xlane.f32.xlu1 %v6475_v25  ;;  %2539 = vadd.xlane.f32.xlu0 %v6473_v27  ;;  %v9726_v53 = vpop.permute.xlu0 %2980 }
 0x748   : > { %v6477_v9 = vpop.eup %6476 }
 0x749   : > { %v9724_v52 = vpop.permute.xlu1 %2974 }
 0x74a   : > { %v6479_v28 = vpop.eup %6478 }
 0x74b   : > { %2545 = vadd.xlane.f32.xlu1 %v6479_v28  ;;  %2543 = vadd.xlane.f32.xlu0 %v6477_v9  ;;  %v9730_v16 = vpop.permute.xlu0 %2984 }
 0x74c   : > { %v6481_v50 = vpop.eup %6480 }
 0x74d   : > { %v9728_v4 = vpop.permute.xlu1 %2978 }
 0x74e   : > { %v6483_v8 = vpop.eup %6482 }
 0x74f   : > { %2549 = vadd.xlane.f32.xlu1 %v6483_v8  ;;  %2547 = vadd.xlane.f32.xlu0 %v6481_v50  ;;  %v9734_v3 = vpop.permute.xlu0 %2988 }
 0x751   : > { %v9732_v15 = vpop.permute.xlu1 %2982 }
 0x753   : > { %v9738_v20 = vpop.permute.xlu0 %2992 }
 0x755   : > { %v9736_v35 = vpop.permute.xlu1 %2986 }
 0x757   : > { %v9742_v2 = vpop.permute.xlu0 %2996 }
 0x758   : > { %13533 = vst [vmem:[#allocation6_spill] sm:$0xff] %v9742_v2 }
 0x759   : > { %v9740_v36 = vpop.permute.xlu1 %2990 }
 0x75d   : > { %v9744_v14 = vpop.permute.xlu1 %2994 }
 0x761   : > { %v9755_v19 = vpop.permute.xlu1 %2998 }
 0x762   : > { %13534 = vst [vmem:[#allocation7_spill] sm:$0xff] %v9755_v19 }
 0x788   : > { %v9746_v42 = vpop.xlane.xlu0 %2649 }
 0x789   : > { %vm13259_vm8 = vcmp.eq.f32.partialorder %v9746_v42, -inf }
 0x78a   : > { %v2712_v31 = vsel %vm13259_vm8, 0.0, %v9746_v42 }
 0x78b   : > { %v2728_v59 = vsub.f32 %v9316_v41, %v2712_v31 }
 0x78c   : > { %v9753_v60 = vpop.xlane.xlu0 %2655 }
 0x78d   : > { %v2744_v7 = vmul.f32 1.442695, %v2728_v59  ;;  %vm13261_vm14 = vcmp.eq.f32.partialorder %v9753_v60, -inf }
 0x78e   : > { %v2714_v40 = vsel %vm13261_vm14, 0.0, %v9753_v60 }
 0x78f   : > { %6484 = vpow2.f32 %v2744_v7  ;;  %v2730_v44 = vsub.f32 %v9384_v17, %v2714_v40 }
 0x790   : > { %v9758_v24 = vpop.xlane.xlu0 %2658 }
 0x791   : > { %vm13263_vm8 = vcmp.eq.f32.partialorder %v9758_v24, -inf }
 0x792   : > { %v9763_v12 = vpop.xlane.xlu1 %2652  ;;  %v2715_v9 = vsel %vm13263_vm8, 0.0, %v9758_v24 }
 0x793   : > { %vm13262_vm11 = vcmp.eq.f32.partialorder %v9763_v12, -inf  ;;  %v2731_v31 = vsub.f32 %v9407_v37, %v2715_v9 }
 0x794   : > { %v2713_v41 = vsel %vm13262_vm11, 0.0, %v9763_v12  ;;  %v9772_v25 = vpop.xlane.xlu0 %2661 }
 0x795   : > { %v2729_v27 = vsub.f32 %v9361_v18, %v2713_v41  ;;  %vm13264_vm14 = vcmp.eq.f32.partialorder %v9772_v25, -inf  ;;  %v2748_v18 = vmul.f32 1.442695, %v2730_v44  ;;  %v2750_v44 = vmul.f32 1.442695, %v2731_v31 }
 0x796   : > { %v9778_v28 = vpop.xlane.xlu1 %2664  ;;  %v2716_v8 = vsel %vm13264_vm14, 0.0, %v9772_v25 }
 0x797   : > { %v2746_v50 = vmul.f32 1.442695, %v2729_v27  ;;  %vm13266_vm11 = vcmp.eq.f32.partialorder %v9778_v28, -inf  ;;  %v2732_v17 = vsub.f32 %v9425_v26, %v2716_v8 }
 0x798   : > { %v9786_v59 = vpop.xlane.xlu0 %2667  ;;  %v2717_v41 = vsel %vm13266_vm11, 0.0, %v9778_v28 }
 0x799   : > { %6486 = vpow2.f32 %v2746_v50  ;;  %v6485_v7 = vpop.eup %6484  ;;  %v2752_v40 = vmul.f32 1.442695, %v2732_v17  ;;  %vm13265_vm8 = vcmp.eq.f32.partialorder %v9786_v59, -inf  ;;  %v2733_v9 = vsub.f32 %v9428_v61, %v2717_v41 }
 0x79a   : > { %v9792_v27 = vpop.xlane.xlu1 %2670  ;;  %v2718_v26 = vsel %vm13265_vm8, 0.0, %v9786_v59  ;;  %2792 = vrot.lane.b32.xlu0 %v6485_v7, %s7179_s10 }
 0x79b   : > { %vm13267_vm14 = vcmp.eq.f32.partialorder %v9792_v27, -inf  ;;  %6488 = vpow2.f32 %v2752_v40  ;;  %v2734_v37 = vsub.f32 %v9449_v47, %v2718_v26  ;;  %v2754_v47 = vmul.f32 1.442695, %v2733_v9 }
 0x79c   : > { %6490 = vpow2.f32 %v2748_v18  ;;  %v9801_v50 = vpop.xlane.xlu0 %2673  ;;  %v2719_v17 = vsel %vm13267_vm14, 0.0, %v9792_v27 }
 0x79d   : > { %v2756_v8 = vmul.f32 1.442695, %v2734_v37  ;;  %vm13268_vm8 = vcmp.eq.f32.partialorder %v9801_v50, -inf  ;;  %v2735_v18 = vsub.f32 %v9455_v48, %v2719_v17 }
 0x79e   : > { %v9807_v19 = vpop.xlane.xlu1 %2676  ;;  %v2720_v7 = vsel %vm13268_vm8, 0.0, %v9801_v50 }
 0x79f   : > { %vm13270_vm11 = vcmp.eq.f32.partialorder %v9807_v19, -inf  ;;  %6492 = vpow2.f32 %v2756_v8  ;;  %v2736_v61 = vsub.f32 %v9464_v10, %v2720_v7 }
 0x7a0   : > { %6494 = vpow2.f32 %v2750_v44  ;;  %v9815_v31 = vpop.xlane.xlu0 %2679  ;;  %v2721_v41 = vsel %vm13270_vm11, 0.0, %v9807_v19  ;;  %v2758_v44 = vmul.f32 1.442695, %v2735_v18 }
 0x7a1   : > { %v2760_v40 = vmul.f32 1.442695, %v2736_v61  ;;  %vm13269_vm14 = vcmp.eq.f32.partialorder %v9815_v31, -inf  ;;  %v2737_v9 = vsub.f32 %v9482_v6, %v2721_v41 }
 0x7a2   : > { %v9821_v26 = vpop.xlane.xlu1 %2682  ;;  %v2722_v10 = vsel %vm13269_vm14, 0.0, %v9815_v31 }
 0x7a3   : > { %v6487_v37 = vpop.eup %6486  ;;  %vm13272_vm8 = vcmp.eq.f32.partialorder %v9821_v26, -inf  ;;  %6496 = vpow2.f32 %v2760_v40  ;;  %v2738_v48 = vsub.f32 %v9490_v49, %v2722_v10 }
 0x7a4   : > { %2794 = vrot.lane.b32.xlu1 %v6487_v37, %s7179_s10  ;;  %6498 = vpow2.f32 %v2754_v47  ;;  %v9830_v8 = vpop.xlane.xlu0 %2685  ;;  %v2723_v61 = vsel %vm13272_vm8, 0.0, %v9821_v26  ;;  %v2762_v47 = vmul.f32 1.442695, %v2737_v9 }
 0x7a5   : > { %v6489_v17 = vpop.eup %6488  ;;  %v2764_v7 = vmul.f32 1.442695, %v2738_v48  ;;  %vm13271_vm14 = vcmp.eq.f32.partialorder %v9830_v8, -inf  ;;  %v2739_v18 = vsub.f32 %v9506_v32, %v2723_v61 }
 0x7a6   : > { %v9836_v2 = vpop.xlane.xlu1 %2688  ;;  %v6491_v40 = vpop.eup %6490  ;;  %v2724_v49 = vsel %vm13271_vm14, 0.0, %v9830_v8  ;;  %2800 = vrot.lane.b32.xlu0 %v6489_v17, %s7179_s10 }
 0x7a7   : > { %vm2709_vm11 = vcmp.eq.f32.partialorder %v9836_v2, -inf  ;;  %6500 = vpow2.f32 %v2764_v7  ;;  %v2740_v6 = vsub.f32 %v9514_v5, %v2724_v49  ;;  %v2766_v9 = vmul.f32 1.442695, %v2739_v18 }
 0x7a8   : > { %2796 = vrot.lane.b32.xlu1 %v6491_v40, %s7179_s10  ;;  %6502 = vpow2.f32 %v2758_v44  ;;  %v2725_v41 = vsel %vm2709_vm11, 0.0, %v9836_v2  ;;  %v9849_v37 = vpop.xlane.xlu0 %2691 }
 0x7a9   : > { %v6493_v10 = vpop.eup %6492  ;;  %v2768_v48 = vmul.f32 1.442695, %v2740_v6  ;;  %vm2710_vm14 = vcmp.eq.f32.partialorder %v9849_v37, -inf  ;;  %v2741_v32 = vsub.f32 %v9526_v51, %v2725_v41 }
 0x7aa   : > { %v9852_v17 = vpop.xlane.xlu1 %2694  ;;  %v6495_v7 = vpop.eup %6494  ;;  %v2726_v5 = vsel %vm2710_vm14, 0.0, %v9849_v37  ;;  %2804 = vrot.lane.b32.xlu0 %v6493_v10, %s7179_s10 }
 0x7ab   : > { %vm2711_vm8 = vcmp.eq.f32.partialorder %v9852_v17, -inf  ;;  %6504 = vpow2.f32 %v2768_v48  ;;  %v2742_v44 = vsub.f32 %v9531_v0, %v2726_v5  ;;  %v2770_v10 = vmul.f32 1.442695, %v2741_v32 }
 0x7ac   : > { %2798 = vrot.lane.b32.xlu1 %v6495_v7, %s7179_s10  ;;  %6506 = vpow2.f32 %v2762_v47  ;;  %v2727_v49 = vsel %vm2711_vm8, 0.0, %v9852_v17 }
 0x7ad   : > { %v6497_v61 = vpop.eup %6496  ;;  %v2772_v40 = vmul.f32 1.442695, %v2742_v44  ;;  %v2743_v51 = vsub.f32 %v9536_v34, %v2727_v49 }
 0x7ae   : > { %v6499_v6 = vpop.eup %6498  ;;  %2808 = vrot.lane.b32.xlu0 %v6497_v61, %s7179_s10 }
 0x7af   : > { %6508 = vpow2.f32 %v2772_v40  ;;  %v2774_v48 = vmul.f32 1.442695, %v2743_v51 }
 0x7b0   : > { %2802 = vrot.lane.b32.xlu1 %v6499_v6, %s7179_s10  ;;  %6510 = vpow2.f32 %v2766_v9 }
 0x7b1   : > { %v6501_v0 = vpop.eup %6500  ;;  %v2520_v47 = vpop.xlane.xlu0 %2519  ;;  %6512 = vpow2.f32 %v2770_v10 }
 0x7b2   : > { %v6503_v41 = vpop.eup %6502  ;;  %2812 = vrot.lane.b32.xlu0 %v6501_v0, %s7179_s10  ;;  %v2551_v18 = vsel %vm2439_vm1, 1.0, %v2520_v47  ;;  %vm2631_vm1 = vcmask 31768  }
 0x7b3   : > { %6514 = vlog2.f32 %v2551_v18 }
 0x7b4   : > { %2806 = vrot.lane.b32.xlu1 %v6503_v41, %s7179_s10  ;;  %6516 = vpow2.f32 %v2774_v48 }
 0x7b5   : > { %v6505_v7 = vpop.eup %6504 }
 0x7b6   : > { %v6507_v5 = vpop.eup %6506  ;;  %2816 = vrot.lane.b32.xlu0 %v6505_v7, %s7179_s10 }
 0x7b8   : > { %2810 = vrot.lane.b32.xlu1 %v6507_v5, %s7179_s10 }
 0x7b9   : > { %v6509_v34 = vpop.eup %6508 }
 0x7ba   : > { %v6511_v32 = vpop.eup %6510  ;;  %2820 = vrot.lane.b32.xlu0 %v6509_v34, %s7179_s10 }
 0x7bb   : > { %v2522_v44 = vpop.xlane.xlu1 %2521  ;;  %v6513_v61 = vpop.eup %6512 }
 0x7bc   : > { %2814 = vrot.lane.b32.xlu1 %v6511_v32, %s7179_s10  ;;  %v2552_v9 = vsel %vm2440_vm5, 1.0, %v2522_v44  ;;  %vm13535_vm5 = vcmp.eq.f32.partialorder %v9688_v57, -inf }
 0x7bd   : > { %6518 = vlog2.f32 %v2552_v9  ;;  %v6515_v40 = vpop.eup %6514 }
 0x7be   : > { %v2568_v49 = vmul.f32 0.6931472, %v6515_v40  ;;  %v6517_v0 = vpop.eup %6516 }
 0x7c0   : > { %2818 = vrot.lane.b32.xlu1 %v6513_v61, %s7179_s10  ;;  %v2524_v6 = vpop.xlane.xlu0 %2523  ;;  %v9882_v51 = vadd.f32 %v2568_v49, %v9594_v29 }
 0x7c1   : > { %v2553_v10 = vsel %vm2441_vm2, 1.0, %v2524_v6  ;;  %vm13536_vm2 = vcmp.eq.f32.partialorder %v9705_v21, -inf }
 0x7c2   : > { %6520 = vlog2.f32 %v2553_v10  ;;  %v2615_v41 = vsub.f32 0.0, %v9882_v51 }
 0x7c4   : > { %2822 = vrot.lane.b32.xlu1 %v6517_v0, %s7179_s10  ;;  %v2526_v47 = vpop.xlane.xlu0 %2525  ;;  %2632 = vst.msk [vmem:[%s7665_s21] sm:$0xff] %vm2631_vm1, %v2615_v41 }
 0x7c5   : > { %v2554_v18 = vsel %vm2442_vm6, 1.0, %v2526_v47  ;;  %vm13537_vm6 = vcmp.eq.f32.partialorder %v9702_v38, -inf }
 0x7c6   : > { %6522 = vlog2.f32 %v2554_v18 }
 0x7c7   : > { %v6519_v48 = vpop.eup %6518 }
 0x7c8   : > { %v2530_v7 = vpop.xlane.xlu1 %2529  ;;  %v2528_v5 = vpop.xlane.xlu0 %2527  ;;  %v2570_v29 = vmul.f32 0.6931472, %v6519_v48 }
 0x7c9   : > { %v2556_v34 = vsel %vm2444_vm0, 1.0, %v2530_v7  ;;  %v2555_v32 = vsel %vm2443_vm7, 1.0, %v2528_v5  ;;  %vm13538_vm7 = vcmask 15360  }
 0x7ca   : > { %6524 = vlog2.f32 %v2556_v34  ;;  %v9895_v44 = vadd.f32 %v2570_v29, %v9611_v56  ;;  %vm13539_vm0 = vmmov %vm13538_vm7 }
 0x7cb   : > { %6526 = vlog2.f32 %v2555_v32 }
 0x7cc   : > { %v6521_v9 = vpop.eup %6520  ;;  %v2534_v61 = vpop.xlane.xlu1 %2533  ;;  %v2616_v49 = vsub.f32 0.0, %v9895_v44 }
 0x7cd   : > { %v2532_v40 = vpop.xlane.xlu0 %2531  ;;  %v2572_v6 = vmul.f32 0.6931472, %v6521_v9  ;;  %v2558_v10 = vsel %vm2446_vm15, 1.0, %v2534_v61  ;;  %vm13541_vm15 = vmmov %vm13539_vm0 }
 0x7ce   : > { %6528 = vlog2.f32 %v2558_v10  ;;  %v2557_v0 = vsel %vm2445_vm12, 1.0, %v2532_v40  ;;  %2633 = vst.msk [vmem:[%s7665_s21 + $0x8] sm:$0xff] %vm2631_vm1, %v2616_v49  ;;  %vm13540_vm12 = vmmov %vm13539_vm0 }
 0x7cf   : > { %v9905_v56 = vadd.f32 %v2572_v6, %v9618_v13  ;;  %6530 = vlog2.f32 %v2557_v0 }
 0x7d0   : > { %v6523_v41 = vpop.eup %6522  ;;  %v2538_v47 = vpop.xlane.xlu1 %2537 }
 0x7d1   : > { %v2536_v18 = vpop.xlane.xlu0 %2535  ;;  %v2617_v48 = vsub.f32 0.0, %v9905_v56  ;;  %v2574_v7 = vmul.f32 0.6931472, %v6523_v41  ;;  %v2560_v5 = vsel %vm2448_vm9, 1.0, %v2538_v47  ;;  %vm13543_vm9 = vmmov %vm13539_vm0 }
 0x7d2   : > { %6532 = vlog2.f32 %v2560_v5  ;;  %v2559_v29 = vsel %vm2447_vm4, 1.0, %v2536_v18  ;;  %vm13542_vm4 = vmmov %vm13539_vm0 }
 0x7d3   : > { %2634 = vst.msk [vmem:[%s7665_s21 + $0x10] sm:$0xff] %vm2631_vm1, %v2617_v48  ;;  %v9915_v13 = vadd.f32 %v2574_v7, %v9625_v46  ;;  %6534 = vlog2.f32 %v2559_v29 }
 0x7d4   : > { %v6525_v34 = vpop.eup %6524  ;;  %v2542_v32 = vpop.xlane.xlu1 %2541 }
 0x7d5   : > { %v2540_v9 = vpop.xlane.xlu0 %2539  ;;  %v6527_v61 = vpop.eup %6526  ;;  %v2618_v40 = vsub.f32 0.0, %v9915_v13  ;;  %v2578_v49 = vmul.f32 0.6931472, %v6525_v34  ;;  %v2562_v6 = vsel %vm2450_vm13, 1.0, %v2542_v32  ;;  %vm13545_vm13 = vmmov %vm13539_vm0 }
 0x7d6   : > { %v2576_v10 = vmul.f32 0.6931472, %v6527_v61  ;;  %6536 = vlog2.f32 %v2562_v6  ;;  %v2561_v0 = vsel %vm2449_vm10, 1.0, %v2540_v9  ;;  %vm13544_vm10 = vmmov %vm13539_vm0 }
 0x7d7   : > { %2635 = vst.msk [vmem:[%s7665_s21 + $0x18] sm:$0xff] %vm2631_vm1, %v2618_v40  ;;  %v9925_v46 = vadd.f32 %v2578_v49, %v9635_v54  ;;  %6538 = vlog2.f32 %v2561_v0 }
 0x7d8   : > { %v6529_v41 = vpop.eup %6528  ;;  %v9928_v47 = vadd.f32 %v2576_v10, %v9632_v11  ;;  %v2546_v18 = vpop.xlane.xlu1 %2545 }
 0x7d9   : > { %v2544_v48 = vpop.xlane.xlu0 %2543  ;;  %v6531_v7 = vpop.eup %6530  ;;  %v2620_v5 = vsub.f32 0.0, %v9925_v46  ;;  %v2582_v29 = vmul.f32 0.6931472, %v6529_v41  ;;  %v2564_v34 = vsel %vm2452_vm3, 1.0, %v2546_v18  ;;  %vm13546_vm3 = vmmov %vm13539_vm0 }
 0x7da   : > { %v2619_v32 = vsub.f32 0.0, %v9928_v47  ;;  %v2580_v9 = vmul.f32 0.6931472, %v6531_v7  ;;  %6540 = vlog2.f32 %v2564_v34  ;;  %v2563_v11 = vsel %vm13535_vm5, 1.0, %v2544_v48  ;;  %vm13548_vm5 = vmmov %vm13539_vm0 }
 0x7db   : > { %2637 = vst.msk [vmem:[%s7665_s21 + $0x28] sm:$0xff] %vm2631_vm1, %v2620_v5  ;;  %v9937_v54 = vadd.f32 %v2582_v29, %v9649_v55  ;;  %6542 = vlog2.f32 %v2563_v11 }
 0x7dc   : > { %v6533_v61 = vpop.eup %6532  ;;  %2636 = vst.msk [vmem:[%s7665_s21 + $0x20] sm:$0xff] %vm2631_vm1, %v2619_v32  ;;  %v9944_v40 = vadd.f32 %v2580_v9, %v9646_v63  ;;  %v2550_v49 = vpop.xlane.xlu1 %2549 }
 0x7dd   : > { %v2548_v6 = vpop.xlane.xlu0 %2547  ;;  %v6535_v10 = vpop.eup %6534  ;;  %v2622_v0 = vsub.f32 0.0, %v9937_v54  ;;  %v2586_v41 = vmul.f32 0.6931472, %v6533_v61  ;;  %v2566_v55 = vsel %vm13536_vm2, 1.0, %v2550_v49  ;;  %vm13549_vm2 = vmmov %vm13539_vm0 }
 0x7de   : > { %v2621_v18 = vsub.f32 0.0, %v9944_v40  ;;  %v2584_v48 = vmul.f32 0.6931472, %v6535_v10  ;;  %6544 = vlog2.f32 %v2566_v55  ;;  %v2565_v7 = vsel %vm13537_vm6, 1.0, %v2548_v6  ;;  %vm13550_vm6 = vmmov %vm13539_vm0 }
 0x7df   : > { %2639 = vst.msk [vmem:[%s7665_s21 + $0x38] sm:$0xff] %vm2631_vm1, %v2622_v0  ;;  %v9953_v63 = vadd.f32 %v2586_v41, %v9663_v23  ;;  %6546 = vlog2.f32 %v2565_v7 }
 0x7e0   : > { %v6537_v5 = vpop.eup %6536  ;;  %2638 = vst.msk [vmem:[%s7665_s21 + $0x30] sm:$0xff] %vm2631_vm1, %v2621_v18  ;;  %v9960_v29 = vadd.f32 %v2584_v48, %v9660_v62 }
 0x7e1   : > { %v6539_v34 = vpop.eup %6538  ;;  %v2624_v32 = vsub.f32 0.0, %v9953_v63  ;;  %v2590_v9 = vmul.f32 0.6931472, %v6537_v5 }
 0x7e2   : > { %v2623_v11 = vsub.f32 0.0, %v9960_v29  ;;  %v2588_v23 = vmul.f32 0.6931472, %v6539_v34 }
 0x7e3   : > { %2641 = vst.msk [vmem:[%s7665_s21 + $0x48] sm:$0xff] %vm2631_vm1, %v2624_v32  ;;  %v9967_v61 = vadd.f32 %v2590_v9, %v9677_v43 }
 0x7e4   : > { %v6541_v49 = vpop.eup %6540  ;;  %2640 = vst.msk [vmem:[%s7665_s21 + $0x40] sm:$0xff] %vm2631_vm1, %v2623_v11  ;;  %v9972_v62 = vadd.f32 %v2588_v23, %v9674_v22 }
 0x7e5   : > { %v2626_v6 = vsub.f32 0.0, %v9967_v61  ;;  %v2594_v10 = vmul.f32 0.6931472, %v6541_v49  ;;  %v6543_v0 = vpop.eup %6542 }
 0x7e6   : > { %v2625_v41 = vsub.f32 0.0, %v9972_v62  ;;  %v2592_v55 = vmul.f32 0.6931472, %v6543_v0 }
 0x7e7   : > { %2643 = vst.msk [vmem:[%s7665_s21 + $0x58] sm:$0xff] %vm2631_vm1, %v2626_v6  ;;  %v9979_v43 = vadd.f32 %v2594_v10, %v9691_v39 }
 0x7e8   : > { %v6545_v18 = vpop.eup %6544  ;;  %2642 = vst.msk [vmem:[%s7665_s21 + $0x50] sm:$0xff] %vm2631_vm1, %v2625_v41  ;;  %v9985_v48 = vadd.f32 %v2592_v55, %v9688_v57 }
 0x7e9   : > { %v2628_v22 = vsub.f32 0.0, %v9979_v43  ;;  %v2598_v7 = vmul.f32 0.6931472, %v6545_v18  ;;  %v6547_v5 = vpop.eup %6546 }
 0x7ea   : > { %v2627_v34 = vsub.f32 0.0, %v9985_v48  ;;  %v2596_v39 = vmul.f32 0.6931472, %v6547_v5 }
 0x7eb   : > { %2645 = vst.msk [vmem:[%s7665_s21 + $0x68] sm:$0xff] %vm2631_vm1, %v2628_v22  ;;  %v9991_v32 = vadd.f32 %v2598_v7, %v9705_v21 }
 0x7ec   : > { %2644 = vst.msk [vmem:[%s7665_s21 + $0x60] sm:$0xff] %vm2631_vm1, %v2627_v34  ;;  %v9997_v11 = vadd.f32 %v2596_v39, %v9702_v38 }
 0x7ed   : > { %v2630_v9 = vsub.f32 0.0, %v9991_v32 }
 0x7ee   : > { %v2629_v57 = vsub.f32 0.0, %v9997_v11 }
 0x7ef   : > { %2647 = vst.msk [vmem:[%s7665_s21 + $0x78] sm:$0xff] %vm2631_vm1, %v2630_v9 }
 0x7f0   : > { %2646 = vst.msk [vmem:[%s7665_s21 + $0x70] sm:$0xff] %vm2631_vm1, %v2629_v57  ;;  %vm13547_vm1 = vmmov %vm13539_vm0 }
 0x80c   : > { %v2793_v23 = vpop.permute.xlu0 %2792 }
 0x80d   : > { %v2840_v49 = vsel %vm13538_vm7, %v2793_v23, 0.0  ;;  %vm13551_vm7 = vmmov %vm13539_vm0 }
 0x80e   : > { %2841 = vadd.xlane.f32.xlu0 %v2840_v49 }
 0x816   : > { %v2795_v21 = vpop.permute.xlu1 %2794 }
 0x817   : > { %v2843_v6 = vsel %vm13539_vm0, %v2795_v21, 0.0 }
 0x818   : > { %2844 = vadd.xlane.f32.xlu1 %v2843_v6  ;;  %v2801_v10 = vpop.permute.xlu0 %2800 }
 0x819   : > { %v2852_v22 = vsel %vm13542_vm4, %v2801_v10, 0.0  ;;  %vm13554_vm4 = vcmp.eq.f32.partialorder %v9763_v12, -inf }
 0x81a   : > { %v2797_v0 = vpop.permute.xlu1 %2796 }
 0x81b   : > { %v2846_v41 = vsel %vm13540_vm12, %v2797_v0, 0.0  ;;  %vm13552_vm12 = vmmov %vm13539_vm0 }
 0x81c   : > { %2847 = vadd.xlane.f32.xlu0 %v2846_v41  ;;  %v2805_v38 = vpop.permute.xlu0 %2804 }
 0x81d   : > { %v2858_v39 = vsel %vm13544_vm10, %v2805_v38, 0.0  ;;  %vm13556_vm10 = vcmp.eq.s32.totalorder %v7822_v33, 0 }
 0x81e   : > { %v2799_v55 = vpop.permute.xlu1 %2798 }
 0x81f   : > { %v2849_v18 = vsel %vm13541_vm15, %v2799_v55, 0.0  ;;  %vm13553_vm15 = vcmp.eq.f32.partialorder %v9746_v42, -inf }
 0x820   : > { %2850 = vadd.xlane.f32.xlu1 %v2849_v18  ;;  %2853 = vadd.xlane.f32.xlu0 %v2852_v22  ;;  %v2809_v7 = vpop.permute.xlu0 %2808 }
 0x821   : > { %v2864_v49 = vsel %vm13546_vm3, %v2809_v7, 0.0  ;;  %vm13558_vm3 = vcmp.eq.f32.partialorder %v9772_v25, -inf }
 0x822   : > { %v2803_v5 = vpop.permute.xlu1 %2802 }
 0x823   : > { %v2855_v34 = vsel %vm13543_vm9, %v2803_v5, 0.0  ;;  %vm13555_vm9 = vcmp.eq.f32.partialorder %v9753_v60, -inf }
 0x824   : > { %2856 = vadd.xlane.f32.xlu1 %v2855_v34  ;;  %2859 = vadd.xlane.f32.xlu0 %v2858_v39  ;;  %v2813_v9 = vpop.permute.xlu0 %2812 }
 0x825   : > { %v2870_v0 = vsel %vm13548_vm5, %v2813_v9, 0.0  ;;  %vm13560_vm5 = vcmp.eq.f32.partialorder %v9778_v28, -inf }
 0x826   : > { %v2807_v57 = vpop.permute.xlu1 %2806 }
 0x827   : > { %v2861_v23 = vsel %vm13545_vm13, %v2807_v57, 0.0  ;;  %vm13557_vm13 = vcmp.eq.f32.partialorder %v9758_v24, -inf }
 0x828   : > { %2862 = vadd.xlane.f32.xlu1 %v2861_v23  ;;  %2865 = vadd.xlane.f32.xlu0 %v2864_v49  ;;  %v2817_v21 = vpop.permute.xlu0 %2816 }
 0x829   : > { %v2876_v55 = vsel %vm13550_vm6, %v2817_v21, 0.0  ;;  %vm13562_vm6 = vcmp.eq.f32.partialorder %v9792_v27, -inf }
 0x82a   : > { %v2811_v6 = vpop.permute.xlu1 %2810 }
 0x82b   : > { %v2867_v10 = vsel %vm13547_vm1, %v2811_v6, 0.0  ;;  %vm13559_vm1 = vcmp.eq.s32.totalorder %v7822_v33, 127 }
 0x82c   : > { %2868 = vadd.xlane.f32.xlu1 %v2867_v10  ;;  %2871 = vadd.xlane.f32.xlu0 %v2870_v0  ;;  %v2821_v18 = vpop.permute.xlu0 %2820  ;;  %v3000_v0 = vsub.f32 %v9718_v45, %v9882_v51 }
 0x82d   : > { %v2882_v5 = vsel %vm13539_vm0, %v2821_v18, 0.0  ;;  %vm13564_vm0 = vmmov %vm13556_vm10 }
 0x82e   : > { %v2815_v41 = vpop.permute.xlu1 %2814 }
 0x82f   : > { %v2873_v38 = vsel %vm13549_vm2, %v2815_v41, 0.0  ;;  %vm13561_vm2 = vcmp.eq.f32.partialorder %v9786_v59, -inf }
 0x830   : > { %2874 = vadd.xlane.f32.xlu1 %v2873_v38  ;;  %2877 = vadd.xlane.f32.xlu0 %v2876_v55 }
 0x832   : > { %v2819_v22 = vpop.permute.xlu1 %2818 }
 0x833   : > { %v2879_v7 = vsel %vm13551_vm7, %v2819_v22, 0.0  ;;  %vm13563_vm7 = vcmp.eq.f32.partialorder %v9801_v50, -inf }
 0x834   : > { %2880 = vadd.xlane.f32.xlu1 %v2879_v7  ;;  %2883 = vadd.xlane.f32.xlu0 %v2882_v5  ;;  %v3016_v7 = vsel %vm13556_vm10, 0.0, %v3000_v0  ;;  %v3001_v0 = vsub.f32 %v9716_v30, %v9895_v44  ;;  %vm13569_vm10 = vcmp.eq.f32.partialorder %v9807_v19, -inf }
 0x836   : > { %v2823_v34 = vpop.permute.xlu1 %2822 }
 0x837   : > { %v2885_v39 = vsel %vm13552_vm12, %v2823_v34, 0.0  ;;  %vm13565_vm12 = vmmov %vm13564_vm0 }
 0x838   : > { %2886 = vadd.xlane.f32.xlu1 %v2885_v39  ;;  %v3064_v39 = vld [vmem:[%s7274_s9 + $0x20] sm:$0xff] }
 0x89b   : > { %v2842_v9 = vpop.xlane.xlu0 %2841 }
 0x89c   : > { %v2888_v57 = vsel %vm13553_vm15, 1.0, %v2842_v9  ;;  %vm13566_vm15 = vmmov %vm13559_vm1 }
 0x89d   : > { %6548 = vlog2.f32 %v2888_v57 }
 0x8a5   : > { %v2845_v23 = vpop.xlane.xlu1 %2844 }
 0x8a6   : > { %v2889_v49 = vsel %vm13554_vm4, 1.0, %v2845_v23  ;;  %vm13567_vm4 = vmmov %vm13564_vm0 }
 0x8a7   : > { %6550 = vlog2.f32 %v2889_v49  ;;  %v6549_v21 = vpop.eup %6548 }
 0x8a8   : > { %v2905_v6 = vmul.f32 0.6931472, %v6549_v21 }
 0x8a9   : > { %v2848_v10 = vpop.xlane.xlu0 %2847 }
 0x8aa   : > { %v2890_v41 = vsel %vm13555_vm9, 1.0, %v2848_v10  ;;  %v2936_v38 = vadd.f32 %v2905_v6, %v9746_v42  ;;  %v10042_v42 = vld [vmem:[%s13202_s2] ss:$0 sm:$0xff]  ;;  %vm13568_vm9 = vmmov %vm13564_vm0 }
 0x8ab   : > { %6552 = vlog2.f32 %v2890_v41  ;;  %v3002_v41 = vsub.f32 %v9720_v1, %v9905_v56 }
 0x8ac   : > { %v2952_v55 = vsub.f32 %v2936_v38, %v9882_v51 }
 0x8ad   : > { %v2851_v18 = vpop.xlane.xlu1 %2850  ;;  %v2854_v22 = vpop.xlane.xlu0 %2853 }
 0x8ae   : > { %v2891_v5 = vsel %vm13557_vm13, 1.0, %v2851_v18  ;;  %v2892_v34 = vsel %vm13558_vm3, 1.0, %v2854_v22  ;;  %v3032_v45 = vsel %vm13559_vm1, %v2952_v55, %v3016_v7  ;;  %v3003_v18 = vsub.f32 %v9724_v52, %v9915_v13  ;;  %vm13571_vm3 = vmmov %vm13564_vm0 }
 0x8af   : > { %6554 = vlog2.f32 %v2891_v5  ;;  %v3048_v51 = vadd.f32 %v10042_v42, %v3032_v45  ;;  %v3005_v22 = vsub.f32 %v9728_v4, %v9925_v46  ;;  %v3017_v45 = vsel %vm13564_vm0, 0.0, %v3001_v0  ;;  %vm13572_vm1 = vmmov %vm13564_vm0 }
 0x8b0   : > { %6556 = vlog2.f32 %v2892_v34  ;;  %v3018_v52 = vsel %vm13565_vm12, 0.0, %v3002_v41  ;;  %v3004_v4 = vsub.f32 %v9722_v58, %v9928_v47  ;;  %v3006_v58 = vsub.f32 %v9726_v53, %v9944_v40  ;;  %vm13578_vm12 = vmmov %vm13572_vm1 }
 0x8b1   : > { %v6551_v9 = vpop.eup %6550  ;;  %v2857_v57 = vpop.xlane.xlu1 %2856  ;;  %v10047_v6 = vadd.f32 %v3064_v39, %v3048_v51  ;;  %vm13570_vm13 = vcmp.eq.f32.partialorder %v9815_v31, -inf }
 0x8b2   : > { %v2860_v23 = vpop.xlane.xlu0 %2859  ;;  %v2907_v49 = vmul.f32 0.6931472, %v6551_v9  ;;  %v2893_v21 = vsel %vm13560_vm5, 1.0, %v2857_v57  ;;  %v3065_v9 = vld [vmem:[%s7274_s9 + $0x60] sm:$0xff]  ;;  %vm13573_vm5 = vmmov %vm13566_vm15 }
 0x8b3   : > { %v2894_v10 = vsel %vm13561_vm2, 1.0, %v2860_v23  ;;  %6558 = vlog2.f32 %v2893_v21  ;;  %3096 = vmax.xlane.f32.xlu0 %v10047_v6  ;;  %v3019_v23 = vsel %vm13567_vm4, 0.0, %v3003_v18  ;;  %v3020_v18 = vsel %vm13571_vm3, 0.0, %v3004_v4  ;;  %vm13574_vm2 = vmmov %vm13564_vm0 }
 0x8b4   : > { %v2937_v38 = vadd.f32 %v2907_v49, %v9763_v12  ;;  %6560 = vlog2.f32 %v2894_v10  ;;  %v3021_v49 = vsel %vm13568_vm9, 0.0, %v3005_v22  ;;  %vm13577_vm0 = vmmov %vm13573_vm5 }
 0x8b5   : > { %v6553_v55 = vpop.eup %6552  ;;  %v2863_v7 = vpop.xlane.xlu1 %2862  ;;  %vm13580_vm4 = vmmov %vm13577_vm0 }
 0x8b6   : > { %v2866_v5 = vpop.xlane.xlu0 %2865  ;;  %v2953_v30 = vsub.f32 %v2937_v38, %v9895_v44  ;;  %v2909_v34 = vmul.f32 0.6931472, %v6553_v55  ;;  %v2895_v1 = vsel %vm13562_vm6, 1.0, %v2863_v7  ;;  %v3007_v44 = vsub.f32 %v9732_v15, %v9937_v54  ;;  %vm13583_vm9 = vmmov %vm13577_vm0 }
 0x8b7   : > { %v2896_v12 = vsel %vm13563_vm7, 1.0, %v2866_v5  ;;  %6562 = vlog2.f32 %v2895_v1  ;;  %v3022_v1 = vsel %vm13574_vm2, 0.0, %v3006_v58  ;;  %vm13575_vm6 = vcmp.eq.f32.partialorder %v9821_v26, -inf  ;;  %vm13587_vm3 = vmmov %vm13572_vm1 }
 0x8b8   : > { %v3033_v39 = vsel %vm13566_vm15, %v2953_v30, %v3017_v45  ;;  %v2938_v51 = vadd.f32 %v2909_v34, %v9753_v60  ;;  %6564 = vlog2.f32 %v2896_v12  ;;  %v10096_v7 = vsel %vm13572_vm1, 0.0, %v3007_v44  ;;  %v3066_v30 = vld [vmem:[%s7274_s9 + $0xa0] sm:$0xff]  ;;  %vm13579_vm15 = vmmov %vm13577_vm0 }
 0x8b9   : > { %v6555_v57 = vpop.eup %6554  ;;  %v2869_v21 = vpop.xlane.xlu1 %2868  ;;  %v3049_v10 = vadd.f32 %v10042_v42, %v3033_v39  ;;  %v3009_v12 = vsub.f32 %v9736_v35, %v9953_v63  ;;  %vm13576_vm7 = vcmp.eq.f32.partialorder %v9830_v8, -inf }
 0x8ba   : > { %v2872_v15 = vpop.xlane.xlu0 %2871  ;;  %v6557_v0 = vpop.eup %6556  ;;  %v2954_v60 = vsub.f32 %v2938_v51, %v9905_v56  ;;  %v2911_v41 = vmul.f32 0.6931472, %v6555_v57  ;;  %v2897_v38 = vsel %vm13569_vm10, 1.0, %v2869_v21  ;;  %v3008_v21 = vsub.f32 %v9730_v16, %v9960_v29  ;;  %vm13585_vm10 = vmmov %vm13572_vm1 }
 0x8bb   : > { %v2898_v55 = vsel %vm13570_vm13, 1.0, %v2872_v15  ;;  %v2913_v22 = vmul.f32 0.6931472, %v6557_v0  ;;  %6566 = vlog2.f32 %v2897_v38  ;;  %v10092_v53 = vadd.f32 %v3065_v9, %v3049_v10  ;;  %v3067_v10 = vld [vmem:[%s7274_s9 + $0xe0] sm:$0xff]  ;;  %vm13586_vm13 = vmmov %vm13577_vm0 }
 0x8bc   : > { %v3034_v56 = vsel %vm13573_vm5, %v2954_v60, %v3018_v52  ;;  %v2939_v5 = vadd.f32 %v2911_v41, %v9758_v24  ;;  %6568 = vlog2.f32 %v2898_v55  ;;  %v10125_v60 = vsel %vm13578_vm12, 0.0, %v3009_v12  ;;  %vm13589_vm5 = vmmov %vm13574_vm2 }
 0x8bd   : > { %v6559_v34 = vpop.eup %6558  ;;  %v2940_v45 = vadd.f32 %v2913_v22, %v9772_v25  ;;  %3098 = vmax.xlane.f32.xlu1 %v10092_v53  ;;  %v2875_v4 = vpop.xlane.xlu1 %2874  ;;  %v3050_v52 = vadd.f32 %v10042_v42, %v3034_v56  ;;  %vm13591_vm2 = vmmov %vm13577_vm0 }
 0x8be   : > { %v2878_v44 = vpop.xlane.xlu0 %2877  ;;  %v6561_v39 = vpop.eup %6560  ;;  %v2955_v24 = vsub.f32 %v2939_v5, %v9915_v13  ;;  %v2915_v51 = vmul.f32 0.6931472, %v6559_v34  ;;  %v2899_v9 = vsel %vm13575_vm6, 1.0, %v2875_v4  ;;  %v3068_v34 = vld [vmem:[%s7274_s9 + $0x120] sm:$0xff]  ;;  %vm13592_vm6 = vmmov %vm13577_vm0 }
 0x8bf   : > { %v2900_v57 = vsel %vm13576_vm7, 1.0, %v2878_v44  ;;  %v2956_v35 = vsub.f32 %v2940_v45, %v9928_v47  ;;  %v2917_v25 = vmul.f32 0.6931472, %v6561_v39  ;;  %6570 = vlog2.f32 %v2899_v9  ;;  %v3069_v4 = vld [vmem:[%s7274_s9 + $0x160] sm:$0xff]  ;;  %vm13593_vm7 = vmmov %vm13587_vm3 }
 0x8c0   : > { %v10115_v58 = vadd.f32 %v3066_v30, %v3050_v52  ;;  %v3035_v15 = vsel %vm13577_vm0, %v2955_v24, %v3019_v23  ;;  %v2941_v13 = vadd.f32 %v2915_v51, %v9778_v28  ;;  %6572 = vlog2.f32 %v2900_v57 }
 0x8c1   : > { %v6563_v0 = vpop.eup %6562  ;;  %v3036_v47 = vsel %vm13579_vm15, %v2956_v35, %v3020_v18  ;;  %v2942_v41 = vadd.f32 %v2917_v25, %v9786_v59  ;;  %v2881_v38 = vpop.xlane.xlu1 %2880  ;;  %v3051_v28 = vadd.f32 %v10042_v42, %v3035_v15  ;;  %v3010_v15 = vsub.f32 %v9734_v3, %v9972_v62 }
 0x8c2   : > { %3100 = vmax.xlane.f32.xlu0 %v10115_v58  ;;  %v2884_v16 = vpop.xlane.xlu0 %2883  ;;  %v6565_v23 = vpop.eup %6564  ;;  %v2957_v55 = vsub.f32 %v2941_v13, %v9925_v46  ;;  %v2919_v22 = vmul.f32 0.6931472, %v6563_v0  ;;  %v2901_v56 = vsel %vm2709_vm11, 1.0, %v2881_v38  ;;  %v3052_v46 = vadd.f32 %v10042_v42, %v3036_v47  ;;  %vm13581_vm11 = vmmov %vm13572_vm1 }
 0x8c3   : > { %v2902_v5 = vsel %vm2710_vm14, 1.0, %v2884_v16  ;;  %v2958_v18 = vsub.f32 %v2942_v41, %v9944_v40  ;;  %v2921_v59 = vmul.f32 0.6931472, %v6565_v23  ;;  %6574 = vlog2.f32 %v2901_v56  ;;  %vm13582_vm14 = vmmov %vm13577_vm0 }
 0x8c4   : > { %v10138_v30 = vadd.f32 %v3067_v10, %v3051_v28  ;;  %v3037_v12 = vsel %vm13580_vm4, %v2957_v55, %v3021_v49  ;;  %v2943_v45 = vadd.f32 %v2919_v22, %v9792_v27  ;;  %6576 = vlog2.f32 %v2902_v5  ;;  %vm13588_vm1 = vmmov %vm13577_vm0 }
 0x8c5   : > { %v6567_v44 = vpop.eup %6566  ;;  %v3024_v52 = vsel %vm13581_vm11, 0.0, %v3008_v21  ;;  %v3038_v40 = vsel %vm13582_vm14, %v2958_v18, %v3022_v1  ;;  %v2944_v39 = vadd.f32 %v2921_v59, %v9801_v50  ;;  %v2887_v24 = vpop.xlane.xlu1 %2886  ;;  %v3053_v49 = vadd.f32 %v10042_v42, %v3037_v12  ;;  %v3070_v21 = vld [vmem:[%s7274_s9 + $0x1a0] sm:$0xff]  ;;  %vm13596_vm12 = vmmov %vm13588_vm1 }
 0x8c6   : > { %3102 = vmax.xlane.f32.xlu1 %v10138_v30  ;;  %v6569_v27 = vpop.eup %6568  ;;  %v2959_v51 = vsub.f32 %v2943_v45, %v9937_v54  ;;  %v2923_v9 = vmul.f32 0.6931472, %v6567_v44  ;;  %v2903_v57 = vsel %vm2711_vm8, 1.0, %v2887_v24  ;;  %v10156_v35 = vadd.f32 %v3068_v34, %v3052_v46  ;;  %vm13584_vm8 = vmmov %vm13577_vm0 }
 0x8c7   : > { %v2960_v25 = vsub.f32 %v2944_v39, %v9960_v29  ;;  %v2925_v1 = vmul.f32 0.6931472, %v6569_v27  ;;  %6578 = vlog2.f32 %v2903_v57  ;;  %v10159_v50 = vadd.f32 %v3069_v4, %v3053_v49  ;;  %v3071_v29 = vld [vmem:[%s7274_s9 + $0x1e0] sm:$0xff]  ;;  %vm13595_vm0 = vmmov %vm13587_vm3 }
 0x8c8   : > { %v3039_v54 = vsel %vm13583_vm9, %v2959_v51, %v10096_v7  ;;  %v2945_v13 = vadd.f32 %v2923_v9, %v9807_v19  ;;  %3104 = vmax.xlane.f32.xlu0 %v10156_v35  ;;  %v3054_v10 = vadd.f32 %v10042_v42, %v3038_v40  ;;  %v3011_v47 = vsub.f32 %v9740_v36, %v9967_v61  ;;  %v3072_v19 = vld [vmem:[%s7274_s9 + $0x220] sm:$0xff]  ;;  %vm13597_vm15 = vmmov %vm13588_vm1 }
 0x8c9   : > { %v6571_v0 = vpop.eup %6570  ;;  %v3040_v41 = vsel %vm13584_vm8, %v2960_v25, %v3024_v52  ;;  %v2946_v3 = vadd.f32 %v2925_v1, %v9815_v31  ;;  %v3055_v7 = vadd.f32 %v10042_v42, %v3039_v54  ;;  %v3012_v36 = vsub.f32 %v9738_v20, %v9985_v48  ;;  %v3073_v20 = vld [vmem:[%s7274_s9 + $0x260] sm:$0xff]  ;;  %vm13598_vm4 = vmmov %vm13595_vm0 }
 0x8ca   : > { %3106 = vmax.xlane.f32.xlu1 %v10159_v50  ;;  %v6573_v38 = vpop.eup %6572  ;;  %v2961_v16 = vsub.f32 %v2945_v13, %v9953_v63  ;;  %v2927_v28 = vmul.f32 0.6931472, %v6571_v0  ;;  %v10180_v23 = vadd.f32 %v3070_v21, %v3054_v10  ;;  %v3056_v55 = vadd.f32 %v10042_v42, %v3040_v41  ;;  %v13590_v27 = vld [vmem:[#allocation6_spill] sm:$0xff]  ;;  %vm13599_vm11 = vmmov %vm13588_vm1 }
 0x8cb   : > { %v2962_v31 = vsub.f32 %v2946_v3, %v9972_v62  ;;  %v2929_v22 = vmul.f32 0.6931472, %v6573_v38  ;;  %v10186_v56 = vadd.f32 %v3071_v29, %v3055_v7  ;;  %v3026_v5 = vsel %vm13585_vm10, 0.0, %v3010_v15  ;;  %v3075_v57 = vld [vmem:[%s7274_s9 + $0x2e0] sm:$0xff]  ;;  %v13594_v29 = vld [vmem:[#allocation7_spill] sm:$0xff] }
 0x8cc   : > { %v3041_v63 = vsel %vm13586_vm13, %v2961_v16, %v10125_v60  ;;  %v2947_v18 = vadd.f32 %v2927_v28, %v9821_v26  ;;  %3108 = vmax.xlane.f32.xlu0 %v10180_v23  ;;  %v10195_v59 = vadd.f32 %v3072_v19, %v3056_v55  ;;  %v3027_v62 = vsel %vm13587_vm3, 0.0, %v3011_v47  ;;  %v3074_v26 = vld [vmem:[%s7274_s9 + $0x2a0] sm:$0xff] }
 0x8cd   : > { %v6575_v34 = vpop.eup %6574  ;;  %v3042_v12 = vsel %vm13588_vm1, %v2962_v31, %v3026_v5  ;;  %v2948_v45 = vadd.f32 %v2929_v22, %v9830_v8  ;;  %v3057_v60 = vadd.f32 %v10042_v42, %v3041_v63  ;;  %v3013_v4 = vsub.f32 %v9744_v14, %v9979_v43  ;;  %v3076_v15 = vld [vmem:[%s7274_s9 + $0x320] sm:$0xff] }
 0x8ce   : > { %3110 = vmax.xlane.f32.xlu1 %v10186_v56  ;;  %v6577_v46 = vpop.eup %6576  ;;  %v2963_v44 = vsub.f32 %v2947_v18, %v9967_v61  ;;  %v2931_v52 = vmul.f32 0.6931472, %v6575_v34  ;;  %v3058_v40 = vadd.f32 %v10042_v42, %v3042_v12  ;;  %v3028_v39 = vsel %vm13589_vm5, 0.0, %v3012_v36  ;;  %v3077_v19 = vld [vmem:[%s7274_s9 + $0x360] sm:$0xff] }
 0x8cf   : > { %v2964_v8 = vsub.f32 %v2948_v45, %v9985_v48  ;;  %v2933_v24 = vmul.f32 0.6931472, %v6577_v46  ;;  %v10213_v49 = vadd.f32 %v3073_v20, %v3057_v60  ;;  %v3014_v51 = vsub.f32 %v13590_v27, %v9997_v11  ;;  %v3078_v16 = vld [vmem:[%s7274_s9 + $0x3a0] sm:$0xff] }
 0x8d0   : > { %v3043_v14 = vsel %vm13591_vm2, %v2963_v44, %v3027_v62  ;;  %v2949_v61 = vadd.f32 %v2931_v52, %v9836_v2  ;;  %3112 = vmax.xlane.f32.xlu0 %v10195_v59  ;;  %v10221_v9 = vadd.f32 %v3074_v26, %v3058_v40  ;;  %v3029_v10 = vsel %vm13593_vm7, 0.0, %v3013_v4  ;;  %v3079_v5 = vld [vmem:[%s7274_s9 + $0x3e0] sm:$0xff] }
 0x8d1   : > { %v6579_v25 = vpop.eup %6578  ;;  %v3044_v48 = vsel %vm13592_vm6, %v2964_v8, %v3028_v39  ;;  %v2950_v1 = vadd.f32 %v2933_v24, %v9849_v37  ;;  %v3059_v21 = vadd.f32 %v10042_v42, %v3043_v14  ;;  %v3015_v0 = vsub.f32 %v13594_v29, %v9991_v32 }
 0x8d2   : > { %3114 = vmax.xlane.f32.xlu1 %v10213_v49  ;;  %v2965_v54 = vsub.f32 %v2949_v61, %v9979_v43  ;;  %v2935_v2 = vmul.f32 0.6931472, %v6579_v25  ;;  %v3060_v13 = vadd.f32 %v10042_v42, %v3044_v48  ;;  %v3030_v41 = vsel %vm13595_vm0, 0.0, %v3014_v51 }
 0x8d3   : > { %v2966_v37 = vsub.f32 %v2950_v1, %v9997_v11  ;;  %v10237_v47 = vadd.f32 %v3075_v57, %v3059_v21  ;;  %vm13600_vm14 = vcmask 1048560  }
 0x8d4   : > { %v3045_v43 = vsel %vm13596_vm12, %v2965_v54, %v3029_v10  ;;  %v2951_v3 = vadd.f32 %v2935_v2, %v9852_v17  ;;  %3116 = vmax.xlane.f32.xlu0 %v10221_v9  ;;  %v10245_v7 = vadd.f32 %v3076_v15, %v3060_v13  ;;  %v3031_v17 = vsel %vm13598_vm4, 0.0, %v3015_v0  ;;  %vm13601_vm9 = vmmov %vm13600_vm14 }
 0x8d5   : > { %v3046_v38 = vsel %vm13597_vm15, %v2966_v37, %v3030_v41  ;;  %v3061_v11 = vadd.f32 %v10042_v42, %v3045_v43  ;;  %v3343_v18 = vsel %vm13601_vm9, %v10115_v58, -inf  ;;  %vm13602_vm8 = vmmov %vm13601_vm9 }
 0x8d6   : > { %3118 = vmax.xlane.f32.xlu1 %v10237_v47  ;;  %v2967_v28 = vsub.f32 %v2951_v3, %v9991_v32  ;;  %v3062_v55 = vadd.f32 %v10042_v42, %v3046_v38  ;;  %v3346_v20 = vsel %vm13602_vm8, %v10138_v30, -inf  ;;  %vm13603_vm10 = vmmov %vm13602_vm8 }
 0x8d7   : > { %v10257_v36 = vadd.f32 %v3077_v19, %v3061_v11  ;;  %v3340_v34 = vsel %vm13603_vm10, %v10092_v53, -inf  ;;  %vm13604_vm13 = vmmov %vm13602_vm8 }
 0x8d8   : > { %v3047_v31 = vsel %vm13599_vm11, %v2967_v28, %v3031_v17  ;;  %3120 = vmax.xlane.f32.xlu0 %v10245_v7  ;;  %v10262_v22 = vadd.f32 %v3078_v16, %v3062_v55  ;;  %v3349_v62 = vsel %vm13604_vm13, %v10156_v35, -inf  ;;  %vm13605_vm3 = vmmov %vm13602_vm8 }
 0x8d9   : > { %v3063_v63 = vadd.f32 %v10042_v42, %v3047_v31  ;;  %v3337_v42 = vsel %vm13600_vm14, %v10047_v6, -inf  ;;  %v3352_v12 = vsel %vm13605_vm3, %v10159_v50, -inf  ;;  %vm13606_vm1 = vmmov %vm13605_vm3 }
 0x8da   : > { %3122 = vmax.xlane.f32.xlu1 %v10257_v36  ;;  %v3355_v45 = vsel %vm13606_vm1, %v10180_v23, -inf  ;;  %vm13607_vm5 = vmmov %vm13606_vm1 }
 0x8db   : > { %v10267_v32 = vadd.f32 %v3079_v5, %v3063_v63  ;;  %v3358_v60 = vsel %vm13607_vm5, %v10186_v56, -inf  ;;  %vm13608_vm2 = vmmov %vm13606_vm1 }
 0x8dc   : > { %3124 = vmax.xlane.f32.xlu0 %v10262_v22  ;;  %v3361_v26 = vsel %vm13608_vm2, %v10195_v59, -inf  ;;  %vm13609_vm6 = vmmov %vm13606_vm1 }
 0x8dd   : > { %v3364_v46 = vsel %vm13609_vm6, %v10213_v49, -inf  ;;  %vm13610_vm7 = vmmov %vm13606_vm1 }
 0x8de   : > { %3126 = vmax.xlane.f32.xlu1 %v10267_v32  ;;  %v3367_v4 = vsel %vm13610_vm7, %v10221_v9, -inf  ;;  %vm13611_vm0 = vmmov %vm13606_vm1 }
 0x8df   : > { %v3370_v52 = vsel %vm13611_vm0, %v10237_v47, -inf  ;;  %vm13612_vm15 = vmmov %vm13611_vm0 }
 0x8e0   : > { %v3373_v8 = vsel %vm13612_vm15, %v10245_v7, -inf  ;;  %vm13613_vm4 = vmmov %vm13611_vm0 }
 0x8e1   : > { %v3376_v24 = vsel %vm13613_vm4, %v10257_v36, -inf  ;;  %vm13614_vm11 = vmmov %vm13611_vm0 }
 0x8e2   : > { %v3379_v51 = vsel %vm13614_vm11, %v10262_v22, -inf  ;;  %vm13615_vm14 = vmmov %vm13611_vm0 }
 0x8e3   : > { %v3382_v14 = vsel %vm13615_vm14, %v10267_v32, -inf }
 0x8ef   : > { %3659 = vrot.lane.b32.xlu1 %v10092_v53, %s7180_s11 }
 0x8f2   : > { %3657 = vrot.lane.b32.xlu0 %v10047_v6, %s7180_s11 }
 0x8f3   : > { %3661 = vrot.lane.b32.xlu1 %v10115_v58, %s7180_s11 }
 0x8f6   : > { %3665 = vrot.lane.b32.xlu0 %v10156_v35, %s7180_s11 }
 0x8f7   : > { %3663 = vrot.lane.b32.xlu1 %v10138_v30, %s7180_s11 }
 0x8fa   : > { %3669 = vrot.lane.b32.xlu0 %v10180_v23, %s7180_s11 }
 0x8fb   : > { %3667 = vrot.lane.b32.xlu1 %v10159_v50, %s7180_s11 }
 0x8fe   : > { %3673 = vrot.lane.b32.xlu0 %v10195_v59, %s7180_s11 }
 0x8ff   : > { %3671 = vrot.lane.b32.xlu1 %v10186_v56, %s7180_s11 }
 0x902   : > { %3677 = vrot.lane.b32.xlu0 %v10221_v9, %s7180_s11 }
 0x903   : > { %3675 = vrot.lane.b32.xlu1 %v10213_v49, %s7180_s11 }
 0x906   : > { %3681 = vrot.lane.b32.xlu0 %v10245_v7, %s7180_s11 }
 0x907   : > { %3679 = vrot.lane.b32.xlu1 %v10237_v47, %s7180_s11 }
 0x90a   : > { %3685 = vrot.lane.b32.xlu0 %v10262_v22, %s7180_s11 }
 0x90b   : > { %3683 = vrot.lane.b32.xlu1 %v10257_v36, %s7180_s11 }
 0x90f   : > { %3687 = vrot.lane.b32.xlu1 %v10267_v32, %s7180_s11 }
 0x929   : > { %3338 = vmax.xlane.f32.xlu0 %v3337_v42 }
 0x92d   : > { %3344 = vmax.xlane.f32.xlu0 %v3343_v18 }
 0x931   : > { %3347 = vmax.xlane.f32.xlu0 %v3346_v20 }
 0x933   : > { %3341 = vmax.xlane.f32.xlu1 %v3340_v34 }
 0x935   : > { %3350 = vmax.xlane.f32.xlu0 %v3349_v62 }
 0x937   : > { %3353 = vmax.xlane.f32.xlu1 %v3352_v12 }
 0x939   : > { %3356 = vmax.xlane.f32.xlu0 %v3355_v45 }
 0x93b   : > { %3359 = vmax.xlane.f32.xlu1 %v3358_v60 }
 0x93d   : > { %3362 = vmax.xlane.f32.xlu0 %v3361_v26 }
 0x93f   : > { %3365 = vmax.xlane.f32.xlu1 %v3364_v46 }
 0x940   : > { %v10325_v44 = vpop.xlane.xlu0 %3096 }
 0x941   : > { %3368 = vmax.xlane.f32.xlu0 %v3367_v4  ;;  %vm3128_vm12 = vcmp.eq.f32.partialorder %v10325_v44, -inf }
 0x942   : > { %v3144_v40 = vsel %vm3128_vm12, 0.0, %v10325_v44 }
 0x943   : > { %3371 = vmax.xlane.f32.xlu1 %v3370_v52  ;;  %v3160_v39 = vsub.f32 %v10047_v6, %v3144_v40 }
 0x945   : > { %3374 = vmax.xlane.f32.xlu0 %v3373_v8  ;;  %v3176_v27 = vmul.f32 1.442695, %v3160_v39 }
 0x947   : > { %3377 = vmax.xlane.f32.xlu1 %v3376_v24  ;;  %6580 = vpow2.f32 %v3176_v27 }
 0x949   : > { %3380 = vmax.xlane.f32.xlu0 %v3379_v51 }
 0x94a   : > { %v10342_v61 = vpop.xlane.xlu1 %3098 }
 0x94b   : > { %3383 = vmax.xlane.f32.xlu1 %v3382_v14  ;;  %vm3129_vm9 = vcmp.eq.f32.partialorder %v10342_v61, -inf }
 0x94c   : > { %v3145_v57 = vsel %vm3129_vm9, 0.0, %v10342_v61 }
 0x94d   : > { %v3161_v25 = vsub.f32 %v10092_v53, %v3145_v57 }
 0x94f   : > { %v10349_v48 = vpop.xlane.xlu0 %3100  ;;  %v3178_v1 = vmul.f32 1.442695, %v3161_v25 }
 0x950   : > { %vm3130_vm8 = vcmp.eq.f32.partialorder %v10349_v48, -inf }
 0x951   : > { %v3146_v21 = vsel %vm3130_vm8, 0.0, %v10349_v48  ;;  %6582 = vpow2.f32 %v3178_v1  ;;  %v6581_v54 = vpop.eup %6580 }
 0x952   : > { %v3162_v15 = vsub.f32 %v10115_v58, %v3146_v21  ;;  %3208 = vadd.xlane.f32.xlu0 %v6581_v54 }
 0x953   : > { %v10356_v2 = vpop.xlane.xlu1 %3102 }
 0x954   : > { %v3180_v13 = vmul.f32 1.442695, %v3162_v15  ;;  %vm3131_vm10 = vcmp.eq.f32.partialorder %v10356_v2, -inf }
 0x955   : > { %v3147_v10 = vsel %vm3131_vm10, 0.0, %v10356_v2  ;;  %v10363_v0 = vpop.xlane.xlu0 %3104 }
 0x956   : > { %6584 = vpow2.f32 %v3180_v13  ;;  %v3163_v29 = vsub.f32 %v10138_v30, %v3147_v10  ;;  %vm3132_vm13 = vcmp.eq.f32.partialorder %v10363_v0, -inf }
 0x957   : > { %v10366_v37 = vpop.xlane.xlu1 %3106  ;;  %v3148_v43 = vsel %vm3132_vm13, 0.0, %v10363_v0 }
 0x958   : > { %v3182_v41 = vmul.f32 1.442695, %v3163_v29  ;;  %vm3133_vm3 = vcmp.eq.f32.partialorder %v10366_v37, -inf  ;;  %v3164_v3 = vsub.f32 %v10156_v35, %v3148_v43 }
 0x959   : > { %v3149_v19 = vsel %vm3133_vm3, 0.0, %v10366_v37  ;;  %v10377_v11 = vpop.xlane.xlu0 %3108 }
 0x95a   : > { %6586 = vpow2.f32 %v3182_v41  ;;  %v3165_v38 = vsub.f32 %v10159_v50, %v3149_v19  ;;  %v3184_v16 = vmul.f32 1.442695, %v3164_v3  ;;  %vm3134_vm1 = vcmp.eq.f32.partialorder %v10377_v11, -inf }
 0x95b   : > { %v10380_v28 = vpop.xlane.xlu1 %3110  ;;  %v6583_v55 = vpop.eup %6582  ;;  %v3150_v31 = vsel %vm3134_vm1, 0.0, %v10377_v11 }
 0x95c   : > { %v3186_v17 = vmul.f32 1.442695, %v3165_v38  ;;  %vm3135_vm5 = vcmp.eq.f32.partialorder %v10380_v28, -inf  ;;  %6588 = vpow2.f32 %v3184_v16  ;;  %v3166_v5 = vsub.f32 %v10180_v23, %v3150_v31  ;;  %3210 = vadd.xlane.f32.xlu1 %v6583_v55 }
 0x95d   : > { %v3151_v63 = vsel %vm3135_vm5, 0.0, %v10380_v28  ;;  %v10391_v18 = vpop.xlane.xlu0 %3112 }
 0x95e   : > { %6590 = vpow2.f32 %v3186_v17  ;;  %v3167_v42 = vsub.f32 %v10186_v56, %v3151_v63  ;;  %v3188_v20 = vmul.f32 1.442695, %v3166_v5  ;;  %vm3136_vm2 = vcmp.eq.f32.partialorder %v10391_v18, -inf }
 0x95f   : > { %v10394_v34 = vpop.xlane.xlu1 %3114  ;;  %v3152_v45 = vsel %vm3136_vm2, 0.0, %v10391_v18 }
 0x960   : > { %v6585_v62 = vpop.eup %6584  ;;  %v3190_v12 = vmul.f32 1.442695, %v3167_v42  ;;  %vm3137_vm6 = vcmp.eq.f32.partialorder %v10394_v34, -inf  ;;  %6592 = vpow2.f32 %v3188_v20  ;;  %v3168_v60 = vsub.f32 %v10195_v59, %v3152_v45 }
 0x961   : > { %v3153_v26 = vsel %vm3137_vm6, 0.0, %v10394_v34  ;;  %3212 = vadd.xlane.f32.xlu0 %v6585_v62  ;;  %v10405_v4 = vpop.xlane.xlu0 %3116 }
 0x962   : > { %6594 = vpow2.f32 %v3190_v12  ;;  %v3169_v46 = vsub.f32 %v10213_v49, %v3153_v26  ;;  %v3192_v52 = vmul.f32 1.442695, %v3168_v60  ;;  %vm3138_vm7 = vcmp.eq.f32.partialorder %v10405_v4, -inf }
 0x963   : > { %v10408_v40 = vpop.xlane.xlu1 %3118  ;;  %v3154_v24 = vsel %vm3138_vm7, 0.0, %v10405_v4 }
 0x964   : > { %v6587_v39 = vpop.eup %6586  ;;  %v3194_v8 = vmul.f32 1.442695, %v3169_v46  ;;  %vm3139_vm0 = vcmp.eq.f32.partialorder %v10408_v40, -inf  ;;  %6596 = vpow2.f32 %v3192_v52  ;;  %v3170_v27 = vsub.f32 %v10221_v9, %v3154_v24 }
 0x965   : > { %v3155_v51 = vsel %vm3139_vm0, 0.0, %v10408_v40  ;;  %3214 = vadd.xlane.f32.xlu0 %v6587_v39  ;;  %v10419_v57 = vpop.xlane.xlu0 %3120 }
 0x966   : > { %6598 = vpow2.f32 %v3194_v8  ;;  %v3171_v14 = vsub.f32 %v10237_v47, %v3155_v51  ;;  %v6589_v25 = vpop.eup %6588  ;;  %v3196_v1 = vmul.f32 1.442695, %v3170_v27  ;;  %vm13276_vm15 = vcmp.eq.f32.partialorder %v10419_v57, -inf }
 0x967   : > { %v10422_v21 = vpop.xlane.xlu1 %3122  ;;  %v3156_v13 = vsel %vm13276_vm15, 0.0, %v10419_v57 }
 0x968   : > { %v6591_v15 = vpop.eup %6590  ;;  %v3198_v54 = vmul.f32 1.442695, %v3171_v14  ;;  %vm3141_vm4 = vcmp.eq.f32.partialorder %v10422_v21, -inf  ;;  %6600 = vpow2.f32 %v3196_v1  ;;  %v3172_v10 = vsub.f32 %v10245_v7, %v3156_v13 }
 0x969   : > { %v3157_v29 = vsel %vm3141_vm4, 0.0, %v10422_v21  ;;  %3218 = vadd.xlane.f32.xlu1 %v6591_v15  ;;  %3216 = vadd.xlane.f32.xlu0 %v6589_v25  ;;  %v10433_v43 = vpop.xlane.xlu0 %3124 }
 0x96a   : > { %6602 = vpow2.f32 %v3198_v54  ;;  %v3173_v41 = vsub.f32 %v10257_v36, %v3157_v29  ;;  %v6593_v3 = vpop.eup %6592  ;;  %v3200_v19 = vmul.f32 1.442695, %v3172_v10  ;;  %vm13273_vm11 = vcmp.eq.f32.partialorder %v10433_v43, -inf }
 0x96b   : > { %v10436_v38 = vpop.xlane.xlu1 %3126  ;;  %v3158_v17 = vsel %vm13273_vm11, 0.0, %v10433_v43 }
 0x96c   : > { %v6595_v16 = vpop.eup %6594  ;;  %v3202_v55 = vmul.f32 1.442695, %v3173_v41  ;;  %vm13274_vm14 = vcmp.eq.f32.partialorder %v10436_v38, -inf  ;;  %6604 = vpow2.f32 %v3200_v19  ;;  %v3174_v31 = vsub.f32 %v10262_v22, %v3158_v17 }
 0x96d   : > { %v3159_v5 = vsel %vm13274_vm14, 0.0, %v10436_v38  ;;  %3222 = vadd.xlane.f32.xlu1 %v6595_v16  ;;  %3220 = vadd.xlane.f32.xlu0 %v6593_v3  ;;  %v10449_v24 = vpop.permute.xlu0 %3657 }
 0x96e   : > { %6606 = vpow2.f32 %v3202_v55  ;;  %v3175_v63 = vsub.f32 %v10267_v32, %v3159_v5  ;;  %v6597_v42 = vpop.eup %6596  ;;  %v3204_v20 = vmul.f32 1.442695, %v3174_v31 }
 0x96f   : > { %v10447_v8 = vpop.permute.xlu1 %3659 }
 0x970   : > { %v6599_v62 = vpop.eup %6598  ;;  %v3206_v12 = vmul.f32 1.442695, %v3175_v63  ;;  %6608 = vpow2.f32 %v3204_v20 }
 0x971   : > { %3226 = vadd.xlane.f32.xlu1 %v6599_v62  ;;  %3224 = vadd.xlane.f32.xlu0 %v6597_v42  ;;  %v10453_v51 = vpop.permute.xlu0 %3665 }
 0x972   : > { %6610 = vpow2.f32 %v3206_v12  ;;  %v6601_v45 = vpop.eup %6600 }
 0x973   : > { %v10451_v27 = vpop.permute.xlu1 %3661 }
 0x974   : > { %v6603_v60 = vpop.eup %6602 }
 0x975   : > { %3230 = vadd.xlane.f32.xlu1 %v6603_v60  ;;  %3228 = vadd.xlane.f32.xlu0 %v6601_v45  ;;  %v10457_v25 = vpop.permute.xlu0 %3669 }
 0x976   : > { %v6605_v26 = vpop.eup %6604 }
 0x977   : > { %v10455_v14 = vpop.permute.xlu1 %3663 }
 0x978   : > { %v6607_v46 = vpop.eup %6606 }
 0x979   : > { %3234 = vadd.xlane.f32.xlu1 %v6607_v46  ;;  %3232 = vadd.xlane.f32.xlu0 %v6605_v26  ;;  %v10461_v15 = vpop.permute.xlu0 %3673 }
 0x97a   : > { %v6609_v52 = vpop.eup %6608 }
 0x97b   : > { %v10459_v1 = vpop.permute.xlu1 %3667 }
 0x97c   : > { %v6611_v39 = vpop.eup %6610 }
 0x97d   : > { %3238 = vadd.xlane.f32.xlu1 %v6611_v39  ;;  %3236 = vadd.xlane.f32.xlu0 %v6609_v52  ;;  %v10465_v13 = vpop.permute.xlu0 %3677 }
 0x97f   : > { %v10463_v54 = vpop.permute.xlu1 %3671 }
 0x981   : > { %v10469_v29 = vpop.permute.xlu0 %3681 }
 0x983   : > { %v10467_v10 = vpop.permute.xlu1 %3675 }
 0x985   : > { %v10473_v3 = vpop.permute.xlu0 %3685 }
 0x986   : > { %13616 = vst [vmem:[#allocation6_spill] sm:$0xff] %v10473_v3 }
 0x987   : > { %v10471_v41 = vpop.permute.xlu1 %3679 }
 0x98b   : > { %v10475_v19 = vpop.permute.xlu1 %3683 }
 0x98f   : > { %v10486_v5 = vpop.permute.xlu1 %3687 }
 0x990   : > { %13617 = vst [vmem:[#allocation7_spill] sm:$0xff] %v10486_v5 }
 0x9b6   : > { %v10477_v16 = vpop.xlane.xlu0 %3338 }
 0x9b7   : > { %vm13275_vm11 = vcmp.eq.f32.partialorder %v10477_v16, -inf }
 0x9b8   : > { %v3401_v55 = vsel %vm13275_vm11, 0.0, %v10477_v16 }
 0x9b9   : > { %v3417_v17 = vsub.f32 %v10047_v6, %v3401_v55 }
 0x9ba   : > { %v10484_v31 = vpop.xlane.xlu0 %3344 }
 0x9bb   : > { %v3433_v63 = vmul.f32 1.442695, %v3417_v17  ;;  %vm13277_vm14 = vcmp.eq.f32.partialorder %v10484_v31, -inf }
 0x9bc   : > { %v3403_v20 = vsel %vm13277_vm14, 0.0, %v10484_v31 }
 0x9bd   : > { %6612 = vpow2.f32 %v3433_v63  ;;  %v3419_v12 = vsub.f32 %v10115_v58, %v3403_v20 }
 0x9be   : > { %v10489_v42 = vpop.xlane.xlu0 %3347 }
 0x9bf   : > { %vm13279_vm11 = vcmp.eq.f32.partialorder %v10489_v42, -inf }
 0x9c0   : > { %v10494_v62 = vpop.xlane.xlu1 %3341  ;;  %v3404_v26 = vsel %vm13279_vm11, 0.0, %v10489_v42 }
 0x9c1   : > { %vm13278_vm15 = vcmp.eq.f32.partialorder %v10494_v62, -inf  ;;  %v3420_v55 = vsub.f32 %v10138_v30, %v3404_v26 }
 0x9c2   : > { %v3402_v6 = vsel %vm13278_vm15, 0.0, %v10494_v62  ;;  %v10503_v60 = vpop.xlane.xlu0 %3350 }
 0x9c3   : > { %v3418_v45 = vsub.f32 %v10092_v53, %v3402_v6  ;;  %vm13280_vm14 = vcmp.eq.f32.partialorder %v10503_v60, -inf  ;;  %v3437_v53 = vmul.f32 1.442695, %v3419_v12  ;;  %v3439_v12 = vmul.f32 1.442695, %v3420_v55 }
 0x9c4   : > { %v10509_v46 = vpop.xlane.xlu1 %3353  ;;  %v3405_v39 = vsel %vm13280_vm14, 0.0, %v10503_v60 }
 0x9c5   : > { %v3435_v52 = vmul.f32 1.442695, %v3418_v45  ;;  %vm13282_vm15 = vcmp.eq.f32.partialorder %v10509_v46, -inf  ;;  %v3421_v58 = vsub.f32 %v10156_v35, %v3405_v39 }
 0x9c6   : > { %v10517_v17 = vpop.xlane.xlu0 %3356  ;;  %v3406_v6 = vsel %vm13282_vm15, 0.0, %v10509_v46 }
 0x9c7   : > { %6614 = vpow2.f32 %v3435_v52  ;;  %v6613_v63 = vpop.eup %6612  ;;  %v3441_v20 = vmul.f32 1.442695, %v3421_v58  ;;  %vm13281_vm11 = vcmp.eq.f32.partialorder %v10517_v17, -inf  ;;  %v3422_v26 = vsub.f32 %v10159_v50, %v3406_v6 }
 0x9c8   : > { %v10523_v45 = vpop.xlane.xlu1 %3359  ;;  %v3407_v35 = vsel %vm13281_vm11, 0.0, %v10517_v17  ;;  %3481 = vrot.lane.b32.xlu0 %v6613_v63, %s7179_s10 }
 0x9c9   : > { %vm13283_vm14 = vcmp.eq.f32.partialorder %v10523_v45, -inf  ;;  %6616 = vpow2.f32 %v3441_v20  ;;  %v3423_v30 = vsub.f32 %v10180_v23, %v3407_v35  ;;  %v3443_v23 = vmul.f32 1.442695, %v3422_v26 }
 0x9ca   : > { %6618 = vpow2.f32 %v3437_v53  ;;  %v10532_v52 = vpop.xlane.xlu0 %3362  ;;  %v3408_v58 = vsel %vm13283_vm14, 0.0, %v10523_v45 }
 0x9cb   : > { %v3445_v39 = vmul.f32 1.442695, %v3423_v30  ;;  %vm13284_vm11 = vcmp.eq.f32.partialorder %v10532_v52, -inf  ;;  %v3424_v53 = vsub.f32 %v10186_v56, %v3408_v58 }
 0x9cc   : > { %v10538_v5 = vpop.xlane.xlu1 %3365  ;;  %v3409_v63 = vsel %vm13284_vm11, 0.0, %v10532_v52 }
 0x9cd   : > { %vm13286_vm15 = vcmp.eq.f32.partialorder %v10538_v5, -inf  ;;  %6620 = vpow2.f32 %v3445_v39  ;;  %v3425_v50 = vsub.f32 %v10195_v59, %v3409_v63 }
 0x9ce   : > { %6622 = vpow2.f32 %v3439_v12  ;;  %v10546_v55 = vpop.xlane.xlu0 %3368  ;;  %v3410_v6 = vsel %vm13286_vm15, 0.0, %v10538_v5  ;;  %v3447_v12 = vmul.f32 1.442695, %v3424_v53 }
 0x9cf   : > { %v3449_v20 = vmul.f32 1.442695, %v3425_v50  ;;  %vm13285_vm14 = vcmp.eq.f32.partialorder %v10546_v55, -inf  ;;  %v3426_v26 = vsub.f32 %v10213_v49, %v3410_v6 }
 0x9d0   : > { %v10552_v35 = vpop.xlane.xlu1 %3371  ;;  %v3411_v59 = vsel %vm13285_vm14, 0.0, %v10546_v55 }
 0x9d1   : > { %v6615_v30 = vpop.eup %6614  ;;  %vm13288_vm11 = vcmp.eq.f32.partialorder %v10552_v35, -inf  ;;  %6624 = vpow2.f32 %v3449_v20  ;;  %v3427_v56 = vsub.f32 %v10221_v9, %v3411_v59 }
 0x9d2   : > { %3483 = vrot.lane.b32.xlu1 %v6615_v30, %s7179_s10  ;;  %6626 = vpow2.f32 %v3443_v23  ;;  %v10561_v39 = vpop.xlane.xlu0 %3374  ;;  %v3412_v50 = vsel %vm13288_vm11, 0.0, %v10552_v35  ;;  %v3451_v23 = vmul.f32 1.442695, %v3426_v26 }
 0x9d3   : > { %v6617_v58 = vpop.eup %6616  ;;  %v3453_v63 = vmul.f32 1.442695, %v3427_v56  ;;  %vm13287_vm14 = vcmp.eq.f32.partialorder %v10561_v39, -inf  ;;  %v3428_v53 = vsub.f32 %v10237_v47, %v3412_v50 }
 0x9d4   : > { %v10567_v3 = vpop.xlane.xlu1 %3377  ;;  %v6619_v20 = vpop.eup %6618  ;;  %v3413_v9 = vsel %vm13287_vm14, 0.0, %v10561_v39  ;;  %3489 = vrot.lane.b32.xlu0 %v6617_v58, %s7179_s10 }
 0x9d5   : > { %vm3398_vm15 = vcmp.eq.f32.partialorder %v10567_v3, -inf  ;;  %6628 = vpow2.f32 %v3453_v63  ;;  %v3429_v49 = vsub.f32 %v10245_v7, %v3413_v9  ;;  %v3455_v26 = vmul.f32 1.442695, %v3428_v53 }
 0x9d6   : > { %3485 = vrot.lane.b32.xlu1 %v6619_v20, %s7179_s10  ;;  %6630 = vpow2.f32 %v3447_v12  ;;  %v3414_v6 = vsel %vm3398_vm15, 0.0, %v10567_v3  ;;  %v10580_v30 = vpop.xlane.xlu0 %3380 }
 0x9d7   : > { %v6621_v59 = vpop.eup %6620  ;;  %v3457_v56 = vmul.f32 1.442695, %v3429_v49  ;;  %vm3399_vm14 = vcmp.eq.f32.partialorder %v10580_v30, -inf  ;;  %v3430_v47 = vsub.f32 %v10257_v36, %v3414_v6 }
 0x9d8   : > { %v10583_v58 = vpop.xlane.xlu1 %3383  ;;  %v6623_v63 = vpop.eup %6622  ;;  %v3415_v7 = vsel %vm3399_vm14, 0.0, %v10580_v30  ;;  %3493 = vrot.lane.b32.xlu0 %v6621_v59, %s7179_s10 }
 0x9d9   : > { %vm3400_vm11 = vcmp.eq.f32.partialorder %v10583_v58, -inf  ;;  %6632 = vpow2.f32 %v3457_v56  ;;  %v3431_v12 = vsub.f32 %v10262_v22, %v3415_v7  ;;  %v3459_v59 = vmul.f32 1.442695, %v3430_v47 }
 0x9da   : > { %3487 = vrot.lane.b32.xlu1 %v6623_v63, %s7179_s10  ;;  %6634 = vpow2.f32 %v3451_v23  ;;  %v3416_v9 = vsel %vm3400_vm11, 0.0, %v10583_v58 }
 0x9db   : > { %v6625_v50 = vpop.eup %6624  ;;  %v3461_v20 = vmul.f32 1.442695, %v3431_v12  ;;  %v3432_v36 = vsub.f32 %v10267_v32, %v3416_v9 }
 0x9dc   : > { %v6627_v49 = vpop.eup %6626  ;;  %3497 = vrot.lane.b32.xlu0 %v6625_v50, %s7179_s10 }
 0x9dd   : > { %6636 = vpow2.f32 %v3461_v20  ;;  %v3463_v56 = vmul.f32 1.442695, %v3432_v36 }
 0x9de   : > { %3491 = vrot.lane.b32.xlu1 %v6627_v49, %s7179_s10  ;;  %6638 = vpow2.f32 %v3455_v26 }
 0x9df   : > { %v6629_v22 = vpop.eup %6628  ;;  %v3209_v23 = vpop.xlane.xlu0 %3208  ;;  %6640 = vpow2.f32 %v3459_v59 }
 0x9e0   : > { %v6631_v6 = vpop.eup %6630  ;;  %3501 = vrot.lane.b32.xlu0 %v6629_v22, %s7179_s10  ;;  %v3240_v53 = vsel %vm3128_vm12, 1.0, %v3209_v23  ;;  %vm3320_vm12 = vcmask 39968  }
 0x9e1   : > { %6642 = vlog2.f32 %v3240_v53 }
 0x9e2   : > { %3495 = vrot.lane.b32.xlu1 %v6631_v6, %s7179_s10  ;;  %6644 = vpow2.f32 %v3463_v56 }
 0x9e3   : > { %v6633_v63 = vpop.eup %6632 }
 0x9e4   : > { %v6635_v7 = vpop.eup %6634  ;;  %3505 = vrot.lane.b32.xlu0 %v6633_v63, %s7179_s10 }
 0x9e6   : > { %3499 = vrot.lane.b32.xlu1 %v6635_v7, %s7179_s10 }
 0x9e7   : > { %v6637_v32 = vpop.eup %6636 }
 0x9e8   : > { %v6639_v47 = vpop.eup %6638  ;;  %3509 = vrot.lane.b32.xlu0 %v6637_v32, %s7179_s10 }
 0x9e9   : > { %v3211_v12 = vpop.xlane.xlu1 %3210  ;;  %v6641_v50 = vpop.eup %6640 }
 0x9ea   : > { %3503 = vrot.lane.b32.xlu1 %v6639_v47, %s7179_s10  ;;  %v3241_v26 = vsel %vm3129_vm9, 1.0, %v3211_v12  ;;  %vm13618_vm9 = vcmp.eq.f32.partialorder %v10419_v57, -inf }
 0x9eb   : > { %6646 = vlog2.f32 %v3241_v26  ;;  %v6643_v20 = vpop.eup %6642 }
 0x9ec   : > { %v3257_v9 = vmul.f32 0.6931472, %v6643_v20  ;;  %v6645_v22 = vpop.eup %6644 }
 0x9ee   : > { %3507 = vrot.lane.b32.xlu1 %v6641_v50, %s7179_s10  ;;  %v3213_v49 = vpop.xlane.xlu0 %3212  ;;  %v10613_v36 = vadd.f32 %v3257_v9, %v10325_v44 }
 0x9ef   : > { %v3242_v59 = vsel %vm3130_vm8, 1.0, %v3213_v49  ;;  %vm13619_vm8 = vcmp.eq.f32.partialorder %v10436_v38, -inf }
 0x9f0   : > { %6648 = vlog2.f32 %v3242_v59  ;;  %v3304_v6 = vsub.f32 0.0, %v10613_v36 }
 0x9f2   : > { %3511 = vrot.lane.b32.xlu1 %v6645_v22, %s7179_s10  ;;  %v3215_v23 = vpop.xlane.xlu0 %3214  ;;  %3321 = vst.msk [vmem:[%s7665_s21] sm:$0xff] %vm3320_vm12, %v3304_v6 }
 0x9f3   : > { %v3243_v53 = vsel %vm3131_vm10, 1.0, %v3215_v23  ;;  %vm13620_vm10 = vcmp.eq.f32.partialorder %v10433_v43, -inf }
 0x9f4   : > { %6650 = vlog2.f32 %v3243_v53 }
 0x9f5   : > { %v6647_v56 = vpop.eup %6646 }
 0x9f6   : > { %v3219_v63 = vpop.xlane.xlu1 %3218  ;;  %v3217_v7 = vpop.xlane.xlu0 %3216  ;;  %v3259_v44 = vmul.f32 0.6931472, %v6647_v56 }
 0x9f7   : > { %v3245_v32 = vsel %vm3133_vm3, 1.0, %v3219_v63  ;;  %v3244_v47 = vsel %vm3132_vm13, 1.0, %v3217_v7  ;;  %vm13621_vm13 = vcmask 15360  }
 0x9f8   : > { %6652 = vlog2.f32 %v3245_v32  ;;  %v10626_v12 = vadd.f32 %v3259_v44, %v10342_v61  ;;  %vm13622_vm3 = vmmov %vm13621_vm13 }
 0x9f9   : > { %6654 = vlog2.f32 %v3244_v47 }
 0x9fa   : > { %v6649_v26 = vpop.eup %6648  ;;  %v3223_v50 = vpop.xlane.xlu1 %3222  ;;  %v3305_v9 = vsub.f32 0.0, %v10626_v12 }
 0x9fb   : > { %v3221_v20 = vpop.xlane.xlu0 %3220  ;;  %v3261_v49 = vmul.f32 0.6931472, %v6649_v26  ;;  %v3247_v59 = vsel %vm3135_vm5, 1.0, %v3223_v50 }
 0x9fc   : > { %6656 = vlog2.f32 %v3247_v59  ;;  %v3246_v22 = vsel %vm3134_vm1, 1.0, %v3221_v20  ;;  %3322 = vst.msk [vmem:[%s7665_s21 + $0x8] sm:$0xff] %vm3320_vm12, %v3305_v9  ;;  %vm13623_vm1 = vmmov %vm13622_vm3 }
 0x9fd   : > { %v10636_v61 = vadd.f32 %v3261_v49, %v10349_v48  ;;  %6658 = vlog2.f32 %v3246_v22  ;;  %vm13624_vm5 = vmmov %vm13623_vm1 }
 0x9fe   : > { %v6651_v6 = vpop.eup %6650  ;;  %v3227_v23 = vpop.xlane.xlu1 %3226 }
 0x9ff   : > { %v3225_v53 = vpop.xlane.xlu0 %3224  ;;  %v3306_v56 = vsub.f32 0.0, %v10636_v61  ;;  %v3263_v63 = vmul.f32 0.6931472, %v6651_v6  ;;  %v3249_v7 = vsel %vm3137_vm6, 1.0, %v3227_v23  ;;  %vm13626_vm6 = vmmov %vm13623_vm1 }
 0xa00   : > { %6660 = vlog2.f32 %v3249_v7  ;;  %v3248_v44 = vsel %vm3136_vm2, 1.0, %v3225_v53  ;;  %vm13625_vm2 = vmmov %vm13623_vm1 }
 0xa01   : > { %3323 = vst.msk [vmem:[%s7665_s21 + $0x10] sm:$0xff] %vm3320_vm12, %v3306_v56  ;;  %v10646_v48 = vadd.f32 %v3263_v63, %v10356_v2  ;;  %6662 = vlog2.f32 %v3248_v44 }
 0xa02   : > { %v6653_v32 = vpop.eup %6652  ;;  %v3231_v47 = vpop.xlane.xlu1 %3230 }
 0xa03   : > { %v3229_v26 = vpop.xlane.xlu0 %3228  ;;  %v6655_v50 = vpop.eup %6654  ;;  %v3307_v20 = vsub.f32 0.0, %v10646_v48  ;;  %v3267_v9 = vmul.f32 0.6931472, %v6653_v32  ;;  %v3251_v49 = vsel %vm3139_vm0, 1.0, %v3231_v47  ;;  %vm13628_vm0 = vmmov %vm13623_vm1 }
 0xa04   : > { %v3265_v59 = vmul.f32 0.6931472, %v6655_v50  ;;  %6664 = vlog2.f32 %v3251_v49  ;;  %v3250_v22 = vsel %vm3138_vm7, 1.0, %v3229_v26  ;;  %vm13627_vm7 = vmmov %vm13623_vm1 }
 0xa05   : > { %3324 = vst.msk [vmem:[%s7665_s21 + $0x18] sm:$0xff] %vm3320_vm12, %v3307_v20  ;;  %v10656_v2 = vadd.f32 %v3267_v9, %v10366_v37  ;;  %6666 = vlog2.f32 %v3250_v22 }
 0xa06   : > { %v6657_v6 = vpop.eup %6656  ;;  %v10659_v23 = vadd.f32 %v3265_v59, %v10363_v0  ;;  %v3235_v53 = vpop.xlane.xlu1 %3234 }
 0xa07   : > { %v3233_v56 = vpop.xlane.xlu0 %3232  ;;  %v6659_v63 = vpop.eup %6658  ;;  %v3309_v7 = vsub.f32 0.0, %v10656_v2  ;;  %v3271_v44 = vmul.f32 0.6931472, %v6657_v6  ;;  %v3253_v32 = vsel %vm3141_vm4, 1.0, %v3235_v53  ;;  %vm13629_vm4 = vmmov %vm13628_vm0 }
 0xa08   : > { %v3308_v47 = vsub.f32 0.0, %v10659_v23  ;;  %v3269_v26 = vmul.f32 0.6931472, %v6659_v63  ;;  %6668 = vlog2.f32 %v3253_v32  ;;  %v3252_v0 = vsel %vm13618_vm9, 1.0, %v3233_v56  ;;  %vm13631_vm9 = vmmov %vm13628_vm0 }
 0xa09   : > { %3326 = vst.msk [vmem:[%s7665_s21 + $0x28] sm:$0xff] %vm3320_vm12, %v3309_v7  ;;  %v10668_v37 = vadd.f32 %v3271_v44, %v10380_v28  ;;  %6670 = vlog2.f32 %v3252_v0 }
 0xa0a   : > { %v6661_v50 = vpop.eup %6660  ;;  %3325 = vst.msk [vmem:[%s7665_s21 + $0x20] sm:$0xff] %vm3320_vm12, %v3308_v47  ;;  %v10675_v20 = vadd.f32 %v3269_v26, %v10377_v11  ;;  %v3239_v9 = vpop.xlane.xlu1 %3238 }
 0xa0b   : > { %v3237_v49 = vpop.xlane.xlu0 %3236  ;;  %v6663_v59 = vpop.eup %6662  ;;  %v3311_v22 = vsub.f32 0.0, %v10668_v37  ;;  %v3275_v6 = vmul.f32 0.6931472, %v6661_v50  ;;  %v3255_v28 = vsel %vm13619_vm8, 1.0, %v3239_v9  ;;  %vm13632_vm8 = vmmov %vm13628_vm0 }
 0xa0c   : > { %v3310_v53 = vsub.f32 0.0, %v10675_v20  ;;  %v3273_v56 = vmul.f32 0.6931472, %v6663_v59  ;;  %6672 = vlog2.f32 %v3255_v28  ;;  %v3254_v63 = vsel %vm13620_vm10, 1.0, %v3237_v49  ;;  %vm13633_vm10 = vmmov %vm13628_vm0 }
 0xa0d   : > { %3328 = vst.msk [vmem:[%s7665_s21 + $0x38] sm:$0xff] %vm3320_vm12, %v3311_v22  ;;  %v10684_v11 = vadd.f32 %v3275_v6, %v10394_v34  ;;  %6674 = vlog2.f32 %v3254_v63 }
 0xa0e   : > { %v6665_v7 = vpop.eup %6664  ;;  %3327 = vst.msk [vmem:[%s7665_s21 + $0x30] sm:$0xff] %vm3320_vm12, %v3310_v53  ;;  %v10691_v44 = vadd.f32 %v3273_v56, %v10391_v18 }
 0xa0f   : > { %v6667_v32 = vpop.eup %6666  ;;  %v3313_v47 = vsub.f32 0.0, %v10684_v11  ;;  %v3279_v26 = vmul.f32 0.6931472, %v6665_v7 }
 0xa10   : > { %v3312_v0 = vsub.f32 0.0, %v10691_v44  ;;  %v3277_v34 = vmul.f32 0.6931472, %v6667_v32 }
 0xa11   : > { %3330 = vst.msk [vmem:[%s7665_s21 + $0x48] sm:$0xff] %vm3320_vm12, %v3313_v47  ;;  %v10698_v50 = vadd.f32 %v3279_v26, %v10408_v40 }
 0xa12   : > { %v6669_v9 = vpop.eup %6668  ;;  %3329 = vst.msk [vmem:[%s7665_s21 + $0x40] sm:$0xff] %vm3320_vm12, %v3312_v0  ;;  %v10703_v18 = vadd.f32 %v3277_v34, %v10405_v4 }
 0xa13   : > { %v3315_v49 = vsub.f32 0.0, %v10698_v50  ;;  %v3283_v59 = vmul.f32 0.6931472, %v6669_v9  ;;  %v6671_v22 = vpop.eup %6670 }
 0xa14   : > { %v3314_v6 = vsub.f32 0.0, %v10703_v18  ;;  %v3281_v28 = vmul.f32 0.6931472, %v6671_v22 }
 0xa15   : > { %3332 = vst.msk [vmem:[%s7665_s21 + $0x58] sm:$0xff] %vm3320_vm12, %v3315_v49  ;;  %v10710_v40 = vadd.f32 %v3283_v59, %v10422_v21 }
 0xa16   : > { %v6673_v53 = vpop.eup %6672  ;;  %3331 = vst.msk [vmem:[%s7665_s21 + $0x50] sm:$0xff] %vm3320_vm12, %v3314_v6  ;;  %v10716_v56 = vadd.f32 %v3281_v28, %v10419_v57 }
 0xa17   : > { %v3317_v4 = vsub.f32 0.0, %v10710_v40  ;;  %v3287_v63 = vmul.f32 0.6931472, %v6673_v53  ;;  %v6675_v7 = vpop.eup %6674 }
 0xa18   : > { %v3316_v32 = vsub.f32 0.0, %v10716_v56  ;;  %v3285_v21 = vmul.f32 0.6931472, %v6675_v7 }
 0xa19   : > { %3334 = vst.msk [vmem:[%s7665_s21 + $0x68] sm:$0xff] %vm3320_vm12, %v3317_v4  ;;  %v10722_v47 = vadd.f32 %v3287_v63, %v10436_v38 }
 0xa1a   : > { %3333 = vst.msk [vmem:[%s7665_s21 + $0x60] sm:$0xff] %vm3320_vm12, %v3316_v32  ;;  %v10728_v0 = vadd.f32 %v3285_v21, %v10433_v43 }
 0xa1b   : > { %v3319_v26 = vsub.f32 0.0, %v10722_v47 }
 0xa1c   : > { %v3318_v57 = vsub.f32 0.0, %v10728_v0 }
 0xa1d   : > { %3336 = vst.msk [vmem:[%s7665_s21 + $0x78] sm:$0xff] %vm3320_vm12, %v3319_v26 }
 0xa1e   : > { %3335 = vst.msk [vmem:[%s7665_s21 + $0x70] sm:$0xff] %vm3320_vm12, %v3318_v57  ;;  %vm13630_vm12 = vmmov %vm13628_vm0 }
 0xa3a   : > { %v3482_v34 = vpop.permute.xlu0 %3481 }
 0xa3b   : > { %v3529_v9 = vsel %vm13621_vm13, %v3482_v34, 0.0  ;;  %vm13634_vm13 = vmmov %vm13628_vm0 }
 0xa3c   : > { %3530 = vadd.xlane.f32.xlu0 %v3529_v9 }
 0xa44   : > { %v3484_v38 = vpop.permute.xlu1 %3483 }
 0xa45   : > { %v3532_v49 = vsel %vm13622_vm3, %v3484_v38, 0.0  ;;  %vm13635_vm3 = vmmov %vm13628_vm0 }
 0xa46   : > { %3533 = vadd.xlane.f32.xlu1 %v3532_v49  ;;  %v3490_v59 = vpop.permute.xlu0 %3489 }
 0xa47   : > { %v3541_v4 = vsel %vm13625_vm2, %v3490_v59, 0.0  ;;  %vm13638_vm2 = vcmp.eq.f32.partialorder %v10494_v62, -inf }
 0xa48   : > { %v3486_v22 = vpop.permute.xlu1 %3485 }
 0xa49   : > { %v3535_v6 = vsel %vm13623_vm1, %v3486_v22, 0.0  ;;  %vm13636_vm1 = vmmov %vm13628_vm0 }
 0xa4a   : > { %3536 = vadd.xlane.f32.xlu0 %v3535_v6  ;;  %v3494_v43 = vpop.permute.xlu0 %3493 }
 0xa4b   : > { %v3547_v21 = vsel %vm13627_vm7, %v3494_v43, 0.0  ;;  %vm13640_vm7 = vcmp.eq.s32.totalorder %v7822_v33, 0 }
 0xa4c   : > { %v3488_v28 = vpop.permute.xlu1 %3487 }
 0xa4d   : > { %v3538_v53 = vsel %vm13624_vm5, %v3488_v28, 0.0  ;;  %vm13637_vm5 = vcmp.eq.f32.partialorder %v10477_v16, -inf }
 0xa4e   : > { %3539 = vadd.xlane.f32.xlu1 %v3538_v53  ;;  %3542 = vadd.xlane.f32.xlu0 %v3541_v4  ;;  %v3498_v63 = vpop.permute.xlu0 %3497 }
 0xa4f   : > { %v3553_v9 = vsel %vm13629_vm4, %v3498_v63, 0.0  ;;  %vm13642_vm4 = vcmp.eq.f32.partialorder %v10503_v60, -inf }
 0xa50   : > { %v3492_v7 = vpop.permute.xlu1 %3491 }
 0xa51   : > { %v3544_v32 = vsel %vm13626_vm6, %v3492_v7, 0.0  ;;  %vm13639_vm6 = vcmp.eq.f32.partialorder %v10484_v31, -inf }
 0xa52   : > { %3545 = vadd.xlane.f32.xlu1 %v3544_v32  ;;  %3548 = vadd.xlane.f32.xlu0 %v3547_v21  ;;  %v3502_v26 = vpop.permute.xlu0 %3501 }
 0xa53   : > { %v3559_v22 = vsel %vm13631_vm9, %v3502_v26, 0.0  ;;  %vm13644_vm9 = vcmp.eq.f32.partialorder %v10509_v46, -inf }
 0xa54   : > { %v3496_v57 = vpop.permute.xlu1 %3495 }
 0xa55   : > { %v3550_v34 = vsel %vm13628_vm0, %v3496_v57, 0.0  ;;  %vm13641_vm0 = vcmp.eq.f32.partialorder %v10489_v42, -inf }
 0xa56   : > { %3551 = vadd.xlane.f32.xlu1 %v3550_v34  ;;  %3554 = vadd.xlane.f32.xlu0 %v3553_v9  ;;  %v3506_v38 = vpop.permute.xlu0 %3505 }
 0xa57   : > { %v3565_v28 = vsel %vm13633_vm10, %v3506_v38, 0.0  ;;  %vm13646_vm10 = vcmp.eq.f32.partialorder %v10523_v45, -inf }
 0xa58   : > { %v3500_v49 = vpop.permute.xlu1 %3499 }
 0xa59   : > { %v3556_v59 = vsel %vm13630_vm12, %v3500_v49, 0.0  ;;  %vm13643_vm12 = vcmp.eq.s32.totalorder %v7822_v33, 127 }
 0xa5a   : > { %3557 = vadd.xlane.f32.xlu1 %v3556_v59  ;;  %3560 = vadd.xlane.f32.xlu0 %v3559_v22  ;;  %v3510_v53 = vpop.permute.xlu0 %3509  ;;  %v3689_v22 = vsub.f32 %v10449_v24, %v10613_v36 }
 0xa5b   : > { %v3571_v7 = vsel %vm13635_vm3, %v3510_v53, 0.0  ;;  %vm13648_vm3 = vmmov %vm13640_vm7 }
 0xa5c   : > { %v3504_v6 = vpop.permute.xlu1 %3503 }
 0xa5d   : > { %v3562_v43 = vsel %vm13632_vm8, %v3504_v6, 0.0  ;;  %vm13645_vm8 = vcmp.eq.f32.partialorder %v10517_v17, -inf }
 0xa5e   : > { %3563 = vadd.xlane.f32.xlu1 %v3562_v43  ;;  %3566 = vadd.xlane.f32.xlu0 %v3565_v28 }
 0xa60   : > { %v3508_v4 = vpop.permute.xlu1 %3507 }
 0xa61   : > { %v3568_v63 = vsel %vm13634_vm13, %v3508_v4, 0.0  ;;  %vm13647_vm13 = vcmp.eq.f32.partialorder %v10532_v52, -inf }
 0xa62   : > { %3569 = vadd.xlane.f32.xlu1 %v3568_v63  ;;  %3572 = vadd.xlane.f32.xlu0 %v3571_v7  ;;  %v3705_v63 = vsel %vm13640_vm7, 0.0, %v3689_v22  ;;  %v3690_v22 = vsub.f32 %v10447_v8, %v10626_v12  ;;  %vm13653_vm7 = vcmp.eq.f32.partialorder %v10538_v5, -inf }
 0xa64   : > { %v3512_v32 = vpop.permute.xlu1 %3511 }
 0xa65   : > { %v3574_v21 = vsel %vm13636_vm1, %v3512_v32, 0.0  ;;  %vm13649_vm1 = vmmov %vm13648_vm3 }
 0xa66   : > { %3575 = vadd.xlane.f32.xlu1 %v3574_v21  ;;  %v3753_v21 = vld [vmem:[%s7274_s9 + $0x28] sm:$0xff] }
 0xac9   : > { %v3531_v26 = vpop.xlane.xlu0 %3530 }
 0xaca   : > { %v3577_v57 = vsel %vm13637_vm5, 1.0, %v3531_v26  ;;  %vm13650_vm5 = vmmov %vm13643_vm12 }
 0xacb   : > { %6676 = vlog2.f32 %v3577_v57 }
 0xad3   : > { %v3534_v34 = vpop.xlane.xlu1 %3533 }
 0xad4   : > { %v3578_v9 = vsel %vm13638_vm2, 1.0, %v3534_v34  ;;  %vm13651_vm2 = vmmov %vm13649_vm1 }
 0xad5   : > { %6678 = vlog2.f32 %v3578_v9  ;;  %v6677_v38 = vpop.eup %6676 }
 0xad6   : > { %v3594_v49 = vmul.f32 0.6931472, %v6677_v38 }
 0xad7   : > { %v3537_v59 = vpop.xlane.xlu0 %3536 }
 0xad8   : > { %v3579_v6 = vsel %vm13639_vm6, 1.0, %v3537_v59  ;;  %v3625_v43 = vadd.f32 %v3594_v49, %v10477_v16  ;;  %v10773_v16 = vld [vmem:[%s13202_s2] ss:$0 sm:$0xff]  ;;  %vm13652_vm6 = vmmov %vm13649_vm1 }
 0xad9   : > { %6680 = vlog2.f32 %v3579_v6  ;;  %v3691_v6 = vsub.f32 %v10451_v27, %v10636_v61 }
 0xada   : > { %v3641_v28 = vsub.f32 %v3625_v43, %v10613_v36 }
 0xadb   : > { %v3540_v53 = vpop.xlane.xlu1 %3539  ;;  %v3543_v4 = vpop.xlane.xlu0 %3542 }
 0xadc   : > { %v3580_v7 = vsel %vm13641_vm0, 1.0, %v3540_v53  ;;  %v3581_v32 = vsel %vm13642_vm4, 1.0, %v3543_v4  ;;  %v3721_v24 = vsel %vm13643_vm12, %v3641_v28, %v3705_v63  ;;  %v3692_v53 = vsub.f32 %v10455_v14, %v10646_v48  ;;  %vm13655_vm4 = vmmov %vm13649_vm1 }
 0xadd   : > { %6682 = vlog2.f32 %v3580_v7  ;;  %v3737_v36 = vadd.f32 %v10773_v16, %v3721_v24  ;;  %v3694_v4 = vsub.f32 %v10459_v1, %v10656_v2  ;;  %v3706_v24 = vsel %vm13648_vm3, 0.0, %v3690_v22  ;;  %vm13656_vm12 = vmmov %vm13649_vm1 }
 0xade   : > { %6684 = vlog2.f32 %v3581_v32  ;;  %v3707_v14 = vsel %vm13649_vm1, 0.0, %v3691_v6  ;;  %v3693_v1 = vsub.f32 %v10453_v51, %v10659_v23  ;;  %v3695_v51 = vsub.f32 %v10457_v25, %v10675_v20  ;;  %vm13661_vm3 = vmmov %vm13650_vm5 }
 0xadf   : > { %v6679_v26 = vpop.eup %6678  ;;  %v3546_v57 = vpop.xlane.xlu1 %3545  ;;  %v10778_v49 = vadd.f32 %v3753_v21, %v3737_v36  ;;  %vm13654_vm0 = vcmp.eq.f32.partialorder %v10546_v55, -inf }
 0xae0   : > { %v3549_v34 = vpop.xlane.xlu0 %3548  ;;  %v3596_v9 = vmul.f32 0.6931472, %v6679_v26  ;;  %v3582_v38 = vsel %vm13644_vm9, 1.0, %v3546_v57  ;;  %v3754_v26 = vld [vmem:[%s7274_s9 + $0x68] sm:$0xff]  ;;  %vm13657_vm9 = vmmov %vm13650_vm5 }
 0xae1   : > { %v3583_v59 = vsel %vm13645_vm8, 1.0, %v3549_v34  ;;  %6686 = vlog2.f32 %v3582_v38  ;;  %3785 = vmax.xlane.f32.xlu0 %v10778_v49  ;;  %v3708_v34 = vsel %vm13651_vm2, 0.0, %v3692_v53  ;;  %v3709_v53 = vsel %vm13655_vm4, 0.0, %v3693_v1  ;;  %vm13658_vm8 = vmmov %vm13649_vm1 }
 0xae2   : > { %v3626_v43 = vadd.f32 %v3596_v9, %v10494_v62  ;;  %6688 = vlog2.f32 %v3583_v59  ;;  %v3710_v9 = vsel %vm13652_vm6, 0.0, %v3694_v4  ;;  %vm13663_vm2 = vmmov %vm13661_vm3 }
 0xae3   : > { %v6681_v28 = vpop.eup %6680  ;;  %v3552_v63 = vpop.xlane.xlu1 %3551  ;;  %vm13666_vm6 = vmmov %vm13663_vm2 }
 0xae4   : > { %v3555_v7 = vpop.xlane.xlu0 %3554  ;;  %v3642_v8 = vsub.f32 %v3626_v43, %v10626_v12  ;;  %v3598_v32 = vmul.f32 0.6931472, %v6681_v28  ;;  %v3584_v27 = vsel %vm13646_vm10, 1.0, %v3552_v63  ;;  %v3696_v12 = vsub.f32 %v10463_v54, %v10668_v37  ;;  %vm13670_vm4 = vmmov %vm13649_vm1 }
 0xae5   : > { %v3585_v62 = vsel %vm13647_vm13, 1.0, %v3555_v7  ;;  %6690 = vlog2.f32 %v3584_v27  ;;  %v3711_v27 = vsel %vm13658_vm8, 0.0, %v3695_v51  ;;  %vm13659_vm10 = vcmp.eq.f32.partialorder %v10552_v35, -inf }
 0xae6   : > { %v3722_v21 = vsel %vm13650_vm5, %v3642_v8, %v3706_v24  ;;  %v3627_v36 = vadd.f32 %v3598_v32, %v10484_v31  ;;  %6692 = vlog2.f32 %v3585_v62  ;;  %v10827_v63 = vsel %vm13656_vm12, 0.0, %v3696_v12  ;;  %v3755_v8 = vld [vmem:[%s7274_s9 + $0xa8] sm:$0xff]  ;;  %vm13662_vm5 = vmmov %vm13661_vm3 }
 0xae7   : > { %v6683_v57 = vpop.eup %6682  ;;  %v3558_v38 = vpop.xlane.xlu1 %3557  ;;  %v3738_v59 = vadd.f32 %v10773_v16, %v3722_v21  ;;  %v3698_v62 = vsub.f32 %v10467_v10, %v10684_v11  ;;  %vm13660_vm13 = vcmp.eq.f32.partialorder %v10561_v39, -inf }
 0xae8   : > { %v3561_v54 = vpop.xlane.xlu0 %3560  ;;  %v6685_v22 = vpop.eup %6684  ;;  %v3643_v31 = vsub.f32 %v3627_v36, %v10636_v61  ;;  %v3600_v6 = vmul.f32 0.6931472, %v6683_v57  ;;  %v3586_v43 = vsel %vm13653_vm7, 1.0, %v3558_v38  ;;  %v3697_v38 = vsub.f32 %v10461_v15, %v10691_v44  ;;  %vm13668_vm7 = vmmov %vm13649_vm1 }
 0xae9   : > { %v3587_v28 = vsel %vm13654_vm0, 1.0, %v3561_v54  ;;  %v3602_v4 = vmul.f32 0.6931472, %v6685_v22  ;;  %6694 = vlog2.f32 %v3586_v43  ;;  %v10823_v25 = vadd.f32 %v3754_v26, %v3738_v59  ;;  %v3756_v59 = vld [vmem:[%s7274_s9 + $0xe8] sm:$0xff]  ;;  %vm13669_vm0 = vmmov %vm13663_vm2 }
 0xaea   : > { %v3723_v61 = vsel %vm13657_vm9, %v3643_v31, %v3707_v14  ;;  %v3628_v7 = vadd.f32 %v3600_v6, %v10489_v42  ;;  %6696 = vlog2.f32 %v3587_v28  ;;  %v10856_v31 = vsel %vm13649_vm1, 0.0, %v3698_v62  ;;  %vm13671_vm12 = vmmov %vm13669_vm0 }
 0xaeb   : > { %v6687_v32 = vpop.eup %6686  ;;  %v3629_v24 = vadd.f32 %v3602_v4, %v10503_v60  ;;  %3787 = vmax.xlane.f32.xlu1 %v10823_v25  ;;  %v3564_v1 = vpop.xlane.xlu1 %3563  ;;  %v3739_v14 = vadd.f32 %v10773_v16, %v3723_v61  ;;  %vm13672_vm9 = vmmov %vm13649_vm1 }
 0xaec   : > { %v3567_v12 = vpop.xlane.xlu0 %3566  ;;  %v6689_v21 = vpop.eup %6688  ;;  %v3644_v42 = vsub.f32 %v3628_v7, %v10646_v48  ;;  %v3604_v36 = vmul.f32 0.6931472, %v6687_v32  ;;  %v3588_v26 = vsel %vm13659_vm10, 1.0, %v3564_v1  ;;  %v3757_v32 = vld [vmem:[%s7274_s9 + $0x128] sm:$0xff]  ;;  %vm13674_vm8 = vmmov %vm13669_vm0 }
 0xaed   : > { %v3589_v57 = vsel %vm13660_vm13, 1.0, %v3567_v12  ;;  %v3645_v10 = vsub.f32 %v3629_v24, %v10659_v23  ;;  %v3606_v60 = vmul.f32 0.6931472, %v6689_v21  ;;  %6698 = vlog2.f32 %v3588_v26  ;;  %v3758_v1 = vld [vmem:[%s7274_s9 + $0x168] sm:$0xff]  ;;  %vm13675_vm10 = vmmov %vm13669_vm0 }
 0xaee   : > { %v10846_v51 = vadd.f32 %v3755_v8, %v3739_v14  ;;  %v3724_v54 = vsel %vm13661_vm3, %v3644_v42, %v3708_v34  ;;  %v3630_v48 = vadd.f32 %v3604_v36, %v10509_v46  ;;  %6700 = vlog2.f32 %v3589_v57  ;;  %vm13676_vm13 = vmmov %vm13649_vm1 }
 0xaef   : > { %v6691_v22 = vpop.eup %6690  ;;  %v3725_v23 = vsel %vm13662_vm5, %v3645_v10, %v3709_v53  ;;  %v3631_v6 = vadd.f32 %v3606_v60, %v10517_v17  ;;  %v3570_v43 = vpop.xlane.xlu1 %3569  ;;  %v3740_v46 = vadd.f32 %v10773_v16, %v3724_v54  ;;  %v3699_v54 = vsub.f32 %v10465_v13, %v10703_v18  ;;  %vm13678_vm3 = vmmov %vm13649_vm1 }
 0xaf0   : > { %3789 = vmax.xlane.f32.xlu0 %v10846_v51  ;;  %v3573_v15 = vpop.xlane.xlu0 %3572  ;;  %v6693_v34 = vpop.eup %6692  ;;  %v3646_v28 = vsub.f32 %v3630_v48, %v10656_v2  ;;  %v3608_v4 = vmul.f32 0.6931472, %v6691_v22  ;;  %v3590_v61 = vsel %vm3398_vm15, 1.0, %v3570_v43  ;;  %v3741_v2 = vadd.f32 %v10773_v16, %v3725_v23  ;;  %vm13664_vm15 = vmmov %vm13649_vm1 }
 0xaf1   : > { %v3591_v7 = vsel %vm3399_vm14, 1.0, %v3573_v15  ;;  %v3647_v53 = vsub.f32 %v3631_v6, %v10675_v20  ;;  %v3610_v17 = vmul.f32 0.6931472, %v6693_v34  ;;  %6702 = vlog2.f32 %v3590_v61  ;;  %vm13665_vm14 = vmmov %vm13663_vm2 }
 0xaf2   : > { %v10869_v8 = vadd.f32 %v3756_v59, %v3740_v46  ;;  %v3726_v62 = vsel %vm13663_vm2, %v3646_v28, %v3710_v9  ;;  %v3632_v24 = vadd.f32 %v3608_v4, %v10523_v45  ;;  %6704 = vlog2.f32 %v3591_v7  ;;  %vm13679_vm1 = vmmov %vm13669_vm0 }
 0xaf3   : > { %v6695_v12 = vpop.eup %6694  ;;  %v3713_v14 = vsel %vm13664_vm15, 0.0, %v3697_v38  ;;  %v3727_v20 = vsel %vm13665_vm14, %v3647_v53, %v3711_v27  ;;  %v3633_v21 = vadd.f32 %v3610_v17, %v10532_v52  ;;  %v3576_v42 = vpop.xlane.xlu1 %3575  ;;  %v3742_v9 = vadd.f32 %v10773_v16, %v3726_v62  ;;  %v3759_v38 = vld [vmem:[%s7274_s9 + $0x1a8] sm:$0xff]  ;;  %vm13680_vm5 = vmmov %vm13669_vm0 }
 0xaf4   : > { %3791 = vmax.xlane.f32.xlu1 %v10869_v8  ;;  %v6697_v45 = vpop.eup %6696  ;;  %v3648_v36 = vsub.f32 %v3632_v24, %v10668_v37  ;;  %v3612_v26 = vmul.f32 0.6931472, %v6695_v12  ;;  %v3592_v57 = vsel %vm3400_vm11, 1.0, %v3576_v42  ;;  %v10887_v10 = vadd.f32 %v3757_v32, %v3741_v2  ;;  %vm13667_vm11 = vmmov %vm13663_vm2 }
 0xaf5   : > { %v3649_v60 = vsub.f32 %v3633_v21, %v10691_v44  ;;  %v3614_v27 = vmul.f32 0.6931472, %v6697_v45  ;;  %6706 = vlog2.f32 %v3592_v57  ;;  %v10890_v52 = vadd.f32 %v3758_v1, %v3742_v9  ;;  %v3760_v44 = vld [vmem:[%s7274_s9 + $0x1e8] sm:$0xff]  ;;  %v13673_v45 = vld [vmem:[#allocation6_spill] sm:$0xff]  ;;  %vm13681_vm2 = vmmov %vm13678_vm3 }
 0xaf6   : > { %v3728_v37 = vsel %vm13666_vm6, %v3648_v36, %v10827_v63  ;;  %v3634_v48 = vadd.f32 %v3612_v26, %v10538_v5  ;;  %3793 = vmax.xlane.f32.xlu0 %v10887_v10  ;;  %v3743_v59 = vadd.f32 %v10773_v16, %v3727_v20  ;;  %v3700_v23 = vsub.f32 %v10471_v41, %v10698_v50  ;;  %v3761_v5 = vld [vmem:[%s7274_s9 + $0x228] sm:$0xff]  ;;  %vm13682_vm15 = vmmov %vm13669_vm0 }
 0xaf7   : > { %v6699_v22 = vpop.eup %6698  ;;  %v3729_v6 = vsel %vm13667_vm11, %v3649_v60, %v3713_v14  ;;  %v3635_v13 = vadd.f32 %v3614_v27, %v10546_v55  ;;  %v3744_v63 = vadd.f32 %v10773_v16, %v3728_v37  ;;  %v3701_v41 = vsub.f32 %v10469_v29, %v10716_v56  ;;  %v3762_v29 = vld [vmem:[%s7274_s9 + $0x268] sm:$0xff] }
 0xaf8   : > { %3795 = vmax.xlane.f32.xlu1 %v10890_v52  ;;  %v6701_v43 = vpop.eup %6700  ;;  %v3650_v15 = vsub.f32 %v3634_v48, %v10684_v11  ;;  %v3616_v46 = vmul.f32 0.6931472, %v6699_v22  ;;  %v10911_v34 = vadd.f32 %v3759_v38, %v3743_v59  ;;  %v3745_v28 = vadd.f32 %v10773_v16, %v3729_v6  ;;  %v3764_v57 = vld [vmem:[%s7274_s9 + $0x2e8] sm:$0xff] }
 0xaf9   : > { %v3651_v55 = vsub.f32 %v3635_v13, %v10703_v18  ;;  %v3618_v4 = vmul.f32 0.6931472, %v6701_v43  ;;  %v10917_v61 = vadd.f32 %v3760_v44, %v3744_v63  ;;  %v3715_v7 = vsel %vm13668_vm7, 0.0, %v3699_v54  ;;  %v3765_v54 = vld [vmem:[%s7274_s9 + $0x328] sm:$0xff] }
 0xafa   : > { %v3730_v11 = vsel %vm13669_vm0, %v3650_v15, %v10856_v31  ;;  %v3636_v53 = vadd.f32 %v3616_v46, %v10552_v35  ;;  %3797 = vmax.xlane.f32.xlu0 %v10911_v34  ;;  %v10926_v17 = vadd.f32 %v3761_v5, %v3745_v28  ;;  %v3716_v18 = vsel %vm13670_vm4, 0.0, %v3700_v23  ;;  %v3763_v35 = vld [vmem:[%s7274_s9 + $0x2a8] sm:$0xff] }
 0xafb   : > { %v6703_v32 = vpop.eup %6702  ;;  %v3731_v62 = vsel %vm13671_vm12, %v3651_v55, %v3715_v7  ;;  %v3637_v24 = vadd.f32 %v3618_v4, %v10561_v39  ;;  %v3746_v31 = vadd.f32 %v10773_v16, %v3730_v11  ;;  %v3702_v1 = vsub.f32 %v10475_v19, %v10710_v40  ;;  %v13677_v44 = vld [vmem:[#allocation7_spill] sm:$0xff] }
 0xafc   : > { %3799 = vmax.xlane.f32.xlu1 %v10917_v61  ;;  %v6705_v2 = vpop.eup %6704  ;;  %v3652_v12 = vsub.f32 %v3636_v53, %v10698_v50  ;;  %v3620_v14 = vmul.f32 0.6931472, %v6703_v32  ;;  %v3747_v20 = vadd.f32 %v10773_v16, %v3731_v62  ;;  %v3717_v21 = vsel %vm13672_vm9, 0.0, %v3701_v41  ;;  %v3766_v5 = vld [vmem:[%s7274_s9 + $0x368] sm:$0xff] }
 0xafd   : > { %v3653_v39 = vsub.f32 %v3637_v24, %v10716_v56  ;;  %v3622_v42 = vmul.f32 0.6931472, %v6705_v2  ;;  %v10944_v9 = vadd.f32 %v3762_v29, %v3746_v31  ;;  %v3703_v36 = vsub.f32 %v13673_v45, %v10728_v0  ;;  %v3767_v15 = vld [vmem:[%s7274_s9 + $0x3a8] sm:$0xff] }
 0xafe   : > { %v3732_v19 = vsel %vm13674_vm8, %v3652_v12, %v3716_v18  ;;  %v3638_v50 = vadd.f32 %v3620_v14, %v10567_v3  ;;  %3801 = vmax.xlane.f32.xlu0 %v10926_v17  ;;  %v10952_v26 = vadd.f32 %v3763_v35, %v3747_v20  ;;  %v3718_v59 = vsel %vm13676_vm13, 0.0, %v3702_v1  ;;  %v3768_v7 = vld [vmem:[%s7274_s9 + $0x3e8] sm:$0xff] }
 0xaff   : > { %v6707_v60 = vpop.eup %6706  ;;  %v3733_v56 = vsel %vm13675_vm10, %v3653_v39, %v3717_v21  ;;  %v3639_v27 = vadd.f32 %v3622_v42, %v10580_v30  ;;  %v3748_v38 = vadd.f32 %v10773_v16, %v3732_v19  ;;  %v3704_v22 = vsub.f32 %v13677_v44, %v10722_v47 }
 0xb00   : > { %3803 = vmax.xlane.f32.xlu1 %v10944_v9  ;;  %v3654_v37 = vsub.f32 %v3638_v50, %v10710_v40  ;;  %v3624_v3 = vmul.f32 0.6931472, %v6707_v60  ;;  %v3749_v48 = vadd.f32 %v10773_v16, %v3733_v56  ;;  %v3719_v6 = vsel %vm13678_vm3, 0.0, %v3703_v36 }
 0xb01   : > { %v3655_v30 = vsub.f32 %v3639_v27, %v10728_v0  ;;  %v10968_v23 = vadd.f32 %v3764_v57, %v3748_v38  ;;  %vm13683_vm14 = vcmask 1048560  }
 0xb02   : > { %v3734_v40 = vsel %vm13679_vm1, %v3654_v37, %v3718_v59  ;;  %v3640_v13 = vadd.f32 %v3624_v3, %v10583_v58  ;;  %3805 = vmax.xlane.f32.xlu0 %v10952_v26  ;;  %v10976_v63 = vadd.f32 %v3765_v54, %v3749_v48  ;;  %v3720_v58 = vsel %vm13681_vm2, 0.0, %v3704_v22  ;;  %vm13684_vm6 = vmmov %vm13683_vm14 }
 0xb03   : > { %v3735_v43 = vsel %vm13680_vm5, %v3655_v30, %v3719_v6  ;;  %v3750_v0 = vadd.f32 %v10773_v16, %v3734_v40  ;;  %v4032_v53 = vsel %vm13684_vm6, %v10846_v51, -inf  ;;  %vm13685_vm11 = vmmov %vm13684_vm6 }
 0xb04   : > { %3807 = vmax.xlane.f32.xlu1 %v10968_v23  ;;  %v3656_v46 = vsub.f32 %v3640_v13, %v10722_v47  ;;  %v3751_v28 = vadd.f32 %v10773_v16, %v3735_v43  ;;  %v4035_v29 = vsel %vm13685_vm11, %v10869_v8, -inf  ;;  %vm13686_vm7 = vmmov %vm13684_vm6 }
 0xb05   : > { %v10988_v41 = vadd.f32 %v3766_v5, %v3750_v0  ;;  %v4029_v32 = vsel %vm13686_vm7, %v10823_v25, -inf  ;;  %vm13687_vm0 = vmmov %vm13684_vm6 }
 0xb06   : > { %v3736_v55 = vsel %vm13682_vm15, %v3656_v46, %v3720_v58  ;;  %3809 = vmax.xlane.f32.xlu0 %v10976_v63  ;;  %v10993_v4 = vadd.f32 %v3767_v15, %v3751_v28  ;;  %v4038_v18 = vsel %vm13687_vm0, %v10887_v10, -inf  ;;  %vm13688_vm4 = vmmov %vm13687_vm0 }
 0xb07   : > { %v3752_v11 = vadd.f32 %v10773_v16, %v3736_v55  ;;  %v4026_v16 = vsel %vm13683_vm14, %v10778_v49, -inf  ;;  %v4041_v62 = vsel %vm13688_vm4, %v10890_v52, -inf  ;;  %vm13689_vm12 = vmmov %vm13687_vm0 }
 0xb08   : > { %3811 = vmax.xlane.f32.xlu1 %v10988_v41  ;;  %v4044_v24 = vsel %vm13689_vm12, %v10911_v34, -inf  ;;  %vm13690_vm9 = vmmov %vm13687_vm0 }
 0xb09   : > { %v10998_v47 = vadd.f32 %v3768_v7, %v3752_v11  ;;  %v4047_v31 = vsel %vm13690_vm9, %v10917_v61, -inf  ;;  %vm13691_vm8 = vmmov %vm13687_vm0 }
 0xb0a   : > { %3813 = vmax.xlane.f32.xlu0 %v10993_v4  ;;  %v4050_v35 = vsel %vm13691_vm8, %v10926_v17, -inf  ;;  %vm13692_vm10 = vmmov %vm13687_vm0 }
 0xb0b   : > { %v4053_v2 = vsel %vm13692_vm10, %v10944_v9, -inf  ;;  %vm13693_vm13 = vmmov %vm13687_vm0 }
 0xb0c   : > { %3815 = vmax.xlane.f32.xlu1 %v10998_v47  ;;  %v4056_v1 = vsel %vm13693_vm13, %v10952_v26, -inf  ;;  %vm13694_vm3 = vmmov %vm13687_vm0 }
 0xb0d   : > { %v4059_v14 = vsel %vm13694_vm3, %v10968_v23, -inf  ;;  %vm13695_vm5 = vmmov %vm13687_vm0 }
 0xb0e   : > { %v4062_v39 = vsel %vm13695_vm5, %v10976_v63, -inf  ;;  %vm13696_vm2 = vmmov %vm13687_vm0 }
 0xb0f   : > { %v4065_v42 = vsel %vm13696_vm2, %v10988_v41, -inf  ;;  %vm13697_vm15 = vmmov %vm13687_vm0 }
 0xb10   : > { %v4068_v36 = vsel %vm13697_vm15, %v10993_v4, -inf  ;;  %vm13698_vm14 = vmmov %vm13687_vm0 }
 0xb11   : > { %v4071_v19 = vsel %vm13698_vm14, %v10998_v47, -inf }
 0xb1d   : > { %4348 = vrot.lane.b32.xlu1 %v10823_v25, %s7180_s11 }
 0xb20   : > { %4346 = vrot.lane.b32.xlu0 %v10778_v49, %s7180_s11 }
 0xb21   : > { %4350 = vrot.lane.b32.xlu1 %v10846_v51, %s7180_s11 }
 0xb24   : > { %4354 = vrot.lane.b32.xlu0 %v10887_v10, %s7180_s11 }
 0xb25   : > { %4352 = vrot.lane.b32.xlu1 %v10869_v8, %s7180_s11 }
 0xb28   : > { %4358 = vrot.lane.b32.xlu0 %v10911_v34, %s7180_s11 }
 0xb29   : > { %4356 = vrot.lane.b32.xlu1 %v10890_v52, %s7180_s11 }
 0xb2c   : > { %4362 = vrot.lane.b32.xlu0 %v10926_v17, %s7180_s11 }
 0xb2d   : > { %4360 = vrot.lane.b32.xlu1 %v10917_v61, %s7180_s11 }
 0xb30   : > { %4366 = vrot.lane.b32.xlu0 %v10952_v26, %s7180_s11 }
 0xb31   : > { %4364 = vrot.lane.b32.xlu1 %v10944_v9, %s7180_s11 }
 0xb34   : > { %4370 = vrot.lane.b32.xlu0 %v10976_v63, %s7180_s11 }
 0xb35   : > { %4368 = vrot.lane.b32.xlu1 %v10968_v23, %s7180_s11 }
 0xb38   : > { %4374 = vrot.lane.b32.xlu0 %v10993_v4, %s7180_s11 }
 0xb39   : > { %4372 = vrot.lane.b32.xlu1 %v10988_v41, %s7180_s11 }
 0xb3d   : > { %4376 = vrot.lane.b32.xlu1 %v10998_v47, %s7180_s11 }
 0xb57   : > { %4027 = vmax.xlane.f32.xlu0 %v4026_v16 }
 0xb5b   : > { %4033 = vmax.xlane.f32.xlu0 %v4032_v53 }
 0xb5f   : > { %4036 = vmax.xlane.f32.xlu0 %v4035_v29 }
 0xb61   : > { %4030 = vmax.xlane.f32.xlu1 %v4029_v32 }
 0xb63   : > { %4039 = vmax.xlane.f32.xlu0 %v4038_v18 }
 0xb65   : > { %4042 = vmax.xlane.f32.xlu1 %v4041_v62 }
 0xb67   : > { %4045 = vmax.xlane.f32.xlu0 %v4044_v24 }
 0xb69   : > { %4048 = vmax.xlane.f32.xlu1 %v4047_v31 }
 0xb6b   : > { %4051 = vmax.xlane.f32.xlu0 %v4050_v35 }
 0xb6d   : > { %4054 = vmax.xlane.f32.xlu1 %v4053_v2 }
 0xb6e   : > { %v11056_v12 = vpop.xlane.xlu0 %3785 }
 0xb6f   : > { %4057 = vmax.xlane.f32.xlu0 %v4056_v1  ;;  %vm3817_vm1 = vcmp.eq.f32.partialorder %v11056_v12, -inf }
 0xb70   : > { %v3833_v20 = vsel %vm3817_vm1, 0.0, %v11056_v12 }
 0xb71   : > { %4060 = vmax.xlane.f32.xlu1 %v4059_v14  ;;  %v3849_v21 = vsub.f32 %v10778_v49, %v3833_v20 }
 0xb73   : > { %4063 = vmax.xlane.f32.xlu0 %v4062_v39  ;;  %v3865_v45 = vmul.f32 1.442695, %v3849_v21 }
 0xb75   : > { %4066 = vmax.xlane.f32.xlu1 %v4065_v42  ;;  %6708 = vpow2.f32 %v3865_v45 }
 0xb77   : > { %4069 = vmax.xlane.f32.xlu0 %v4068_v36 }
 0xb78   : > { %v11073_v50 = vpop.xlane.xlu1 %3787 }
 0xb79   : > { %4072 = vmax.xlane.f32.xlu1 %v4071_v19  ;;  %vm3818_vm6 = vcmp.eq.f32.partialorder %v11073_v50, -inf }
 0xb7a   : > { %v3834_v57 = vsel %vm3818_vm6, 0.0, %v11073_v50 }
 0xb7b   : > { %v3850_v60 = vsub.f32 %v10823_v25, %v3834_v57 }
 0xb7d   : > { %v11080_v56 = vpop.xlane.xlu0 %3789  ;;  %v3867_v27 = vmul.f32 1.442695, %v3850_v60 }
 0xb7e   : > { %vm3819_vm11 = vcmp.eq.f32.partialorder %v11080_v56, -inf }
 0xb7f   : > { %v3835_v38 = vsel %vm3819_vm11, 0.0, %v11080_v56  ;;  %6710 = vpow2.f32 %v3867_v27  ;;  %v6709_v37 = vpop.eup %6708 }
 0xb80   : > { %v3851_v54 = vsub.f32 %v10846_v51, %v3835_v38  ;;  %3897 = vadd.xlane.f32.xlu0 %v6709_v37 }
 0xb81   : > { %v11087_v3 = vpop.xlane.xlu1 %3791 }
 0xb82   : > { %v3869_v48 = vmul.f32 1.442695, %v3851_v54  ;;  %vm3820_vm7 = vcmp.eq.f32.partialorder %v11087_v3, -inf }
 0xb83   : > { %v3836_v59 = vsel %vm3820_vm7, 0.0, %v11087_v3  ;;  %v11094_v22 = vpop.xlane.xlu0 %3793 }
 0xb84   : > { %6712 = vpow2.f32 %v3869_v48  ;;  %v3852_v44 = vsub.f32 %v10869_v8, %v3836_v59  ;;  %vm3821_vm0 = vcmp.eq.f32.partialorder %v11094_v22, -inf }
 0xb85   : > { %v11097_v30 = vpop.xlane.xlu1 %3795  ;;  %v3837_v40 = vsel %vm3821_vm0, 0.0, %v11094_v22 }
 0xb86   : > { %v3871_v6 = vmul.f32 1.442695, %v3852_v44  ;;  %vm3822_vm4 = vcmp.eq.f32.partialorder %v11097_v30, -inf  ;;  %v3853_v13 = vsub.f32 %v10887_v10, %v3837_v40 }
 0xb87   : > { %v3838_v5 = vsel %vm3822_vm4, 0.0, %v11097_v30  ;;  %v11108_v0 = vpop.xlane.xlu0 %3797 }
 0xb88   : > { %6714 = vpow2.f32 %v3871_v6  ;;  %v3854_v43 = vsub.f32 %v10890_v52, %v3838_v5  ;;  %v3873_v15 = vmul.f32 1.442695, %v3853_v13  ;;  %vm3823_vm12 = vcmp.eq.f32.partialorder %v11108_v0, -inf }
 0xb89   : > { %v11111_v46 = vpop.xlane.xlu1 %3799  ;;  %v6711_v28 = vpop.eup %6710  ;;  %v3839_v55 = vsel %vm3823_vm12, 0.0, %v11108_v0 }
 0xb8a   : > { %v3875_v58 = vmul.f32 1.442695, %v3854_v43  ;;  %vm3824_vm9 = vcmp.eq.f32.partialorder %v11111_v46, -inf  ;;  %6716 = vpow2.f32 %v3873_v15  ;;  %v3855_v7 = vsub.f32 %v10911_v34, %v3839_v55  ;;  %3899 = vadd.xlane.f32.xlu1 %v6711_v28 }
 0xb8b   : > { %v3840_v11 = vsel %vm3824_vm9, 0.0, %v11111_v46  ;;  %v11122_v53 = vpop.xlane.xlu0 %3801 }
 0xb8c   : > { %6718 = vpow2.f32 %v3875_v58  ;;  %v3856_v16 = vsub.f32 %v10917_v61, %v3840_v11  ;;  %v3877_v29 = vmul.f32 1.442695, %v3855_v7  ;;  %vm3825_vm8 = vcmp.eq.f32.partialorder %v11122_v53, -inf }
 0xb8d   : > { %v11125_v32 = vpop.xlane.xlu1 %3803  ;;  %v3841_v24 = vsel %vm3825_vm8, 0.0, %v11122_v53 }
 0xb8e   : > { %v6713_v18 = vpop.eup %6712  ;;  %v3879_v62 = vmul.f32 1.442695, %v3856_v16  ;;  %vm3826_vm10 = vcmp.eq.f32.partialorder %v11125_v32, -inf  ;;  %6720 = vpow2.f32 %v3877_v29  ;;  %v3857_v31 = vsub.f32 %v10926_v17, %v3841_v24 }
 0xb8f   : > { %v3842_v35 = vsel %vm3826_vm10, 0.0, %v11125_v32  ;;  %3901 = vadd.xlane.f32.xlu0 %v6713_v18  ;;  %v11136_v1 = vpop.xlane.xlu0 %3805 }
 0xb90   : > { %6722 = vpow2.f32 %v3879_v62  ;;  %v3858_v2 = vsub.f32 %v10944_v9, %v3842_v35  ;;  %v3881_v14 = vmul.f32 1.442695, %v3857_v31  ;;  %vm3827_vm13 = vcmp.eq.f32.partialorder %v11136_v1, -inf }
 0xb91   : > { %v11139_v20 = vpop.xlane.xlu1 %3807  ;;  %v3843_v42 = vsel %vm3827_vm13, 0.0, %v11136_v1 }
 0xb92   : > { %v6715_v21 = vpop.eup %6714  ;;  %v3883_v39 = vmul.f32 1.442695, %v3858_v2  ;;  %vm3828_vm3 = vcmp.eq.f32.partialorder %v11139_v20, -inf  ;;  %6724 = vpow2.f32 %v3881_v14  ;;  %v3859_v45 = vsub.f32 %v10952_v26, %v3843_v42 }
 0xb93   : > { %v3844_v36 = vsel %vm3828_vm3, 0.0, %v11139_v20  ;;  %3903 = vadd.xlane.f32.xlu0 %v6715_v21  ;;  %v11150_v57 = vpop.xlane.xlu0 %3809 }
 0xb94   : > { %6726 = vpow2.f32 %v3883_v39  ;;  %v3860_v19 = vsub.f32 %v10968_v23, %v3844_v36  ;;  %v6717_v60 = vpop.eup %6716  ;;  %v3885_v27 = vmul.f32 1.442695, %v3859_v45  ;;  %vm13292_vm5 = vcmp.eq.f32.partialorder %v11150_v57, -inf }
 0xb95   : > { %v11153_v38 = vpop.xlane.xlu1 %3811  ;;  %v3845_v48 = vsel %vm13292_vm5, 0.0, %v11150_v57 }
 0xb96   : > { %v6719_v54 = vpop.eup %6718  ;;  %v3887_v37 = vmul.f32 1.442695, %v3860_v19  ;;  %vm3830_vm2 = vcmp.eq.f32.partialorder %v11153_v38, -inf  ;;  %6728 = vpow2.f32 %v3885_v27  ;;  %v3861_v59 = vsub.f32 %v10976_v63, %v3845_v48 }
 0xb97   : > { %v3846_v44 = vsel %vm3830_vm2, 0.0, %v11153_v38  ;;  %3907 = vadd.xlane.f32.xlu1 %v6719_v54  ;;  %3905 = vadd.xlane.f32.xlu0 %v6717_v60  ;;  %v11164_v40 = vpop.xlane.xlu0 %3813 }
 0xb98   : > { %6730 = vpow2.f32 %v3887_v37  ;;  %v3862_v6 = vsub.f32 %v10988_v41, %v3846_v44  ;;  %v6721_v13 = vpop.eup %6720  ;;  %v3889_v5 = vmul.f32 1.442695, %v3861_v59  ;;  %vm13289_vm15 = vcmp.eq.f32.partialorder %v11164_v40, -inf }
 0xb99   : > { %v11167_v43 = vpop.xlane.xlu1 %3815  ;;  %v3847_v58 = vsel %vm13289_vm15, 0.0, %v11164_v40 }
 0xb9a   : > { %v6723_v15 = vpop.eup %6722  ;;  %v3891_v28 = vmul.f32 1.442695, %v3862_v6  ;;  %vm13290_vm14 = vcmp.eq.f32.partialorder %v11167_v43, -inf  ;;  %6732 = vpow2.f32 %v3889_v5  ;;  %v3863_v55 = vsub.f32 %v10993_v4, %v3847_v58 }
 0xb9b   : > { %v3848_v7 = vsel %vm13290_vm14, 0.0, %v11167_v43  ;;  %3911 = vadd.xlane.f32.xlu1 %v6723_v15  ;;  %3909 = vadd.xlane.f32.xlu0 %v6721_v13  ;;  %v11180_v42 = vpop.permute.xlu0 %4346 }
 0xb9c   : > { %6734 = vpow2.f32 %v3891_v28  ;;  %v3864_v11 = vsub.f32 %v10998_v47, %v3848_v7  ;;  %v6725_v16 = vpop.eup %6724  ;;  %v3893_v29 = vmul.f32 1.442695, %v3863_v55 }
 0xb9d   : > { %v11178_v39 = vpop.permute.xlu1 %4348 }
 0xb9e   : > { %v6727_v18 = vpop.eup %6726  ;;  %v3895_v62 = vmul.f32 1.442695, %v3864_v11  ;;  %6736 = vpow2.f32 %v3893_v29 }
 0xb9f   : > { %3915 = vadd.xlane.f32.xlu1 %v6727_v18  ;;  %3913 = vadd.xlane.f32.xlu0 %v6725_v16  ;;  %v11184_v36 = vpop.permute.xlu0 %4354 }
 0xba0   : > { %6738 = vpow2.f32 %v3895_v62  ;;  %v6729_v24 = vpop.eup %6728 }
 0xba1   : > { %v11182_v45 = vpop.permute.xlu1 %4350 }
 0xba2   : > { %v6731_v31 = vpop.eup %6730 }
 0xba3   : > { %3919 = vadd.xlane.f32.xlu1 %v6731_v31  ;;  %3917 = vadd.xlane.f32.xlu0 %v6729_v24  ;;  %v11188_v60 = vpop.permute.xlu0 %4358 }
 0xba4   : > { %v6733_v35 = vpop.eup %6732 }
 0xba5   : > { %v11186_v19 = vpop.permute.xlu1 %4352 }
 0xba6   : > { %v6735_v2 = vpop.eup %6734 }
 0xba7   : > { %3923 = vadd.xlane.f32.xlu1 %v6735_v2  ;;  %3921 = vadd.xlane.f32.xlu0 %v6733_v35  ;;  %v11192_v54 = vpop.permute.xlu0 %4362 }
 0xba8   : > { %v6737_v14 = vpop.eup %6736 }
 0xba9   : > { %v11190_v27 = vpop.permute.xlu1 %4356 }
 0xbaa   : > { %v6739_v21 = vpop.eup %6738 }
 0xbab   : > { %3927 = vadd.xlane.f32.xlu1 %v6739_v21  ;;  %3925 = vadd.xlane.f32.xlu0 %v6737_v14  ;;  %v11196_v48 = vpop.permute.xlu0 %4366 }
 0xbad   : > { %v11194_v37 = vpop.permute.xlu1 %4360 }
 0xbaf   : > { %v11200_v44 = vpop.permute.xlu0 %4370 }
 0xbb1   : > { %v11198_v59 = vpop.permute.xlu1 %4364 }
 0xbb3   : > { %v11204_v13 = vpop.permute.xlu0 %4374 }
 0xbb4   : > { %13699 = vst [vmem:[#allocation6_spill] sm:$0xff] %v11204_v13 }
 0xbb5   : > { %v11202_v6 = vpop.permute.xlu1 %4368 }
 0xbb9   : > { %v11206_v5 = vpop.permute.xlu1 %4372 }
 0xbbd   : > { %v11217_v7 = vpop.permute.xlu1 %4376 }
 0xbbe   : > { %13700 = vst [vmem:[#allocation7_spill] sm:$0xff] %v11217_v7 }
 0xbe4   : > { %v11208_v15 = vpop.xlane.xlu0 %4027 }
 0xbe5   : > { %vm13291_vm15 = vcmp.eq.f32.partialorder %v11208_v15, -inf }
 0xbe6   : > { %v4090_v28 = vsel %vm13291_vm15, 0.0, %v11208_v15 }
 0xbe7   : > { %v4106_v58 = vsub.f32 %v10778_v49, %v4090_v28 }
 0xbe8   : > { %v11215_v55 = vpop.xlane.xlu0 %4033 }
 0xbe9   : > { %v4122_v11 = vmul.f32 1.442695, %v4106_v58  ;;  %vm13293_vm14 = vcmp.eq.f32.partialorder %v11215_v55, -inf }
 0xbea   : > { %v4092_v29 = vsel %vm13293_vm14, 0.0, %v11215_v55 }
 0xbeb   : > { %6740 = vpow2.f32 %v4122_v11  ;;  %v4108_v62 = vsub.f32 %v10846_v51, %v4092_v29 }
 0xbec   : > { %v11220_v16 = vpop.xlane.xlu0 %4036 }
 0xbed   : > { %vm13295_vm15 = vcmp.eq.f32.partialorder %v11220_v16, -inf }
 0xbee   : > { %v11225_v18 = vpop.xlane.xlu1 %4030  ;;  %v4093_v35 = vsel %vm13295_vm15, 0.0, %v11220_v16 }
 0xbef   : > { %vm13294_vm5 = vcmp.eq.f32.partialorder %v11225_v18, -inf  ;;  %v4109_v28 = vsub.f32 %v10869_v8, %v4093_v35 }
 0xbf0   : > { %v4091_v49 = vsel %vm13294_vm5, 0.0, %v11225_v18  ;;  %v11234_v31 = vpop.xlane.xlu0 %4039 }
 0xbf1   : > { %v4107_v24 = vsub.f32 %v10823_v25, %v4091_v49  ;;  %vm13296_vm14 = vcmp.eq.f32.partialorder %v11234_v31, -inf  ;;  %v4126_v25 = vmul.f32 1.442695, %v4108_v62  ;;  %v4128_v62 = vmul.f32 1.442695, %v4109_v28 }
 0xbf2   : > { %v11240_v2 = vpop.xlane.xlu1 %4042  ;;  %v4094_v21 = vsel %vm13296_vm14, 0.0, %v11234_v31 }
 0xbf3   : > { %v4124_v14 = vmul.f32 1.442695, %v4107_v24  ;;  %vm13298_vm5 = vcmp.eq.f32.partialorder %v11240_v2, -inf  ;;  %v4110_v51 = vsub.f32 %v10887_v10, %v4094_v21 }
 0xbf4   : > { %v11248_v58 = vpop.xlane.xlu0 %4045  ;;  %v4095_v49 = vsel %vm13298_vm5, 0.0, %v11240_v2 }
 0xbf5   : > { %6742 = vpow2.f32 %v4124_v14  ;;  %v6741_v11 = vpop.eup %6740  ;;  %v4130_v29 = vmul.f32 1.442695, %v4110_v51  ;;  %vm13297_vm15 = vcmp.eq.f32.partialorder %v11248_v58, -inf  ;;  %v4111_v35 = vsub.f32 %v10890_v52, %v4095_v49 }
 0xbf6   : > { %v11254_v24 = vpop.xlane.xlu1 %4048  ;;  %v4096_v10 = vsel %vm13297_vm15, 0.0, %v11248_v58  ;;  %4170 = vrot.lane.b32.xlu0 %v6741_v11, %s7179_s10 }
 0xbf7   : > { %vm13299_vm14 = vcmp.eq.f32.partialorder %v11254_v24, -inf  ;;  %6744 = vpow2.f32 %v4130_v29  ;;  %v4112_v8 = vsub.f32 %v10911_v34, %v4096_v10  ;;  %v4132_v34 = vmul.f32 1.442695, %v4111_v35 }
 0xbf8   : > { %6746 = vpow2.f32 %v4126_v25  ;;  %v11263_v14 = vpop.xlane.xlu0 %4051  ;;  %v4097_v51 = vsel %vm13299_vm14, 0.0, %v11254_v24 }
 0xbf9   : > { %v4134_v21 = vmul.f32 1.442695, %v4112_v8  ;;  %vm13300_vm15 = vcmp.eq.f32.partialorder %v11263_v14, -inf  ;;  %v4113_v25 = vsub.f32 %v10917_v61, %v4097_v51 }
 0xbfa   : > { %v11269_v7 = vpop.xlane.xlu1 %4054  ;;  %v4098_v11 = vsel %vm13300_vm15, 0.0, %v11263_v14 }
 0xbfb   : > { %vm13302_vm5 = vcmp.eq.f32.partialorder %v11269_v7, -inf  ;;  %6748 = vpow2.f32 %v4134_v21  ;;  %v4114_v52 = vsub.f32 %v10926_v17, %v4098_v11 }
 0xbfc   : > { %6750 = vpow2.f32 %v4128_v62  ;;  %v11277_v28 = vpop.xlane.xlu0 %4057  ;;  %v4099_v49 = vsel %vm13302_vm5, 0.0, %v11269_v7  ;;  %v4136_v62 = vmul.f32 1.442695, %v4113_v25 }
 0xbfd   : > { %v4138_v29 = vmul.f32 1.442695, %v4114_v52  ;;  %vm13301_vm14 = vcmp.eq.f32.partialorder %v11277_v28, -inf  ;;  %v4115_v35 = vsub.f32 %v10944_v9, %v4099_v49 }
 0xbfe   : > { %v11283_v10 = vpop.xlane.xlu1 %4060  ;;  %v4100_v17 = vsel %vm13301_vm14, 0.0, %v11277_v28 }
 0xbff   : > { %v6743_v8 = vpop.eup %6742  ;;  %vm13304_vm15 = vcmp.eq.f32.partialorder %v11283_v10, -inf  ;;  %6752 = vpow2.f32 %v4138_v29  ;;  %v4116_v61 = vsub.f32 %v10952_v26, %v4100_v17 }
 0xc00   : > { %4172 = vrot.lane.b32.xlu1 %v6743_v8, %s7179_s10  ;;  %6754 = vpow2.f32 %v4132_v34  ;;  %v11292_v21 = vpop.xlane.xlu0 %4063  ;;  %v4101_v52 = vsel %vm13304_vm15, 0.0, %v11283_v10  ;;  %v4140_v34 = vmul.f32 1.442695, %v4115_v35 }
 0xc01   : > { %v6745_v51 = vpop.eup %6744  ;;  %v4142_v11 = vmul.f32 1.442695, %v4116_v61  ;;  %vm13303_vm14 = vcmp.eq.f32.partialorder %v11292_v21, -inf  ;;  %v4117_v25 = vsub.f32 %v10968_v23, %v4101_v52 }
 0xc02   : > { %v11298_v13 = vpop.xlane.xlu1 %4066  ;;  %v6747_v29 = vpop.eup %6746  ;;  %v4102_v26 = vsel %vm13303_vm14, 0.0, %v11292_v21  ;;  %4178 = vrot.lane.b32.xlu0 %v6745_v51, %s7179_s10 }
 0xc03   : > { %vm4087_vm5 = vcmp.eq.f32.partialorder %v11298_v13, -inf  ;;  %6756 = vpow2.f32 %v4142_v11  ;;  %v4118_v9 = vsub.f32 %v10976_v63, %v4102_v26  ;;  %v4144_v35 = vmul.f32 1.442695, %v4117_v25 }
 0xc04   : > { %4174 = vrot.lane.b32.xlu1 %v6747_v29, %s7179_s10  ;;  %6758 = vpow2.f32 %v4136_v62  ;;  %v4103_v49 = vsel %vm4087_vm5, 0.0, %v11298_v13  ;;  %v11311_v8 = vpop.xlane.xlu0 %4069 }
 0xc05   : > { %v6749_v17 = vpop.eup %6748  ;;  %v4146_v61 = vmul.f32 1.442695, %v4118_v9  ;;  %vm4088_vm14 = vcmp.eq.f32.partialorder %v11311_v8, -inf  ;;  %v4119_v23 = vsub.f32 %v10988_v41, %v4103_v49 }
 0xc06   : > { %v11314_v51 = vpop.xlane.xlu1 %4072  ;;  %v6751_v11 = vpop.eup %6750  ;;  %v4104_v63 = vsel %vm4088_vm14, 0.0, %v11311_v8  ;;  %4182 = vrot.lane.b32.xlu0 %v6749_v17, %s7179_s10 }
 0xc07   : > { %vm4089_vm15 = vcmp.eq.f32.partialorder %v11314_v51, -inf  ;;  %6760 = vpow2.f32 %v4146_v61  ;;  %v4120_v62 = vsub.f32 %v10993_v4, %v4104_v63  ;;  %v4148_v17 = vmul.f32 1.442695, %v4119_v23 }
 0xc08   : > { %4176 = vrot.lane.b32.xlu1 %v6751_v11, %s7179_s10  ;;  %6762 = vpow2.f32 %v4140_v34  ;;  %v4105_v26 = vsel %vm4089_vm15, 0.0, %v11314_v51 }
 0xc09   : > { %v6753_v52 = vpop.eup %6752  ;;  %v4150_v29 = vmul.f32 1.442695, %v4120_v62  ;;  %v4121_v41 = vsub.f32 %v10998_v47, %v4105_v26 }
 0xc0a   : > { %v6755_v9 = vpop.eup %6754  ;;  %4186 = vrot.lane.b32.xlu0 %v6753_v52, %s7179_s10 }
 0xc0b   : > { %6764 = vpow2.f32 %v4150_v29  ;;  %v4152_v61 = vmul.f32 1.442695, %v4121_v41 }
 0xc0c   : > { %4180 = vrot.lane.b32.xlu1 %v6755_v9, %s7179_s10  ;;  %6766 = vpow2.f32 %v4144_v35 }
 0xc0d   : > { %v6757_v4 = vpop.eup %6756  ;;  %v3898_v34 = vpop.xlane.xlu0 %3897  ;;  %6768 = vpow2.f32 %v4148_v17 }
 0xc0e   : > { %v6759_v49 = vpop.eup %6758  ;;  %4190 = vrot.lane.b32.xlu0 %v6757_v4, %s7179_s10  ;;  %v3929_v25 = vsel %vm3817_vm1, 1.0, %v3898_v34  ;;  %vm4009_vm1 = vcmask 48168  }
 0xc0f   : > { %6770 = vlog2.f32 %v3929_v25 }
 0xc10   : > { %4184 = vrot.lane.b32.xlu1 %v6759_v49, %s7179_s10  ;;  %6772 = vpow2.f32 %v4152_v61 }
 0xc11   : > { %v6761_v11 = vpop.eup %6760 }
 0xc12   : > { %v6763_v63 = vpop.eup %6762  ;;  %4194 = vrot.lane.b32.xlu0 %v6761_v11, %s7179_s10 }
 0xc14   : > { %4188 = vrot.lane.b32.xlu1 %v6763_v63, %s7179_s10 }
 0xc15   : > { %v6765_v47 = vpop.eup %6764 }
 0xc16   : > { %v6767_v23 = vpop.eup %6766  ;;  %4198 = vrot.lane.b32.xlu0 %v6765_v47, %s7179_s10 }
 0xc17   : > { %v3900_v62 = vpop.xlane.xlu1 %3899  ;;  %v6769_v52 = vpop.eup %6768 }
 0xc18   : > { %4192 = vrot.lane.b32.xlu1 %v6767_v23, %s7179_s10  ;;  %v3930_v35 = vsel %vm3818_vm6, 1.0, %v3900_v62  ;;  %vm13701_vm6 = vcmp.eq.f32.partialorder %v11150_v57, -inf }
 0xc19   : > { %6774 = vlog2.f32 %v3930_v35  ;;  %v6771_v29 = vpop.eup %6770 }
 0xc1a   : > { %v3946_v26 = vmul.f32 0.6931472, %v6771_v29  ;;  %v6773_v4 = vpop.eup %6772 }
 0xc1c   : > { %4196 = vrot.lane.b32.xlu1 %v6769_v52, %s7179_s10  ;;  %v3902_v9 = vpop.xlane.xlu0 %3901  ;;  %v11344_v41 = vadd.f32 %v3946_v26, %v11056_v12 }
 0xc1d   : > { %v3931_v17 = vsel %vm3819_vm11, 1.0, %v3902_v9  ;;  %vm13702_vm11 = vcmp.eq.f32.partialorder %v11167_v43, -inf }
 0xc1e   : > { %6776 = vlog2.f32 %v3931_v17  ;;  %v3993_v49 = vsub.f32 0.0, %v11344_v41 }
 0xc20   : > { %4200 = vrot.lane.b32.xlu1 %v6773_v4, %s7179_s10  ;;  %v3904_v34 = vpop.xlane.xlu0 %3903  ;;  %4010 = vst.msk [vmem:[%s7665_s21] sm:$0xff] %vm4009_vm1, %v3993_v49 }
 0xc21   : > { %v3932_v25 = vsel %vm3820_vm7, 1.0, %v3904_v34  ;;  %vm13703_vm7 = vcmp.eq.f32.partialorder %v11164_v40, -inf }
 0xc22   : > { %6778 = vlog2.f32 %v3932_v25 }
 0xc23   : > { %v6775_v61 = vpop.eup %6774 }
 0xc24   : > { %v3908_v11 = vpop.xlane.xlu1 %3907  ;;  %v3906_v63 = vpop.xlane.xlu0 %3905  ;;  %v3948_v12 = vmul.f32 0.6931472, %v6775_v61 }
 0xc25   : > { %v3934_v47 = vsel %vm3822_vm4, 1.0, %v3908_v11  ;;  %v3933_v23 = vsel %vm3821_vm0, 1.0, %v3906_v63  ;;  %vm13704_vm0 = vcmask 15360  }
 0xc26   : > { %6780 = vlog2.f32 %v3934_v47  ;;  %v11357_v62 = vadd.f32 %v3948_v12, %v11073_v50  ;;  %vm13705_vm4 = vmmov %vm13704_vm0 }
 0xc27   : > { %6782 = vlog2.f32 %v3933_v23 }
 0xc28   : > { %v6777_v35 = vpop.eup %6776  ;;  %v3912_v52 = vpop.xlane.xlu1 %3911  ;;  %v3994_v26 = vsub.f32 0.0, %v11357_v62 }
 0xc29   : > { %v3910_v29 = vpop.xlane.xlu0 %3909  ;;  %v3950_v9 = vmul.f32 0.6931472, %v6777_v35  ;;  %v3936_v17 = vsel %vm3824_vm9, 1.0, %v3912_v52  ;;  %vm13707_vm9 = vmmov %vm13704_vm0 }
 0xc2a   : > { %6784 = vlog2.f32 %v3936_v17  ;;  %v3935_v4 = vsel %vm3823_vm12, 1.0, %v3910_v29  ;;  %4011 = vst.msk [vmem:[%s7665_s21 + $0x8] sm:$0xff] %vm4009_vm1, %v3994_v26  ;;  %vm13706_vm12 = vmmov %vm13704_vm0 }
 0xc2b   : > { %v11367_v50 = vadd.f32 %v3950_v9, %v11080_v56  ;;  %6786 = vlog2.f32 %v3935_v4 }
 0xc2c   : > { %v6779_v49 = vpop.eup %6778  ;;  %v3916_v34 = vpop.xlane.xlu1 %3915 }
 0xc2d   : > { %v3914_v25 = vpop.xlane.xlu0 %3913  ;;  %v3995_v61 = vsub.f32 0.0, %v11367_v50  ;;  %v3952_v11 = vmul.f32 0.6931472, %v6779_v49  ;;  %v3938_v63 = vsel %vm3826_vm10, 1.0, %v3916_v34  ;;  %vm13709_vm10 = vmmov %vm13704_vm0 }
 0xc2e   : > { %6788 = vlog2.f32 %v3938_v63  ;;  %v3937_v12 = vsel %vm3825_vm8, 1.0, %v3914_v25  ;;  %vm13708_vm8 = vmmov %vm13704_vm0 }
 0xc2f   : > { %4012 = vst.msk [vmem:[%s7665_s21 + $0x10] sm:$0xff] %vm4009_vm1, %v3995_v61  ;;  %v11377_v56 = vadd.f32 %v3952_v11, %v11087_v3  ;;  %6790 = vlog2.f32 %v3937_v12 }
 0xc30   : > { %v6781_v47 = vpop.eup %6780  ;;  %v3920_v23 = vpop.xlane.xlu1 %3919 }
 0xc31   : > { %v3918_v35 = vpop.xlane.xlu0 %3917  ;;  %v6783_v52 = vpop.eup %6782  ;;  %v3996_v29 = vsub.f32 0.0, %v11377_v56  ;;  %v3956_v26 = vmul.f32 0.6931472, %v6781_v47  ;;  %v3940_v9 = vsel %vm3828_vm3, 1.0, %v3920_v23  ;;  %vm13711_vm3 = vmmov %vm13704_vm0 }
 0xc32   : > { %v3954_v17 = vmul.f32 0.6931472, %v6783_v52  ;;  %6792 = vlog2.f32 %v3940_v9  ;;  %v3939_v4 = vsel %vm3827_vm13, 1.0, %v3918_v35  ;;  %vm13710_vm13 = vmmov %vm13704_vm0 }
 0xc33   : > { %4013 = vst.msk [vmem:[%s7665_s21 + $0x18] sm:$0xff] %vm4009_vm1, %v3996_v29  ;;  %v11387_v3 = vadd.f32 %v3956_v26, %v11097_v30  ;;  %6794 = vlog2.f32 %v3939_v4 }
 0xc34   : > { %v6785_v49 = vpop.eup %6784  ;;  %v11390_v34 = vadd.f32 %v3954_v17, %v11094_v22  ;;  %v3924_v25 = vpop.xlane.xlu1 %3923 }
 0xc35   : > { %v3922_v61 = vpop.xlane.xlu0 %3921  ;;  %v6787_v11 = vpop.eup %6786  ;;  %v3998_v63 = vsub.f32 0.0, %v11387_v3  ;;  %v3960_v12 = vmul.f32 0.6931472, %v6785_v49  ;;  %v3942_v47 = vsel %vm3830_vm2, 1.0, %v3924_v25  ;;  %vm13712_vm2 = vmmov %vm13704_vm0 }
 0xc36   : > { %v3997_v23 = vsub.f32 0.0, %v11390_v34  ;;  %v3958_v35 = vmul.f32 0.6931472, %v6787_v11  ;;  %6796 = vlog2.f32 %v3942_v47  ;;  %v3941_v22 = vsel %vm13701_vm6, 1.0, %v3922_v61  ;;  %vm13714_vm6 = vmmov %vm13704_vm0 }
 0xc37   : > { %4015 = vst.msk [vmem:[%s7665_s21 + $0x28] sm:$0xff] %vm4009_vm1, %v3998_v63  ;;  %v11399_v30 = vadd.f32 %v3960_v12, %v11111_v46  ;;  %6798 = vlog2.f32 %v3941_v22 }
 0xc38   : > { %v6789_v52 = vpop.eup %6788  ;;  %4014 = vst.msk [vmem:[%s7665_s21 + $0x20] sm:$0xff] %vm4009_vm1, %v3997_v23  ;;  %v11406_v29 = vadd.f32 %v3958_v35, %v11108_v0  ;;  %v3928_v26 = vpop.xlane.xlu1 %3927 }
 0xc39   : > { %v3926_v9 = vpop.xlane.xlu0 %3925  ;;  %v6791_v17 = vpop.eup %6790  ;;  %v4000_v4 = vsub.f32 0.0, %v11399_v30  ;;  %v3964_v49 = vmul.f32 0.6931472, %v6789_v52  ;;  %v3944_v46 = vsel %vm13702_vm11, 1.0, %v3928_v26  ;;  %vm13715_vm11 = vmmov %vm13704_vm0 }
 0xc3a   : > { %v3999_v25 = vsub.f32 0.0, %v11406_v29  ;;  %v3962_v61 = vmul.f32 0.6931472, %v6791_v17  ;;  %6800 = vlog2.f32 %v3944_v46  ;;  %v3943_v11 = vsel %vm13703_vm7, 1.0, %v3926_v9  ;;  %vm13716_vm7 = vmmov %vm13704_vm0 }
 0xc3b   : > { %4017 = vst.msk [vmem:[%s7665_s21 + $0x38] sm:$0xff] %vm4009_vm1, %v4000_v4  ;;  %v11415_v0 = vadd.f32 %v3964_v49, %v11125_v32  ;;  %6802 = vlog2.f32 %v3943_v11 }
 0xc3c   : > { %v6793_v63 = vpop.eup %6792  ;;  %4016 = vst.msk [vmem:[%s7665_s21 + $0x30] sm:$0xff] %vm4009_vm1, %v3999_v25  ;;  %v11422_v12 = vadd.f32 %v3962_v61, %v11122_v53 }
 0xc3d   : > { %v6795_v47 = vpop.eup %6794  ;;  %v4002_v23 = vsub.f32 0.0, %v11415_v0  ;;  %v3968_v35 = vmul.f32 0.6931472, %v6793_v63 }
 0xc3e   : > { %v4001_v22 = vsub.f32 0.0, %v11422_v12  ;;  %v3966_v32 = vmul.f32 0.6931472, %v6795_v47 }
 0xc3f   : > { %4019 = vst.msk [vmem:[%s7665_s21 + $0x48] sm:$0xff] %vm4009_vm1, %v4002_v23  ;;  %v11429_v52 = vadd.f32 %v3968_v35, %v11139_v20 }
 0xc40   : > { %v6797_v26 = vpop.eup %6796  ;;  %4018 = vst.msk [vmem:[%s7665_s21 + $0x40] sm:$0xff] %vm4009_vm1, %v4001_v22  ;;  %v11434_v53 = vadd.f32 %v3966_v32, %v11136_v1 }
 0xc41   : > { %v4004_v9 = vsub.f32 0.0, %v11429_v52  ;;  %v3972_v17 = vmul.f32 0.6931472, %v6797_v26  ;;  %v6799_v4 = vpop.eup %6798 }
 0xc42   : > { %v4003_v49 = vsub.f32 0.0, %v11434_v53  ;;  %v3970_v46 = vmul.f32 0.6931472, %v6799_v4 }
 0xc43   : > { %4021 = vst.msk [vmem:[%s7665_s21 + $0x58] sm:$0xff] %vm4009_vm1, %v4004_v9  ;;  %v11441_v20 = vadd.f32 %v3972_v17, %v11153_v38 }
 0xc44   : > { %v6801_v25 = vpop.eup %6800  ;;  %4020 = vst.msk [vmem:[%s7665_s21 + $0x50] sm:$0xff] %vm4009_vm1, %v4003_v49  ;;  %v11447_v61 = vadd.f32 %v3970_v46, %v11150_v57 }
 0xc45   : > { %v4006_v1 = vsub.f32 0.0, %v11441_v20  ;;  %v3976_v11 = vmul.f32 0.6931472, %v6801_v25  ;;  %v6803_v63 = vpop.eup %6802 }
 0xc46   : > { %v4005_v47 = vsub.f32 0.0, %v11447_v61  ;;  %v3974_v38 = vmul.f32 0.6931472, %v6803_v63 }
 0xc47   : > { %4023 = vst.msk [vmem:[%s7665_s21 + $0x68] sm:$0xff] %vm4009_vm1, %v4006_v1  ;;  %v11453_v23 = vadd.f32 %v3976_v11, %v11167_v43 }
 0xc48   : > { %4022 = vst.msk [vmem:[%s7665_s21 + $0x60] sm:$0xff] %vm4009_vm1, %v4005_v47  ;;  %v11459_v22 = vadd.f32 %v3974_v38, %v11164_v40 }
 0xc49   : > { %v4008_v35 = vsub.f32 0.0, %v11453_v23 }
 0xc4a   : > { %v4007_v57 = vsub.f32 0.0, %v11459_v22 }
 0xc4b   : > { %4025 = vst.msk [vmem:[%s7665_s21 + $0x78] sm:$0xff] %vm4009_vm1, %v4008_v35 }
 0xc4c   : > { %4024 = vst.msk [vmem:[%s7665_s21 + $0x70] sm:$0xff] %vm4009_vm1, %v4007_v57  ;;  %vm13713_vm1 = vmmov %vm13704_vm0 }
 0xc68   : > { %v4171_v32 = vpop.permute.xlu0 %4170 }
 0xc69   : > { %v4218_v26 = vsel %vm13704_vm0, %v4171_v32, 0.0 }
 0xc6a   : > { %4219 = vadd.xlane.f32.xlu0 %v4218_v26 }
 0xc72   : > { %v4173_v43 = vpop.permute.xlu1 %4172 }
 0xc73   : > { %v4221_v9 = vsel %vm13705_vm4, %v4173_v43, 0.0  ;;  %vm13717_vm4 = vmmov %vm13704_vm0 }
 0xc74   : > { %4222 = vadd.xlane.f32.xlu1 %v4221_v9  ;;  %v4179_v17 = vpop.permute.xlu0 %4178 }
 0xc75   : > { %v4230_v1 = vsel %vm13708_vm8, %v4179_v17, 0.0  ;;  %vm13720_vm8 = vcmp.eq.f32.partialorder %v11225_v18, -inf }
 0xc76   : > { %v4175_v4 = vpop.permute.xlu1 %4174 }
 0xc77   : > { %v4224_v49 = vsel %vm13706_vm12, %v4175_v4, 0.0  ;;  %vm13718_vm12 = vmmov %vm13704_vm0 }
 0xc78   : > { %4225 = vadd.xlane.f32.xlu0 %v4224_v49  ;;  %v4183_v40 = vpop.permute.xlu0 %4182 }
 0xc79   : > { %v4236_v38 = vsel %vm13710_vm13, %v4183_v40, 0.0  ;;  %vm13722_vm13 = vcmp.eq.s32.totalorder %v7822_v33, 0 }
 0xc7a   : > { %v4177_v46 = vpop.permute.xlu1 %4176 }
 0xc7b   : > { %v4227_v25 = vsel %vm13707_vm9, %v4177_v46, 0.0  ;;  %vm13719_vm9 = vcmp.eq.f32.partialorder %v11208_v15, -inf }
 0xc7c   : > { %4228 = vadd.xlane.f32.xlu1 %v4227_v25  ;;  %4231 = vadd.xlane.f32.xlu0 %v4230_v1  ;;  %v4187_v11 = vpop.permute.xlu0 %4186 }
 0xc7d   : > { %v4242_v26 = vsel %vm13712_vm2, %v4187_v11, 0.0  ;;  %vm13724_vm2 = vcmp.eq.f32.partialorder %v11234_v31, -inf }
 0xc7e   : > { %v4181_v63 = vpop.permute.xlu1 %4180 }
 0xc7f   : > { %v4233_v47 = vsel %vm13709_vm10, %v4181_v63, 0.0  ;;  %vm13721_vm10 = vcmp.eq.f32.partialorder %v11215_v55, -inf }
 0xc80   : > { %4234 = vadd.xlane.f32.xlu1 %v4233_v47  ;;  %4237 = vadd.xlane.f32.xlu0 %v4236_v38  ;;  %v4191_v35 = vpop.permute.xlu0 %4190 }
 0xc81   : > { %v4248_v4 = vsel %vm13714_vm6, %v4191_v35, 0.0  ;;  %vm13726_vm6 = vcmp.eq.f32.partialorder %v11240_v2, -inf }
 0xc82   : > { %v4185_v57 = vpop.permute.xlu1 %4184 }
 0xc83   : > { %v4239_v32 = vsel %vm13711_vm3, %v4185_v57, 0.0  ;;  %vm13723_vm3 = vcmp.eq.f32.partialorder %v11220_v16, -inf }
 0xc84   : > { %4240 = vadd.xlane.f32.xlu1 %v4239_v32  ;;  %4243 = vadd.xlane.f32.xlu0 %v4242_v26  ;;  %v4195_v43 = vpop.permute.xlu0 %4194 }
 0xc85   : > { %v4254_v46 = vsel %vm13716_vm7, %v4195_v43, 0.0  ;;  %vm13728_vm7 = vcmp.eq.f32.partialorder %v11254_v24, -inf }
 0xc86   : > { %v4189_v9 = vpop.permute.xlu1 %4188 }
 0xc87   : > { %v4245_v17 = vsel %vm13713_vm1, %v4189_v9, 0.0  ;;  %vm13725_vm1 = vcmp.eq.s32.totalorder %v7822_v33, 127 }
 0xc88   : > { %4246 = vadd.xlane.f32.xlu1 %v4245_v17  ;;  %4249 = vadd.xlane.f32.xlu0 %v4248_v4  ;;  %v4199_v25 = vpop.permute.xlu0 %4198  ;;  %v4378_v4 = vsub.f32 %v11180_v42, %v11344_v41 }
 0xc89   : > { %v4260_v63 = vsel %vm13717_vm4, %v4199_v25, 0.0  ;;  %vm13730_vm4 = vmmov %vm13722_vm13 }
 0xc8a   : > { %v4193_v49 = vpop.permute.xlu1 %4192 }
 0xc8b   : > { %v4251_v40 = vsel %vm13715_vm11, %v4193_v49, 0.0  ;;  %vm13727_vm11 = vcmp.eq.f32.partialorder %v11248_v58, -inf }
 0xc8c   : > { %4252 = vadd.xlane.f32.xlu1 %v4251_v40  ;;  %4255 = vadd.xlane.f32.xlu0 %v4254_v46 }
 0xc8e   : > { %v4197_v1 = vpop.permute.xlu1 %4196 }
 0xc8f   : > { %v4257_v11 = vsel %vm13704_vm0, %v4197_v1, 0.0  ;;  %vm13729_vm0 = vcmp.eq.f32.partialorder %v11263_v14, -inf }
 0xc90   : > { %4258 = vadd.xlane.f32.xlu1 %v4257_v11  ;;  %4261 = vadd.xlane.f32.xlu0 %v4260_v63  ;;  %v4394_v11 = vsel %vm13722_vm13, 0.0, %v4378_v4  ;;  %v4379_v4 = vsub.f32 %v11178_v39, %v11357_v62  ;;  %vm13735_vm13 = vcmp.eq.f32.partialorder %v11269_v7, -inf }
 0xc92   : > { %v4201_v47 = vpop.permute.xlu1 %4200 }
 0xc93   : > { %v4263_v38 = vsel %vm13718_vm12, %v4201_v47, 0.0  ;;  %vm13731_vm12 = vmmov %vm13730_vm4 }
 0xc94   : > { %4264 = vadd.xlane.f32.xlu1 %v4263_v38  ;;  %v4442_v38 = vld [vmem:[%s7274_s9 + $0x30] sm:$0xff] }
 0xcf7   : > { %v4220_v35 = vpop.xlane.xlu0 %4219 }
 0xcf8   : > { %v4266_v57 = vsel %vm13719_vm9, 1.0, %v4220_v35  ;;  %vm13732_vm9 = vmmov %vm13725_vm1 }
 0xcf9   : > { %6804 = vlog2.f32 %v4266_v57 }
 0xd01   : > { %v4223_v32 = vpop.xlane.xlu1 %4222 }
 0xd02   : > { %v4267_v26 = vsel %vm13720_vm8, 1.0, %v4223_v32  ;;  %vm13733_vm8 = vmmov %vm13730_vm4 }
 0xd03   : > { %6806 = vlog2.f32 %v4267_v26  ;;  %v6805_v43 = vpop.eup %6804 }
 0xd04   : > { %v4283_v9 = vmul.f32 0.6931472, %v6805_v43 }
 0xd05   : > { %v4226_v17 = vpop.xlane.xlu0 %4225 }
 0xd06   : > { %v4268_v49 = vsel %vm13721_vm10, 1.0, %v4226_v17  ;;  %v4314_v40 = vadd.f32 %v4283_v9, %v11208_v15  ;;  %v11504_v15 = vld [vmem:[%s13202_s2] ss:$0 sm:$0xff]  ;;  %vm13734_vm10 = vmmov %vm13730_vm4 }
 0xd07   : > { %6808 = vlog2.f32 %v4268_v49  ;;  %v4380_v49 = vsub.f32 %v11182_v45, %v11367_v50 }
 0xd08   : > { %v4330_v46 = vsub.f32 %v4314_v40, %v11344_v41 }
 0xd09   : > { %v4229_v25 = vpop.xlane.xlu1 %4228  ;;  %v4232_v1 = vpop.xlane.xlu0 %4231 }
 0xd0a   : > { %v4269_v63 = vsel %vm13723_vm3, 1.0, %v4229_v25  ;;  %v4270_v47 = vsel %vm13724_vm2, 1.0, %v4232_v1  ;;  %v4410_v42 = vsel %vm13725_vm1, %v4330_v46, %v4394_v11  ;;  %v4381_v25 = vsub.f32 %v11186_v19, %v11377_v56  ;;  %vm13737_vm2 = vmmov %vm13730_vm4 }
 0xd0b   : > { %6810 = vlog2.f32 %v4269_v63  ;;  %v4426_v41 = vadd.f32 %v11504_v15, %v4410_v42  ;;  %v4383_v1 = vsub.f32 %v11190_v27, %v11387_v3  ;;  %v4395_v42 = vsel %vm13730_vm4, 0.0, %v4379_v4  ;;  %vm13738_vm1 = vmmov %vm13737_vm2 }
 0xd0c   : > { %6812 = vlog2.f32 %v4270_v47  ;;  %v4396_v19 = vsel %vm13731_vm12, 0.0, %v4380_v49  ;;  %v4382_v27 = vsub.f32 %v11184_v36, %v11390_v34  ;;  %v4384_v36 = vsub.f32 %v11188_v60, %v11406_v29  ;;  %vm13744_vm12 = vmmov %vm13738_vm1 }
 0xd0d   : > { %v6807_v35 = vpop.eup %6806  ;;  %v4235_v57 = vpop.xlane.xlu1 %4234  ;;  %v11509_v9 = vadd.f32 %v4442_v38, %v4426_v41  ;;  %vm13736_vm3 = vcmp.eq.f32.partialorder %v11277_v28, -inf }
 0xd0e   : > { %v4238_v32 = vpop.xlane.xlu0 %4237  ;;  %v4285_v26 = vmul.f32 0.6931472, %v6807_v35  ;;  %v4271_v43 = vsel %vm13726_vm6, 1.0, %v4235_v57  ;;  %v4443_v35 = vld [vmem:[%s7274_s9 + $0x70] sm:$0xff]  ;;  %vm13739_vm6 = vmmov %vm13732_vm9 }
 0xd0f   : > { %v4272_v17 = vsel %vm13727_vm11, 1.0, %v4238_v32  ;;  %6814 = vlog2.f32 %v4271_v43  ;;  %4474 = vmax.xlane.f32.xlu0 %v11509_v9  ;;  %v4397_v32 = vsel %vm13733_vm8, 0.0, %v4381_v25  ;;  %v4398_v25 = vsel %vm13737_vm2, 0.0, %v4382_v27  ;;  %vm13740_vm11 = vmmov %vm13738_vm1 }
 0xd10   : > { %v4315_v40 = vadd.f32 %v4285_v26, %v11225_v18  ;;  %6816 = vlog2.f32 %v4272_v17  ;;  %v4399_v26 = vsel %vm13734_vm10, 0.0, %v4383_v1  ;;  %vm13743_vm4 = vmmov %vm13739_vm6 }
 0xd11   : > { %v6809_v46 = vpop.eup %6808  ;;  %v4241_v11 = vpop.xlane.xlu1 %4240  ;;  %vm13746_vm8 = vmmov %vm13743_vm4 }
 0xd12   : > { %v4244_v63 = vpop.xlane.xlu0 %4243  ;;  %v4331_v39 = vsub.f32 %v4315_v40, %v11357_v62  ;;  %v4287_v47 = vmul.f32 0.6931472, %v6809_v46  ;;  %v4273_v45 = vsel %vm13728_vm7, 1.0, %v4241_v11  ;;  %v4385_v62 = vsub.f32 %v11194_v37, %v11399_v30  ;;  %vm13749_vm10 = vmmov %vm13743_vm4 }
 0xd13   : > { %v4274_v18 = vsel %vm13729_vm0, 1.0, %v4244_v63  ;;  %6818 = vlog2.f32 %v4273_v45  ;;  %v4400_v45 = vsel %vm13740_vm11, 0.0, %v4384_v36  ;;  %vm13741_vm7 = vcmp.eq.f32.partialorder %v11283_v10, -inf  ;;  %vm13753_vm2 = vmmov %vm13738_vm1 }
 0xd14   : > { %v4411_v38 = vsel %vm13732_vm9, %v4331_v39, %v4395_v42  ;;  %v4316_v41 = vadd.f32 %v4287_v47, %v11215_v55  ;;  %6820 = vlog2.f32 %v4274_v18  ;;  %v11558_v11 = vsel %vm13738_vm1, 0.0, %v4385_v62  ;;  %v4444_v39 = vld [vmem:[%s7274_s9 + $0xb0] sm:$0xff]  ;;  %vm13745_vm9 = vmmov %vm13743_vm4 }
 0xd15   : > { %v6811_v57 = vpop.eup %6810  ;;  %v4247_v43 = vpop.xlane.xlu1 %4246  ;;  %v4427_v17 = vadd.f32 %v11504_v15, %v4411_v38  ;;  %v4387_v18 = vsub.f32 %v11198_v59, %v11415_v0  ;;  %vm13742_vm0 = vcmp.eq.f32.partialorder %v11292_v21, -inf }
 0xd16   : > { %v4250_v37 = vpop.xlane.xlu0 %4249  ;;  %v6813_v4 = vpop.eup %6812  ;;  %v4332_v55 = vsub.f32 %v4316_v41, %v11367_v50  ;;  %v4289_v49 = vmul.f32 0.6931472, %v6811_v57  ;;  %v4275_v40 = vsel %vm13735_vm13, 1.0, %v4247_v43  ;;  %v4386_v43 = vsub.f32 %v11192_v54, %v11422_v12  ;;  %vm13751_vm13 = vmmov %vm13738_vm1 }
 0xd17   : > { %v4276_v46 = vsel %vm13736_vm3, 1.0, %v4250_v37  ;;  %v4291_v1 = vmul.f32 0.6931472, %v6813_v4  ;;  %6822 = vlog2.f32 %v4275_v40  ;;  %v11554_v60 = vadd.f32 %v4443_v35, %v4427_v17  ;;  %v4445_v17 = vld [vmem:[%s7274_s9 + $0xf0] sm:$0xff]  ;;  %vm13752_vm3 = vmmov %vm13743_vm4 }
 0xd18   : > { %v4412_v50 = vsel %vm13739_vm6, %v4332_v55, %v4396_v19  ;;  %v4317_v63 = vadd.f32 %v4289_v49, %v11220_v16  ;;  %6824 = vlog2.f32 %v4276_v46  ;;  %v11587_v55 = vsel %vm13744_vm12, 0.0, %v4387_v18  ;;  %vm13755_vm6 = vmmov %vm13753_vm2 }
 0xd19   : > { %v6815_v47 = vpop.eup %6814  ;;  %v4318_v42 = vadd.f32 %v4291_v1, %v11234_v31  ;;  %4476 = vmax.xlane.f32.xlu1 %v11554_v60  ;;  %v4253_v27 = vpop.xlane.xlu1 %4252  ;;  %v4428_v19 = vadd.f32 %v11504_v15, %v4412_v50 }
 0xd1a   : > { %v4256_v62 = vpop.xlane.xlu0 %4255  ;;  %v6817_v38 = vpop.eup %6816  ;;  %v4333_v16 = vsub.f32 %v4317_v63, %v11377_v56  ;;  %v4293_v41 = vmul.f32 0.6931472, %v6815_v47  ;;  %v4277_v35 = vsel %vm13741_vm7, 1.0, %v4253_v27  ;;  %v4446_v47 = vld [vmem:[%s7274_s9 + $0x130] sm:$0xff] }
 0xd1b   : > { %v4278_v57 = vsel %vm13742_vm0, 1.0, %v4256_v62  ;;  %v4334_v59 = vsub.f32 %v4318_v42, %v11390_v34  ;;  %v4295_v31 = vmul.f32 0.6931472, %v6817_v38  ;;  %6826 = vlog2.f32 %v4277_v35  ;;  %v4447_v27 = vld [vmem:[%s7274_s9 + $0x170] sm:$0xff]  ;;  %vm13759_vm0 = vmmov %vm13753_vm2 }
 0xd1c   : > { %v11577_v36 = vadd.f32 %v4444_v39, %v4428_v19  ;;  %v4413_v37 = vsel %vm13743_vm4, %v4333_v16, %v4397_v32  ;;  %v4319_v56 = vadd.f32 %v4293_v41, %v11240_v2  ;;  %6828 = vlog2.f32 %v4278_v57 }
 0xd1d   : > { %v6819_v4 = vpop.eup %6818  ;;  %v4414_v34 = vsel %vm13745_vm9, %v4334_v59, %v4398_v25  ;;  %v4320_v49 = vadd.f32 %v4295_v31, %v11248_v58  ;;  %v4259_v40 = vpop.xlane.xlu1 %4258  ;;  %v4429_v2 = vadd.f32 %v11504_v15, %v4413_v37  ;;  %v4388_v37 = vsub.f32 %v11196_v48, %v11434_v53 }
 0xd1e   : > { %4478 = vmax.xlane.f32.xlu0 %v11577_v36  ;;  %v4262_v54 = vpop.xlane.xlu0 %4261  ;;  %v6821_v32 = vpop.eup %6820  ;;  %v4335_v46 = vsub.f32 %v4319_v56, %v11387_v3  ;;  %v4297_v1 = vmul.f32 0.6931472, %v6819_v4  ;;  %v4279_v50 = vsel %vm4087_vm5, 1.0, %v4259_v40  ;;  %v4430_v3 = vadd.f32 %v11504_v15, %v4414_v34  ;;  %vm13747_vm5 = vmmov %vm13738_vm1 }
 0xd1f   : > { %v4280_v63 = vsel %vm4088_vm14, 1.0, %v4262_v54  ;;  %v4336_v25 = vsub.f32 %v4320_v49, %v11406_v29  ;;  %v4299_v58 = vmul.f32 0.6931472, %v6821_v32  ;;  %6830 = vlog2.f32 %v4279_v50  ;;  %vm13748_vm14 = vmmov %vm13743_vm4 }
 0xd20   : > { %v11600_v39 = vadd.f32 %v4445_v17, %v4429_v2  ;;  %v4415_v18 = vsel %vm13746_vm8, %v4335_v46, %v4399_v26  ;;  %v4321_v42 = vadd.f32 %v4297_v1, %v11254_v24  ;;  %6832 = vlog2.f32 %v4280_v63  ;;  %vm13754_vm1 = vmmov %vm13752_vm3 }
 0xd21   : > { %v6823_v62 = vpop.eup %6822  ;;  %v4402_v19 = vsel %vm13747_vm5, 0.0, %v4386_v43  ;;  %v4416_v29 = vsel %vm13748_vm14, %v4336_v25, %v4400_v45  ;;  %v4322_v38 = vadd.f32 %v4299_v58, %v11263_v14  ;;  %v4265_v16 = vpop.xlane.xlu1 %4264  ;;  %v4431_v26 = vadd.f32 %v11504_v15, %v4415_v18  ;;  %v4448_v43 = vld [vmem:[%s7274_s9 + $0x1b0] sm:$0xff]  ;;  %vm13757_vm11 = vmmov %vm13754_vm1 }
 0xd22   : > { %4480 = vmax.xlane.f32.xlu1 %v11600_v39  ;;  %v6825_v24 = vpop.eup %6824  ;;  %v4337_v41 = vsub.f32 %v4321_v42, %v11399_v30  ;;  %v4301_v35 = vmul.f32 0.6931472, %v6823_v62  ;;  %v4281_v57 = vsel %vm4089_vm15, 1.0, %v4265_v16  ;;  %v11618_v59 = vadd.f32 %v4446_v47, %v4430_v3  ;;  %vm13750_vm15 = vmmov %vm13743_vm4 }
 0xd23   : > { %v4338_v31 = vsub.f32 %v4322_v38, %v11422_v12  ;;  %v4303_v45 = vmul.f32 0.6931472, %v6825_v24  ;;  %6834 = vlog2.f32 %v4281_v57  ;;  %v11621_v14 = vadd.f32 %v4447_v27, %v4431_v26  ;;  %v4449_v12 = vld [vmem:[%s7274_s9 + $0x1f0] sm:$0xff]  ;;  %v13756_v24 = vld [vmem:[#allocation6_spill] sm:$0xff]  ;;  %vm13758_vm7 = vmmov %vm13754_vm1 }
 0xd24   : > { %v4417_v30 = vsel %vm13749_vm10, %v4337_v41, %v11558_v11  ;;  %v4323_v56 = vadd.f32 %v4301_v35, %v11269_v7  ;;  %4482 = vmax.xlane.f32.xlu0 %v11618_v59  ;;  %v4432_v17 = vadd.f32 %v11504_v15, %v4416_v29  ;;  %v4389_v34 = vsub.f32 %v11202_v6, %v11429_v52  ;;  %v4450_v7 = vld [vmem:[%s7274_s9 + $0x230] sm:$0xff]  ;;  %vm13761_vm4 = vmmov %vm13759_vm0 }
 0xd25   : > { %v6827_v4 = vpop.eup %6826  ;;  %v4418_v49 = vsel %vm13750_vm15, %v4338_v31, %v4402_v19  ;;  %v4324_v48 = vadd.f32 %v4303_v45, %v11277_v28  ;;  %v4433_v11 = vadd.f32 %v11504_v15, %v4417_v30  ;;  %v4390_v6 = vsub.f32 %v11200_v44, %v11447_v61  ;;  %v4451_v44 = vld [vmem:[%s7274_s9 + $0x270] sm:$0xff]  ;;  %vm13762_vm12 = vmmov %vm13754_vm1 }
 0xd26   : > { %4484 = vmax.xlane.f32.xlu1 %v11621_v14  ;;  %v6829_v40 = vpop.eup %6828  ;;  %v4339_v54 = vsub.f32 %v4323_v56, %v11415_v0  ;;  %v4305_v2 = vmul.f32 0.6931472, %v6827_v4  ;;  %v11642_v32 = vadd.f32 %v4448_v43, %v4432_v17  ;;  %v4434_v46 = vadd.f32 %v11504_v15, %v4418_v49  ;;  %v4453_v57 = vld [vmem:[%s7274_s9 + $0x2f0] sm:$0xff]  ;;  %vm13763_vm9 = vmmov %vm13754_vm1 }
 0xd27   : > { %v4340_v28 = vsub.f32 %v4324_v48, %v11434_v53  ;;  %v4307_v1 = vmul.f32 0.6931472, %v6829_v40  ;;  %v11648_v50 = vadd.f32 %v4449_v12, %v4433_v11  ;;  %v4404_v63 = vsel %vm13751_vm13, 0.0, %v4388_v37  ;;  %v4454_v37 = vld [vmem:[%s7274_s9 + $0x330] sm:$0xff]  ;;  %v13760_v12 = vld [vmem:[#allocation7_spill] sm:$0xff]  ;;  %vm13764_vm8 = vmmov %vm13759_vm0 }
 0xd28   : > { %v4419_v0 = vsel %vm13752_vm3, %v4339_v54, %v11587_v55  ;;  %v4325_v25 = vadd.f32 %v4305_v2, %v11283_v10  ;;  %4486 = vmax.xlane.f32.xlu0 %v11642_v32  ;;  %v11657_v58 = vadd.f32 %v4450_v7, %v4434_v46  ;;  %v4405_v53 = vsel %vm13753_vm2, 0.0, %v4389_v34  ;;  %v4452_v10 = vld [vmem:[%s7274_s9 + $0x2b0] sm:$0xff]  ;;  %vm13765_vm5 = vmmov %vm13754_vm1 }
 0xd29   : > { %v6831_v47 = vpop.eup %6830  ;;  %v4420_v18 = vsel %vm13754_vm1, %v4340_v28, %v4404_v63  ;;  %v4326_v42 = vadd.f32 %v4307_v1, %v11292_v21  ;;  %v4435_v55 = vadd.f32 %v11504_v15, %v4419_v0  ;;  %v4391_v27 = vsub.f32 %v11206_v5, %v11441_v20  ;;  %v4455_v7 = vld [vmem:[%s7274_s9 + $0x370] sm:$0xff] }
 0xd2a   : > { %4488 = vmax.xlane.f32.xlu1 %v11648_v50  ;;  %v6833_v3 = vpop.eup %6832  ;;  %v4341_v62 = vsub.f32 %v4325_v25, %v11429_v52  ;;  %v4309_v19 = vmul.f32 0.6931472, %v6831_v47  ;;  %v4436_v29 = vadd.f32 %v11504_v15, %v4420_v18  ;;  %v4406_v38 = vsel %vm13755_vm6, 0.0, %v4390_v6  ;;  %v4456_v54 = vld [vmem:[%s7274_s9 + $0x3b0] sm:$0xff] }
 0xd2b   : > { %v4342_v21 = vsub.f32 %v4326_v42, %v11447_v61  ;;  %v4311_v16 = vmul.f32 0.6931472, %v6833_v3  ;;  %v11675_v26 = vadd.f32 %v4451_v44, %v4435_v55  ;;  %v4392_v41 = vsub.f32 %v13756_v24, %v11459_v22  ;;  %v4457_v63 = vld [vmem:[%s7274_s9 + $0x3f0] sm:$0xff] }
 0xd2c   : > { %v4421_v5 = vsel %vm13757_vm11, %v4341_v62, %v4405_v53  ;;  %v4327_v52 = vadd.f32 %v4309_v19, %v11298_v13  ;;  %4490 = vmax.xlane.f32.xlu0 %v11657_v58  ;;  %v11683_v35 = vadd.f32 %v4452_v10, %v4436_v29  ;;  %v4407_v17 = vsel %vm13759_vm0, 0.0, %v4391_v27 }
 0xd2d   : > { %v6835_v31 = vpop.eup %6834  ;;  %v4422_v61 = vsel %vm13758_vm7, %v4342_v21, %v4406_v38  ;;  %v4328_v45 = vadd.f32 %v4311_v16, %v11311_v8  ;;  %v4437_v43 = vadd.f32 %v11504_v15, %v4421_v5  ;;  %v4393_v4 = vsub.f32 %v13760_v12, %v11453_v23 }
 0xd2e   : > { %4492 = vmax.xlane.f32.xlu1 %v11675_v26  ;;  %v4343_v30 = vsub.f32 %v4327_v52, %v11441_v20  ;;  %v4313_v13 = vmul.f32 0.6931472, %v6835_v31  ;;  %v4438_v56 = vadd.f32 %v11504_v15, %v4422_v61  ;;  %v4408_v49 = vsel %vm13761_vm4, 0.0, %v4392_v41 }
 0xd2f   : > { %v4344_v8 = vsub.f32 %v4328_v45, %v11459_v22  ;;  %v11699_v34 = vadd.f32 %v4453_v57, %v4437_v43  ;;  %vm13766_vm14 = vcmask 1048560  }
 0xd30   : > { %v4423_v20 = vsel %vm13762_vm12, %v4343_v30, %v4407_v17  ;;  %v4329_v48 = vadd.f32 %v4313_v13, %v11314_v51  ;;  %4494 = vmax.xlane.f32.xlu0 %v11683_v35  ;;  %v11707_v11 = vadd.f32 %v4454_v37, %v4438_v56  ;;  %v4409_v51 = vsel %vm13764_vm8, 0.0, %v4393_v4  ;;  %vm13767_vm10 = vmmov %vm13766_vm14 }
 0xd31   : > { %v4424_v40 = vsel %vm13763_vm9, %v4344_v8, %v4408_v49  ;;  %v4439_v22 = vadd.f32 %v11504_v15, %v4423_v20  ;;  %v4721_v25 = vsel %vm13767_vm10, %v11577_v36, -inf  ;;  %vm13768_vm15 = vmmov %vm13767_vm10 }
 0xd32   : > { %4496 = vmax.xlane.f32.xlu1 %v11699_v34  ;;  %v4345_v2 = vsub.f32 %v4329_v48, %v11453_v23  ;;  %v4440_v46 = vadd.f32 %v11504_v15, %v4424_v40  ;;  %v4724_v44 = vsel %vm13768_vm15, %v11600_v39, -inf  ;;  %vm13769_vm13 = vmmov %vm13767_vm10 }
 0xd33   : > { %v11719_v6 = vadd.f32 %v4455_v7, %v4439_v22  ;;  %v4718_v47 = vsel %vm13769_vm13, %v11554_v60, -inf  ;;  %vm13770_vm3 = vmmov %vm13767_vm10 }
 0xd34   : > { %v4425_v28 = vsel %vm13765_vm5, %v4345_v2, %v4409_v51  ;;  %4498 = vmax.xlane.f32.xlu0 %v11707_v11  ;;  %v11724_v1 = vadd.f32 %v4456_v54, %v4440_v46  ;;  %v4727_v53 = vsel %vm13770_vm3, %v11618_v59, -inf  ;;  %vm13771_vm2 = vmmov %vm13770_vm3 }
 0xd35   : > { %v4441_v0 = vadd.f32 %v11504_v15, %v4425_v28  ;;  %v4715_v15 = vsel %vm13766_vm14, %v11509_v9, -inf  ;;  %v4730_v18 = vsel %vm13771_vm2, %v11621_v14, -inf  ;;  %vm13772_vm1 = vmmov %vm13771_vm2 }
 0xd36   : > { %4500 = vmax.xlane.f32.xlu1 %v11719_v6  ;;  %v4733_v42 = vsel %vm13772_vm1, %v11642_v32, -inf  ;;  %vm13773_vm6 = vmmov %vm13772_vm1 }
 0xd37   : > { %v11729_v23 = vadd.f32 %v4457_v63, %v4441_v0  ;;  %v4736_v55 = vsel %vm13773_vm6, %v11648_v50, -inf  ;;  %vm13774_vm11 = vmmov %vm13772_vm1 }
 0xd38   : > { %4502 = vmax.xlane.f32.xlu0 %v11724_v1  ;;  %v4739_v10 = vsel %vm13774_vm11, %v11657_v58, -inf  ;;  %vm13775_vm7 = vmmov %vm13772_vm1 }
 0xd39   : > { %v4742_v3 = vsel %vm13775_vm7, %v11675_v26, -inf  ;;  %vm13776_vm0 = vmmov %vm13772_vm1 }
 0xd3a   : > { %4504 = vmax.xlane.f32.xlu1 %v11729_v23  ;;  %v4745_v27 = vsel %vm13776_vm0, %v11683_v35, -inf  ;;  %vm13777_vm4 = vmmov %vm13776_vm0 }
 0xd3b   : > { %v4748_v19 = vsel %vm13777_vm4, %v11699_v34, -inf  ;;  %vm13778_vm9 = vmmov %vm13776_vm0 }
 0xd3c   : > { %v4751_v21 = vsel %vm13778_vm9, %v11707_v11, -inf  ;;  %vm13779_vm8 = vmmov %vm13776_vm0 }
 0xd3d   : > { %v4754_v16 = vsel %vm13779_vm8, %v11719_v6, -inf  ;;  %vm13780_vm5 = vmmov %vm13776_vm0 }
 0xd3e   : > { %v4757_v41 = vsel %vm13780_vm5, %v11724_v1, -inf  ;;  %vm13781_vm14 = vmmov %vm13776_vm0 }
 0xd3f   : > { %v4760_v5 = vsel %vm13781_vm14, %v11729_v23, -inf }
 0xd4b   : > { %5037 = vrot.lane.b32.xlu1 %v11554_v60, %s7180_s11 }
 0xd4e   : > { %5035 = vrot.lane.b32.xlu0 %v11509_v9, %s7180_s11 }
 0xd4f   : > { %5039 = vrot.lane.b32.xlu1 %v11577_v36, %s7180_s11 }
 0xd52   : > { %5043 = vrot.lane.b32.xlu0 %v11618_v59, %s7180_s11 }
 0xd53   : > { %5041 = vrot.lane.b32.xlu1 %v11600_v39, %s7180_s11 }
 0xd56   : > { %5047 = vrot.lane.b32.xlu0 %v11642_v32, %s7180_s11 }
 0xd57   : > { %5045 = vrot.lane.b32.xlu1 %v11621_v14, %s7180_s11 }
 0xd5a   : > { %5051 = vrot.lane.b32.xlu0 %v11657_v58, %s7180_s11 }
 0xd5b   : > { %5049 = vrot.lane.b32.xlu1 %v11648_v50, %s7180_s11 }
 0xd5e   : > { %5055 = vrot.lane.b32.xlu0 %v11683_v35, %s7180_s11 }
 0xd5f   : > { %5053 = vrot.lane.b32.xlu1 %v11675_v26, %s7180_s11 }
 0xd62   : > { %5059 = vrot.lane.b32.xlu0 %v11707_v11, %s7180_s11 }
 0xd63   : > { %5057 = vrot.lane.b32.xlu1 %v11699_v34, %s7180_s11 }
 0xd66   : > { %5063 = vrot.lane.b32.xlu0 %v11724_v1, %s7180_s11 }
 0xd67   : > { %5061 = vrot.lane.b32.xlu1 %v11719_v6, %s7180_s11 }
 0xd6b   : > { %5065 = vrot.lane.b32.xlu1 %v11729_v23, %s7180_s11 }
 0xd85   : > { %4716 = vmax.xlane.f32.xlu0 %v4715_v15 }
 0xd89   : > { %4722 = vmax.xlane.f32.xlu0 %v4721_v25 }
 0xd8d   : > { %4725 = vmax.xlane.f32.xlu0 %v4724_v44 }
 0xd8f   : > { %4719 = vmax.xlane.f32.xlu1 %v4718_v47 }
 0xd91   : > { %4728 = vmax.xlane.f32.xlu0 %v4727_v53 }
 0xd93   : > { %4731 = vmax.xlane.f32.xlu1 %v4730_v18 }
 0xd95   : > { %4734 = vmax.xlane.f32.xlu0 %v4733_v42 }
 0xd97   : > { %4737 = vmax.xlane.f32.xlu1 %v4736_v55 }
 0xd99   : > { %4740 = vmax.xlane.f32.xlu0 %v4739_v10 }
 0xd9b   : > { %4743 = vmax.xlane.f32.xlu1 %v4742_v3 }
 0xd9c   : > { %v11787_v62 = vpop.xlane.xlu0 %4474 }
 0xd9d   : > { %4746 = vmax.xlane.f32.xlu0 %v4745_v27  ;;  %vm4506_vm12 = vcmp.eq.f32.partialorder %v11787_v62, -inf }
 0xd9e   : > { %v4522_v29 = vsel %vm4506_vm12, 0.0, %v11787_v62 }
 0xd9f   : > { %4749 = vmax.xlane.f32.xlu1 %v4748_v19  ;;  %v4538_v38 = vsub.f32 %v11509_v9, %v4522_v29 }
 0xda1   : > { %4752 = vmax.xlane.f32.xlu0 %v4751_v21  ;;  %v4554_v24 = vmul.f32 1.442695, %v4538_v38 }
 0xda3   : > { %4755 = vmax.xlane.f32.xlu1 %v4754_v16  ;;  %6836 = vpow2.f32 %v4554_v24 }
 0xda5   : > { %4758 = vmax.xlane.f32.xlu0 %v4757_v41 }
 0xda6   : > { %v11804_v52 = vpop.xlane.xlu1 %4476 }
 0xda7   : > { %4761 = vmax.xlane.f32.xlu1 %v4760_v5  ;;  %vm4507_vm10 = vcmp.eq.f32.partialorder %v11804_v52, -inf }
 0xda8   : > { %v4523_v57 = vsel %vm4507_vm10, 0.0, %v11804_v52 }
 0xda9   : > { %v4539_v31 = vsub.f32 %v11554_v60, %v4523_v57 }
 0xdab   : > { %v11811_v61 = vpop.xlane.xlu0 %4478  ;;  %v4556_v45 = vmul.f32 1.442695, %v4539_v31 }
 0xdac   : > { %vm4508_vm15 = vcmp.eq.f32.partialorder %v11811_v61, -inf }
 0xdad   : > { %v4524_v43 = vsel %vm4508_vm15, 0.0, %v11811_v61  ;;  %6838 = vpow2.f32 %v4556_v45  ;;  %v6837_v30 = vpop.eup %6836 }
 0xdae   : > { %v4540_v37 = vsub.f32 %v11577_v36, %v4524_v43  ;;  %4586 = vadd.xlane.f32.xlu0 %v6837_v30 }
 0xdaf   : > { %v11818_v13 = vpop.xlane.xlu1 %4480 }
 0xdb0   : > { %v4558_v56 = vmul.f32 1.442695, %v4540_v37  ;;  %vm4509_vm13 = vcmp.eq.f32.partialorder %v11818_v13, -inf }
 0xdb1   : > { %v4525_v17 = vsel %vm4509_vm13, 0.0, %v11818_v13  ;;  %v11825_v4 = vpop.xlane.xlu0 %4482 }
 0xdb2   : > { %6840 = vpow2.f32 %v4558_v56  ;;  %v4541_v12 = vsub.f32 %v11600_v39, %v4525_v17  ;;  %vm4510_vm3 = vcmp.eq.f32.partialorder %v11825_v4, -inf }
 0xdb3   : > { %v11828_v8 = vpop.xlane.xlu1 %4484  ;;  %v4526_v20 = vsel %vm4510_vm3, 0.0, %v11825_v4 }
 0xdb4   : > { %v4560_v49 = vmul.f32 1.442695, %v4541_v12  ;;  %vm4511_vm2 = vcmp.eq.f32.partialorder %v11828_v8, -inf  ;;  %v4542_v48 = vsub.f32 %v11618_v59, %v4526_v20 }
 0xdb5   : > { %v4527_v7 = vsel %vm4511_vm2, 0.0, %v11828_v8  ;;  %v11839_v22 = vpop.xlane.xlu0 %4486 }
 0xdb6   : > { %6842 = vpow2.f32 %v4560_v49  ;;  %v4543_v40 = vsub.f32 %v11621_v14, %v4527_v7  ;;  %v4562_v54 = vmul.f32 1.442695, %v4542_v48  ;;  %vm4512_vm1 = vcmp.eq.f32.partialorder %v11839_v22, -inf }
 0xdb7   : > { %v11842_v2 = vpop.xlane.xlu1 %4488  ;;  %v6839_v46 = vpop.eup %6838  ;;  %v4528_v28 = vsel %vm4512_vm1, 0.0, %v11839_v22 }
 0xdb8   : > { %v4564_v51 = vmul.f32 1.442695, %v4543_v40  ;;  %vm4513_vm6 = vcmp.eq.f32.partialorder %v11842_v2, -inf  ;;  %6844 = vpow2.f32 %v4562_v54  ;;  %v4544_v63 = vsub.f32 %v11642_v32, %v4528_v28  ;;  %4588 = vadd.xlane.f32.xlu1 %v6839_v46 }
 0xdb9   : > { %v4529_v0 = vsel %vm4513_vm6, 0.0, %v11842_v2  ;;  %v11853_v25 = vpop.xlane.xlu0 %4490 }
 0xdba   : > { %6846 = vpow2.f32 %v4564_v51  ;;  %v4545_v15 = vsub.f32 %v11648_v50, %v4529_v0  ;;  %v4566_v44 = vmul.f32 1.442695, %v4544_v63  ;;  %vm4514_vm11 = vcmp.eq.f32.partialorder %v11853_v25, -inf }
 0xdbb   : > { %v11856_v47 = vpop.xlane.xlu1 %4492  ;;  %v4530_v42 = vsel %vm4514_vm11, 0.0, %v11853_v25 }
 0xdbc   : > { %v6841_v53 = vpop.eup %6840  ;;  %v4568_v18 = vmul.f32 1.442695, %v4545_v15  ;;  %vm4515_vm7 = vcmp.eq.f32.partialorder %v11856_v47, -inf  ;;  %6848 = vpow2.f32 %v4566_v44  ;;  %v4546_v55 = vsub.f32 %v11657_v58, %v4530_v42 }
 0xdbd   : > { %v4531_v10 = vsel %vm4515_vm7, 0.0, %v11856_v47  ;;  %4590 = vadd.xlane.f32.xlu0 %v6841_v53  ;;  %v11867_v27 = vpop.xlane.xlu0 %4494 }
 0xdbe   : > { %6850 = vpow2.f32 %v4568_v18  ;;  %v4547_v3 = vsub.f32 %v11675_v26, %v4531_v10  ;;  %v4570_v19 = vmul.f32 1.442695, %v4546_v55  ;;  %vm4516_vm0 = vcmp.eq.f32.partialorder %v11867_v27, -inf }
 0xdbf   : > { %v11870_v29 = vpop.xlane.xlu1 %4496  ;;  %v4532_v16 = vsel %vm4516_vm0, 0.0, %v11867_v27 }
 0xdc0   : > { %v6843_v38 = vpop.eup %6842  ;;  %v4572_v21 = vmul.f32 1.442695, %v4547_v3  ;;  %vm4517_vm4 = vcmp.eq.f32.partialorder %v11870_v29, -inf  ;;  %6852 = vpow2.f32 %v4570_v19  ;;  %v4548_v24 = vsub.f32 %v11683_v35, %v4532_v16 }
 0xdc1   : > { %v4533_v41 = vsel %vm4517_vm4, 0.0, %v11870_v29  ;;  %4592 = vadd.xlane.f32.xlu0 %v6843_v38  ;;  %v11881_v57 = vpop.xlane.xlu0 %4498 }
 0xdc2   : > { %6854 = vpow2.f32 %v4572_v21  ;;  %v4549_v5 = vsub.f32 %v11699_v34, %v4533_v41  ;;  %v6845_v31 = vpop.eup %6844  ;;  %v4574_v45 = vmul.f32 1.442695, %v4548_v24  ;;  %vm13308_vm9 = vcmp.eq.f32.partialorder %v11881_v57, -inf }
 0xdc3   : > { %v11884_v43 = vpop.xlane.xlu1 %4500  ;;  %v4534_v56 = vsel %vm13308_vm9, 0.0, %v11881_v57 }
 0xdc4   : > { %v6847_v37 = vpop.eup %6846  ;;  %v4576_v30 = vmul.f32 1.442695, %v4549_v5  ;;  %vm4519_vm8 = vcmp.eq.f32.partialorder %v11884_v43, -inf  ;;  %6856 = vpow2.f32 %v4574_v45  ;;  %v4550_v17 = vsub.f32 %v11707_v11, %v4534_v56 }
 0xdc5   : > { %v4535_v12 = vsel %vm4519_vm8, 0.0, %v11884_v43  ;;  %4596 = vadd.xlane.f32.xlu1 %v6847_v37  ;;  %4594 = vadd.xlane.f32.xlu0 %v6845_v31  ;;  %v11895_v20 = vpop.xlane.xlu0 %4502 }
 0xdc6   : > { %6858 = vpow2.f32 %v4576_v30  ;;  %v4551_v49 = vsub.f32 %v11719_v6, %v4535_v12  ;;  %v6849_v48 = vpop.eup %6848  ;;  %v4578_v7 = vmul.f32 1.442695, %v4550_v17  ;;  %vm13305_vm5 = vcmp.eq.f32.partialorder %v11895_v20, -inf }
 0xdc7   : > { %v11898_v40 = vpop.xlane.xlu1 %4504  ;;  %v4536_v51 = vsel %vm13305_vm5, 0.0, %v11895_v20 }
 0xdc8   : > { %v6851_v54 = vpop.eup %6850  ;;  %v4580_v46 = vmul.f32 1.442695, %v4551_v49  ;;  %vm13306_vm14 = vcmp.eq.f32.partialorder %v11898_v40, -inf  ;;  %6860 = vpow2.f32 %v4578_v7  ;;  %v4552_v28 = vsub.f32 %v11724_v1, %v4536_v51 }
 0xdc9   : > { %v4537_v63 = vsel %vm13306_vm14, 0.0, %v11898_v40  ;;  %4600 = vadd.xlane.f32.xlu1 %v6851_v54  ;;  %4598 = vadd.xlane.f32.xlu0 %v6849_v48  ;;  %v11911_v16 = vpop.permute.xlu0 %5035 }
 0xdca   : > { %6862 = vpow2.f32 %v4580_v46  ;;  %v4553_v0 = vsub.f32 %v11729_v23, %v4537_v63  ;;  %v6853_v15 = vpop.eup %6852  ;;  %v4582_v44 = vmul.f32 1.442695, %v4552_v28 }
 0xdcb   : > { %v11909_v21 = vpop.permute.xlu1 %5037 }
 0xdcc   : > { %v6855_v53 = vpop.eup %6854  ;;  %v4584_v18 = vmul.f32 1.442695, %v4553_v0  ;;  %6864 = vpow2.f32 %v4582_v44 }
 0xdcd   : > { %4604 = vadd.xlane.f32.xlu1 %v6855_v53  ;;  %4602 = vadd.xlane.f32.xlu0 %v6853_v15  ;;  %v11915_v41 = vpop.permute.xlu0 %5043 }
 0xdce   : > { %6866 = vpow2.f32 %v4584_v18  ;;  %v6857_v42 = vpop.eup %6856 }
 0xdcf   : > { %v11913_v24 = vpop.permute.xlu1 %5039 }
 0xdd0   : > { %v6859_v55 = vpop.eup %6858 }
 0xdd1   : > { %4608 = vadd.xlane.f32.xlu1 %v6859_v55  ;;  %4606 = vadd.xlane.f32.xlu0 %v6857_v42  ;;  %v11919_v31 = vpop.permute.xlu0 %5047 }
 0xdd2   : > { %v6861_v10 = vpop.eup %6860 }
 0xdd3   : > { %v11917_v5 = vpop.permute.xlu1 %5041 }
 0xdd4   : > { %v6863_v3 = vpop.eup %6862 }
 0xdd5   : > { %4612 = vadd.xlane.f32.xlu1 %v6863_v3  ;;  %4610 = vadd.xlane.f32.xlu0 %v6861_v10  ;;  %v11923_v37 = vpop.permute.xlu0 %5051 }
 0xdd6   : > { %v6865_v19 = vpop.eup %6864 }
 0xdd7   : > { %v11921_v45 = vpop.permute.xlu1 %5045 }
 0xdd8   : > { %v6867_v38 = vpop.eup %6866 }
 0xdd9   : > { %4616 = vadd.xlane.f32.xlu1 %v6867_v38  ;;  %4614 = vadd.xlane.f32.xlu0 %v6865_v19  ;;  %v11927_v56 = vpop.permute.xlu0 %5055 }
 0xddb   : > { %v11925_v30 = vpop.permute.xlu1 %5049 }
 0xddd   : > { %v11931_v12 = vpop.permute.xlu0 %5059 }
 0xddf   : > { %v11929_v17 = vpop.permute.xlu1 %5053 }
 0xde1   : > { %v11935_v48 = vpop.permute.xlu0 %5063 }
 0xde3   : > { %v11933_v49 = vpop.permute.xlu1 %5057 }
 0xde7   : > { %v11937_v7 = vpop.permute.xlu1 %5061 }
 0xdeb   : > { %v11948_v63 = vpop.permute.xlu1 %5065 }
 0xe12   : > { %v11939_v54 = vpop.xlane.xlu0 %4716 }
 0xe13   : > { %vm13307_vm5 = vcmp.eq.f32.partialorder %v11939_v54, -inf }
 0xe14   : > { %v4779_v46 = vsel %vm13307_vm5, 0.0, %v11939_v54 }
 0xe15   : > { %v4795_v51 = vsub.f32 %v11509_v9, %v4779_v46 }
 0xe16   : > { %v11946_v28 = vpop.xlane.xlu0 %4722 }
 0xe17   : > { %v4811_v0 = vmul.f32 1.442695, %v4795_v51  ;;  %vm13309_vm14 = vcmp.eq.f32.partialorder %v11946_v28, -inf }
 0xe18   : > { %v4781_v15 = vsel %vm13309_vm14, 0.0, %v11946_v28 }
 0xe19   : > { %6868 = vpow2.f32 %v4811_v0  ;;  %v4797_v44 = vsub.f32 %v11577_v36, %v4781_v15 }
 0xe1a   : > { %v11955_v53 = vpop.xlane.xlu0 %4725 }
 0xe1b   : > { %v4815_v18 = vmul.f32 1.442695, %v4797_v44  ;;  %vm13310_vm5 = vcmp.eq.f32.partialorder %v11955_v53, -inf }
 0xe1c   : > { %v11958_v9 = vpop.xlane.xlu1 %4719  ;;  %v4782_v42 = vsel %vm13310_vm5, 0.0, %v11955_v53 }
 0xe1d   : > { %vm13311_vm9 = vcmp.eq.f32.partialorder %v11958_v9, -inf  ;;  %6870 = vpow2.f32 %v4815_v18  ;;  %v4798_v55 = vsub.f32 %v11600_v39, %v4782_v42 }
 0xe1e   : > { %v4780_v36 = vsel %vm13311_vm9, 0.0, %v11958_v9  ;;  %v11969_v3 = vpop.xlane.xlu0 %4728 }
 0xe1f   : > { %v4796_v10 = vsub.f32 %v11554_v60, %v4780_v36  ;;  %v4817_v19 = vmul.f32 1.442695, %v4798_v55  ;;  %vm4767_vm14 = vcmp.eq.f32.partialorder %v11969_v3, -inf }
 0xe20   : > { %v11972_v38 = vpop.xlane.xlu1 %4731  ;;  %v4783_v51 = vsel %vm4767_vm14, 0.0, %v11969_v3 }
 0xe21   : > { %v4813_v46 = vmul.f32 1.442695, %v4796_v10  ;;  %vm13312_vm5 = vcmp.eq.f32.partialorder %v11972_v38, -inf  ;;  %6872 = vpow2.f32 %v4817_v19  ;;  %v4799_v39 = vsub.f32 %v11618_v59, %v4783_v51 }
 0xe22   : > { %v4784_v60 = vsel %vm13312_vm5, 0.0, %v11972_v38  ;;  %v11983_v15 = vpop.xlane.xlu0 %4734 }
 0xe23   : > { %6874 = vpow2.f32 %v4813_v46  ;;  %v4800_v0 = vsub.f32 %v11621_v14, %v4784_v60  ;;  %v6869_v44 = vpop.eup %6868  ;;  %v4819_v18 = vmul.f32 1.442695, %v4799_v39  ;;  %vm13313_vm9 = vcmp.eq.f32.partialorder %v11983_v15, -inf }
 0xe24   : > { %v11986_v42 = vpop.xlane.xlu1 %4737  ;;  %v4785_v59 = vsel %vm13313_vm9, 0.0, %v11983_v15  ;;  %4859 = vrot.lane.b32.xlu1 %v6869_v44, %s7179_s10 }
 0xe25   : > { %v4821_v55 = vmul.f32 1.442695, %v4800_v0  ;;  %vm13314_vm5 = vcmp.eq.f32.partialorder %v11986_v42, -inf  ;;  %6876 = vpow2.f32 %v4819_v18  ;;  %v4801_v14 = vsub.f32 %v11642_v32, %v4785_v59 }
 0xe26   : > { %v4786_v36 = vsel %vm13314_vm5, 0.0, %v11986_v42  ;;  %v11998_v19 = vpop.xlane.xlu0 %4740 }
 0xe27   : > { %6878 = vpow2.f32 %v4821_v55  ;;  %v4802_v10 = vsub.f32 %v11648_v50, %v4786_v36  ;;  %v6871_v46 = vpop.eup %6870  ;;  %v4823_v51 = vmul.f32 1.442695, %v4801_v14  ;;  %vm13315_vm9 = vcmp.eq.f32.partialorder %v11998_v19, -inf }
 0xe28   : > { %v12001_v39 = vpop.xlane.xlu1 %4743  ;;  %v4787_v32 = vsel %vm13315_vm9, 0.0, %v11998_v19  ;;  %4863 = vrot.lane.b32.xlu1 %v6871_v46, %s7179_s10 }
 0xe29   : > { %v4825_v60 = vmul.f32 1.442695, %v4802_v10  ;;  %vm13316_vm5 = vcmp.eq.f32.partialorder %v12001_v39, -inf  ;;  %6880 = vpow2.f32 %v4823_v51  ;;  %v4803_v50 = vsub.f32 %v11657_v58, %v4787_v32 }
 0xe2a   : > { %v4788_v0 = vsel %vm13316_vm5, 0.0, %v12001_v39  ;;  %v12013_v18 = vpop.xlane.xlu0 %4746 }
 0xe2b   : > { %6882 = vpow2.f32 %v4825_v60  ;;  %v4804_v44 = vsub.f32 %v11675_v26, %v4788_v0  ;;  %v6873_v55 = vpop.eup %6872  ;;  %v4827_v59 = vmul.f32 1.442695, %v4803_v50  ;;  %vm13317_vm9 = vcmp.eq.f32.partialorder %v12013_v18, -inf }
 0xe2c   : > { %v12016_v14 = vpop.xlane.xlu1 %4749  ;;  %v4789_v58 = vsel %vm13317_vm9, 0.0, %v12013_v18  ;;  %4865 = vrot.lane.b32.xlu1 %v6873_v55, %s7179_s10 }
 0xe2d   : > { %v6875_v36 = vpop.eup %6874  ;;  %v4829_v10 = vmul.f32 1.442695, %v4804_v44  ;;  %vm13318_vm5 = vcmp.eq.f32.partialorder %v12016_v14, -inf  ;;  %6884 = vpow2.f32 %v4827_v59  ;;  %v4805_v26 = vsub.f32 %v11683_v35, %v4789_v58 }
 0xe2e   : > { %v4790_v46 = vsel %vm13318_vm5, 0.0, %v12016_v14  ;;  %4861 = vrot.lane.b32.xlu0 %v6875_v36, %s7179_s10  ;;  %v12029_v60 = vpop.xlane.xlu0 %4752 }
 0xe2f   : > { %6886 = vpow2.f32 %v4829_v10  ;;  %v4806_v51 = vsub.f32 %v11699_v34, %v4790_v46  ;;  %v6877_v32 = vpop.eup %6876  ;;  %v4831_v50 = vmul.f32 1.442695, %v4805_v26  ;;  %vm13319_vm9 = vcmp.eq.f32.partialorder %v12029_v60, -inf }
 0xe30   : > { %v12032_v0 = vpop.xlane.xlu1 %4755  ;;  %v4791_v35 = vsel %vm13319_vm9, 0.0, %v12029_v60  ;;  %4867 = vrot.lane.b32.xlu1 %v6877_v32, %s7179_s10 }
 0xe31   : > { %v6879_v44 = vpop.eup %6878  ;;  %v4833_v55 = vmul.f32 1.442695, %v4806_v51  ;;  %vm13320_vm5 = vcmp.eq.f32.partialorder %v12032_v0, -inf  ;;  %6888 = vpow2.f32 %v4831_v50  ;;  %v4807_v34 = vsub.f32 %v11707_v11, %v4791_v35 }
 0xe32   : > { %v4792_v59 = vsel %vm13320_vm5, 0.0, %v12032_v0  ;;  %4869 = vrot.lane.b32.xlu0 %v6879_v44, %s7179_s10  ;;  %v12045_v10 = vpop.xlane.xlu0 %4758 }
 0xe33   : > { %6890 = vpow2.f32 %v4833_v55  ;;  %v4808_v36 = vsub.f32 %v11719_v6, %v4792_v59  ;;  %v6881_v58 = vpop.eup %6880  ;;  %v4835_v26 = vmul.f32 1.442695, %v4807_v34  ;;  %vm4777_vm9 = vcmp.eq.f32.partialorder %v12045_v10, -inf }
 0xe34   : > { %v12048_v46 = vpop.xlane.xlu1 %4761  ;;  %v4793_v11 = vsel %vm4777_vm9, 0.0, %v12045_v10  ;;  %4871 = vrot.lane.b32.xlu1 %v6881_v58, %s7179_s10 }
 0xe35   : > { %v6883_v51 = vpop.eup %6882  ;;  %v4837_v32 = vmul.f32 1.442695, %v4808_v36  ;;  %vm4778_vm5 = vcmp.eq.f32.partialorder %v12048_v46, -inf  ;;  %6892 = vpow2.f32 %v4835_v26  ;;  %v4809_v6 = vsub.f32 %v11724_v1, %v4793_v11 }
 0xe36   : > { %v4794_v50 = vsel %vm4778_vm5, 0.0, %v12048_v46  ;;  %4873 = vrot.lane.b32.xlu0 %v6883_v51, %s7179_s10 }
 0xe37   : > { %6894 = vpow2.f32 %v4837_v32  ;;  %v4810_v44 = vsub.f32 %v11729_v23, %v4794_v50  ;;  %v6885_v55 = vpop.eup %6884  ;;  %v4839_v35 = vmul.f32 1.442695, %v4809_v6 }
 0xe38   : > { %4875 = vrot.lane.b32.xlu1 %v6885_v55, %s7179_s10 }
 0xe39   : > { %v6887_v34 = vpop.eup %6886  ;;  %v4841_v59 = vmul.f32 1.442695, %v4810_v44  ;;  %6896 = vpow2.f32 %v4839_v35 }
 0xe3a   : > { %4877 = vrot.lane.b32.xlu0 %v6887_v34, %s7179_s10 }
 0xe3b   : > { %6898 = vpow2.f32 %v4841_v59  ;;  %v6889_v1 = vpop.eup %6888  ;;  %v4587_v58 = vpop.xlane.xlu0 %4586 }
 0xe3c   : > { %4879 = vrot.lane.b32.xlu1 %v6889_v1, %s7179_s10  ;;  %v4618_v26 = vsel %vm4506_vm12, 1.0, %v4587_v58  ;;  %vm4698_vm12 = vcmask 56368  }
 0xe3d   : > { %v6891_v36 = vpop.eup %6890  ;;  %6900 = vlog2.f32 %v4618_v26 }
 0xe3e   : > { %4881 = vrot.lane.b32.xlu0 %v6891_v36, %s7179_s10 }
 0xe3f   : > { %v6893_v23 = vpop.eup %6892 }
 0xe40   : > { %4883 = vrot.lane.b32.xlu1 %v6893_v23, %s7179_s10 }
 0xe41   : > { %v6895_v51 = vpop.eup %6894 }
 0xe42   : > { %4885 = vrot.lane.b32.xlu0 %v6895_v51, %s7179_s10 }
 0xe43   : > { %v6897_v32 = vpop.eup %6896 }
 0xe44   : > { %4887 = vrot.lane.b32.xlu1 %v6897_v32, %s7179_s10 }
 0xe45   : > { %v6899_v11 = vpop.eup %6898  ;;  %v4589_v6 = vpop.xlane.xlu1 %4588 }
 0xe46   : > { %4889 = vrot.lane.b32.xlu0 %v6899_v11, %s7179_s10  ;;  %v4619_v50 = vsel %vm4507_vm10, 1.0, %v4589_v6  ;;  %vm13782_vm10 = vcmp.eq.f32.partialorder %v11881_v57, -inf }
 0xe47   : > { %6902 = vlog2.f32 %v4619_v50  ;;  %v6901_v44 = vpop.eup %6900 }
 0xe48   : > { %v4635_v55 = vmul.f32 0.6931472, %v6901_v44 }
 0xe4a   : > { %v4591_v35 = vpop.xlane.xlu0 %4590  ;;  %v12076_v59 = vadd.f32 %v4635_v55, %v11787_v62 }
 0xe4b   : > { %v4620_v34 = vsel %vm4508_vm15, 1.0, %v4591_v35  ;;  %vm13783_vm15 = vcmp.eq.f32.partialorder %v11898_v40, -inf }
 0xe4c   : > { %6904 = vlog2.f32 %v4620_v34  ;;  %v4682_v1 = vsub.f32 0.0, %v12076_v59 }
 0xe4e   : > { %v4593_v36 = vpop.xlane.xlu0 %4592  ;;  %4699 = vst.msk [vmem:[%s7665_s21] sm:$0xff] %vm4698_vm12, %v4682_v1 }
 0xe4f   : > { %v4621_v58 = vsel %vm4509_vm13, 1.0, %v4593_v36  ;;  %vm13784_vm13 = vcmp.eq.f32.partialorder %v11895_v20, -inf }
 0xe50   : > { %6906 = vlog2.f32 %v4621_v58 }
 0xe51   : > { %v6903_v26 = vpop.eup %6902 }
 0xe52   : > { %v4597_v23 = vpop.xlane.xlu1 %4596  ;;  %v4595_v51 = vpop.xlane.xlu0 %4594  ;;  %v4637_v32 = vmul.f32 0.6931472, %v6903_v26 }
 0xe53   : > { %v4623_v62 = vsel %vm4511_vm2, 1.0, %v4597_v23  ;;  %v4622_v11 = vsel %vm4510_vm3, 1.0, %v4595_v51  ;;  %vm13785_vm3 = vcmask 15360  }
 0xe54   : > { %6908 = vlog2.f32 %v4623_v62  ;;  %v12088_v6 = vadd.f32 %v4637_v32, %v11804_v52  ;;  %vm13786_vm2 = vmmov %vm13785_vm3 }
 0xe55   : > { %6910 = vlog2.f32 %v4622_v11 }
 0xe56   : > { %v6905_v50 = vpop.eup %6904  ;;  %v4601_v44 = vpop.xlane.xlu1 %4600  ;;  %v4683_v35 = vsub.f32 0.0, %v12088_v6 }
 0xe57   : > { %v4599_v55 = vpop.xlane.xlu0 %4598  ;;  %v4639_v34 = vmul.f32 0.6931472, %v6905_v50  ;;  %v4625_v1 = vsel %vm4513_vm6, 1.0, %v4601_v44 }
 0xe58   : > { %6912 = vlog2.f32 %v4625_v1  ;;  %v4624_v36 = vsel %vm4512_vm1, 1.0, %v4599_v55  ;;  %4700 = vst.msk [vmem:[%s7665_s21 + $0x8] sm:$0xff] %vm4698_vm12, %v4683_v35  ;;  %vm13787_vm1 = vmmov %vm13786_vm2 }
 0xe59   : > { %v12098_v52 = vadd.f32 %v4639_v34, %v11811_v61  ;;  %6914 = vlog2.f32 %v4624_v36  ;;  %vm13788_vm6 = vmmov %vm13787_vm1 }
 0xe5a   : > { %v6907_v58 = vpop.eup %6906  ;;  %v4605_v26 = vpop.xlane.xlu1 %4604 }
 0xe5b   : > { %v4603_v23 = vpop.xlane.xlu0 %4602  ;;  %v4684_v51 = vsub.f32 0.0, %v12098_v52  ;;  %v4641_v32 = vmul.f32 0.6931472, %v6907_v58  ;;  %v4627_v62 = vsel %vm4515_vm7, 1.0, %v4605_v26  ;;  %vm13790_vm7 = vmmov %vm13787_vm1 }
 0xe5c   : > { %6916 = vlog2.f32 %v4627_v62  ;;  %v4626_v11 = vsel %vm4514_vm11, 1.0, %v4603_v23  ;;  %vm13789_vm11 = vmmov %vm13787_vm1 }
 0xe5d   : > { %4701 = vst.msk [vmem:[%s7665_s21 + $0x10] sm:$0xff] %vm4698_vm12, %v4684_v51  ;;  %v12108_v61 = vadd.f32 %v4641_v32, %v11818_v13  ;;  %6918 = vlog2.f32 %v4626_v11 }
 0xe5e   : > { %v6909_v50 = vpop.eup %6908  ;;  %v4609_v44 = vpop.xlane.xlu1 %4608 }
 0xe5f   : > { %v4607_v55 = vpop.xlane.xlu0 %4606  ;;  %v6911_v35 = vpop.eup %6910  ;;  %v4685_v34 = vsub.f32 0.0, %v12108_v61  ;;  %v4645_v1 = vmul.f32 0.6931472, %v6909_v50  ;;  %v4629_v36 = vsel %vm4517_vm4, 1.0, %v4609_v44 }
 0xe60   : > { %v4643_v58 = vmul.f32 0.6931472, %v6911_v35  ;;  %6920 = vlog2.f32 %v4629_v36  ;;  %v4628_v26 = vsel %vm4516_vm0, 1.0, %v4607_v55  ;;  %vm13791_vm0 = vmmov %vm13787_vm1 }
 0xe61   : > { %4702 = vst.msk [vmem:[%s7665_s21 + $0x18] sm:$0xff] %vm4698_vm12, %v4685_v34  ;;  %v12118_v13 = vadd.f32 %v4645_v1, %v11828_v8  ;;  %6922 = vlog2.f32 %v4628_v26  ;;  %vm13792_vm4 = vmmov %vm13791_vm0 }
 0xe62   : > { %v6913_v23 = vpop.eup %6912  ;;  %v12121_v51 = vadd.f32 %v4643_v58, %v11825_v4  ;;  %v4613_v32 = vpop.xlane.xlu1 %4612 }
 0xe63   : > { %v4611_v62 = vpop.xlane.xlu0 %4610  ;;  %v6915_v11 = vpop.eup %6914  ;;  %v4687_v50 = vsub.f32 0.0, %v12118_v13  ;;  %v4649_v44 = vmul.f32 0.6931472, %v6913_v23  ;;  %v4631_v55 = vsel %vm4519_vm8, 1.0, %v4613_v32  ;;  %vm13793_vm8 = vmmov %vm13791_vm0 }
 0xe64   : > { %v4686_v35 = vsub.f32 0.0, %v12121_v51  ;;  %v4647_v34 = vmul.f32 0.6931472, %v6915_v11  ;;  %6924 = vlog2.f32 %v4631_v55  ;;  %v4630_v4 = vsel %vm13782_vm10, 1.0, %v4611_v62  ;;  %vm13795_vm10 = vmmov %vm13791_vm0 }
 0xe65   : > { %4704 = vst.msk [vmem:[%s7665_s21 + $0x28] sm:$0xff] %vm4698_vm12, %v4687_v50  ;;  %v12130_v8 = vadd.f32 %v4649_v44, %v11842_v2  ;;  %6926 = vlog2.f32 %v4630_v4 }
 0xe66   : > { %v6917_v1 = vpop.eup %6916  ;;  %4703 = vst.msk [vmem:[%s7665_s21 + $0x20] sm:$0xff] %vm4698_vm12, %v4686_v35  ;;  %v12137_v36 = vadd.f32 %v4647_v34, %v11839_v22  ;;  %v4617_v58 = vpop.xlane.xlu1 %4616 }
 0xe67   : > { %v4615_v26 = vpop.xlane.xlu0 %4614  ;;  %v6919_v23 = vpop.eup %6918  ;;  %v4689_v32 = vsub.f32 0.0, %v12130_v8  ;;  %v4653_v11 = vmul.f32 0.6931472, %v6917_v1  ;;  %v4633_v2 = vsel %vm13783_vm15, 1.0, %v4617_v58  ;;  %vm13796_vm15 = vmmov %vm13791_vm0 }
 0xe68   : > { %v4688_v62 = vsub.f32 0.0, %v12137_v36  ;;  %v4651_v50 = vmul.f32 0.6931472, %v6919_v23  ;;  %6928 = vlog2.f32 %v4633_v2  ;;  %v4632_v44 = vsel %vm13784_vm13, 1.0, %v4615_v26  ;;  %vm13797_vm13 = vmmov %vm13791_vm0 }
 0xe69   : > { %4706 = vst.msk [vmem:[%s7665_s21 + $0x38] sm:$0xff] %vm4698_vm12, %v4689_v32  ;;  %v12146_v22 = vadd.f32 %v4653_v11, %v11856_v47  ;;  %6930 = vlog2.f32 %v4632_v44 }
 0xe6a   : > { %v6921_v55 = vpop.eup %6920  ;;  %4705 = vst.msk [vmem:[%s7665_s21 + $0x30] sm:$0xff] %vm4698_vm12, %v4688_v62  ;;  %v12153_v35 = vadd.f32 %v4651_v50, %v11853_v25 }
 0xe6b   : > { %v6923_v34 = vpop.eup %6922  ;;  %v4691_v4 = vsub.f32 0.0, %v12146_v22  ;;  %v4657_v1 = vmul.f32 0.6931472, %v6921_v55 }
 0xe6c   : > { %v4690_v58 = vsub.f32 0.0, %v12153_v35  ;;  %v4655_v47 = vmul.f32 0.6931472, %v6923_v34 }
 0xe6d   : > { %4708 = vst.msk [vmem:[%s7665_s21 + $0x48] sm:$0xff] %vm4698_vm12, %v4691_v4  ;;  %v12160_v26 = vadd.f32 %v4657_v1, %v11870_v29 }
 0xe6e   : > { %v6925_v23 = vpop.eup %6924  ;;  %4707 = vst.msk [vmem:[%s7665_s21 + $0x40] sm:$0xff] %vm4698_vm12, %v4690_v58  ;;  %v12165_v25 = vadd.f32 %v4655_v47, %v11867_v27 }
 0xe6f   : > { %v4693_v32 = vsub.f32 0.0, %v12160_v26  ;;  %v4661_v11 = vmul.f32 0.6931472, %v6925_v23  ;;  %v6927_v2 = vpop.eup %6926 }
 0xe70   : > { %v4692_v62 = vsub.f32 0.0, %v12165_v25  ;;  %v4659_v50 = vmul.f32 0.6931472, %v6927_v2 }
 0xe71   : > { %4710 = vst.msk [vmem:[%s7665_s21 + $0x58] sm:$0xff] %vm4698_vm12, %v4693_v32  ;;  %v12172_v29 = vadd.f32 %v4661_v11, %v11884_v43 }
 0xe72   : > { %v6929_v44 = vpop.eup %6928  ;;  %4709 = vst.msk [vmem:[%s7665_s21 + $0x50] sm:$0xff] %vm4698_vm12, %v4692_v62  ;;  %v12178_v55 = vadd.f32 %v4659_v50, %v11881_v57 }
 0xe73   : > { %v4695_v27 = vsub.f32 0.0, %v12172_v29  ;;  %v4665_v34 = vmul.f32 0.6931472, %v6929_v44  ;;  %v6931_v4 = vpop.eup %6930 }
 0xe74   : > { %v4694_v1 = vsub.f32 0.0, %v12178_v55  ;;  %v4663_v43 = vmul.f32 0.6931472, %v6931_v4 }
 0xe75   : > { %4712 = vst.msk [vmem:[%s7665_s21 + $0x68] sm:$0xff] %vm4698_vm12, %v4695_v27  ;;  %v12184_v58 = vadd.f32 %v4665_v34, %v11898_v40 }
 0xe76   : > { %4711 = vst.msk [vmem:[%s7665_s21 + $0x60] sm:$0xff] %vm4698_vm12, %v4694_v1  ;;  %v12190_v23 = vadd.f32 %v4663_v43, %v11895_v20 }
 0xe77   : > { %v4697_v47 = vsub.f32 0.0, %v12184_v58 }
 0xe78   : > { %v4696_v57 = vsub.f32 0.0, %v12190_v23 }
 0xe79   : > { %4714 = vst.msk [vmem:[%s7665_s21 + $0x78] sm:$0xff] %vm4698_vm12, %v4697_v47 }
 0xe7a   : > { %4713 = vst.msk [vmem:[%s7665_s21 + $0x70] sm:$0xff] %vm4698_vm12, %v4696_v57  ;;  %vm13794_vm12 = vmmov %vm13791_vm0 }
 0xe96   : > { %v4860_v32 = vpop.permute.xlu1 %4859 }
 0xe97   : > { %v4907_v11 = vsel %vm13785_vm3, %v4860_v32, 0.0  ;;  %vm13798_vm3 = vmmov %vm13791_vm0 }
 0xe98   : > { %4908 = vadd.xlane.f32.xlu0 %v4907_v11 }
 0xe9a   : > { %v4864_v40 = vpop.permute.xlu1 %4863 }
 0xe9b   : > { %v4913_v2 = vsel %vm13786_vm2, %v4864_v40, 0.0  ;;  %vm13799_vm2 = vmmov %vm13791_vm0 }
 0xe9c   : > { %4914 = vadd.xlane.f32.xlu0 %v4913_v2 }
 0xe9e   : > { %v4866_v62 = vpop.permute.xlu1 %4865 }
 0xe9f   : > { %v4916_v4 = vsel %vm13789_vm11, %v4866_v62, 0.0  ;;  %vm13802_vm11 = vcmp.eq.f32.partialorder %v11946_v28, -inf }
 0xea0   : > { %v4862_v50 = vpop.permute.xlu0 %4861 }
 0xea1   : > { %v4910_v44 = vsel %vm13787_vm1, %v4862_v50, 0.0  ;;  %vm13800_vm1 = vmmov %vm13791_vm0 }
 0xea2   : > { %4911 = vadd.xlane.f32.xlu1 %v4910_v44  ;;  %v4868_v20 = vpop.permute.xlu1 %4867 }
 0xea3   : > { %v4919_v27 = vsel %vm13788_vm6, %v4868_v20, 0.0  ;;  %vm13801_vm6 = vcmp.eq.f32.partialorder %v11939_v54, -inf }
 0xea4   : > { %v4870_v34 = vpop.permute.xlu0 %4869  ;;  %4920 = vadd.xlane.f32.xlu0 %v4919_v27 }
 0xea5   : > { %v4922_v57 = vsel %vm13791_vm0, %v4870_v34, 0.0  ;;  %vm13804_vm0 = vcmp.eq.f32.partialorder %v11955_v53, -inf }
 0xea6   : > { %4917 = vadd.xlane.f32.xlu1 %v4916_v4  ;;  %v4872_v1 = vpop.permute.xlu1 %4871 }
 0xea7   : > { %v4925_v43 = vsel %vm13790_vm7, %v4872_v1, 0.0  ;;  %vm13803_vm7 = vcmp.eq.f32.partialorder %v11958_v9, -inf }
 0xea8   : > { %v4874_v47 = vpop.permute.xlu0 %4873  ;;  %4926 = vadd.xlane.f32.xlu0 %v4925_v43 }
 0xea9   : > { %v4928_v2 = vsel %vm13793_vm8, %v4874_v47, 0.0  ;;  %vm13807_vm8 = vcmp.eq.f32.partialorder %v11972_v38, -inf }
 0xeaa   : > { %4923 = vadd.xlane.f32.xlu1 %v4922_v57  ;;  %v4876_v32 = vpop.permute.xlu1 %4875 }
 0xeab   : > { %v4931_v11 = vsel %vm13792_vm4, %v4876_v32, 0.0  ;;  %vm13806_vm4 = vcmp.eq.s32.totalorder %v7822_v33, 0 }
 0xeac   : > { %v4878_v40 = vpop.permute.xlu0 %4877  ;;  %4932 = vadd.xlane.f32.xlu0 %v4931_v11 }
 0xead   : > { %v4934_v20 = vsel %vm13795_vm10, %v4878_v40, 0.0  ;;  %vm13809_vm10 = vmmov %vm13806_vm4 }
 0xeae   : > { %4929 = vadd.xlane.f32.xlu1 %v4928_v2  ;;  %v4880_v50 = vpop.permute.xlu1 %4879 }
 0xeaf   : > { %v4937_v62 = vsel %vm13794_vm12, %v4880_v50, 0.0  ;;  %vm13808_vm12 = vcmp.eq.s32.totalorder %v7822_v33, 127 }
 0xeb0   : > { %v4882_v44 = vpop.permute.xlu0 %4881  ;;  %4938 = vadd.xlane.f32.xlu0 %v4937_v62 }
 0xeb1   : > { %v4940_v1 = vsel %vm13797_vm13, %v4882_v44, 0.0  ;;  %vm13811_vm13 = vcmp.eq.f32.partialorder %v11986_v42, -inf }
 0xeb2   : > { %4935 = vadd.xlane.f32.xlu1 %v4934_v20  ;;  %v4884_v27 = vpop.permute.xlu1 %4883 }
 0xeb3   : > { %v4943_v34 = vsel %vm13796_vm15, %v4884_v27, 0.0  ;;  %vm13810_vm15 = vcmp.eq.f32.partialorder %v11998_v19, -inf }
 0xeb4   : > { %v4886_v4 = vpop.permute.xlu0 %4885  ;;  %4944 = vadd.xlane.f32.xlu0 %v4943_v34 }
 0xeb5   : > { %v4946_v57 = vsel %vm13799_vm2, %v4886_v4, 0.0  ;;  %vm13813_vm2 = vmmov %vm13808_vm12 }
 0xeb6   : > { %4941 = vadd.xlane.f32.xlu1 %v4940_v1  ;;  %v4888_v43 = vpop.permute.xlu1 %4887 }
 0xeb7   : > { %v4949_v47 = vsel %vm13798_vm3, %v4888_v43, 0.0  ;;  %vm13812_vm3 = vmmov %vm13806_vm4 }
 0xeb8   : > { %4950 = vadd.xlane.f32.xlu0 %v4949_v47  ;;  %v4890_v32 = vpop.permute.xlu0 %4889  ;;  %v5067_v47 = vsub.f32 %v11911_v16, %v12076_v59 }
 0xeb9   : > { %v4952_v11 = vsel %vm13800_vm1, %v4890_v32, 0.0  ;;  %vm13814_vm1 = vmmov %vm13812_vm3 }
 0xeba   : > { %4947 = vadd.xlane.f32.xlu1 %v4946_v57 }
 0xebe   : > { %4953 = vadd.xlane.f32.xlu1 %v4952_v11 }
 0xf25   : > { %v4909_v40 = vpop.xlane.xlu0 %4908 }
 0xf26   : > { %v4955_v2 = vsel %vm13801_vm6, 1.0, %v4909_v40  ;;  %v5069_v40 = vsub.f32 %v11913_v24, %v12098_v52  ;;  %vm13815_vm6 = vmmov %vm13814_vm1 }
 0xf27   : > { %6932 = vlog2.f32 %v4955_v2 }
 0xf29   : > { %v4915_v50 = vpop.xlane.xlu0 %4914 }
 0xf2a   : > { %v4957_v62 = vsel %vm13802_vm11, 1.0, %v4915_v50  ;;  %vm13816_vm11 = vmmov %vm13814_vm1 }
 0xf2b   : > { %6934 = vlog2.f32 %v4957_v62 }
 0xf2f   : > { %v4912_v44 = vpop.xlane.xlu1 %4911 }
 0xf30   : > { %v4956_v20 = vsel %vm13803_vm7, 1.0, %v4912_v44  ;;  %vm13817_vm7 = vmmov %vm13814_vm1 }
 0xf31   : > { %6936 = vlog2.f32 %v4956_v20  ;;  %v6933_v27 = vpop.eup %6932  ;;  %v4921_v34 = vpop.xlane.xlu0 %4920  ;;  %v5083_v20 = vsel %vm13806_vm4, 0.0, %v5067_v47  ;;  %vm13820_vm4 = vmmov %vm13814_vm1 }
 0xf32   : > { %v4972_v4 = vmul.f32 0.6931472, %v6933_v27  ;;  %v4959_v1 = vsel %vm4767_vm14, 1.0, %v4921_v34  ;;  %vm13805_vm14 = vcmp.eq.f32.partialorder %v11983_v15, -inf  ;;  %v5068_v27 = vsub.f32 %v11909_v21, %v12088_v6  ;;  %v5131_v34 = vld [vmem:[%s7274_s9 + $0x38] sm:$0xff] }
 0xf33   : > { %v4918_v43 = vpop.xlane.xlu1 %4917  ;;  %6938 = vlog2.f32 %v4959_v1  ;;  %v5070_v1 = vsub.f32 %v11917_v5, %v12108_v61  ;;  %v12250_v21 = vld [vmem:[%s13202_s2] ss:$0 sm:$0xff] }
 0xf34   : > { %v4958_v57 = vsel %vm13804_vm0, 1.0, %v4918_v43  ;;  %v5003_v32 = vadd.f32 %v4972_v4, %v11939_v54  ;;  %v5085_v4 = vsel %vm13809_vm10, 0.0, %v5069_v40  ;;  %v5072_v43 = vsub.f32 %v11921_v45, %v12118_v13 }
 0xf35   : > { %6940 = vlog2.f32 %v4958_v57  ;;  %v6935_v11 = vpop.eup %6934  ;;  %v4927_v2 = vpop.xlane.xlu0 %4926  ;;  %vm13818_vm0 = vcmp.eq.f32.partialorder %v12013_v18, -inf  ;;  %vm13823_vm10 = vcmp.eq.f32.partialorder %v12016_v14, -inf }
 0xf36   : > { %v5019_v50 = vsub.f32 %v5003_v32, %v12076_v59  ;;  %v4976_v62 = vmul.f32 0.6931472, %v6935_v11  ;;  %v4961_v44 = vsel %vm13805_vm14, 1.0, %v4927_v2  ;;  %v5071_v32 = vsub.f32 %v11915_v41, %v12121_v51 }
 0xf37   : > { %v4924_v16 = vpop.xlane.xlu1 %4923  ;;  %6942 = vlog2.f32 %v4961_v44  ;;  %v5074_v11 = vsub.f32 %v11925_v30, %v12130_v8  ;;  %v5084_v41 = vsel %vm13812_vm3, 0.0, %v5068_v27  ;;  %v5073_v30 = vsub.f32 %v11919_v31, %v12137_v36  ;;  %v5133_v31 = vld [vmem:[%s7274_s9 + $0xb8] sm:$0xff]  ;;  %vm13826_vm3 = vmmov %vm13813_vm2 }
 0xf38   : > { %v4960_v54 = vsel %vm13807_vm8, 1.0, %v4924_v16  ;;  %v5099_v24 = vsel %vm13808_vm12, %v5019_v50, %v5083_v20  ;;  %v5005_v59 = vadd.f32 %v4976_v62, %v11946_v28  ;;  %v5086_v16 = vsel %vm13814_vm1, 0.0, %v5070_v1  ;;  %vm13821_vm8 = vmmov %vm13813_vm2 }
 0xf39   : > { %6944 = vlog2.f32 %v4960_v54  ;;  %v4933_v47 = vpop.xlane.xlu0 %4932  ;;  %v5115_v57 = vadd.f32 %v12250_v21, %v5099_v24  ;;  %v12274_v20 = vsel %vm13815_vm6, 0.0, %v5072_v43  ;;  %vm13819_vm14 = vcmp.eq.f32.partialorder %v12001_v39, -inf }
 0xf3a   : > { %v5021_v5 = vsub.f32 %v5005_v59, %v12098_v52  ;;  %v4963_v45 = vsel %vm13810_vm15, 1.0, %v4933_v47  ;;  %vm13822_vm12 = vcmp.eq.f32.partialorder %v12029_v60, -inf  ;;  %vm13824_vm15 = vmmov %vm13813_vm2 }
 0xf3b   : > { %v6937_v28 = vpop.eup %6936  ;;  %v4930_v40 = vpop.xlane.xlu1 %4929  ;;  %6946 = vlog2.f32 %v4963_v45  ;;  %v12262_v62 = vadd.f32 %v5131_v34, %v5115_v57  ;;  %v5087_v34 = vsel %vm13816_vm11, 0.0, %v5071_v32  ;;  %v5089_v32 = vsel %vm13820_vm4, 0.0, %v5073_v30 }
 0xf3c   : > { %v4974_v2 = vmul.f32 0.6931472, %v6937_v28  ;;  %v4962_v50 = vsel %vm13811_vm13, 1.0, %v4930_v40  ;;  %v5101_v52 = vsel %vm13813_vm2, %v5021_v5, %v5085_v4  ;;  %v12284_v4 = vsel %vm13817_vm7, 0.0, %v5074_v11  ;;  %vm13825_vm13 = vmmov %vm13814_vm1 }
 0xf3d   : > { %6948 = vlog2.f32 %v4962_v50  ;;  %v6939_v44 = vpop.eup %6938  ;;  %5163 = vmax.xlane.f32.xlu0 %v12262_v62  ;;  %v4939_v27 = vpop.xlane.xlu0 %4938  ;;  %v5117_v24 = vadd.f32 %v12250_v21, %v5101_v52  ;;  %v5076_v40 = vsub.f32 %v11929_v17, %v12146_v22  ;;  %vm13827_vm2 = vcmp.eq.f32.partialorder %v12032_v0, -inf  ;;  %vm13828_vm1 = vmmov %vm13826_vm3 }
 0xf3e   : > { %v5004_v54 = vadd.f32 %v4974_v2, %v11958_v9  ;;  %v4980_v1 = vmul.f32 0.6931472, %v6939_v44  ;;  %v4965_v43 = vsel %vm13818_vm0, 1.0, %v4939_v27  ;;  %v5132_v44 = vld [vmem:[%s7274_s9 + $0x78] sm:$0xff]  ;;  %vm13830_vm6 = vmmov %vm13828_vm1 }
 0xf3f   : > { %v6941_v59 = vpop.eup %6940  ;;  %v4936_v9 = vpop.xlane.xlu1 %4935  ;;  %6950 = vlog2.f32 %v4965_v43  ;;  %v12294_v11 = vadd.f32 %v5133_v31, %v5117_v24  ;;  %vm13831_vm11 = vmmov %vm13828_vm1 }
 0xf40   : > { %v5020_v47 = vsub.f32 %v5004_v54, %v12088_v6  ;;  %v4978_v57 = vmul.f32 0.6931472, %v6941_v59  ;;  %v4964_v28 = vsel %vm13819_vm14, 1.0, %v4936_v9  ;;  %v5007_v5 = vadd.f32 %v4980_v1, %v11969_v3  ;;  %vm13833_vm7 = vmmov %vm13820_vm4 }
 0xf41   : > { %6952 = vlog2.f32 %v4964_v28  ;;  %v6943_v45 = vpop.eup %6942  ;;  %v5075_v6 = vsub.f32 %v11923_v37, %v12153_v35  ;;  %v4945_v52 = vpop.xlane.xlu0 %4944  ;;  %5167 = vmax.xlane.f32.xlu0 %v12294_v11  ;;  %vm13834_vm0 = vmmov %vm13828_vm1 }
 0xf42   : > { %v5100_v2 = vsel %vm13821_vm8, %v5020_v47, %v5084_v41  ;;  %v5006_v50 = vadd.f32 %v4978_v57, %v11955_v53  ;;  %v5023_v3 = vsub.f32 %v5007_v5, %v12121_v51  ;;  %v4984_v54 = vmul.f32 0.6931472, %v6943_v45  ;;  %v5135_v5 = vld [vmem:[%s7274_s9 + $0x138] sm:$0xff]  ;;  %vm13835_vm14 = vmmov %vm13820_vm4 }
 0xf43   : > { %v6945_v30 = vpop.eup %6944  ;;  %v4967_v27 = vsel %vm13822_vm12, 1.0, %v4945_v52  ;;  %v4942_v24 = vpop.xlane.xlu1 %4941  ;;  %v5116_v37 = vadd.f32 %v12250_v21, %v5100_v2  ;;  %v5091_v9 = vsel %vm13825_vm13, 0.0, %v5075_v6  ;;  %vm13838_vm12 = vmmov %vm13834_vm0 }
 0xf44   : > { %v5022_v31 = vsub.f32 %v5006_v50, %v12108_v61  ;;  %v4982_v41 = vmul.f32 0.6931472, %v6945_v30  ;;  %6954 = vlog2.f32 %v4967_v27  ;;  %v4966_v53 = vsel %vm13823_vm10, 1.0, %v4942_v24  ;;  %vm13839_vm10 = vmmov %vm13834_vm0 }
 0xf45   : > { %v5103_v51 = vsel %vm13824_vm15, %v5023_v3, %v5087_v34  ;;  %v5009_v59 = vadd.f32 %v4984_v54, %v11983_v15  ;;  %6956 = vlog2.f32 %v4966_v53  ;;  %v12315_v1 = vadd.f32 %v5132_v44, %v5116_v37  ;;  %v6947_v43 = vpop.eup %6946  ;;  %v4951_v57 = vpop.xlane.xlu0 %4950  ;;  %v5137_v54 = vld [vmem:[%s7274_s9 + $0x1b8] sm:$0xff] }
 0xf46   : > { %v5102_v61 = vsel %vm13826_vm3, %v5022_v31, %v5086_v16  ;;  %v5008_v47 = vadd.f32 %v4982_v41, %v11972_v38  ;;  %v5119_v28 = vadd.f32 %v12250_v21, %v5103_v51  ;;  %v4988_v45 = vmul.f32 0.6931472, %v6947_v43  ;;  %v5134_v16 = vld [vmem:[%s7274_s9 + $0xf8] sm:$0xff]  ;;  %vm13842_vm3 = vmmov %vm13834_vm0 }
 0xf47   : > { %v6949_v34 = vpop.eup %6948  ;;  %v5025_v15 = vsub.f32 %v5009_v59, %v12137_v36  ;;  %v4969_v2 = vsel %vm4777_vm9, 1.0, %v4951_v57  ;;  %v4948_v50 = vpop.xlane.xlu1 %4947  ;;  %5165 = vmax.xlane.f32.xlu1 %v12315_v1  ;;  %v5118_v6 = vadd.f32 %v12250_v21, %v5102_v61  ;;  %vm13829_vm9 = vmmov %vm13828_vm1  ;;  %v5136_v41 = vld [vmem:[%s7274_s9 + $0x178] sm:$0xff] }
 0xf48   : > { %v5024_v38 = vsub.f32 %v5008_v47, %v12118_v13  ;;  %v4986_v52 = vmul.f32 0.6931472, %v6949_v34  ;;  %6958 = vlog2.f32 %v4969_v2  ;;  %v4968_v44 = vsel %vm13827_vm2, 1.0, %v4948_v50  ;;  %v5138_v2 = vld [vmem:[%s7274_s9 + $0x1f8] sm:$0xff]  ;;  %vm13843_vm2 = vmmov %vm13834_vm0 }
 0xf49   : > { %v5105_v36 = vsel %vm13828_vm1, %v5025_v15, %v5089_v32  ;;  %v5011_v30 = vadd.f32 %v4988_v45, %v11998_v19  ;;  %6960 = vlog2.f32 %v4968_v44  ;;  %v12336_v3 = vadd.f32 %v5135_v5, %v5119_v28  ;;  %v6951_v27 = vpop.eup %6950  ;;  %v5139_v28 = vld [vmem:[%s7274_s9 + $0x238] sm:$0xff] }
 0xf4a   : > { %v5104_v24 = vsel %vm13829_vm9, %v5024_v38, %v12274_v20  ;;  %v5010_v13 = vadd.f32 %v4986_v52, %v11986_v42  ;;  %v12343_v37 = vadd.f32 %v5134_v16, %v5118_v6  ;;  %v5121_v31 = vadd.f32 %v12250_v21, %v5105_v36  ;;  %v5141_v36 = vld [vmem:[%s7274_s9 + $0x2b8] sm:$0xff]  ;;  %vm13845_vm9 = vmmov %vm13834_vm0 }
 0xf4b   : > { %v6953_v53 = vpop.eup %6952  ;;  %v5077_v19 = vsub.f32 %v11927_v56, %v12165_v25  ;;  %v5027_v32 = vsub.f32 %v5011_v30, %v12153_v35  ;;  %v4992_v51 = vmul.f32 0.6931472, %v6951_v27  ;;  %5171 = vmax.xlane.f32.xlu0 %v12336_v3  ;;  %v4954_v59 = vpop.xlane.xlu1 %4953  ;;  %v5120_v20 = vadd.f32 %v12250_v21, %v5104_v24 }
 0xf4c   : > { %v5026_v42 = vsub.f32 %v5010_v13, %v12130_v8  ;;  %v4990_v43 = vmul.f32 0.6931472, %v6953_v53  ;;  %5169 = vmax.xlane.f32.xlu1 %v12343_v37  ;;  %v4970_v61 = vsel %vm4778_vm5, 1.0, %v4954_v59  ;;  %v12356_v47 = vadd.f32 %v5137_v54, %v5121_v31  ;;  %vm13832_vm5 = vmmov %vm13820_vm4 }
 0xf4d   : > { %v5107_v56 = vsel %vm13830_vm6, %v5027_v32, %v5091_v9  ;;  %v5013_v35 = vadd.f32 %v4992_v51, %v12013_v18  ;;  %6962 = vlog2.f32 %v4970_v61  ;;  %v12361_v57 = vadd.f32 %v5136_v41, %v5120_v20  ;;  %vm13836_vm4 = vmmov %vm13834_vm0  ;;  %v5142_v61 = vld [vmem:[%s7274_s9 + $0x2f8] sm:$0xff] }
 0xf4e   : > { %v6955_v5 = vpop.eup %6954  ;;  %v5078_v8 = vsub.f32 %v11933_v49, %v12160_v26  ;;  %v5106_v34 = vsel %vm13831_vm11, %v5026_v42, %v12284_v4  ;;  %v5012_v15 = vadd.f32 %v4990_v43, %v12001_v39  ;;  %v5123_v45 = vadd.f32 %v12250_v21, %v5107_v56  ;;  %vm13837_vm8 = vmmov %vm13832_vm5  ;;  %v5143_v42 = vld [vmem:[%s7274_s9 + $0x338] sm:$0xff] }
 0xf4f   : > { %v6957_v9 = vpop.eup %6956  ;;  %v5079_v18 = vsub.f32 %v11931_v12, %v12178_v55  ;;  %v5029_v50 = vsub.f32 %v5013_v35, %v12165_v25  ;;  %v4996_v6 = vmul.f32 0.6931472, %v6955_v5  ;;  %5175 = vmax.xlane.f32.xlu0 %v12356_v47  ;;  %v5122_v49 = vadd.f32 %v12250_v21, %v5106_v34  ;;  %vm13840_vm15 = vmmov %vm13832_vm5 }
 0xf50   : > { %v5093_v4 = vsel %vm13832_vm5, 0.0, %v5077_v19  ;;  %v5028_v39 = vsub.f32 %v5012_v15, %v12146_v22  ;;  %v4994_v16 = vmul.f32 0.6931472, %v6957_v9  ;;  %5173 = vmax.xlane.f32.xlu1 %v12361_v57  ;;  %v12381_v38 = vadd.f32 %v5139_v28, %v5123_v45  ;;  %vm13841_vm13 = vmmov %vm13832_vm5  ;;  %v5145_v45 = vld [vmem:[%s7274_s9 + $0x3b8] sm:$0xff] }
 0xf51   : > { %v5092_v12 = vsel %vm13833_vm7, 0.0, %v5076_v40  ;;  %v5109_v25 = vsel %vm13834_vm0, %v5029_v50, %v5093_v4  ;;  %v5015_v52 = vadd.f32 %v4996_v6, %v12029_v60  ;;  %v12391_v44 = vadd.f32 %v5138_v2, %v5122_v49  ;;  %v5140_v40 = vld [vmem:[%s7274_s9 + $0x278] sm:$0xff]  ;;  %vm13844_vm1 = vmmov %vm13832_vm5 }
 0xf52   : > { %v6959_v30 = vpop.eup %6958  ;;  %v5094_v54 = vsel %vm13835_vm14, 0.0, %v5078_v8  ;;  %v5108_v27 = vsel %vm13836_vm4, %v5028_v39, %v5092_v12  ;;  %v5014_v17 = vadd.f32 %v4994_v16, %v12016_v14  ;;  %v5125_v22 = vadd.f32 %v12250_v21, %v5109_v25 }
 0xf53   : > { %v6961_v24 = vpop.eup %6960  ;;  %v5095_v60 = vsel %vm13837_vm8, 0.0, %v5079_v18  ;;  %v5031_v13 = vsub.f32 %v5015_v52, %v12178_v55  ;;  %v5000_v31 = vmul.f32 0.6931472, %v6959_v30  ;;  %5179 = vmax.xlane.f32.xlu0 %v12381_v38  ;;  %v5124_v41 = vadd.f32 %v12250_v21, %v5108_v27  ;;  %v5144_v18 = vld [vmem:[%s7274_s9 + $0x378] sm:$0xff] }
 0xf54   : > { %v5081_v53 = vsub.f32 %v11935_v48, %v12190_v23  ;;  %v5030_v14 = vsub.f32 %v5014_v17, %v12160_v26  ;;  %v4998_v19 = vmul.f32 0.6931472, %v6961_v24  ;;  %5177 = vmax.xlane.f32.xlu1 %v12391_v44  ;;  %v12410_v32 = vadd.f32 %v5141_v36, %v5125_v22 }
 0xf55   : > { %v5080_v51 = vsub.f32 %v11937_v7, %v12172_v29  ;;  %v5111_v55 = vsel %vm13838_vm12, %v5031_v13, %v5095_v60  ;;  %v5017_v59 = vadd.f32 %v5000_v31, %v12045_v10  ;;  %v12417_v20 = vadd.f32 %v5140_v40, %v5124_v41 }
 0xf56   : > { %v5110_v48 = vsel %vm13839_vm10, %v5030_v14, %v5094_v54  ;;  %v5016_v26 = vadd.f32 %v4998_v19, %v12032_v0  ;;  %v5127_v43 = vadd.f32 %v12250_v21, %v5111_v55  ;;  %v5097_v35 = vsel %vm13840_vm15, 0.0, %v5081_v53 }
 0xf57   : > { %v6963_v56 = vpop.eup %6962  ;;  %v5033_v7 = vsub.f32 %v5017_v59, %v12190_v23  ;;  %5183 = vmax.xlane.f32.xlu0 %v12410_v32  ;;  %v5126_v10 = vadd.f32 %v12250_v21, %v5110_v48  ;;  %v5096_v8 = vsel %vm13841_vm13, 0.0, %v5080_v51  ;;  %v5082_v23 = vsub.f32 %v11948_v63, %v12184_v58 }
 0xf58   : > { %v5032_v28 = vsub.f32 %v5016_v26, %v12172_v29  ;;  %v5002_v5 = vmul.f32 0.6931472, %v6963_v56  ;;  %5181 = vmax.xlane.f32.xlu1 %v12417_v20  ;;  %v12432_v0 = vadd.f32 %v5143_v42, %v5127_v43  ;;  %vm13846_vm6 = vcmask 1048560  }
 0xf59   : > { %v5113_v34 = vsel %vm13842_vm3, %v5033_v7, %v5097_v35  ;;  %v12440_v15 = vadd.f32 %v5142_v61, %v5126_v10  ;;  %v5098_v49 = vsel %vm13844_vm1, 0.0, %v5082_v23  ;;  %vm13847_vm11 = vmmov %vm13846_vm6 }
 0xf5a   : > { %v5129_v29 = vadd.f32 %v12250_v21, %v5113_v34  ;;  %v5112_v2 = vsel %vm13843_vm2, %v5032_v28, %v5096_v8  ;;  %v5018_v9 = vadd.f32 %v5002_v5, %v12048_v46  ;;  %v5146_v46 = vld [vmem:[%s7274_s9 + $0x3f8] sm:$0xff]  ;;  %v5410_v12 = vsel %vm13847_vm11, %v12294_v11, -inf  ;;  %vm13848_vm5 = vmmov %vm13846_vm6  ;;  %s227_s9 = sand.u32 1, %s7161_s16  }
 0xf5b   : > { %5187 = vmax.xlane.f32.xlu0 %v12432_v0  ;;  %v5128_v50 = vadd.f32 %v12250_v21, %v5112_v2  ;;  %v5413_v25 = vsel %vm13848_vm5, %v12343_v37, -inf  ;;  %vm13849_vm7 = vmmov %vm13848_vm5  ;;  %s13154_s18 = scalar_lea.sflag [#allocation4], %s227_s9 }
 0xf5c   : > { %v5034_v63 = vsub.f32 %v5018_v9, %v12184_v58  ;;  %5185 = vmax.xlane.f32.xlu1 %v12440_v15  ;;  %v12452_v6 = vadd.f32 %v5145_v45, %v5129_v29  ;;  %v5416_v52 = vsel %vm13849_vm7, %v12336_v3, -inf  ;;  %vm13850_vm0 = vmmov %vm13848_vm5 }
 0xf5d   : > { %v12456_v4 = vadd.f32 %v5144_v18, %v5128_v50  ;;  %v5407_v36 = vsel %vm13850_vm0, %v12315_v1, -inf  ;;  %vm13851_vm14 = vmmov %vm13850_vm0 }
 0xf5e   : > { %v5114_v39 = vsel %vm13845_vm9, %v5034_v63, %v5098_v49  ;;  %v5422_v30 = vsel %vm13851_vm14, %v12356_v47, -inf  ;;  %vm13852_vm4 = vmmov %vm13850_vm0 }
 0xf5f   : > { %v5130_v16 = vadd.f32 %v12250_v21, %v5114_v39  ;;  %5191 = vmax.xlane.f32.xlu0 %v12452_v6  ;;  %v5404_v21 = vsel %vm13846_vm6, %v12262_v62, -inf  ;;  %v5419_v54 = vsel %vm13852_vm4, %v12361_v57, -inf  ;;  %vm13853_vm8 = vmmov %vm13850_vm0 }
 0xf60   : > { %5189 = vmax.xlane.f32.xlu1 %v12456_v4  ;;  %v5428_v27 = vsel %vm13853_vm8, %v12381_v38, -inf  ;;  %vm13854_vm12 = vmmov %vm13850_vm0 }
 0xf61   : > { %v12464_v58 = vadd.f32 %v5146_v46, %v5130_v16  ;;  %v5425_v17 = vsel %vm13854_vm12, %v12391_v44, -inf  ;;  %vm13855_vm10 = vmmov %vm13850_vm0 }
 0xf62   : > { %v5434_v22 = vsel %vm13855_vm10, %v12410_v32, -inf  ;;  %vm13856_vm15 = vmmov %vm13850_vm0 }
 0xf63   : > { %v5431_v40 = vsel %vm13856_vm15, %v12417_v20, -inf  ;;  %vm13857_vm13 = vmmov %vm13850_vm0 }
 0xf64   : > { %5193 = vmax.xlane.f32.xlu1 %v12464_v58  ;;  %v5440_v24 = vsel %vm13857_vm13, %v12432_v0, -inf  ;;  %vm13858_vm3 = vmmov %vm13850_vm0 }
 0xf65   : > { %v5437_v60 = vsel %vm13858_vm3, %v12440_v15, -inf  ;;  %vm13859_vm2 = vmmov %vm13850_vm0 }
 0xf66   : > { %v5446_v13 = vsel %vm13859_vm2, %v12452_v6, -inf  ;;  %vm13860_vm1 = vmmov %vm13850_vm0 }
 0xf67   : > { %v5443_v31 = vsel %vm13860_vm1, %v12456_v4, -inf  ;;  %vm13861_vm9 = vmmov %vm13850_vm0 }
 0xf68   : > { %v5449_v41 = vsel %vm13861_vm9, %v12464_v58, -inf }
 0xf75   : > { %5724 = vrot.lane.b32.xlu0 %v12262_v62, %s7180_s11  ;;  %5726 = vrot.lane.b32.xlu1 %v12315_v1, %s7180_s11 }
 0xf79   : > { %5732 = vrot.lane.b32.xlu0 %v12336_v3, %s7180_s11  ;;  %5728 = vrot.lane.b32.xlu1 %v12294_v11, %s7180_s11 }
 0xf7d   : > { %5736 = vrot.lane.b32.xlu0 %v12356_v47, %s7180_s11  ;;  %5730 = vrot.lane.b32.xlu1 %v12343_v37, %s7180_s11 }
 0xf81   : > { %5740 = vrot.lane.b32.xlu0 %v12381_v38, %s7180_s11  ;;  %5734 = vrot.lane.b32.xlu1 %v12361_v57, %s7180_s11 }
 0xf85   : > { %5738 = vrot.lane.b32.xlu1 %v12391_v44, %s7180_s11 }
 0xf89   : > { %5742 = vrot.lane.b32.xlu1 %v12417_v20, %s7180_s11 }
 0xfa0   : > { %5405 = vmax.xlane.f32.xlu0 %v5404_v21 }
 0xfa4   : > { %5411 = vmax.xlane.f32.xlu0 %v5410_v12 }
 0xfa8   : > { %5414 = vmax.xlane.f32.xlu0 %v5413_v25 }
 0xfac   : > { %5417 = vmax.xlane.f32.xlu0 %v5416_v52 }
 0xfad   : > { %5408 = vmax.xlane.f32.xlu1 %v5407_v36 }
 0xfb0   : > { %5423 = vmax.xlane.f32.xlu0 %v5422_v30 }
 0xfb1   : > { %5420 = vmax.xlane.f32.xlu1 %v5419_v54 }
 0xfb4   : > { %5429 = vmax.xlane.f32.xlu0 %v5428_v27 }
 0xfb5   : > { %5426 = vmax.xlane.f32.xlu1 %v5425_v17 }
 0xfb8   : > { %5435 = vmax.xlane.f32.xlu0 %v5434_v22 }
 0xfb9   : > { %5432 = vmax.xlane.f32.xlu1 %v5431_v40 }
 0xfbc   : > { %5441 = vmax.xlane.f32.xlu0 %v5440_v24 }
 0xfbd   : > { %5438 = vmax.xlane.f32.xlu1 %v5437_v60 }
 0xfc0   : > { %5447 = vmax.xlane.f32.xlu0 %v5446_v13 }
 0xfc1   : > { %5444 = vmax.xlane.f32.xlu1 %v5443_v31 }
 0xfc5   : > { %5450 = vmax.xlane.f32.xlu1 %v5449_v41 }
 0xfca   : > { %v12519_v53 = vpop.xlane.xlu0 %5163 }
 0xfcb   : > { %vm5195_vm6 = vcmp.eq.f32.partialorder %v12519_v53, -inf }
 0xfcc   : > { %v5211_v14 = vsel %vm5195_vm6, 0.0, %v12519_v53 }
 0xfcd   : > { %v5227_v19 = vsub.f32 %v12262_v62, %v5211_v14 }
 0xfce   : > { %v12526_v55 = vpop.xlane.xlu0 %5167 }
 0xfcf   : > { %v5243_v51 = vmul.f32 1.442695, %v5227_v19  ;;  %vm5197_vm11 = vcmp.eq.f32.partialorder %v12526_v55, -inf }
 0xfd0   : > { %v5213_v59 = vsel %vm5197_vm11, 0.0, %v12526_v55 }
 0xfd1   : > { %6964 = vpow2.f32 %v5243_v51  ;;  %v5229_v42 = vsub.f32 %v12294_v11, %v5213_v59 }
 0xfd3   : > { %v5247_v26 = vmul.f32 1.442695, %v5229_v42 }
 0xfd4   : > { %v12533_v48 = vpop.xlane.xlu1 %5165 }
 0xfd5   : > { %vm5196_vm5 = vcmp.eq.f32.partialorder %v12533_v48, -inf  ;;  %6966 = vpow2.f32 %v5247_v26 }
 0xfd6   : > { %v5212_v43 = vsel %vm5196_vm5, 0.0, %v12533_v48 }
 0xfd7   : > { %v5228_v61 = vsub.f32 %v12315_v1, %v5212_v43 }
 0xfd8   : > { %v12540_v56 = vpop.xlane.xlu0 %5171 }
 0xfd9   : > { %v5245_v7 = vmul.f32 1.442695, %v5228_v61  ;;  %vm5199_vm7 = vcmp.eq.f32.partialorder %v12540_v56, -inf  ;;  %v12543_v10 = vpop.xlane.xlu1 %5169 }
 0xfda   : > { %v5215_v35 = vsel %vm5199_vm7, 0.0, %v12540_v56  ;;  %vm5198_vm0 = vcmp.eq.f32.partialorder %v12543_v10, -inf }
 0xfdb   : > { %6968 = vpow2.f32 %v5245_v7  ;;  %v5231_v28 = vsub.f32 %v12336_v3, %v5215_v35  ;;  %v5214_v5 = vsel %vm5198_vm0, 0.0, %v12543_v10  ;;  %v6965_v8 = vpop.eup %6964 }
 0xfdc   : > { %v5230_v23 = vsub.f32 %v12343_v37, %v5214_v5  ;;  %v12554_v34 = vpop.xlane.xlu0 %5175  ;;  %5275 = vadd.xlane.f32.xlu0 %v6965_v8 }
 0xfdd   : > { %v5251_v45 = vmul.f32 1.442695, %v5231_v28  ;;  %vm5201_vm14 = vcmp.eq.f32.partialorder %v12554_v34, -inf  ;;  %v12557_v29 = vpop.xlane.xlu1 %5173 }
 0xfde   : > { %v5249_v2 = vmul.f32 1.442695, %v5230_v23  ;;  %v5217_v9 = vsel %vm5201_vm14, 0.0, %v12554_v34  ;;  %vm5200_vm4 = vcmp.eq.f32.partialorder %v12557_v29, -inf }
 0xfdf   : > { %6970 = vpow2.f32 %v5251_v45  ;;  %v5233_v18 = vsub.f32 %v12356_v47, %v5217_v9  ;;  %v5216_v50 = vsel %vm5200_vm4, 0.0, %v12557_v29  ;;  %v6967_v39 = vpop.eup %6966 }
 0xfe0   : > { %6972 = vpow2.f32 %v5249_v2  ;;  %v5232_v63 = vsub.f32 %v12361_v57, %v5216_v50  ;;  %v12568_v49 = vpop.xlane.xlu0 %5179  ;;  %5279 = vadd.xlane.f32.xlu0 %v6967_v39 }
 0xfe1   : > { %v5255_v46 = vmul.f32 1.442695, %v5233_v18  ;;  %vm5203_vm8 = vcmp.eq.f32.partialorder %v12568_v49, -inf  ;;  %v12571_v16 = vpop.xlane.xlu1 %5177 }
 0xfe2   : > { %v5253_v21 = vmul.f32 1.442695, %v5232_v63  ;;  %v5219_v12 = vsel %vm5203_vm8, 0.0, %v12568_v49  ;;  %vm5202_vm12 = vcmp.eq.f32.partialorder %v12571_v16, -inf }
 0xfe3   : > { %6974 = vpow2.f32 %v5255_v46  ;;  %v5235_v25 = vsub.f32 %v12381_v38, %v5219_v12  ;;  %v5218_v52 = vsel %vm5202_vm12, 0.0, %v12571_v16 }
 0xfe4   : > { %6976 = vpow2.f32 %v5253_v21  ;;  %v5234_v36 = vsub.f32 %v12391_v44, %v5218_v52  ;;  %v12582_v30 = vpop.xlane.xlu0 %5183 }
 0xfe5   : > { %v6969_v54 = vpop.eup %6968  ;;  %vm5205_vm10 = vcmp.eq.f32.partialorder %v12582_v30, -inf  ;;  %v12585_v27 = vpop.xlane.xlu1 %5181  ;;  %v5259_v40 = vmul.f32 1.442695, %v5235_v25 }
 0xfe6   : > { %v5257_v17 = vmul.f32 1.442695, %v5234_v36  ;;  %v5221_v22 = vsel %vm5205_vm10, 0.0, %v12582_v30  ;;  %vm5204_vm15 = vcmp.eq.f32.partialorder %v12585_v27, -inf  ;;  %5277 = vadd.xlane.f32.xlu1 %v6969_v54 }
 0xfe7   : > { %v5237_v24 = vsub.f32 %v12410_v32, %v5221_v22  ;;  %v5220_v60 = vsel %vm5204_vm15, 0.0, %v12585_v27 }
 0xfe8   : > { %6978 = vpow2.f32 %v5257_v17  ;;  %v5236_v13 = vsub.f32 %v12417_v20, %v5220_v60  ;;  %v12596_v31 = vpop.xlane.xlu0 %5187 }
 0xfe9   : > { %v6971_v41 = vpop.eup %6970  ;;  %vm13324_vm13 = vcmp.eq.f32.partialorder %v12596_v31, -inf  ;;  %v12599_v14 = vpop.xlane.xlu1 %5185  ;;  %6980 = vpow2.f32 %v5259_v40  ;;  %v5263_v42 = vmul.f32 1.442695, %v5237_v24 }
 0xfea   : > { %v6973_v19 = vpop.eup %6972  ;;  %v5261_v51 = vmul.f32 1.442695, %v5236_v13  ;;  %v5223_v59 = vsel %vm13324_vm13, 0.0, %v12596_v31  ;;  %5283 = vadd.xlane.f32.xlu0 %v6971_v41  ;;  %vm5206_vm3 = vcmp.eq.f32.partialorder %v12599_v14, -inf }
 0xfeb   : > { %v5239_v26 = vsub.f32 %v12432_v0, %v5223_v59  ;;  %v5222_v43 = vsel %vm5206_vm3, 0.0, %v12599_v14  ;;  %5281 = vadd.xlane.f32.xlu1 %v6973_v19 }
 0xfec   : > { %6982 = vpow2.f32 %v5261_v51  ;;  %v5238_v61 = vsub.f32 %v12440_v15, %v5222_v43  ;;  %v12610_v7 = vpop.xlane.xlu0 %5191 }
 0xfed   : > { %v6975_v35 = vpop.eup %6974  ;;  %vm13321_vm2 = vcmp.eq.f32.partialorder %v12610_v7, -inf  ;;  %v12613_v28 = vpop.xlane.xlu1 %5189  ;;  %6984 = vpow2.f32 %v5263_v42  ;;  %v5267_v45 = vmul.f32 1.442695, %v5239_v26 }
 0xfee   : > { %v6977_v5 = vpop.eup %6976  ;;  %v5265_v8 = vmul.f32 1.442695, %v5238_v61  ;;  %v5225_v23 = vsel %vm13321_vm2, 0.0, %v12610_v7  ;;  %5287 = vadd.xlane.f32.xlu0 %v6975_v35  ;;  %vm13325_vm1 = vcmp.eq.f32.partialorder %v12613_v28, -inf }
 0xfef   : > { %v5241_v2 = vsub.f32 %v12452_v6, %v5225_v23  ;;  %v5224_v9 = vsel %vm13325_vm1, 0.0, %v12613_v28  ;;  %5285 = vadd.xlane.f32.xlu1 %v6977_v5 }
 0xff0   : > { %6986 = vpow2.f32 %v5265_v8  ;;  %v5240_v18 = vsub.f32 %v12456_v4, %v5224_v9  ;;  %v12631_v13 = vpop.permute.xlu0 %5724 }
 0xff1   : > { %v12624_v50 = vpop.xlane.xlu1 %5193  ;;  %6988 = vpow2.f32 %v5267_v45  ;;  %v5271_v46 = vmul.f32 1.442695, %v5241_v2 }
 0xff2   : > { %v6979_v63 = vpop.eup %6978  ;;  %v5269_v39 = vmul.f32 1.442695, %v5240_v18  ;;  %vm13322_vm9 = vcmp.eq.f32.partialorder %v12624_v50, -inf }
 0xff3   : > { %v5226_v21 = vsel %vm13322_vm9, 0.0, %v12624_v50  ;;  %5289 = vadd.xlane.f32.xlu0 %v6979_v63  ;;  %v6981_v25 = vpop.eup %6980 }
 0xff4   : > { %6990 = vpow2.f32 %v5269_v39  ;;  %v5242_v12 = vsub.f32 %v12464_v58, %v5226_v21  ;;  %v12635_v19 = vpop.permute.xlu0 %5732 }
 0xff5   : > { %6992 = vpow2.f32 %v5271_v46  ;;  %v12633_v41 = vpop.permute.xlu1 %5726 }
 0xff6   : > { %v6983_v52 = vpop.eup %6982  ;;  %v5273_v36 = vmul.f32 1.442695, %v5242_v12 }
 0xff7   : > { %5293 = vadd.xlane.f32.xlu1 %v6983_v52  ;;  %5291 = vadd.xlane.f32.xlu0 %v6981_v25  ;;  %v6985_v54 = vpop.eup %6984 }
 0xff8   : > { %6994 = vpow2.f32 %v5273_v36  ;;  %v12639_v59 = vpop.permute.xlu0 %5736 }
 0xff9   : > { %v12637_v51 = vpop.permute.xlu1 %5728 }
 0xffa   : > { %v6987_v17 = vpop.eup %6986 }
 0xffb   : > { %5297 = vadd.xlane.f32.xlu1 %v6987_v17  ;;  %5295 = vadd.xlane.f32.xlu0 %v6985_v54  ;;  %v6989_v22 = vpop.eup %6988 }
 0xffc   : > { %v12643_v26 = vpop.permute.xlu0 %5740 }
 0xffd   : > { %v12641_v42 = vpop.permute.xlu1 %5730 }
 0xffe   : > { %v6991_v40 = vpop.eup %6990 }
 0xfff   : > { %5301 = vadd.xlane.f32.xlu1 %v6991_v40  ;;  %5299 = vadd.xlane.f32.xlu0 %v6989_v22  ;;  %v6993_v24 = vpop.eup %6992 }
0x1001   : > { %v12645_v43 = vpop.permute.xlu1 %5734 }
0x1002   : > { %v6995_v60 = vpop.eup %6994 }
0x1003   : > { %5305 = vadd.xlane.f32.xlu1 %v6995_v60  ;;  %5303 = vadd.xlane.f32.xlu0 %v6993_v24 }
0x1005   : > { %v12653_v5 = vpop.permute.xlu1 %5738 }
0x1009   : > { %v12660_v9 = vpop.permute.xlu1 %5742 }
0x102d   : > { %v12647_v61 = vpop.xlane.xlu0 %5405 }
0x102e   : > { %vm13323_vm2 = vcmp.eq.f32.partialorder %v12647_v61, -inf }
0x102f   : > { %v5468_v35 = vsel %vm13323_vm2, 0.0, %v12647_v61 }
0x1030   : > { %v5484_v8 = vsub.f32 %v12262_v62, %v5468_v35 }
0x1031   : > { %v12656_v23 = vpop.xlane.xlu0 %5411 }
0x1032   : > { %v5500_v45 = vmul.f32 1.442695, %v5484_v8  ;;  %vm13327_vm9 = vcmp.eq.f32.partialorder %v12656_v23, -inf }
0x1033   : > { %v5470_v63 = vsel %vm13327_vm9, 0.0, %v12656_v23 }
0x1034   : > { %6996 = vpow2.f32 %v5500_v45  ;;  %v5486_v12 = vsub.f32 %v12294_v11, %v5470_v63 }
0x1035   : > { %v12658_v2 = vpop.xlane.xlu0 %5414 }
0x1036   : > { %vm13329_vm13 = vcmp.eq.f32.partialorder %v12658_v2, -inf }
0x1037   : > { %v5471_v54 = vsel %vm13329_vm13, 0.0, %v12658_v2 }
0x1038   : > { %v5487_v24 = vsub.f32 %v12343_v37, %v5471_v54 }
0x1039   : > { %v12663_v18 = vpop.xlane.xlu0 %5417 }
0x103a   : > { %vm13326_vm2 = vcmp.eq.f32.partialorder %v12663_v18, -inf  ;;  %v12669_v39 = vpop.xlane.xlu1 %5408 }
0x103b   : > { %v5472_v62 = vsel %vm13326_vm2, 0.0, %v12663_v18  ;;  %vm5453_vm1 = vcmp.eq.f32.partialorder %v12669_v39, -inf }
0x103c   : > { %v5488_v46 = vsub.f32 %v12336_v3, %v5472_v62  ;;  %v5469_v21 = vsel %vm5453_vm1, 0.0, %v12669_v39 }
0x103d   : > { %v5485_v25 = vsub.f32 %v12315_v1, %v5469_v21  ;;  %v12682_v52 = vpop.xlane.xlu0 %5423  ;;  %v5504_v1 = vmul.f32 1.442695, %v5486_v12 }
0x103e   : > { %v6997_v36 = vpop.eup %6996  ;;  %v5508_v17 = vmul.f32 1.442695, %v5488_v46  ;;  %vm13328_vm2 = vcmp.eq.f32.partialorder %v12682_v52, -inf  ;;  %v12688_v22 = vpop.xlane.xlu1 %5420 }
0x103f   : > { %v5502_v3 = vmul.f32 1.442695, %v5485_v25  ;;  %v5474_v40 = vsel %vm13328_vm2, 0.0, %v12682_v52  ;;  %5548 = vrot.lane.b32.xlu0 %v6997_v36, %s7179_s10  ;;  %vm13330_vm9 = vcmp.eq.f32.partialorder %v12688_v22, -inf }
0x1040   : > { %6998 = vpow2.f32 %v5508_v17  ;;  %v5490_v11 = vsub.f32 %v12356_v47, %v5474_v40  ;;  %v5473_v8 = vsel %vm13330_vm9, 0.0, %v12688_v22  ;;  %v5506_v47 = vmul.f32 1.442695, %v5487_v24 }
0x1041   : > { %7000 = vpow2.f32 %v5502_v3  ;;  %v12697_v60 = vpop.xlane.xlu0 %5429  ;;  %v5489_v62 = vsub.f32 %v12361_v57, %v5473_v8 }
0x1042   : > { %v5512_v35 = vmul.f32 1.442695, %v5490_v11  ;;  %vm13331_vm2 = vcmp.eq.f32.partialorder %v12697_v60, -inf  ;;  %v12703_v45 = vpop.xlane.xlu1 %5426 }
0x1043   : > { %v5476_v63 = vsel %vm13331_vm2, 0.0, %v12697_v60  ;;  %vm13332_vm13 = vcmp.eq.f32.partialorder %v12703_v45, -inf }
0x1044   : > { %7002 = vpow2.f32 %v5512_v35  ;;  %v5492_v37 = vsub.f32 %v12381_v38, %v5476_v63  ;;  %v5475_v12 = vsel %vm13332_vm13, 0.0, %v12703_v45  ;;  %v5510_v38 = vmul.f32 1.442695, %v5489_v62 }
0x1045   : > { %7004 = vpow2.f32 %v5504_v1  ;;  %v12711_v46 = vpop.xlane.xlu0 %5435  ;;  %v5491_v54 = vsub.f32 %v12391_v44, %v5475_v12 }
0x1046   : > { %v5516_v21 = vmul.f32 1.442695, %v5492_v37  ;;  %vm13333_vm9 = vcmp.eq.f32.partialorder %v12711_v46, -inf  ;;  %v12717_v25 = vpop.xlane.xlu1 %5432 }
0x1047   : > { %v5478_v36 = vsel %vm13333_vm9, 0.0, %v12711_v46  ;;  %vm13335_vm2 = vcmp.eq.f32.partialorder %v12717_v25, -inf  ;;  %v5514_v8 = vmul.f32 1.442695, %v5491_v54 }
0x1048   : > { %7006 = vpow2.f32 %v5516_v21  ;;  %v5494_v57 = vsub.f32 %v12410_v32, %v5478_v36  ;;  %v5477_v11 = vsel %vm13335_vm2, 0.0, %v12717_v25 }
0x1049   : > { %7008 = vpow2.f32 %v5506_v47  ;;  %v12725_v17 = vpop.xlane.xlu0 %5441  ;;  %v5493_v63 = vsub.f32 %v12417_v20, %v5477_v11 }
0x104a   : > { %v6999_v3 = vpop.eup %6998  ;;  %v5520_v40 = vmul.f32 1.442695, %v5494_v57  ;;  %vm13334_vm13 = vcmp.eq.f32.partialorder %v12725_v17, -inf  ;;  %v12731_v1 = vpop.xlane.xlu1 %5438 }
0x104b   : > { %v7001_v24 = vpop.eup %7000  ;;  %v5480_v35 = vsel %vm13334_vm13, 0.0, %v12725_v17  ;;  %5556 = vrot.lane.b32.xlu0 %v6999_v3, %s7179_s10  ;;  %vm5463_vm9 = vcmp.eq.f32.partialorder %v12731_v1, -inf }
0x104c   : > { %7010 = vpow2.f32 %v5520_v40  ;;  %v5496_v44 = vsub.f32 %v12432_v0, %v5480_v35  ;;  %5550 = vrot.lane.b32.xlu1 %v7001_v24, %s7179_s10  ;;  %v5479_v21 = vsel %vm5463_vm9, 0.0, %v12731_v1 }
0x104d   : > { %7012 = vpow2.f32 %v5510_v38  ;;  %v12741_v37 = vpop.xlane.xlu0 %5447  ;;  %v5518_v38 = vmul.f32 1.442695, %v5493_v63  ;;  %v5495_v54 = vsub.f32 %v12440_v15, %v5479_v21 }
0x104e   : > { %v7003_v47 = vpop.eup %7002  ;;  %v5524_v62 = vmul.f32 1.442695, %v5496_v44  ;;  %vm13336_vm13 = vcmp.eq.f32.partialorder %v12741_v37, -inf  ;;  %v12747_v12 = vpop.xlane.xlu1 %5444 }
0x104f   : > { %v7005_v36 = vpop.eup %7004  ;;  %v5482_v57 = vsel %vm13336_vm13, 0.0, %v12741_v37  ;;  %5560 = vrot.lane.b32.xlu0 %v7003_v47, %s7179_s10  ;;  %vm5465_vm2 = vcmp.eq.f32.partialorder %v12747_v12, -inf  ;;  %v5522_v44 = vmul.f32 1.442695, %v5495_v54 }
0x1050   : > { %7014 = vpow2.f32 %v5524_v62  ;;  %v5498_v20 = vsub.f32 %v12452_v6, %v5482_v57  ;;  %5552 = vrot.lane.b32.xlu1 %v7005_v36, %s7179_s10  ;;  %v5481_v11 = vsel %vm5465_vm2, 0.0, %v12747_v12 }
0x1051   : > { %7016 = vpow2.f32 %v5514_v8  ;;  %v5497_v8 = vsub.f32 %v12456_v4, %v5481_v11 }
0x1052   : > { %v7007_v3 = vpop.eup %7006  ;;  %v5528_v40 = vmul.f32 1.442695, %v5498_v20  ;;  %v12760_v24 = vpop.xlane.xlu1 %5450 }
0x1053   : > { %v7009_v35 = vpop.eup %7008  ;;  %5564 = vrot.lane.b32.xlu0 %v7007_v3, %s7179_s10  ;;  %vm5467_vm13 = vcmp.eq.f32.partialorder %v12760_v24, -inf  ;;  %v5526_v21 = vmul.f32 1.442695, %v5497_v8 }
0x1054   : > { %7018 = vpow2.f32 %v5528_v40  ;;  %5554 = vrot.lane.b32.xlu1 %v7009_v35, %s7179_s10  ;;  %v5483_v47 = vsel %vm5467_vm13, 0.0, %v12760_v24 }
0x1055   : > { %7020 = vpow2.f32 %v5518_v38  ;;  %v5499_v36 = vsub.f32 %v12464_v58, %v5483_v47 }
0x1056   : > { %v7011_v63 = vpop.eup %7010  ;;  %7022 = vpow2.f32 %v5522_v44 }
0x1057   : > { %v7013_v62 = vpop.eup %7012  ;;  %5568 = vrot.lane.b32.xlu0 %v7011_v63, %s7179_s10  ;;  %7024 = vpow2.f32 %v5526_v21  ;;  %v5530_v38 = vmul.f32 1.442695, %v5499_v36 }
0x1058   : > { %5558 = vrot.lane.b32.xlu1 %v7013_v62, %s7179_s10 }
0x1059   : > { %7026 = vpow2.f32 %v5530_v38 }
0x105a   : > { %v7015_v57 = vpop.eup %7014 }
0x105b   : > { %v7017_v20 = vpop.eup %7016  ;;  %5572 = vrot.lane.b32.xlu0 %v7015_v57, %s7179_s10 }
0x105c   : > { %5562 = vrot.lane.b32.xlu1 %v7017_v20, %s7179_s10 }
0x105e   : > { %v7019_v54 = vpop.eup %7018 }
0x105f   : > { %v7021_v3 = vpop.eup %7020  ;;  %5576 = vrot.lane.b32.xlu0 %v7019_v54, %s7179_s10 }
0x1060   : > { %5566 = vrot.lane.b32.xlu1 %v7021_v3, %s7179_s10  ;;  %v7023_v40 = vpop.eup %7022 }
0x1061   : > { %v7025_v11 = vpop.eup %7024 }
0x1063   : > { %5744 = vrot.lane.b32.xlu0 %v12410_v32, %s7180_s11  ;;  %v7027_v44 = vpop.eup %7026 }
0x1064   : > { %5570 = vrot.lane.b32.xlu1 %v7023_v40, %s7179_s10 }
0x1067   : > { %5748 = vrot.lane.b32.xlu0 %v12432_v0, %s7180_s11 }
0x1068   : > { %5574 = vrot.lane.b32.xlu1 %v7025_v11, %s7179_s10 }
0x1069   : > { %v5276_v35 = vpop.xlane.xlu0 %5275 }
0x106a   : > { %v5307_v8 = vsel %vm5195_vm6, 1.0, %v5276_v35  ;;  %vm5387_vm6 = vcmask 64568  }
0x106b   : > { %7028 = vlog2.f32 %v5307_v8 }
0x106c   : > { %5578 = vrot.lane.b32.xlu1 %v7027_v44, %s7179_s10  ;;  %s5994_s10 = sshll.u32 %s227_s9, 7 }
0x106d   : > { %v5280_v63 = vpop.xlane.xlu0 %5279  ;;  %s12966_s26 = scalar_lea.vmem [#allocation3], %s5994_s10 }
0x106e   : > { %v5309_v32 = vsel %vm5197_vm11, 1.0, %v5280_v63  ;;  %vm13862_vm11 = vcmp.eq.f32.partialorder %v12613_v28, -inf  ;;  %s5881_s30 = sshll.u32 %s12966_s26, 4  ;;  %s13148_s30 = int_to_ptr.vmem [resolvable:$true] %s5881_s30 }
0x106f   : > { %7030 = vlog2.f32 %v5309_v32  ;;  %s7099_s8 = scalar_lea.vmem %s13148_s30, 2048  ;;  %p7106_p1 = scmp.lt.s32.totalorder %s13148_s30, %s7104_s13 }
0x1070   : > { %5746 = vrot.lane.b32.xlu1 %v12440_v15, %s7180_s11  ;;  %p7100_p12 = scmp.ne.s32.totalorder %s13148_s30, %s7099_s8  ;;  %p7107_p2 = scmp.lt.s32.totalorder %s7105_s14, %s7099_s8 }
0x1072   : > { %p7101_p13 = pnand %p7100_p12, %p7249_p4  ;;  %p7108_p3 = por %p7107_p2, %p7106_p1 }
0x1073   : > { %v5278_v47 = vpop.xlane.xlu1 %5277 }
0x1074   : > { %v5308_v0 = vsel %vm5196_vm5, 1.0, %v5278_v47  ;;  %5750 = vrot.lane.b32.xlu1 %v12456_v4, %s7180_s11  ;;  %vm13863_vm5 = vcmp.eq.f32.partialorder %v12596_v31, -inf  ;;  %p7102_p0 = pneg %p7101_p13 }
0x1075   : > { %7032 = vlog2.f32 %v5308_v0  ;;  %v7029_v62 = vpop.eup %7028 }
0x1076   : > { %v5324_v21 = vmul.f32 0.6931472, %v7029_v62  ;;  %p7109_p5 = pnand %p7108_p3, %p7102_p0 }
0x1077   : > { %v5284_v36 = vpop.xlane.xlu0 %5283 }
0x1078   : > { %v5311_v57 = vsel %vm5199_vm7, 1.0, %v5284_v36  ;;  %v5282_v20 = vpop.xlane.xlu1 %5281  ;;  %v12796_v38 = vadd.f32 %v5324_v21, %v12519_v53  ;;  %vm13864_vm7 = vcmp.eq.f32.partialorder %v12624_v50, -inf }
0x1079   : > { %7034 = vlog2.f32 %v5311_v57  ;;  %v5310_v15 = vsel %vm5198_vm0, 1.0, %v5282_v20  ;;  %v7031_v54 = vpop.eup %7030  ;;  %vm13865_vm0 = vcmp.eq.f32.partialorder %v12610_v7, -inf }
0x107a   : > { %7036 = vlog2.f32 %v5310_v15  ;;  %v5371_v4 = vsub.f32 0.0, %v12796_v38  ;;  %v5328_v40 = vmul.f32 0.6931472, %v7031_v54 }
0x107b   : > { %v5288_v3 = vpop.xlane.xlu0 %5287 }
0x107c   : > { %v5313_v11 = vsel %vm5201_vm14, 1.0, %v5288_v3  ;;  %v5286_v35 = vpop.xlane.xlu1 %5285  ;;  %5388 = vst.msk [vmem:[%s7665_s21] sm:$0xff] %vm5387_vm6, %v5371_v4  ;;  %v12808_v44 = vadd.f32 %v5328_v40, %v12526_v55  ;;  %vm13866_vm14 = vcmask 15360  }
0x107d   : > { %7038 = vlog2.f32 %v5313_v11  ;;  %v5312_v53 = vsel %vm5200_vm4, 1.0, %v5286_v35  ;;  %vm13867_vm4 = vmmov %vm13866_vm14 }
0x107e   : > { %7040 = vlog2.f32 %v5312_v53  ;;  %v5373_v63 = vsub.f32 0.0, %v12808_v44 }
0x107f   : > { %v7033_v8 = vpop.eup %7032 }
0x1080   : > { %v5326_v32 = vmul.f32 0.6931472, %v7033_v8  ;;  %v5290_v47 = vpop.xlane.xlu0 %5289  ;;  %5390 = vst.msk [vmem:[%s7665_s21 + $0x10] sm:$0xff] %vm5387_vm6, %v5373_v63 }
0x1081   : > { %v5314_v0 = vsel %vm5202_vm12, 1.0, %v5290_v47  ;;  %vm13869_vm12 = vmmov %vm13867_vm4 }
0x1082   : > { %v12816_v62 = vadd.f32 %v5326_v32, %v12533_v48  ;;  %7042 = vlog2.f32 %v5314_v0 }
0x1083   : > { %v7035_v21 = vpop.eup %7034 }
0x1084   : > { %v7037_v36 = vpop.eup %7036  ;;  %v5372_v55 = vsub.f32 0.0, %v12816_v62  ;;  %v5332_v57 = vmul.f32 0.6931472, %v7035_v21  ;;  %v5294_v20 = vpop.xlane.xlu1 %5293 }
0x1085   : > { %v5292_v15 = vpop.xlane.xlu0 %5291  ;;  %v5330_v54 = vmul.f32 0.6931472, %v7037_v36  ;;  %v5316_v4 = vsel %vm5204_vm15, 1.0, %v5294_v20  ;;  %vm13871_vm15 = vmmov %vm13867_vm4 }
0x1086   : > { %v5315_v3 = vsel %vm5203_vm8, 1.0, %v5292_v15  ;;  %5389 = vst.msk [vmem:[%s7665_s21 + $0x8] sm:$0xff] %vm5387_vm6, %v5372_v55  ;;  %v12826_v48 = vadd.f32 %v5332_v57, %v12540_v56  ;;  %7044 = vlog2.f32 %v5316_v4  ;;  %vm13868_vm8 = vmmov %vm13867_vm4 }
0x1087   : > { %v7039_v40 = vpop.eup %7038  ;;  %v12829_v11 = vadd.f32 %v5330_v54, %v12543_v10  ;;  %7046 = vlog2.f32 %v5315_v3 }
0x1088   : > { %v7041_v35 = vpop.eup %7040  ;;  %v5375_v53 = vsub.f32 0.0, %v12826_v48  ;;  %v5336_v8 = vmul.f32 0.6931472, %v7039_v40  ;;  %v5298_v63 = vpop.xlane.xlu1 %5297 }
0x1089   : > { %v5296_v32 = vpop.xlane.xlu0 %5295  ;;  %v5374_v47 = vsub.f32 0.0, %v12829_v11  ;;  %v5334_v0 = vmul.f32 0.6931472, %v7041_v35  ;;  %v5318_v56 = vsel %vm5206_vm3, 1.0, %v5298_v63  ;;  %vm13872_vm3 = vmmov %vm13867_vm4 }
0x108a   : > { %5392 = vst.msk [vmem:[%s7665_s21 + $0x20] sm:$0xff] %vm5387_vm6, %v5375_v53  ;;  %v12838_v21 = vadd.f32 %v5336_v8, %v12554_v34  ;;  %7048 = vlog2.f32 %v5318_v56  ;;  %v5317_v10 = vsel %vm5205_vm10, 1.0, %v5296_v32  ;;  %vm13870_vm10 = vmmov %vm13867_vm4 }
0x108b   : > { %5391 = vst.msk [vmem:[%s7665_s21 + $0x18] sm:$0xff] %vm5387_vm6, %v5374_v47  ;;  %v12845_v36 = vadd.f32 %v5334_v0, %v12557_v29  ;;  %7050 = vlog2.f32 %v5317_v10 }
0x108c   : > { %v7043_v55 = vpop.eup %7042  ;;  %v5377_v57 = vsub.f32 0.0, %v12838_v21  ;;  %v5302_v20 = vpop.xlane.xlu1 %5301 }
0x108d   : > { %v5300_v15 = vpop.xlane.xlu0 %5299  ;;  %v5376_v54 = vsub.f32 0.0, %v12845_v36  ;;  %v5338_v34 = vmul.f32 0.6931472, %v7043_v55  ;;  %v5320_v4 = vsel %vm13862_vm11, 1.0, %v5302_v20  ;;  %vm13874_vm11 = vmmov %vm13872_vm3 }
0x108e   : > { %5394 = vst.msk [vmem:[%s7665_s21 + $0x30] sm:$0xff] %vm5387_vm6, %v5377_v57  ;;  %7052 = vlog2.f32 %v5320_v4  ;;  %v5319_v29 = vsel %vm13863_vm5, 1.0, %v5300_v15  ;;  %vm13875_vm5 = vmmov %vm13872_vm3 }
0x108f   : > { %5393 = vst.msk [vmem:[%s7665_s21 + $0x28] sm:$0xff] %vm5387_vm6, %v5376_v54  ;;  %v12858_v3 = vadd.f32 %v5338_v34, %v12571_v16  ;;  %7054 = vlog2.f32 %v5319_v29 }
0x1090   : > { %v7045_v40 = vpop.eup %7044  ;;  %v5306_v35 = vpop.xlane.xlu1 %5305 }
0x1091   : > { %v5304_v53 = vpop.xlane.xlu0 %5303  ;;  %v7047_v8 = vpop.eup %7046  ;;  %v5378_v63 = vsub.f32 0.0, %v12858_v3  ;;  %v5342_v32 = vmul.f32 0.6931472, %v7045_v40  ;;  %v5322_v47 = vsel %vm13864_vm7, 1.0, %v5306_v35  ;;  %vm13876_vm7 = vmmov %vm13872_vm3 }
0x1092   : > { %v5340_v0 = vmul.f32 0.6931472, %v7047_v8  ;;  %7056 = vlog2.f32 %v5322_v47  ;;  %v5321_v56 = vsel %vm13865_vm0, 1.0, %v5304_v53  ;;  %vm13877_vm0 = vmmov %vm13872_vm3 }
0x1093   : > { %5395 = vst.msk [vmem:[%s7665_s21 + $0x38] sm:$0xff] %vm5387_vm6, %v5378_v63  ;;  %v12868_v16 = vadd.f32 %v5342_v32, %v12585_v27  ;;  %7058 = vlog2.f32 %v5321_v56 }
0x1094   : > { %v7049_v10 = vpop.eup %7048  ;;  %v12871_v55 = vadd.f32 %v5340_v0, %v12568_v49 }
0x1095   : > { %v7051_v57 = vpop.eup %7050  ;;  %v5380_v20 = vsub.f32 0.0, %v12868_v16  ;;  %v5346_v15 = vmul.f32 0.6931472, %v7049_v10 }
0x1096   : > { %v5379_v54 = vsub.f32 0.0, %v12871_v55  ;;  %v5344_v34 = vmul.f32 0.6931472, %v7051_v57 }
0x1097   : > { %5397 = vst.msk [vmem:[%s7665_s21 + $0x48] sm:$0xff] %vm5387_vm6, %v5380_v20  ;;  %v12878_v4 = vadd.f32 %v5346_v15, %v12599_v14 }
0x1098   : > { %v7053_v27 = vpop.eup %7052  ;;  %5396 = vst.msk [vmem:[%s7665_s21 + $0x40] sm:$0xff] %vm5387_vm6, %v5379_v54  ;;  %v12883_v49 = vadd.f32 %v5344_v34, %v12582_v30 }
0x1099   : > { %v7055_v29 = vpop.eup %7054  ;;  %v5350_v40 = vmul.f32 0.6931472, %v7053_v27  ;;  %v5382_v35 = vsub.f32 0.0, %v12878_v4 }
0x109a   : > { %v5348_v53 = vmul.f32 0.6931472, %v7055_v29  ;;  %v5381_v8 = vsub.f32 0.0, %v12883_v49 }
0x109b   : > { %5399 = vst.msk [vmem:[%s7665_s21 + $0x58] sm:$0xff] %vm5387_vm6, %v5382_v35  ;;  %v12890_v14 = vadd.f32 %v5350_v40, %v12613_v28 }
0x109c   : > { %v7057_v63 = vpop.eup %7056  ;;  %5398 = vst.msk [vmem:[%s7665_s21 + $0x50] sm:$0xff] %vm5387_vm6, %v5381_v8  ;;  %v12895_v30 = vadd.f32 %v5348_v53, %v12596_v31 }
0x109d   : > { %v7059_v32 = vpop.eup %7058  ;;  %v5354_v47 = vmul.f32 0.6931472, %v7057_v63  ;;  %v5384_v0 = vsub.f32 0.0, %v12890_v14 }
0x109e   : > { %v5352_v56 = vmul.f32 0.6931472, %v7059_v32  ;;  %v5383_v10 = vsub.f32 0.0, %v12895_v30 }
0x109f   : > { %5401 = vst.msk [vmem:[%s7665_s21 + $0x68] sm:$0xff] %vm5387_vm6, %v5384_v0  ;;  %v12902_v57 = vadd.f32 %v5354_v47, %v12624_v50 }
0x10a0   : > { %5400 = vst.msk [vmem:[%s7665_s21 + $0x60] sm:$0xff] %vm5387_vm6, %v5383_v10  ;;  %v12907_v28 = vadd.f32 %v5352_v56, %v12610_v7 }
0x10a1   : > { %v5386_v31 = vsub.f32 0.0, %v12902_v57 }
0x10a2   : > { %v5385_v20 = vsub.f32 0.0, %v12907_v28 }
0x10a3   : > { %5403 = vst.msk [vmem:[%s7665_s21 + $0x78] sm:$0xff] %vm5387_vm6, %v5386_v31 }
0x10a4   : > { %5402 = vst.msk [vmem:[%s7665_s21 + $0x70] sm:$0xff] %vm5387_vm6, %v5385_v20  ;;  %vm13873_vm6 = vmmov %vm13872_vm3 }
0x10b1   : > { %v5549_v15 = vpop.permute.xlu0 %5548 }
0x10b2   : > { %v5596_v54 = vsel %vm13866_vm14, %v5549_v15, 0.0  ;;  %vm13878_vm14 = vmmov %vm13877_vm0 }
0x10b3   : > { %5597 = vadd.xlane.f32.xlu0 %v5596_v54 }
0x10bd   : > { %v5557_v34 = vpop.permute.xlu0 %5556 }
0x10be   : > { %v5551_v50 = vpop.permute.xlu1 %5550  ;;  %v5608_v8 = vsel %vm13869_vm12, %v5557_v34, 0.0  ;;  %vm13881_vm12 = vmmov %vm13877_vm0 }
0x10bf   : > { %v5599_v27 = vsel %vm13867_vm4, %v5551_v50, 0.0  ;;  %vm13879_vm4 = vmmov %vm13877_vm0 }
0x10c0   : > { %5600 = vadd.xlane.f32.xlu1 %v5599_v27 }
0x10c1   : > { %v5561_v29 = vpop.permute.xlu0 %5560 }
0x10c2   : > { %v5553_v7 = vpop.permute.xlu1 %5552  ;;  %v5614_v47 = vsel %vm13871_vm15, %v5561_v29, 0.0  ;;  %vm13883_vm15 = vcmp.eq.s32.totalorder %v7822_v33, 0 }
0x10c3   : > { %v5602_v40 = vsel %vm13868_vm8, %v5553_v7, 0.0  ;;  %vm13880_vm8 = vmmov %vm13877_vm0 }
0x10c4   : > { %5603 = vadd.xlane.f32.xlu0 %v5602_v40 }
0x10c5   : > { %v5565_v35 = vpop.permute.xlu0 %5564 }
0x10c6   : > { %v5555_v53 = vpop.permute.xlu1 %5554  ;;  %v5620_v31 = vsel %vm13873_vm6, %v5565_v35, 0.0  ;;  %vm13885_vm6 = vcmp.eq.s32.totalorder %v7822_v33, 127 }
0x10c7   : > { %v5605_v63 = vsel %vm13870_vm10, %v5555_v53, 0.0  ;;  %vm13882_vm10 = vcmp.eq.f32.partialorder %v12647_v61, -inf }
0x10c8   : > { %5606 = vadd.xlane.f32.xlu1 %v5605_v63  ;;  %5609 = vadd.xlane.f32.xlu0 %v5608_v8 }
0x10c9   : > { %v5569_v56 = vpop.permute.xlu0 %5568 }
0x10ca   : > { %v5559_v32 = vpop.permute.xlu1 %5558  ;;  %v5626_v34 = vsel %vm13875_vm5, %v5569_v56, 0.0  ;;  %vm13888_vm5 = vcmp.eq.f32.partialorder %v12688_v22, -inf }
0x10cb   : > { %v5611_v0 = vsel %vm13872_vm3, %v5559_v32, 0.0  ;;  %vm13884_vm3 = vcmp.eq.f32.partialorder %v12656_v23, -inf }
0x10cc   : > { %5612 = vadd.xlane.f32.xlu1 %v5611_v0  ;;  %5615 = vadd.xlane.f32.xlu0 %v5614_v47 }
0x10cd   : > { %v5573_v15 = vpop.permute.xlu0 %5572 }
0x10ce   : > { %v5563_v10 = vpop.permute.xlu1 %5562  ;;  %v5632_v29 = vsel %vm13877_vm0, %v5573_v15, 0.0  ;;  %vm13890_vm0 = vcmp.eq.f32.partialorder %v12703_v45, -inf }
0x10cf   : > { %v5617_v20 = vsel %vm13874_vm11, %v5563_v10, 0.0  ;;  %vm13887_vm11 = vcmp.eq.f32.partialorder %v12663_v18, -inf }
0x10d0   : > { %5618 = vadd.xlane.f32.xlu1 %v5617_v20  ;;  %5621 = vadd.xlane.f32.xlu0 %v5620_v31 }
0x10d1   : > { %v5577_v40 = vpop.permute.xlu0 %5576 }
0x10d2   : > { %v5567_v54 = vpop.permute.xlu1 %5566  ;;  %v5638_v53 = vsel %vm13879_vm4, %v5577_v40, 0.0  ;;  %vm13892_vm4 = vmmov %vm13883_vm15 }
0x10d3   : > { %v5623_v50 = vsel %vm13876_vm7, %v5567_v54, 0.0  ;;  %vm13889_vm7 = vcmp.eq.f32.partialorder %v12682_v52, -inf }
0x10d4   : > { %5624 = vadd.xlane.f32.xlu1 %v5623_v50  ;;  %5627 = vadd.xlane.f32.xlu0 %v5626_v34 }
0x10d5   : > { %v12935_v47 = vpop.permute.xlu0 %5744 }
0x10d6   : > { %v5571_v27 = vpop.permute.xlu1 %5570 }
0x10d7   : > { %v5629_v7 = vsel %vm13878_vm14, %v5571_v27, 0.0  ;;  %vm13891_vm14 = vcmp.eq.f32.partialorder %v12697_v60, -inf }
0x10d8   : > { %5630 = vadd.xlane.f32.xlu1 %v5629_v7  ;;  %5633 = vadd.xlane.f32.xlu0 %v5632_v29 }
0x10d9   : > { %v12937_v0 = vpop.permute.xlu0 %5748 }
0x10da   : > { %v5575_v35 = vpop.permute.xlu1 %5574 }
0x10db   : > { %v5635_v8 = vsel %vm13880_vm8, %v5575_v35, 0.0  ;;  %vm13893_vm8 = vmmov %vm13885_vm6 }
0x10dc   : > { %5636 = vadd.xlane.f32.xlu1 %v5635_v8  ;;  %5639 = vadd.xlane.f32.xlu0 %v5638_v53 }
0x10de   : > { %v5579_v63 = vpop.permute.xlu1 %5578 }
0x10df   : > { %v5641_v32 = vsel %vm13881_vm12, %v5579_v63, 0.0  ;;  %vm13894_vm12 = vcmp.eq.f32.partialorder %v12717_v25, -inf }
0x10e0   : > { %5642 = vadd.xlane.f32.xlu1 %v5641_v32 }
0x10e2   : > { %v12941_v31 = vpop.permute.xlu1 %5746 }
0x10e6   : > { %v12943_v20 = vpop.permute.xlu1 %5750 }
0x10f1   : > { %5754 = vrot.lane.b32.xlu1 %v12464_v58, %s7180_s11 }
0x10f2   : > { %5752 = vrot.lane.b32.xlu0 %v12452_v6, %s7180_s11  ;;  %v5756_v6 = vsub.f32 %v12631_v13, %v12796_v38 }
0x10f4   : > { %v5772_v7 = vsel %vm13883_vm15, 0.0, %v5756_v6  ;;  %v5757_v6 = vsub.f32 %v12633_v41, %v12816_v62  ;;  %vm13896_vm15 = vmmov %vm13892_vm4 }
0x10f6   : > { %v5773_v41 = vsel %vm13892_vm4, 0.0, %v5757_v6 }
0x1140   : > { %v5598_v56 = vpop.xlane.xlu0 %5597 }
0x1141   : > { %v5644_v10 = vsel %vm13882_vm10, 1.0, %v5598_v56  ;;  %vm13895_vm10 = vcmp.eq.f32.partialorder %v12711_v46, -inf }
0x1142   : > { %7060 = vlog2.f32 %v5644_v10 }
0x114c   : > { %v7061_v15 = vpop.eup %7060 }
0x114d   : > { %v5661_v58 = vmul.f32 0.6931472, %v7061_v15  ;;  %v5601_v54 = vpop.xlane.xlu1 %5600 }
0x114e   : > { %v5645_v34 = vsel %vm5453_vm1, 1.0, %v5601_v54  ;;  %vm13886_vm1 = vcmp.eq.f32.partialorder %v12658_v2, -inf }
0x114f   : > { %v5692_v50 = vadd.f32 %v5661_v58, %v12647_v61  ;;  %7062 = vlog2.f32 %v5645_v34  ;;  %v12963_v61 = vld [vmem:[%s13202_s2] ss:$0 sm:$0xff] }
0x1151   : > { %v5708_v27 = vsub.f32 %v5692_v50, %v12796_v38  ;;  %v5604_v29 = vpop.xlane.xlu0 %5603 }
0x1152   : > { %v5646_v40 = vsel %vm13884_vm3, 1.0, %v5604_v29  ;;  %vm13897_vm3 = vmmov %vm13885_vm6 }
0x1153   : > { %v5788_v13 = vsel %vm13885_vm6, %v5708_v27, %v5772_v7  ;;  %7064 = vlog2.f32 %v5646_v40  ;;  %vm13898_vm6 = vmmov %vm13892_vm4 }
0x1154   : > { %v5804_v35 = vadd.f32 %v12963_v61, %v5788_v13 }
0x1155   : > { %v5607_v53 = vpop.xlane.xlu1 %5606  ;;  %v5610_v38 = vpop.xlane.xlu0 %5609 }
0x1156   : > { %5839 = vst [vmem:[%s12966_s26] sm:$0xff] %v5804_v35  ;;  %v5647_v8 = vsel %vm13886_vm1, 1.0, %v5607_v53  ;;  %v5648_v63 = vsel %vm13887_vm11, 1.0, %v5610_v38  ;;  %v5758_v53 = vsub.f32 %v12637_v51, %v12808_v44  ;;  %vm13899_vm1 = vmmov %vm13892_vm4  ;;  %vm13900_vm11 = vcmp.eq.f32.partialorder %v12725_v17, -inf }
0x1157   : > { %7066 = vlog2.f32 %v5647_v8  ;;  %v5760_v8 = vsub.f32 %v12635_v19, %v12826_v48 }
0x1158   : > { %7068 = vlog2.f32 %v5648_v63  ;;  %v5759_v63 = vsub.f32 %v12641_v42, %v12829_v11  ;;  %v5774_v19 = vsel %vm13896_vm15, 0.0, %v5758_v53  ;;  %v5762_v42 = vsub.f32 %v12639_v59, %v12838_v21  ;;  %vm13912_vm15 = vmmov %vm13899_vm1 }
0x1159   : > { %v7063_v32 = vpop.eup %7062  ;;  %v5613_v56 = vpop.xlane.xlu1 %5612 }
0x115a   : > { %v5616_v10 = vpop.xlane.xlu0 %5615  ;;  %v5663_v15 = vmul.f32 0.6931472, %v7063_v32  ;;  %v5649_v58 = vsel %vm13888_vm5, 1.0, %v5613_v56  ;;  %v5775_v59 = vsel %vm13899_vm1, 0.0, %v5759_v63  ;;  %vm13901_vm5 = vmmov %vm13899_vm1 }
0x115b   : > { %v5650_v54 = vsel %vm13889_vm7, 1.0, %v5616_v10  ;;  %7070 = vlog2.f32 %v5649_v58  ;;  %vm13902_vm7 = vmmov %vm13899_vm1 }
0x115c   : > { %v5693_v34 = vadd.f32 %v5663_v15, %v12669_v39  ;;  %7072 = vlog2.f32 %v5650_v54 }
0x115d   : > { %v7065_v50 = vpop.eup %7064  ;;  %v5619_v27 = vpop.xlane.xlu1 %5618 }
0x115e   : > { %v5622_v29 = vpop.xlane.xlu0 %5621  ;;  %v5709_v7 = vsub.f32 %v5693_v34, %v12816_v62  ;;  %v5665_v40 = vmul.f32 0.6931472, %v7065_v50  ;;  %v5651_v13 = vsel %vm13890_vm0, 1.0, %v5619_v27  ;;  %v5761_v34 = vsub.f32 %v12645_v43, %v12845_v36  ;;  %vm13903_vm0 = vmmov %vm13897_vm3 }
0x115f   : > { %v5652_v35 = vsel %vm13891_vm14, 1.0, %v5622_v29  ;;  %7074 = vlog2.f32 %v5651_v13  ;;  %v5776_v29 = vsel %vm13898_vm6, 0.0, %v5760_v8  ;;  %vm13905_vm14 = vcmp.eq.f32.partialorder %v12741_v37, -inf  ;;  %vm13906_vm4 = vmmov %vm13903_vm0 }
0x1160   : > { %v5789_v39 = vsel %vm13893_vm8, %v5709_v7, %v5773_v41  ;;  %v5694_v62 = vadd.f32 %v5665_v40, %v12656_v23  ;;  %7076 = vlog2.f32 %v5652_v35  ;;  %vm13908_vm8 = vmmov %vm13903_vm0 }
0x1161   : > { %v7067_v38 = vpop.eup %7066  ;;  %v5805_v51 = vadd.f32 %v12963_v61, %v5789_v39  ;;  %v5625_v32 = vpop.xlane.xlu1 %5624  ;;  %vm13914_vm6 = vmmov %vm13903_vm0 }
0x1162   : > { %v5628_v56 = vpop.xlane.xlu0 %5627  ;;  %v7069_v10 = vpop.eup %7068  ;;  %v5710_v15 = vsub.f32 %v5694_v62, %v12808_v44  ;;  %v5667_v58 = vmul.f32 0.6931472, %v7067_v38  ;;  %v5653_v54 = vsel %vm13894_vm12, 1.0, %v5625_v32  ;;  %v5778_v62 = vsel %vm13901_vm5, 0.0, %v5762_v42  ;;  %vm13909_vm12 = vmmov %vm13899_vm1 }
0x1163   : > { %v5654_v23 = vsel %vm13895_vm10, 1.0, %v5628_v56  ;;  %5840 = vst [vmem:[%s12966_s26 + $0x8] sm:$0xff] %v5805_v51  ;;  %v5669_v6 = vmul.f32 0.6931472, %v7069_v10  ;;  %7078 = vlog2.f32 %v5653_v54  ;;  %v5763_v32 = vsub.f32 %v12653_v5, %v12858_v3  ;;  %vm13910_vm10 = vmmov %vm13903_vm0 }
0x1164   : > { %v5790_v44 = vsel %vm13897_vm3, %v5710_v15, %v5774_v19  ;;  %v5695_v50 = vadd.f32 %v5667_v58, %v12658_v2  ;;  %7080 = vlog2.f32 %v5654_v23  ;;  %vm13913_vm3 = vmmov %vm13899_vm1 }
0x1165   : > { %v7071_v27 = vpop.eup %7070  ;;  %v5806_v7 = vadd.f32 %v12963_v61, %v5790_v44  ;;  %v5696_v40 = vadd.f32 %v5669_v6, %v12663_v18  ;;  %v5631_v13 = vpop.xlane.xlu1 %5630  ;;  %v5777_v18 = vsel %vm13902_vm7, 0.0, %v5761_v34  ;;  %vm13918_vm7 = vmmov %vm13903_vm0 }
0x1166   : > { %v5634_v43 = vpop.xlane.xlu0 %5633  ;;  %v7073_v35 = vpop.eup %7072  ;;  %v5711_v53 = vsub.f32 %v5695_v50, %v12829_v11  ;;  %v5671_v41 = vmul.f32 0.6931472, %v7071_v27  ;;  %v5655_v2 = vsel %vm5463_vm9, 1.0, %v5631_v13  ;;  %vm13904_vm9 = vmmov %vm13903_vm0 }
0x1167   : > { %v5656_v39 = vsel %vm13900_vm11, 1.0, %v5634_v43  ;;  %5841 = vst [vmem:[%s12966_s26 + $0x10] sm:$0xff] %v5806_v7  ;;  %v5712_v38 = vsub.f32 %v5696_v40, %v12826_v48  ;;  %v5673_v8 = vmul.f32 0.6931472, %v7073_v35  ;;  %7082 = vlog2.f32 %v5655_v2 }
0x1168   : > { %v5791_v11 = vsel %vm13903_vm0, %v5711_v53, %v5775_v59  ;;  %v5697_v63 = vadd.f32 %v5671_v41, %v12688_v22  ;;  %7084 = vlog2.f32 %v5656_v39  ;;  %v5765_v35 = vsub.f32 %v12660_v9, %v12868_v16 }
0x1169   : > { %v7075_v51 = vpop.eup %7074  ;;  %v5807_v56 = vadd.f32 %v12963_v61, %v5791_v11  ;;  %v5792_v48 = vsel %vm13904_vm9, %v5712_v38, %v5776_v29  ;;  %v5698_v10 = vadd.f32 %v5673_v8, %v12682_v52  ;;  %v5637_v15 = vpop.xlane.xlu1 %5636  ;;  %v5764_v52 = vsub.f32 %v12643_v26, %v12871_v55 }
0x116a   : > { %v5640_v58 = vpop.xlane.xlu0 %5639  ;;  %v7077_v54 = vpop.eup %7076  ;;  %v5808_v23 = vadd.f32 %v12963_v61, %v5792_v48  ;;  %v5713_v22 = vsub.f32 %v5697_v63, %v12845_v36  ;;  %v5675_v19 = vmul.f32 0.6931472, %v7075_v51  ;;  %v5657_v42 = vsel %vm5465_vm2, 1.0, %v5637_v15  ;;  %vm13907_vm2 = vmmov %vm13899_vm1 }
0x116b   : > { %5842 = vst [vmem:[%s12966_s26 + $0x18] sm:$0xff] %v5807_v56  ;;  %v5714_v5 = vsub.f32 %v5698_v10, %v12838_v21  ;;  %v5677_v6 = vmul.f32 0.6931472, %v7077_v54  ;;  %7086 = vlog2.f32 %v5657_v42  ;;  %v5658_v34 = vsel %vm13905_vm14, 1.0, %v5640_v58  ;;  %vm13915_vm1 = vmmov %vm13903_vm0 }
0x116c   : > { %5843 = vst [vmem:[%s12966_s26 + $0x20] sm:$0xff] %v5808_v23  ;;  %v5793_v36 = vsel %vm13906_vm4, %v5713_v22, %v5777_v18  ;;  %v5699_v44 = vadd.f32 %v5675_v19, %v12703_v45  ;;  %7088 = vlog2.f32 %v5658_v34  ;;  %v5779_v21 = vsel %vm13907_vm2, 0.0, %v5763_v32  ;;  %vm13916_vm11 = vmmov %vm13907_vm2 }
0x116d   : > { %v7079_v50 = vpop.eup %7078  ;;  %v5809_v27 = vadd.f32 %v12963_v61, %v5793_v36  ;;  %v5794_v29 = vsel %vm13908_vm8, %v5714_v5, %v5778_v62  ;;  %v5700_v26 = vadd.f32 %v5677_v6, %v12697_v60  ;;  %v5643_v59 = vpop.xlane.xlu1 %5642  ;;  %v5780_v60 = vsel %vm13909_vm12, 0.0, %v5764_v52  ;;  %vm13917_vm5 = vmmov %vm13907_vm2 }
0x116e   : > { %v7081_v7 = vpop.eup %7080  ;;  %v5810_v40 = vadd.f32 %v12963_v61, %v5794_v29  ;;  %v5715_v13 = vsub.f32 %v5699_v44, %v12858_v3  ;;  %v5679_v45 = vmul.f32 0.6931472, %v7079_v50  ;;  %v5659_v43 = vsel %vm5467_vm13, 1.0, %v5643_v59  ;;  %vm13911_vm13 = vmmov %vm13903_vm0  ;;  %v5753_v58 = vpop.permute.xlu0 %5752 }
0x116f   : > { %5844 = vst [vmem:[%s12966_s26 + $0x28] sm:$0xff] %v5809_v27  ;;  %v5716_v53 = vsub.f32 %v5700_v26, %v12871_v55  ;;  %v5681_v41 = vmul.f32 0.6931472, %v7081_v7  ;;  %7090 = vlog2.f32 %v5659_v43  ;;  %v5766_v2 = vsub.f32 %v12935_v47, %v12883_v49  ;;  %vm13919_vm9 = vmmov %vm13907_vm2 }
0x1170   : > { %5845 = vst [vmem:[%s12966_s26 + $0x30] sm:$0xff] %v5810_v40  ;;  %v5795_v3 = vsel %vm13910_vm10, %v5715_v13, %v5779_v21  ;;  %v5701_v39 = vadd.f32 %v5679_v45, %v12717_v25  ;;  %v5781_v63 = vsel %vm13912_vm15, 0.0, %v5765_v35  ;;  %v5767_v25 = vsub.f32 %v12941_v31, %v12878_v4  ;;  %vm13920_vm14 = vmmov %vm13903_vm0 }
0x1171   : > { %v7083_v9 = vpop.eup %7082  ;;  %v5811_v62 = vadd.f32 %v12963_v61, %v5795_v3  ;;  %v5796_v55 = vsel %vm13911_vm13, %v5716_v53, %v5780_v60  ;;  %v5702_v38 = vadd.f32 %v5681_v41, %v12711_v46  ;;  %v5782_v56 = vsel %vm13913_vm3, 0.0, %v5766_v2  ;;  %v5755_v52 = vpop.permute.xlu1 %5754  ;;  %vm13921_vm4 = vmmov %vm13907_vm2 }
0x1172   : > { %v7085_v8 = vpop.eup %7084  ;;  %v5812_v18 = vadd.f32 %v12963_v61, %v5796_v55  ;;  %v5717_v47 = vsub.f32 %v5701_v39, %v12868_v16  ;;  %v5683_v11 = vmul.f32 0.6931472, %v7083_v9  ;;  %v5768_v46 = vsub.f32 %v12937_v0, %v12895_v30  ;;  %vm13922_vm2 = vmmov %vm13903_vm0 }
0x1173   : > { %5846 = vst [vmem:[%s12966_s26 + $0x38] sm:$0xff] %v5811_v62  ;;  %v5718_v51 = vsub.f32 %v5702_v38, %v12883_v49  ;;  %v5685_v32 = vmul.f32 0.6931472, %v7085_v8  ;;  %v5783_v19 = vsel %vm13916_vm11, 0.0, %v5767_v25  ;;  %v5770_v34 = vsub.f32 %v5753_v58, %v12907_v28  ;;  %vm13923_vm8 = vmmov %vm13913_vm3 }
0x1174   : > { %5847 = vst [vmem:[%s12966_s26 + $0x40] sm:$0xff] %v5812_v18  ;;  %v5797_v16 = vsel %vm13914_vm6, %v5717_v47, %v5781_v63  ;;  %v5703_v48 = vadd.f32 %v5683_v11, %v12731_v1  ;;  %v5769_v1 = vsub.f32 %v12943_v20, %v12890_v14  ;;  %v5771_v26 = vsub.f32 %v5755_v52, %v12902_v57  ;;  %vm13924_vm12 = vmmov %vm13903_vm0 }
0x1175   : > { %v7087_v10 = vpop.eup %7086  ;;  %v5813_v31 = vadd.f32 %v12963_v61, %v5797_v16  ;;  %v5798_v49 = vsel %vm13915_vm1, %v5718_v51, %v5782_v56  ;;  %v5704_v15 = vadd.f32 %v5685_v32, %v12725_v17  ;;  %v5784_v17 = vsel %vm13917_vm5, 0.0, %v5768_v46 }
0x1176   : > { %v7089_v54 = vpop.eup %7088  ;;  %v5814_v23 = vadd.f32 %v12963_v61, %v5798_v49  ;;  %v5719_v0 = vsub.f32 %v5703_v48, %v12878_v4  ;;  %v5687_v22 = vmul.f32 0.6931472, %v7087_v10 }
0x1177   : > { %5848 = vst [vmem:[%s12966_s26 + $0x48] sm:$0xff] %v5813_v31  ;;  %v5720_v42 = vsub.f32 %v5704_v15, %v12895_v30  ;;  %v5689_v5 = vmul.f32 0.6931472, %v7089_v54 }
0x1178   : > { %5849 = vst [vmem:[%s12966_s26 + $0x50] sm:$0xff] %v5814_v23  ;;  %v5799_v4 = vsel %vm13918_vm7, %v5719_v0, %v5783_v19  ;;  %v5705_v6 = vadd.f32 %v5687_v22, %v12747_v12  ;;  %v5785_v12 = vsel %vm13919_vm9, 0.0, %v5769_v1 }
0x1179   : > { %v7091_v36 = vpop.eup %7090  ;;  %v5815_v20 = vadd.f32 %v12963_v61, %v5799_v4  ;;  %v5800_v30 = vsel %vm13903_vm0, %v5720_v42, %v5784_v17  ;;  %v5706_v44 = vadd.f32 %v5689_v5, %v12741_v37 }
0x117a   : > { %v5816_v50 = vadd.f32 %v12963_v61, %v5800_v30  ;;  %v5721_v21 = vsub.f32 %v5705_v6, %v12890_v14  ;;  %v5691_v27 = vmul.f32 0.6931472, %v7091_v36  ;;  %v5786_v14 = vsel %vm13921_vm4, 0.0, %v5770_v34 }
0x117b   : > { %5850 = vst [vmem:[%s12966_s26 + $0x58] sm:$0xff] %v5815_v20  ;;  %v5722_v29 = vsub.f32 %v5706_v44, %v12907_v28 }
0x117c   : > { %5851 = vst [vmem:[%s12966_s26 + $0x60] sm:$0xff] %v5816_v50  ;;  %v5801_v59 = vsel %vm13920_vm14, %v5721_v21, %v5785_v12  ;;  %v5707_v37 = vadd.f32 %v5691_v27, %v12760_v24  ;;  %v5787_v24 = vsel %vm13923_vm8, 0.0, %v5771_v26 }
0x117d   : > { %v5817_v7 = vadd.f32 %v12963_v61, %v5801_v59  ;;  %v5802_v40 = vsel %vm13922_vm2, %v5722_v29, %v5786_v14 }
0x117e   : > { %v5818_v28 = vadd.f32 %v12963_v61, %v5802_v40  ;;  %v5723_v13 = vsub.f32 %v5707_v37, %v12902_v57 }
0x117f   : > { %5852 = vst [vmem:[%s12966_s26 + $0x68] sm:$0xff] %v5817_v7 }
0x1180   : > { %5853 = vst [vmem:[%s12966_s26 + $0x70] sm:$0xff] %v5818_v28  ;;  %v5803_v45 = vsel %vm13924_vm12, %v5723_v13, %v5787_v24 }
0x1181   : > { %v5819_v57 = vadd.f32 %v12963_v61, %v5803_v45 }
0x1183   : > { %5854 = vst [vmem:[%s12966_s26 + $0x78] sm:$0xff] %v5819_v57 }
0x1184   : > { %7112 = shalt.err (!%p7109_p5)
}
0x1185   : > { %s7113_s22 = scalar_lea.hbm %s13146_s7, 2048  ;;  %s7117_s10 = scalar_lea.hbm %s13204_s4, 4096 }
0x1186   : > { %p7114_p6 = scmp.ne.s32.totalorder %s13146_s7, %s7113_s22  ;;  %p7118_p10 = scmp.lt.u32.totalorder %s13146_s7, %s13204_s4 }
0x1187   : > { %p7119_p11 = scmp.lt.u32.totalorder %s7117_s10, %s7113_s22  ;;  %p7121_p13 = scmp.lt.u32.totalorder %s7113_s22, %s13146_s7 }
0x1188   : > { %p7115_p7 = pnand %p7114_p6, %p7249_p4 }
0x1189   : > { %p7120_p12 = por %p7119_p11, %p7118_p10 }
0x118a   : > { %p7116_p9 = pneg %p7115_p7 }
0x118b   : > { %p7122_p0 = por %p7121_p13, %p7120_p12 }
0x118d   : > { %p7123_p1 = pnand %p7122_p0, %p7116_p9 }
0x118f   : > { %7126 = shalt.err (!%p7123_p1)
}
0x1190   : > { %s7182_s26 = smov 128   ;;  %s7183_s29 = smov 8  }
0x1191   : > { %6009 = dma.vmem_to_hbm [thread:$0]  (%p7249_p4), %s13148_s30, 2048, %s13146_s7, %s13154_s18, %s7182_s26, %s7182_s26, %s7183_s29  }
0x1192 PF: > { %p6015_p2 = scmp.ge.s32.totalorder %s7177_s20, 2  ;;  %s5907_s5 = sand.u32 1, %s7157_s15  }
0x1193   : > { %s5908_s6 = scalar_lea.sflag [#allocation4], %s5907_s5 }
0x1194   : > { %p6012_p3 = pnand %p6015_p2, %p7256_p8 }
0x1196   : > { %7152 = dma.done.wait (!%p6012_p3), %s5908_s6, 2048  }
0x1197   : > { %7154 = vsyncadd (!%p6012_p3), %s5908_s6, 4294965248  ;;  %s18_s20 = sadd.s32 1, %s7177_s20   ;;  %s13925_s15 = smov %s7161_s16 }
0x1198   : > { %p15_p5 = scmp.ge.s32.totalorder %s18_s20, 4   ;;  %s13926_s16 = smov %s7165_s17 }
0x1199   : > { %s13927_s17 = smov %s7262_s28  ;;  %s13928_s18 = smov %s7173_s19 }
0x119a   : > { %s13929_s19 = smov %s13931_s23  ;;  %17 = sbr.rel (!%p15_p5) target bundleno = 4 (0x4), region = 87 }
0x11a1   :  { %5913 = vsyncpa [#allocation4], 1 }
0x11a2   :  { %5915 = vsyncpa [#allocation4 + $0x1], 1 }

</bundles_post_ra>
